<compile_context>
chip_gen: v7x
topology: tpu7x:2x2x1
jax: 0.10.0
libtpu: 0.0.40
codegen_flags: <defaults>
</compile_context>

<pallas_src>
import math
import jax
import jax.numpy as jnp
from jax.experimental import pallas as pl
from jax.experimental.pallas import tpu as pltpu


def _round_up(x, m):
    return (x + m - 1) // m * m


# ----------------------------------------------------------------------------
# Pallas kernels
# ----------------------------------------------------------------------------
def _make_matmul_kernel(relu: bool, with_res: bool):
    """Fused (patches @ W_scaled) [K-accumulated] + bias [+ residual] [ReLU]."""

    def kernel(*refs):
        if with_res:
            p_ref, w_ref, b_ref, r_ref, o_ref, acc_ref = refs
        else:
            p_ref, w_ref, b_ref, o_ref, acc_ref = refs
            r_ref = None
        k = pl.program_id(2)

        @pl.when(k == 0)
        def _init():
            acc_ref[...] = jnp.zeros_like(acc_ref)

        # bf16 x bf16 -> f32 accumulate on the MXU.
        acc_ref[...] += jnp.dot(p_ref[...], w_ref[...],
                                preferred_element_type=jnp.float32)

        @pl.when(k == pl.num_programs(2) - 1)
        def _finalize():
            y = acc_ref[...] + b_ref[...]
            if with_res:
                y = y + r_ref[...].astype(jnp.float32)
            if relu:
                y = jnp.maximum(y, 0.0)
            o_ref[...] = y.astype(o_ref.dtype)

    return kernel


def _maxpool9_kernel(*refs):
    # 9 window-tap inputs, 1 output; elementwise max on the VPU.
    o_ref = refs[-1]
    m = refs[0][...]
    for r in refs[1:-1]:
        m = jnp.maximum(m, r[...])
    o_ref[...] = m


# ----------------------------------------------------------------------------
# Tiling helpers
# ----------------------------------------------------------------------------
def _k_tiling(K, tn, target_bytes=1 << 20):
    """Pick a K tile so one bf16 weight block (tk, tn) stays ~<= target_bytes."""
    if K * tn * 2 <= target_bytes:
        return K, K                       # single K block (block dim == full K)
    tk_max = max(128, (target_bytes // (tn * 2)) // 128 * 128)
    nk = -(-K // tk_max)                  # ceil
    tk = _round_up(-(-K // nk), 128)      # balanced, 128-aligned tiles
    return tk, nk * tk


# ----------------------------------------------------------------------------
# Fused matmul + bias (+ residual) (+ ReLU) pallas_call wrapper
# ----------------------------------------------------------------------------
def _matmul_bn_act(patches, wmat, bias, *, relu, residual=None,
                   out_dtype=jnp.bfloat16):
    """patches: (M, K); wmat: (K, Cout) with BN scale pre-folded; bias: (Cout,)."""
    M, K = patches.shape
    Kw, Cout = wmat.shape
    assert Kw == K

    # Right-size the row tile (16-row granularity for bf16 sublane packing).
    tm = min(128, _round_up(M, 16))
    Mp = _round_up(M, tm)
    # Lane tile: 128 keeps output stores lane-dense and gives >=2 parallel
    # blocks on the wide layers (v7x megacore).  Cout=64 stays full-width.
    tn = Cout if Cout <= 128 else 128
    tk, Kp = _k_tiling(K, tn)

    patches = patches.astype(jnp.bfloat16)
    wmat = wmat.astype(jnp.bfloat16)
    if Mp > M:
        patches = jnp.pad(patches, ((0, Mp - M), (0, 0)))
    if Kp > K:
        patches = jnp.pad(patches, ((0, 0), (0, Kp - K)))
        wmat = jnp.pad(wmat, ((0, Kp - K), (0, 0)))
    bias2 = bias.reshape(1, Cout).astype(jnp.float32)

    inputs = [patches, wmat, bias2]
    in_specs = [
        pl.BlockSpec((tm, tk), lambda i, j, k: (i, k)),
        pl.BlockSpec((tk, tn), lambda i, j, k: (k, j)),
        pl.BlockSpec((1, tn), lambda i, j, k: (0, j)),
    ]
    if residual is not None:
        r = residual.reshape(M, Cout).astype(jnp.bfloat16)
        if Mp > M:
            r = jnp.pad(r, ((0, Mp - M), (0, 0)))
        inputs.append(r)
        in_specs.append(pl.BlockSpec((tm, tn), lambda i, j, k: (i, j)))

    # VMEM budget from the actual (double-buffered) block sizes; always well
    # under v7x's 64 MiB physical VMEM (and trivially fine on v5e/v6e).
    blk = (2 * tm * tk * 2          # patches (bf16, x2 pipeline buffers)
           + 2 * tk * tn * 2        # weights
           + 2 * tn * 4             # bias
           + 2 * tm * tn * 2        # output
           + tm * tn * 4)           # f32 accumulator scratch
    if residual is not None:
        blk += 2 * tm * tn * 2
    vmem_limit = int(min(max(4 * blk, 4 << 20), 48 << 20))

    grid = (Mp // tm, Cout // tn, Kp // tk)
    out = pl.pallas_call(
        _make_matmul_kernel(relu, residual is not None),
        out_shape=jax.ShapeDtypeStruct((Mp, Cout), out_dtype),
        grid=grid,
        in_specs=in_specs,
        out_specs=pl.BlockSpec((tm, tn), lambda i, j, k: (i, j)),
        scratch_shapes=[pltpu.VMEM((tm, tn), jnp.float32)],
        compiler_params=pltpu.CompilerParams(
            dimension_semantics=("parallel", "parallel", "arbitrary"),
            vmem_limit_bytes=vmem_limit,
        ),
    )(*inputs)
    return out[:M]


# ----------------------------------------------------------------------------
# im2col / weight folding glue (plain JAX, kept in bf16)
# ----------------------------------------------------------------------------
def _im2col(x, KH, KW, stride, dilation, padding):
    """x: (N,H,W,Cin) -> patches (N*OH*OW, KH*KW*Cin) ordered (kh, kw, cin)."""
    N, H, W_, Cin = x.shape
    OH = (H + 2 * padding - dilation * (KH - 1) - 1) // stride + 1
    OW = (W_ + 2 * padding - dilation * (KW - 1) - 1) // stride + 1
    if padding > 0:
        x = jnp.pad(x, ((0, 0), (padding, padding), (padding, padding), (0, 0)))
    if KH == 1 and KW == 1:
        p = x[:, :(OH - 1) * stride + 1:stride, :(OW - 1) * stride + 1:stride, :]
        return p.reshape(N * OH * OW, Cin), (N, OH, OW)
    cols = []
    for kh in range(KH):
        for kw in range(KW):
            h0 = kh * dilation
            w0 = kw * dilation
            cols.append(x[:, h0:h0 + (OH - 1) * stride + 1:stride,
                             w0:w0 + (OW - 1) * stride + 1:stride, :])
    patches = jnp.stack(cols, axis=3).reshape(N * OH * OW, KH * KW * Cin)
    return patches, (N, OH, OW)


def _fold_weight(w, scale):
    """(Cout,Cin,KH,KW) -> (KH*KW*Cin, Cout) with BN scale folded in, bf16."""
    Cout = w.shape[0]
    wmat = jnp.transpose(w, (2, 3, 1, 0)).reshape(-1, Cout)
    return (wmat * scale.reshape(1, Cout)).astype(jnp.bfloat16)


def conv_bn(x, w, bn, *, stride, dilation, padding, relu, residual=None):
    scale, bias = bn
    patches, (N, OH, OW) = _im2col(x, w.shape[2], w.shape[3],
                                   stride, dilation, padding)
    wmat = _fold_weight(w, scale)
    out = _matmul_bn_act(patches, wmat, bias, relu=relu, residual=residual)
    return out.reshape(N, OH, OW, w.shape[0])


# ----------------------------------------------------------------------------
# MaxPool2d(kernel=3, stride=2, padding=1): 9 tiled taps, parallel grid over M
# ----------------------------------------------------------------------------
def maxpool3x3s2p1(x):
    N, H, W_, C = x.shape
    OH = (H + 2 - 3) // 2 + 1
    OW = (W_ + 2 - 3) // 2 + 1
    neg = jnp.finfo(x.dtype).min
    xp = jnp.pad(x, ((0, 0), (1, 1), (1, 1), (0, 0)), constant_values=neg)

    M = N * OH * OW
    tm = min(128, _round_up(M, 16))
    Mp = _round_up(M, tm)

    taps = []
    for kh in range(3):
        for kw in range(3):
            t = xp[:, kh:kh + (OH - 1) * 2 + 1:2,
                      kw:kw + (OW - 1) * 2 + 1:2, :].reshape(M, C)
            if Mp > M:
                t = jnp.pad(t, ((0, Mp - M), (0, 0)), constant_values=neg)
            taps.append(t)

    out = pl.pallas_call(
        _maxpool9_kernel,
        out_shape=jax.ShapeDtypeStruct((Mp, C), x.dtype),
        grid=(Mp // tm,),
        in_specs=[pl.BlockSpec((tm, C), lambda i: (i, 0)) for _ in range(9)],
        out_specs=pl.BlockSpec((tm, C), lambda i: (i, 0)),
        compiler_params=pltpu.CompilerParams(
            dimension_semantics=("parallel",)),
    )(*taps)
    return out[:M].reshape(N, OH, OW, C)


# ----------------------------------------------------------------------------
# Parameter init (deterministic, mirrors the PyTorch __init__)
# ----------------------------------------------------------------------------
def _kaiming(key, cout, cin, kh, kw):
    # kaiming_normal_(mode='fan_out', nonlinearity='relu')
    fan_out = cout * kh * kw
    std = math.sqrt(2.0 / fan_out)
    return jax.random.normal(key, (cout, cin, kh, kw), jnp.float32) * std


def _init_bn(c, eps=1e-5):
    gamma = jnp.ones((c,), jnp.float32)
    beta = jnp.zeros((c,), jnp.float32)
    mean = jnp.zeros((c,), jnp.float32)
    var = jnp.ones((c,), jnp.float32)
    scale = gamma / jnp.sqrt(var + eps)
    bias = beta - mean * scale
    return scale, bias


def build_params(key, layers=(1, 1, 1, 1), strides=(1, 2, 2, 2),
                 dilations=(1, 1, 1, 1)):
    keys = iter(jax.random.split(key, 256))
    params = {
        'conv1_w': _kaiming(next(keys), 64, 3, 7, 7),
        'bn1': _init_bn(64),
        'layers': [],
    }
    inplanes = 64
    for planes, nblocks, stride, dil in zip((64, 128, 256, 512), layers,
                                            strides, dilations):
        layer_blocks = []
        for bi in range(nblocks):
            s = stride if bi == 0 else 1
            d = dil if bi == 0 else 1
            bp = {
                'stride': s,
                'dilation': d,
                'conv1_w': _kaiming(next(keys), planes, inplanes, 3, 3),
                'bn1': _init_bn(planes),
                'conv2_w': _kaiming(next(keys), planes, planes, 3, 3),
                'bn2': _init_bn(planes),
            }
            if s != 1 or inplanes != planes:      # BasicBlock.expansion == 1
                bp['ds_w'] = _kaiming(next(keys), planes, inplanes, 1, 1)
                bp['bnds'] = _init_bn(planes)
            inplanes = planes
            layer_blocks.append(bp)
        params['layers'].append(layer_blocks)
    return params


# ----------------------------------------------------------------------------
# Forward pass
# ----------------------------------------------------------------------------
def basic_block_fwd(x, bp):
    s, d = bp['stride'], bp['dilation']
    out = conv_bn(x, bp['conv1_w'], bp['bn1'],
                  stride=s, dilation=d, padding=d, relu=True)
    if 'ds_w' in bp:
        # Fuse the 1x1 downsample conv into conv2's matmul (concat along K):
        #   relu(P2@W2 + b2 + Pd@Wd + bd) == relu([P2|Pd] @ [[W2],[Wd]] + (b2+bd))
        p2, (N, OH, OW) = _im2col(out, 3, 3, 1, d, d)
        pd, _ = _im2col(x, 1, 1, s, 1, 0)
        patches = jnp.concatenate([p2, pd], axis=1)
        wmat = jnp.concatenate(
            [_fold_weight(bp['conv2_w'], bp['bn2'][0]),
             _fold_weight(bp['ds_w'], bp['bnds'][0])], axis=0)
        bias = bp['bn2'][1] + bp['bnds'][1]
        y = _matmul_bn_act(patches, wmat, bias, relu=True)
        return y.reshape(N, OH, OW, bp['conv2_w'].shape[0])
    # Identity residual (stride 1, same width): fused add inside the kernel.
    return conv_bn(out, bp['conv2_w'], bp['bn2'],
                   stride=1, dilation=d, padding=d, relu=True, residual=x)


def dilated_resnet_forward(params, x_nchw):
    # NCHW -> NHWC, bf16 activations internally, f32 NCHW out.
    x = jnp.transpose(x_nchw, (0, 2, 3, 1)).astype(jnp.bfloat16)
    x = conv_bn(x, params['conv1_w'], params['bn1'],
                stride=2, dilation=1, padding=3, relu=True)
    x = maxpool3x3s2p1(x)
    for layer_blocks in params['layers']:
        for bp in layer_blocks:
            x = basic_block_fwd(x, bp)
    return jnp.transpose(x.astype(jnp.float32), (0, 3, 1, 2))


if __name__ == "__main__":
    key = jax.random.PRNGKey(0)
    pkey, xkey = jax.random.split(key)
    params = build_params(pkey, layers=(1, 1, 1, 1),
                          strides=(1, 2, 2, 2), dilations=(1, 1, 1, 1))
    x = jax.random.normal(xkey, (2, 3, 32, 32), jnp.float32)  # NCHW, like PyTorch

    # jit with params closed over: weight folding constant-folds at compile time
    # and the im2col / concat glue fuses around the pallas_calls.
    fwd = jax.jit(lambda inp: dilated_resnet_forward(params, inp))
    y = jax.block_until_ready(fwd(x))

    assert y.shape == (2, 512, 1, 1), y.shape
    assert bool(jnp.all(jnp.isfinite(y)))
    print("KERNEL_OK")
</pallas_src>

<mosaic_0001>
module attributes {stable_mosaic.version = 11 : i64} {
  func.func @kernel(%arg0: i32, %arg1: i32, %arg2: i32, %arg3: memref<128x147xbf16, #tpu.memory_space<vmem>>, %arg4: memref<147x64xbf16, #tpu.memory_space<vmem>>, %arg5: memref<1x64xf32, #tpu.memory_space<vmem>>, %arg6: memref<128x64xbf16, #tpu.memory_space<vmem>>, %arg7: memref<128x64xf32, #tpu.memory_space<vmem>>) attributes {dimension_semantics = [#tpu.dimension_semantics<parallel>, #tpu.dimension_semantics<parallel>, #tpu.dimension_semantics<arbitrary>], iteration_bounds = array<i64: 4, 1, 1>, scalar_prefetch = 0 : i64, scratch_operands = 1 : i64, tpu.core_type = #tpu.core_type<tc>, window_params = [{transform_indices = @transform_0, window_bounds = array<i64: 128, 147>}, {transform_indices = @transform_1, window_bounds = array<i64: 147, 64>}, {transform_indices = @transform_2, window_bounds = array<i64: 1, 64>}, {transform_indices = @transform_3, window_bounds = array<i64: 128, 64>}]} {
    %c0_i32 = arith.constant 0 : i32
    %0 = arith.cmpi eq, %arg2, %c0_i32 : i32
    %1 = arith.extui %0 : i1 to i32
    %c0_i32_0 = arith.constant 0 : i32
    %2 = arith.cmpi ne, %1, %c0_i32_0 : i32
    scf.if %2 {
      %cst_10 = arith.constant 0.000000e+00 : f32
      %12 = vector.broadcast %cst_10 : f32 to vector<128x64xf32>
      %c0_11 = arith.constant 0 : index
      %c0_12 = arith.constant 0 : index
      %13 = vector.load %arg7[%c0_11, %c0_12] : memref<128x64xf32, #tpu.memory_space<vmem>>, vector<128x64xf32>
      tpu.vector_store %arg7[%c0_11, %c0_12], %12 {strides = array<i32>} : memref<128x64xf32, #tpu.memory_space<vmem>>, vector<128x64xf32>,
    } else {
    }
    %c0 = arith.constant 0 : index
    %c0_1 = arith.constant 0 : index
    %3 = vector.load %arg7[%c0, %c0_1] : memref<128x64xf32, #tpu.memory_space<vmem>>, vector<128x64xf32>
    %c0_2 = arith.constant 0 : index
    %c0_3 = arith.constant 0 : index
    %4 = vector.load %arg3[%c0_2, %c0_3] : memref<128x147xbf16, #tpu.memory_space<vmem>>, vector<128x147xbf16>
    %c0_4 = arith.constant 0 : index
    %c0_5 = arith.constant 0 : index
    %5 = vector.load %arg4[%c0_4, %c0_5] : memref<147x64xbf16, #tpu.memory_space<vmem>>, vector<147x64xbf16>
    %cst = arith.constant dense<0.000000e+00> : vector<128x64xf32>
    %6 = tpu.matmul %4, %5, %cst {dimension_numbers = #tpu.dot_dimension_numbers<[1], [0], [0], [1], [0, 0, 1, 1], [], []>} : vector<128x147xbf16>, vector<147x64xbf16>, vector<128x64xf32> -> vector<128x64xf32>
    %7 = arith.addf %3, %6 : vector<128x64xf32>
    %c0_6 = arith.constant 0 : index
    %c0_7 = arith.constant 0 : index
    %8 = vector.load %arg7[%c0_6, %c0_7] : memref<128x64xf32, #tpu.memory_space<vmem>>, vector<128x64xf32>
    tpu.vector_store %arg7[%c0_6, %c0_7], %7 {strides = array<i32>} : memref<128x64xf32, #tpu.memory_space<vmem>>, vector<128x64xf32>,
    %c0_i32_8 = arith.constant 0 : i32
    %9 = arith.cmpi eq, %arg2, %c0_i32_8 : i32
    %10 = arith.extui %9 : i1 to i32
    %c0_i32_9 = arith.constant 0 : i32
    %11 = arith.cmpi ne, %10, %c0_i32_9 : i32
    scf.if %11 {
      %c0_10 = arith.constant 0 : index
      %c0_11 = arith.constant 0 : index
      %12 = vector.load %arg7[%c0_10, %c0_11] : memref<128x64xf32, #tpu.memory_space<vmem>>, vector<128x64xf32>
      %c0_12 = arith.constant 0 : index
      %c0_13 = arith.constant 0 : index
      %13 = vector.load %arg5[%c0_12, %c0_13] : memref<1x64xf32, #tpu.memory_space<vmem>>, vector<1x64xf32>
      %14 = vector.broadcast %13 : vector<1x64xf32> to vector<128x64xf32>
      %15 = arith.addf %12, %14 : vector<128x64xf32>
      %cst_14 = arith.constant 0.000000e+00 : f32
      %16 = vector.broadcast %cst_14 : f32 to vector<128x64xf32>
      %17 = arith.maximumf %15, %16 : vector<128x64xf32>
      %18 = arith.truncf %17 : vector<128x64xf32> to vector<128x64xbf16>
      %c0_15 = arith.constant 0 : index
      %c0_16 = arith.constant 0 : index
      %19 = vector.load %arg6[%c0_15, %c0_16] : memref<128x64xbf16, #tpu.memory_space<vmem>>, vector<128x64xbf16>
      tpu.vector_store %arg6[%c0_15, %c0_16], %18 {strides = array<i32>} : memref<128x64xbf16, #tpu.memory_space<vmem>>, vector<128x64xbf16>,
    } else {
    }
    return
  }
  func.func @transform_0(%arg0: i32, %arg1: i32, %arg2: i32) -> (i32, i32) {
    %c0_i32 = arith.constant 0 : i32
    return %arg0, %arg2 : i32, i32
  }
  func.func @transform_1(%arg0: i32, %arg1: i32, %arg2: i32) -> (i32, i32) {
    %c0_i32 = arith.constant 0 : i32
    return %arg2, %arg1 : i32, i32
  }
  func.func @transform_2(%arg0: i32, %arg1: i32, %arg2: i32) -> (i32, i32) {
    %c0_i32 = arith.constant 0 : i32
    %c0_i32_0 = arith.constant 0 : i32
    return %c0_i32, %arg1 : i32, i32
  }
  func.func @transform_3(%arg0: i32, %arg1: i32, %arg2: i32) -> (i32, i32) {
    %c0_i32 = arith.constant 0 : i32
    return %arg0, %arg1 : i32, i32
  }
}

module attributes {stable_mosaic.version = 11 : i64} {
  func.func @_maxpool9_kernel(%arg0: i32, %arg1: memref<128x64xbf16, #tpu.memory_space<vmem>>, %arg2: memref<128x64xbf16, #tpu.memory_space<vmem>>, %arg3: memref<128x64xbf16, #tpu.memory_space<vmem>>, %arg4: memref<128x64xbf16, #tpu.memory_space<vmem>>, %arg5: memref<128x64xbf16, #tpu.memory_space<vmem>>, %arg6: memref<128x64xbf16, #tpu.memory_space<vmem>>, %arg7: memref<128x64xbf16, #tpu.memory_space<vmem>>, %arg8: memref<128x64xbf16, #tpu.memory_space<vmem>>, %arg9: memref<128x64xbf16, #tpu.memory_space<vmem>>, %arg10: memref<128x64xbf16, #tpu.memory_space<vmem>>) attributes {dimension_semantics = [#tpu.dimension_semantics<parallel>], iteration_bounds = array<i64: 1>, scalar_prefetch = 0 : i64, scratch_operands = 0 : i64, tpu.core_type = #tpu.core_type<tc>, window_params = [{transform_indices = @transform_0, window_bounds = array<i64: 128, 64>}, {transform_indices = @transform_1, window_bounds = array<i64: 128, 64>}, {transform_indices = @transform_2, window_bounds = array<i64: 128, 64>}, {transform_indices = @transform_3, window_bounds = array<i64: 128, 64>}, {transform_indices = @transform_4, window_bounds = array<i64: 128, 64>}, {transform_indices = @transform_5, window_bounds = array<i64: 128, 64>}, {transform_indices = @transform_6, window_bounds = array<i64: 128, 64>}, {transform_indices = @transform_7, window_bounds = array<i64: 128, 64>}, {transform_indices = @transform_8, window_bounds = array<i64: 128, 64>}, {transform_indices = @transform_9, window_bounds = array<i64: 128, 64>}]} {
    %c0 = arith.constant 0 : index
    %c0_0 = arith.constant 0 : index
    %0 = vector.load %arg1[%c0, %c0_0] : memref<128x64xbf16, #tpu.memory_space<vmem>>, vector<128x64xbf16>
    %c0_1 = arith.constant 0 : index
    %c0_2 = arith.constant 0 : index
    %1 = vector.load %arg2[%c0_1, %c0_2] : memref<128x64xbf16, #tpu.memory_space<vmem>>, vector<128x64xbf16>
    %2 = arith.maximumf %0, %1 : vector<128x64xbf16>
    %c0_3 = arith.constant 0 : index
    %c0_4 = arith.constant 0 : index
    %3 = vector.load %arg3[%c0_3, %c0_4] : memref<128x64xbf16, #tpu.memory_space<vmem>>, vector<128x64xbf16>
    %4 = arith.maximumf %2, %3 : vector<128x64xbf16>
    %c0_5 = arith.constant 0 : index
    %c0_6 = arith.constant 0 : index
    %5 = vector.load %arg4[%c0_5, %c0_6] : memref<128x64xbf16, #tpu.memory_space<vmem>>, vector<128x64xbf16>
    %6 = arith.maximumf %4, %5 : vector<128x64xbf16>
    %c0_7 = arith.constant 0 : index
    %c0_8 = arith.constant 0 : index
    %7 = vector.load %arg5[%c0_7, %c0_8] : memref<128x64xbf16, #tpu.memory_space<vmem>>, vector<128x64xbf16>
    %8 = arith.maximumf %6, %7 : vector<128x64xbf16>
    %c0_9 = arith.constant 0 : index
    %c0_10 = arith.constant 0 : index
    %9 = vector.load %arg6[%c0_9, %c0_10] : memref<128x64xbf16, #tpu.memory_space<vmem>>, vector<128x64xbf16>
    %10 = arith.maximumf %8, %9 : vector<128x64xbf16>
    %c0_11 = arith.constant 0 : index
    %c0_12 = arith.constant 0 : index
    %11 = vector.load %arg7[%c0_11, %c0_12] : memref<128x64xbf16, #tpu.memory_space<vmem>>, vector<128x64xbf16>
    %12 = arith.maximumf %10, %11 : vector<128x64xbf16>
    %c0_13 = arith.constant 0 : index
    %c0_14 = arith.constant 0 : index
    %13 = vector.load %arg8[%c0_13, %c0_14] : memref<128x64xbf16, #tpu.memory_space<vmem>>, vector<128x64xbf16>
    %14 = arith.maximumf %12, %13 : vector<128x64xbf16>
    %c0_15 = arith.constant 0 : index
    %c0_16 = arith.constant 0 : index
    %15 = vector.load %arg9[%c0_15, %c0_16] : memref<128x64xbf16, #tpu.memory_space<vmem>>, vector<128x64xbf16>
    %16 = arith.maximumf %14, %15 : vector<128x64xbf16>
    %c0_17 = arith.constant 0 : index
    %c0_18 = arith.constant 0 : index
    %17 = vector.load %arg10[%c0_17, %c0_18] : memref<128x64xbf16, #tpu.memory_space<vmem>>, vector<128x64xbf16>
    tpu.vector_store %arg10[%c0_17, %c0_18], %16 {strides = array<i32>} : memref<128x64xbf16, #tpu.memory_space<vmem>>, vector<128x64xbf16>,
    return
  }
  func.func @transform_0(%arg0: i32) -> (i32, i32) {
    %c0_i32 = arith.constant 0 : i32
    %c0_i32_0 = arith.constant 0 : i32
    return %arg0, %c0_i32 : i32, i32
  }
  func.func @transform_1(%arg0: i32) -> (i32, i32) {
    %c0_i32 = arith.constant 0 : i32
    %c0_i32_0 = arith.constant 0 : i32
    return %arg0, %c0_i32 : i32, i32
  }
  func.func @transform_2(%arg0: i32) -> (i32, i32) {
    %c0_i32 = arith.constant 0 : i32
    %c0_i32_0 = arith.constant 0 : i32
    return %arg0, %c0_i32 : i32, i32
  }
  func.func @transform_3(%arg0: i32) -> (i32, i32) {
    %c0_i32 = arith.constant 0 : i32
    %c0_i32_0 = arith.constant 0 : i32
    return %arg0, %c0_i32 : i32, i32
  }
  func.func @transform_4(%arg0: i32) -> (i32, i32) {
    %c0_i32 = arith.constant 0 : i32
    %c0_i32_0 = arith.constant 0 : i32
    return %arg0, %c0_i32 : i32, i32
  }
  func.func @transform_5(%arg0: i32) -> (i32, i32) {
    %c0_i32 = arith.constant 0 : i32
    %c0_i32_0 = arith.constant 0 : i32
    return %arg0, %c0_i32 : i32, i32
  }
  func.func @transform_6(%arg0: i32) -> (i32, i32) {
    %c0_i32 = arith.constant 0 : i32
    %c0_i32_0 = arith.constant 0 : i32
    return %arg0, %c0_i32 : i32, i32
  }
  func.func @transform_7(%arg0: i32) -> (i32, i32) {
    %c0_i32 = arith.constant 0 : i32
    %c0_i32_0 = arith.constant 0 : i32
    return %arg0, %c0_i32 : i32, i32
  }
  func.func @transform_8(%arg0: i32) -> (i32, i32) {
    %c0_i32 = arith.constant 0 : i32
    %c0_i32_0 = arith.constant 0 : i32
    return %arg0, %c0_i32 : i32, i32
  }
  func.func @transform_9(%arg0: i32) -> (i32, i32) {
    %c0_i32 = arith.constant 0 : i32
    %c0_i32_0 = arith.constant 0 : i32
    return %arg0, %c0_i32 : i32, i32
  }
}

module attributes {stable_mosaic.version = 11 : i64} {
  func.func @kernel(%arg0: i32, %arg1: i32, %arg2: i32, %arg3: memref<128x576xbf16, #tpu.memory_space<vmem>>, %arg4: memref<576x64xbf16, #tpu.memory_space<vmem>>, %arg5: memref<1x64xf32, #tpu.memory_space<vmem>>, %arg6: memref<128x64xbf16, #tpu.memory_space<vmem>>, %arg7: memref<128x64xf32, #tpu.memory_space<vmem>>) attributes {dimension_semantics = [#tpu.dimension_semantics<parallel>, #tpu.dimension_semantics<parallel>, #tpu.dimension_semantics<arbitrary>], iteration_bounds = array<i64: 1, 1, 1>, scalar_prefetch = 0 : i64, scratch_operands = 1 : i64, tpu.core_type = #tpu.core_type<tc>, window_params = [{transform_indices = @transform_0, window_bounds = array<i64: 128, 576>}, {transform_indices = @transform_1, window_bounds = array<i64: 576, 64>}, {transform_indices = @transform_2, window_bounds = array<i64: 1, 64>}, {transform_indices = @transform_3, window_bounds = array<i64: 128, 64>}]} {
    %c0_i32 = arith.constant 0 : i32
    %0 = arith.cmpi eq, %arg2, %c0_i32 : i32
    %1 = arith.extui %0 : i1 to i32
    %c0_i32_0 = arith.constant 0 : i32
    %2 = arith.cmpi ne, %1, %c0_i32_0 : i32
    scf.if %2 {
      %cst_10 = arith.constant 0.000000e+00 : f32
      %12 = vector.broadcast %cst_10 : f32 to vector<128x64xf32>
      %c0_11 = arith.constant 0 : index
      %c0_12 = arith.constant 0 : index
      %13 = vector.load %arg7[%c0_11, %c0_12] : memref<128x64xf32, #tpu.memory_space<vmem>>, vector<128x64xf32>
      tpu.vector_store %arg7[%c0_11, %c0_12], %12 {strides = array<i32>} : memref<128x64xf32, #tpu.memory_space<vmem>>, vector<128x64xf32>,
    } else {
    }
    %c0 = arith.constant 0 : index
    %c0_1 = arith.constant 0 : index
    %3 = vector.load %arg7[%c0, %c0_1] : memref<128x64xf32, #tpu.memory_space<vmem>>, vector<128x64xf32>
    %c0_2 = arith.constant 0 : index
    %c0_3 = arith.constant 0 : index
    %4 = vector.load %arg3[%c0_2, %c0_3] : memref<128x576xbf16, #tpu.memory_space<vmem>>, vector<128x576xbf16>
    %c0_4 = arith.constant 0 : index
    %c0_5 = arith.constant 0 : index
    %5 = vector.load %arg4[%c0_4, %c0_5] : memref<576x64xbf16, #tpu.memory_space<vmem>>, vector<576x64xbf16>
    %cst = arith.constant dense<0.000000e+00> : vector<128x64xf32>
    %6 = tpu.matmul %4, %5, %cst {dimension_numbers = #tpu.dot_dimension_numbers<[1], [0], [0], [1], [0, 0, 1, 1], [], []>} : vector<128x576xbf16>, vector<576x64xbf16>, vector<128x64xf32> -> vector<128x64xf32>
    %7 = arith.addf %3, %6 : vector<128x64xf32>
    %c0_6 = arith.constant 0 : index
    %c0_7 = arith.constant 0 : index
    %8 = vector.load %arg7[%c0_6, %c0_7] : memref<128x64xf32, #tpu.memory_space<vmem>>, vector<128x64xf32>
    tpu.vector_store %arg7[%c0_6, %c0_7], %7 {strides = array<i32>} : memref<128x64xf32, #tpu.memory_space<vmem>>, vector<128x64xf32>,
    %c0_i32_8 = arith.constant 0 : i32
    %9 = arith.cmpi eq, %arg2, %c0_i32_8 : i32
    %10 = arith.extui %9 : i1 to i32
    %c0_i32_9 = arith.constant 0 : i32
    %11 = arith.cmpi ne, %10, %c0_i32_9 : i32
    scf.if %11 {
      %c0_10 = arith.constant 0 : index
      %c0_11 = arith.constant 0 : index
      %12 = vector.load %arg7[%c0_10, %c0_11] : memref<128x64xf32, #tpu.memory_space<vmem>>, vector<128x64xf32>
      %c0_12 = arith.constant 0 : index
      %c0_13 = arith.constant 0 : index
      %13 = vector.load %arg5[%c0_12, %c0_13] : memref<1x64xf32, #tpu.memory_space<vmem>>, vector<1x64xf32>
      %14 = vector.broadcast %13 : vector<1x64xf32> to vector<128x64xf32>
      %15 = arith.addf %12, %14 : vector<128x64xf32>
      %cst_14 = arith.constant 0.000000e+00 : f32
      %16 = vector.broadcast %cst_14 : f32 to vector<128x64xf32>
      %17 = arith.maximumf %15, %16 : vector<128x64xf32>
      %18 = arith.truncf %17 : vector<128x64xf32> to vector<128x64xbf16>
      %c0_15 = arith.constant 0 : index
      %c0_16 = arith.constant 0 : index
      %19 = vector.load %arg6[%c0_15, %c0_16] : memref<128x64xbf16, #tpu.memory_space<vmem>>, vector<128x64xbf16>
      tpu.vector_store %arg6[%c0_15, %c0_16], %18 {strides = array<i32>} : memref<128x64xbf16, #tpu.memory_space<vmem>>, vector<128x64xbf16>,
    } else {
    }
    return
  }
  func.func @transform_0(%arg0: i32, %arg1: i32, %arg2: i32) -> (i32, i32) {
    %c0_i32 = arith.constant 0 : i32
    return %arg0, %arg2 : i32, i32
  }
  func.func @transform_1(%arg0: i32, %arg1: i32, %arg2: i32) -> (i32, i32) {
    %c0_i32 = arith.constant 0 : i32
    return %arg2, %arg1 : i32, i32
  }
  func.func @transform_2(%arg0: i32, %arg1: i32, %arg2: i32) -> (i32, i32) {
    %c0_i32 = arith.constant 0 : i32
    %c0_i32_0 = arith.constant 0 : i32
    return %c0_i32, %arg1 : i32, i32
  }
  func.func @transform_3(%arg0: i32, %arg1: i32, %arg2: i32) -> (i32, i32) {
    %c0_i32 = arith.constant 0 : i32
    return %arg0, %arg1 : i32, i32
  }
}

module attributes {stable_mosaic.version = 11 : i64} {
  func.func @kernel(%arg0: i32, %arg1: i32, %arg2: i32, %arg3: memref<128x576xbf16, #tpu.memory_space<vmem>>, %arg4: memref<576x64xbf16, #tpu.memory_space<vmem>>, %arg5: memref<1x64xf32, #tpu.memory_space<vmem>>, %arg6: memref<128x64xbf16, #tpu.memory_space<vmem>>, %arg7: memref<128x64xbf16, #tpu.memory_space<vmem>>, %arg8: memref<128x64xf32, #tpu.memory_space<vmem>>) attributes {dimension_semantics = [#tpu.dimension_semantics<parallel>, #tpu.dimension_semantics<parallel>, #tpu.dimension_semantics<arbitrary>], iteration_bounds = array<i64: 1, 1, 1>, scalar_prefetch = 0 : i64, scratch_operands = 1 : i64, tpu.core_type = #tpu.core_type<tc>, window_params = [{transform_indices = @transform_0, window_bounds = array<i64: 128, 576>}, {transform_indices = @transform_1, window_bounds = array<i64: 576, 64>}, {transform_indices = @transform_2, window_bounds = array<i64: 1, 64>}, {transform_indices = @transform_3, window_bounds = array<i64: 128, 64>}, {transform_indices = @transform_4, window_bounds = array<i64: 128, 64>}]} {
    %c0_i32 = arith.constant 0 : i32
    %0 = arith.cmpi eq, %arg2, %c0_i32 : i32
    %1 = arith.extui %0 : i1 to i32
    %c0_i32_0 = arith.constant 0 : i32
    %2 = arith.cmpi ne, %1, %c0_i32_0 : i32
    scf.if %2 {
      %cst_10 = arith.constant 0.000000e+00 : f32
      %12 = vector.broadcast %cst_10 : f32 to vector<128x64xf32>
      %c0_11 = arith.constant 0 : index
      %c0_12 = arith.constant 0 : index
      %13 = vector.load %arg8[%c0_11, %c0_12] : memref<128x64xf32, #tpu.memory_space<vmem>>, vector<128x64xf32>
      tpu.vector_store %arg8[%c0_11, %c0_12], %12 {strides = array<i32>} : memref<128x64xf32, #tpu.memory_space<vmem>>, vector<128x64xf32>,
    } else {
    }
    %c0 = arith.constant 0 : index
    %c0_1 = arith.constant 0 : index
    %3 = vector.load %arg8[%c0, %c0_1] : memref<128x64xf32, #tpu.memory_space<vmem>>, vector<128x64xf32>
    %c0_2 = arith.constant 0 : index
    %c0_3 = arith.constant 0 : index
    %4 = vector.load %arg3[%c0_2, %c0_3] : memref<128x576xbf16, #tpu.memory_space<vmem>>, vector<128x576xbf16>
    %c0_4 = arith.constant 0 : index
    %c0_5 = arith.constant 0 : index
    %5 = vector.load %arg4[%c0_4, %c0_5] : memref<576x64xbf16, #tpu.memory_space<vmem>>, vector<576x64xbf16>
    %cst = arith.constant dense<0.000000e+00> : vector<128x64xf32>
    %6 = tpu.matmul %4, %5, %cst {dimension_numbers = #tpu.dot_dimension_numbers<[1], [0], [0], [1], [0, 0, 1, 1], [], []>} : vector<128x576xbf16>, vector<576x64xbf16>, vector<128x64xf32> -> vector<128x64xf32>
    %7 = arith.addf %3, %6 : vector<128x64xf32>
    %c0_6 = arith.constant 0 : index
    %c0_7 = arith.constant 0 : index
    %8 = vector.load %arg8[%c0_6, %c0_7] : memref<128x64xf32, #tpu.memory_space<vmem>>, vector<128x64xf32>
    tpu.vector_store %arg8[%c0_6, %c0_7], %7 {strides = array<i32>} : memref<128x64xf32, #tpu.memory_space<vmem>>, vector<128x64xf32>,
    %c0_i32_8 = arith.constant 0 : i32
    %9 = arith.cmpi eq, %arg2, %c0_i32_8 : i32
    %10 = arith.extui %9 : i1 to i32
    %c0_i32_9 = arith.constant 0 : i32
    %11 = arith.cmpi ne, %10, %c0_i32_9 : i32
    scf.if %11 {
      %c0_10 = arith.constant 0 : index
      %c0_11 = arith.constant 0 : index
      %12 = vector.load %arg8[%c0_10, %c0_11] : memref<128x64xf32, #tpu.memory_space<vmem>>, vector<128x64xf32>
      %c0_12 = arith.constant 0 : index
      %c0_13 = arith.constant 0 : index
      %13 = vector.load %arg5[%c0_12, %c0_13] : memref<1x64xf32, #tpu.memory_space<vmem>>, vector<1x64xf32>
      %14 = vector.broadcast %13 : vector<1x64xf32> to vector<128x64xf32>
      %15 = arith.addf %12, %14 : vector<128x64xf32>
      %c0_14 = arith.constant 0 : index
      %c0_15 = arith.constant 0 : index
      %16 = vector.load %arg6[%c0_14, %c0_15] : memref<128x64xbf16, #tpu.memory_space<vmem>>, vector<128x64xbf16>
      %17 = arith.extf %16 : vector<128x64xbf16> to vector<128x64xf32>
      %18 = arith.addf %15, %17 : vector<128x64xf32>
      %cst_16 = arith.constant 0.000000e+00 : f32
      %19 = vector.broadcast %cst_16 : f32 to vector<128x64xf32>
      %20 = arith.maximumf %18, %19 : vector<128x64xf32>
      %21 = arith.truncf %20 : vector<128x64xf32> to vector<128x64xbf16>
      %c0_17 = arith.constant 0 : index
      %c0_18 = arith.constant 0 : index
      %22 = vector.load %arg7[%c0_17, %c0_18] : memref<128x64xbf16, #tpu.memory_space<vmem>>, vector<128x64xbf16>
      tpu.vector_store %arg7[%c0_17, %c0_18], %21 {strides = array<i32>} : memref<128x64xbf16, #tpu.memory_space<vmem>>, vector<128x64xbf16>,
    } else {
    }
    return
  }
  func.func @transform_0(%arg0: i32, %arg1: i32, %arg2: i32) -> (i32, i32) {
    %c0_i32 = arith.constant 0 : i32
    return %arg0, %arg2 : i32, i32
  }
  func.func @transform_1(%arg0: i32, %arg1: i32, %arg2: i32) -> (i32, i32) {
    %c0_i32 = arith.constant 0 : i32
    return %arg2, %arg1 : i32, i32
  }
  func.func @transform_2(%arg0: i32, %arg1: i32, %arg2: i32) -> (i32, i32) {
    %c0_i32 = arith.constant 0 : i32
    %c0_i32_0 = arith.constant 0 : i32
    return %c0_i32, %arg1 : i32, i32
  }
  func.func @transform_3(%arg0: i32, %arg1: i32, %arg2: i32) -> (i32, i32) {
    %c0_i32 = arith.constant 0 : i32
    return %arg0, %arg1 : i32, i32
  }
  func.func @transform_4(%arg0: i32, %arg1: i32, %arg2: i32) -> (i32, i32) {
    %c0_i32 = arith.constant 0 : i32
    return %arg0, %arg1 : i32, i32
  }
}

module attributes {stable_mosaic.version = 11 : i64} {
  func.func @kernel(%arg0: i32, %arg1: i32, %arg2: i32, %arg3: memref<32x576xbf16, #tpu.memory_space<vmem>>, %arg4: memref<576x128xbf16, #tpu.memory_space<vmem>>, %arg5: memref<1x128xf32, #tpu.memory_space<vmem>>, %arg6: memref<32x128xbf16, #tpu.memory_space<vmem>>, %arg7: memref<32x128xf32, #tpu.memory_space<vmem>>) attributes {dimension_semantics = [#tpu.dimension_semantics<parallel>, #tpu.dimension_semantics<parallel>, #tpu.dimension_semantics<arbitrary>], iteration_bounds = array<i64: 1, 1, 1>, scalar_prefetch = 0 : i64, scratch_operands = 1 : i64, tpu.core_type = #tpu.core_type<tc>, window_params = [{transform_indices = @transform_0, window_bounds = array<i64: 32, 576>}, {transform_indices = @transform_1, window_bounds = array<i64: 576, 128>}, {transform_indices = @transform_2, window_bounds = array<i64: 1, 128>}, {transform_indices = @transform_3, window_bounds = array<i64: 32, 128>}]} {
    %c0_i32 = arith.constant 0 : i32
    %0 = arith.cmpi eq, %arg2, %c0_i32 : i32
    %1 = arith.extui %0 : i1 to i32
    %c0_i32_0 = arith.constant 0 : i32
    %2 = arith.cmpi ne, %1, %c0_i32_0 : i32
    scf.if %2 {
      %cst_10 = arith.constant 0.000000e+00 : f32
      %12 = vector.broadcast %cst_10 : f32 to vector<32x128xf32>
      %c0_11 = arith.constant 0 : index
      %c0_12 = arith.constant 0 : index
      %13 = vector.load %arg7[%c0_11, %c0_12] : memref<32x128xf32, #tpu.memory_space<vmem>>, vector<32x128xf32>
      tpu.vector_store %arg7[%c0_11, %c0_12], %12 {strides = array<i32>} : memref<32x128xf32, #tpu.memory_space<vmem>>, vector<32x128xf32>,
    } else {
    }
    %c0 = arith.constant 0 : index
    %c0_1 = arith.constant 0 : index
    %3 = vector.load %arg7[%c0, %c0_1] : memref<32x128xf32, #tpu.memory_space<vmem>>, vector<32x128xf32>
    %c0_2 = arith.constant 0 : index
    %c0_3 = arith.constant 0 : index
    %4 = vector.load %arg3[%c0_2, %c0_3] : memref<32x576xbf16, #tpu.memory_space<vmem>>, vector<32x576xbf16>
    %c0_4 = arith.constant 0 : index
    %c0_5 = arith.constant 0 : index
    %5 = vector.load %arg4[%c0_4, %c0_5] : memref<576x128xbf16, #tpu.memory_space<vmem>>, vector<576x128xbf16>
    %cst = arith.constant dense<0.000000e+00> : vector<32x128xf32>
    %6 = tpu.matmul %4, %5, %cst {dimension_numbers = #tpu.dot_dimension_numbers<[1], [0], [0], [1], [0, 0, 1, 1], [], []>} : vector<32x576xbf16>, vector<576x128xbf16>, vector<32x128xf32> -> vector<32x128xf32>
    %7 = arith.addf %3, %6 : vector<32x128xf32>
    %c0_6 = arith.constant 0 : index
    %c0_7 = arith.constant 0 : index
    %8 = vector.load %arg7[%c0_6, %c0_7] : memref<32x128xf32, #tpu.memory_space<vmem>>, vector<32x128xf32>
    tpu.vector_store %arg7[%c0_6, %c0_7], %7 {strides = array<i32>} : memref<32x128xf32, #tpu.memory_space<vmem>>, vector<32x128xf32>,
    %c0_i32_8 = arith.constant 0 : i32
    %9 = arith.cmpi eq, %arg2, %c0_i32_8 : i32
    %10 = arith.extui %9 : i1 to i32
    %c0_i32_9 = arith.constant 0 : i32
    %11 = arith.cmpi ne, %10, %c0_i32_9 : i32
    scf.if %11 {
      %c0_10 = arith.constant 0 : index
      %c0_11 = arith.constant 0 : index
      %12 = vector.load %arg7[%c0_10, %c0_11] : memref<32x128xf32, #tpu.memory_space<vmem>>, vector<32x128xf32>
      %c0_12 = arith.constant 0 : index
      %c0_13 = arith.constant 0 : index
      %13 = vector.load %arg5[%c0_12, %c0_13] : memref<1x128xf32, #tpu.memory_space<vmem>>, vector<1x128xf32>
      %14 = vector.broadcast %13 : vector<1x128xf32> to vector<32x128xf32>
      %15 = arith.addf %12, %14 : vector<32x128xf32>
      %cst_14 = arith.constant 0.000000e+00 : f32
      %16 = vector.broadcast %cst_14 : f32 to vector<32x128xf32>
      %17 = arith.maximumf %15, %16 : vector<32x128xf32>
      %18 = arith.truncf %17 : vector<32x128xf32> to vector<32x128xbf16>
      %c0_15 = arith.constant 0 : index
      %c0_16 = arith.constant 0 : index
      %19 = vector.load %arg6[%c0_15, %c0_16] : memref<32x128xbf16, #tpu.memory_space<vmem>>, vector<32x128xbf16>
      tpu.vector_store %arg6[%c0_15, %c0_16], %18 {strides = array<i32>} : memref<32x128xbf16, #tpu.memory_space<vmem>>, vector<32x128xbf16>,
    } else {
    }
    return
  }
  func.func @transform_0(%arg0: i32, %arg1: i32, %arg2: i32) -> (i32, i32) {
    %c0_i32 = arith.constant 0 : i32
    return %arg0, %arg2 : i32, i32
  }
  func.func @transform_1(%arg0: i32, %arg1: i32, %arg2: i32) -> (i32, i32) {
    %c0_i32 = arith.constant 0 : i32
    return %arg2, %arg1 : i32, i32
  }
  func.func @transform_2(%arg0: i32, %arg1: i32, %arg2: i32) -> (i32, i32) {
    %c0_i32 = arith.constant 0 : i32
    %c0_i32_0 = arith.constant 0 : i32
    return %c0_i32, %arg1 : i32, i32
  }
  func.func @transform_3(%arg0: i32, %arg1: i32, %arg2: i32) -> (i32, i32) {
    %c0_i32 = arith.constant 0 : i32
    return %arg0, %arg1 : i32, i32
  }
}

module attributes {stable_mosaic.version = 11 : i64} {
  func.func @kernel(%arg0: i32, %arg1: i32, %arg2: i32, %arg3: memref<32x1216xbf16, #tpu.memory_space<vmem>>, %arg4: memref<1216x128xbf16, #tpu.memory_space<vmem>>, %arg5: memref<1x128xf32, #tpu.memory_space<vmem>>, %arg6: memref<32x128xbf16, #tpu.memory_space<vmem>>, %arg7: memref<32x128xf32, #tpu.memory_space<vmem>>) attributes {dimension_semantics = [#tpu.dimension_semantics<parallel>, #tpu.dimension_semantics<parallel>, #tpu.dimension_semantics<arbitrary>], iteration_bounds = array<i64: 1, 1, 1>, scalar_prefetch = 0 : i64, scratch_operands = 1 : i64, tpu.core_type = #tpu.core_type<tc>, window_params = [{transform_indices = @transform_0, window_bounds = array<i64: 32, 1216>}, {transform_indices = @transform_1, window_bounds = array<i64: 1216, 128>}, {transform_indices = @transform_2, window_bounds = array<i64: 1, 128>}, {transform_indices = @transform_3, window_bounds = array<i64: 32, 128>}]} {
    %c0_i32 = arith.constant 0 : i32
    %0 = arith.cmpi eq, %arg2, %c0_i32 : i32
    %1 = arith.extui %0 : i1 to i32
    %c0_i32_0 = arith.constant 0 : i32
    %2 = arith.cmpi ne, %1, %c0_i32_0 : i32
    scf.if %2 {
      %cst_10 = arith.constant 0.000000e+00 : f32
      %12 = vector.broadcast %cst_10 : f32 to vector<32x128xf32>
      %c0_11 = arith.constant 0 : index
      %c0_12 = arith.constant 0 : index
      %13 = vector.load %arg7[%c0_11, %c0_12] : memref<32x128xf32, #tpu.memory_space<vmem>>, vector<32x128xf32>
      tpu.vector_store %arg7[%c0_11, %c0_12], %12 {strides = array<i32>} : memref<32x128xf32, #tpu.memory_space<vmem>>, vector<32x128xf32>,
    } else {
    }
    %c0 = arith.constant 0 : index
    %c0_1 = arith.constant 0 : index
    %3 = vector.load %arg7[%c0, %c0_1] : memref<32x128xf32, #tpu.memory_space<vmem>>, vector<32x128xf32>
    %c0_2 = arith.constant 0 : index
    %c0_3 = arith.constant 0 : index
    %4 = vector.load %arg3[%c0_2, %c0_3] : memref<32x1216xbf16, #tpu.memory_space<vmem>>, vector<32x1216xbf16>
    %c0_4 = arith.constant 0 : index
    %c0_5 = arith.constant 0 : index
    %5 = vector.load %arg4[%c0_4, %c0_5] : memref<1216x128xbf16, #tpu.memory_space<vmem>>, vector<1216x128xbf16>
    %cst = arith.constant dense<0.000000e+00> : vector<32x128xf32>
    %6 = tpu.matmul %4, %5, %cst {dimension_numbers = #tpu.dot_dimension_numbers<[1], [0], [0], [1], [0, 0, 1, 1], [], []>} : vector<32x1216xbf16>, vector<1216x128xbf16>, vector<32x128xf32> -> vector<32x128xf32>
    %7 = arith.addf %3, %6 : vector<32x128xf32>
    %c0_6 = arith.constant 0 : index
    %c0_7 = arith.constant 0 : index
    %8 = vector.load %arg7[%c0_6, %c0_7] : memref<32x128xf32, #tpu.memory_space<vmem>>, vector<32x128xf32>
    tpu.vector_store %arg7[%c0_6, %c0_7], %7 {strides = array<i32>} : memref<32x128xf32, #tpu.memory_space<vmem>>, vector<32x128xf32>,
    %c0_i32_8 = arith.constant 0 : i32
    %9 = arith.cmpi eq, %arg2, %c0_i32_8 : i32
    %10 = arith.extui %9 : i1 to i32
    %c0_i32_9 = arith.constant 0 : i32
    %11 = arith.cmpi ne, %10, %c0_i32_9 : i32
    scf.if %11 {
      %c0_10 = arith.constant 0 : index
      %c0_11 = arith.constant 0 : index
      %12 = vector.load %arg7[%c0_10, %c0_11] : memref<32x128xf32, #tpu.memory_space<vmem>>, vector<32x128xf32>
      %c0_12 = arith.constant 0 : index
      %c0_13 = arith.constant 0 : index
      %13 = vector.load %arg5[%c0_12, %c0_13] : memref<1x128xf32, #tpu.memory_space<vmem>>, vector<1x128xf32>
      %14 = vector.broadcast %13 : vector<1x128xf32> to vector<32x128xf32>
      %15 = arith.addf %12, %14 : vector<32x128xf32>
      %cst_14 = arith.constant 0.000000e+00 : f32
      %16 = vector.broadcast %cst_14 : f32 to vector<32x128xf32>
      %17 = arith.maximumf %15, %16 : vector<32x128xf32>
      %18 = arith.truncf %17 : vector<32x128xf32> to vector<32x128xbf16>
      %c0_15 = arith.constant 0 : index
      %c0_16 = arith.constant 0 : index
      %19 = vector.load %arg6[%c0_15, %c0_16] : memref<32x128xbf16, #tpu.memory_space<vmem>>, vector<32x128xbf16>
      tpu.vector_store %arg6[%c0_15, %c0_16], %18 {strides = array<i32>} : memref<32x128xbf16, #tpu.memory_space<vmem>>, vector<32x128xbf16>,
    } else {
    }
    return
  }
  func.func @transform_0(%arg0: i32, %arg1: i32, %arg2: i32) -> (i32, i32) {
    %c0_i32 = arith.constant 0 : i32
    return %arg0, %arg2 : i32, i32
  }
  func.func @transform_1(%arg0: i32, %arg1: i32, %arg2: i32) -> (i32, i32) {
    %c0_i32 = arith.constant 0 : i32
    return %arg2, %arg1 : i32, i32
  }
  func.func @transform_2(%arg0: i32, %arg1: i32, %arg2: i32) -> (i32, i32) {
    %c0_i32 = arith.constant 0 : i32
    %c0_i32_0 = arith.constant 0 : i32
    return %c0_i32, %arg1 : i32, i32
  }
  func.func @transform_3(%arg0: i32, %arg1: i32, %arg2: i32) -> (i32, i32) {
    %c0_i32 = arith.constant 0 : i32
    return %arg0, %arg1 : i32, i32
  }
}

module attributes {stable_mosaic.version = 11 : i64} {
  func.func @kernel(%arg0: i32, %arg1: i32, %arg2: i32, %arg3: memref<16x1152xbf16, #tpu.memory_space<vmem>>, %arg4: memref<1152x128xbf16, #tpu.memory_space<vmem>>, %arg5: memref<1x128xf32, #tpu.memory_space<vmem>>, %arg6: memref<16x128xbf16, #tpu.memory_space<vmem>>, %arg7: memref<16x128xf32, #tpu.memory_space<vmem>>) attributes {dimension_semantics = [#tpu.dimension_semantics<parallel>, #tpu.dimension_semantics<parallel>, #tpu.dimension_semantics<arbitrary>], iteration_bounds = array<i64: 1, 2, 1>, scalar_prefetch = 0 : i64, scratch_operands = 1 : i64, tpu.core_type = #tpu.core_type<tc>, window_params = [{transform_indices = @transform_0, window_bounds = array<i64: 16, 1152>}, {transform_indices = @transform_1, window_bounds = array<i64: 1152, 128>}, {transform_indices = @transform_2, window_bounds = array<i64: 1, 128>}, {transform_indices = @transform_3, window_bounds = array<i64: 16, 128>}]} {
    %c0_i32 = arith.constant 0 : i32
    %0 = arith.cmpi eq, %arg2, %c0_i32 : i32
    %1 = arith.extui %0 : i1 to i32
    %c0_i32_0 = arith.constant 0 : i32
    %2 = arith.cmpi ne, %1, %c0_i32_0 : i32
    scf.if %2 {
      %cst_10 = arith.constant 0.000000e+00 : f32
      %12 = vector.broadcast %cst_10 : f32 to vector<16x128xf32>
      %c0_11 = arith.constant 0 : index
      %c0_12 = arith.constant 0 : index
      %13 = vector.load %arg7[%c0_11, %c0_12] : memref<16x128xf32, #tpu.memory_space<vmem>>, vector<16x128xf32>
      tpu.vector_store %arg7[%c0_11, %c0_12], %12 {strides = array<i32>} : memref<16x128xf32, #tpu.memory_space<vmem>>, vector<16x128xf32>,
    } else {
    }
    %c0 = arith.constant 0 : index
    %c0_1 = arith.constant 0 : index
    %3 = vector.load %arg7[%c0, %c0_1] : memref<16x128xf32, #tpu.memory_space<vmem>>, vector<16x128xf32>
    %c0_2 = arith.constant 0 : index
    %c0_3 = arith.constant 0 : index
    %4 = vector.load %arg3[%c0_2, %c0_3] : memref<16x1152xbf16, #tpu.memory_space<vmem>>, vector<16x1152xbf16>
    %c0_4 = arith.constant 0 : index
    %c0_5 = arith.constant 0 : index
    %5 = vector.load %arg4[%c0_4, %c0_5] : memref<1152x128xbf16, #tpu.memory_space<vmem>>, vector<1152x128xbf16>
    %cst = arith.constant dense<0.000000e+00> : vector<16x128xf32>
    %6 = tpu.matmul %4, %5, %cst {dimension_numbers = #tpu.dot_dimension_numbers<[1], [0], [0], [1], [0, 0, 1, 1], [], []>} : vector<16x1152xbf16>, vector<1152x128xbf16>, vector<16x128xf32> -> vector<16x128xf32>
    %7 = arith.addf %3, %6 : vector<16x128xf32>
    %c0_6 = arith.constant 0 : index
    %c0_7 = arith.constant 0 : index
    %8 = vector.load %arg7[%c0_6, %c0_7] : memref<16x128xf32, #tpu.memory_space<vmem>>, vector<16x128xf32>
    tpu.vector_store %arg7[%c0_6, %c0_7], %7 {strides = array<i32>} : memref<16x128xf32, #tpu.memory_space<vmem>>, vector<16x128xf32>,
    %c0_i32_8 = arith.constant 0 : i32
    %9 = arith.cmpi eq, %arg2, %c0_i32_8 : i32
    %10 = arith.extui %9 : i1 to i32
    %c0_i32_9 = arith.constant 0 : i32
    %11 = arith.cmpi ne, %10, %c0_i32_9 : i32
    scf.if %11 {
      %c0_10 = arith.constant 0 : index
      %c0_11 = arith.constant 0 : index
      %12 = vector.load %arg7[%c0_10, %c0_11] : memref<16x128xf32, #tpu.memory_space<vmem>>, vector<16x128xf32>
      %c0_12 = arith.constant 0 : index
      %c0_13 = arith.constant 0 : index
      %13 = vector.load %arg5[%c0_12, %c0_13] : memref<1x128xf32, #tpu.memory_space<vmem>>, vector<1x128xf32>
      %14 = vector.broadcast %13 : vector<1x128xf32> to vector<16x128xf32>
      %15 = arith.addf %12, %14 : vector<16x128xf32>
      %cst_14 = arith.constant 0.000000e+00 : f32
      %16 = vector.broadcast %cst_14 : f32 to vector<16x128xf32>
      %17 = arith.maximumf %15, %16 : vector<16x128xf32>
      %18 = arith.truncf %17 : vector<16x128xf32> to vector<16x128xbf16>
      %c0_15 = arith.constant 0 : index
      %c0_16 = arith.constant 0 : index
      %19 = vector.load %arg6[%c0_15, %c0_16] : memref<16x128xbf16, #tpu.memory_space<vmem>>, vector<16x128xbf16>
      tpu.vector_store %arg6[%c0_15, %c0_16], %18 {strides = array<i32>} : memref<16x128xbf16, #tpu.memory_space<vmem>>, vector<16x128xbf16>,
    } else {
    }
    return
  }
  func.func @transform_0(%arg0: i32, %arg1: i32, %arg2: i32) -> (i32, i32) {
    %c0_i32 = arith.constant 0 : i32
    return %arg0, %arg2 : i32, i32
  }
  func.func @transform_1(%arg0: i32, %arg1: i32, %arg2: i32) -> (i32, i32) {
    %c0_i32 = arith.constant 0 : i32
    return %arg2, %arg1 : i32, i32
  }
  func.func @transform_2(%arg0: i32, %arg1: i32, %arg2: i32) -> (i32, i32) {
    %c0_i32 = arith.constant 0 : i32
    %c0_i32_0 = arith.constant 0 : i32
    return %c0_i32, %arg1 : i32, i32
  }
  func.func @transform_3(%arg0: i32, %arg1: i32, %arg2: i32) -> (i32, i32) {
    %c0_i32 = arith.constant 0 : i32
    return %arg0, %arg1 : i32, i32
  }
}

module attributes {stable_mosaic.version = 11 : i64} {
  func.func @kernel(%arg0: i32, %arg1: i32, %arg2: i32, %arg3: memref<16x2432xbf16, #tpu.memory_space<vmem>>, %arg4: memref<2432x128xbf16, #tpu.memory_space<vmem>>, %arg5: memref<1x128xf32, #tpu.memory_space<vmem>>, %arg6: memref<16x128xbf16, #tpu.memory_space<vmem>>, %arg7: memref<16x128xf32, #tpu.memory_space<vmem>>) attributes {dimension_semantics = [#tpu.dimension_semantics<parallel>, #tpu.dimension_semantics<parallel>, #tpu.dimension_semantics<arbitrary>], iteration_bounds = array<i64: 1, 2, 1>, scalar_prefetch = 0 : i64, scratch_operands = 1 : i64, tpu.core_type = #tpu.core_type<tc>, window_params = [{transform_indices = @transform_0, window_bounds = array<i64: 16, 2432>}, {transform_indices = @transform_1, window_bounds = array<i64: 2432, 128>}, {transform_indices = @transform_2, window_bounds = array<i64: 1, 128>}, {transform_indices = @transform_3, window_bounds = array<i64: 16, 128>}]} {
    %c0_i32 = arith.constant 0 : i32
    %0 = arith.cmpi eq, %arg2, %c0_i32 : i32
    %1 = arith.extui %0 : i1 to i32
    %c0_i32_0 = arith.constant 0 : i32
    %2 = arith.cmpi ne, %1, %c0_i32_0 : i32
    scf.if %2 {
      %cst_10 = arith.constant 0.000000e+00 : f32
      %12 = vector.broadcast %cst_10 : f32 to vector<16x128xf32>
      %c0_11 = arith.constant 0 : index
      %c0_12 = arith.constant 0 : index
      %13 = vector.load %arg7[%c0_11, %c0_12] : memref<16x128xf32, #tpu.memory_space<vmem>>, vector<16x128xf32>
      tpu.vector_store %arg7[%c0_11, %c0_12], %12 {strides = array<i32>} : memref<16x128xf32, #tpu.memory_space<vmem>>, vector<16x128xf32>,
    } else {
    }
    %c0 = arith.constant 0 : index
    %c0_1 = arith.constant 0 : index
    %3 = vector.load %arg7[%c0, %c0_1] : memref<16x128xf32, #tpu.memory_space<vmem>>, vector<16x128xf32>
    %c0_2 = arith.constant 0 : index
    %c0_3 = arith.constant 0 : index
    %4 = vector.load %arg3[%c0_2, %c0_3] : memref<16x2432xbf16, #tpu.memory_space<vmem>>, vector<16x2432xbf16>
    %c0_4 = arith.constant 0 : index
    %c0_5 = arith.constant 0 : index
    %5 = vector.load %arg4[%c0_4, %c0_5] : memref<2432x128xbf16, #tpu.memory_space<vmem>>, vector<2432x128xbf16>
    %cst = arith.constant dense<0.000000e+00> : vector<16x128xf32>
    %6 = tpu.matmul %4, %5, %cst {dimension_numbers = #tpu.dot_dimension_numbers<[1], [0], [0], [1], [0, 0, 1, 1], [], []>} : vector<16x2432xbf16>, vector<2432x128xbf16>, vector<16x128xf32> -> vector<16x128xf32>
    %7 = arith.addf %3, %6 : vector<16x128xf32>
    %c0_6 = arith.constant 0 : index
    %c0_7 = arith.constant 0 : index
    %8 = vector.load %arg7[%c0_6, %c0_7] : memref<16x128xf32, #tpu.memory_space<vmem>>, vector<16x128xf32>
    tpu.vector_store %arg7[%c0_6, %c0_7], %7 {strides = array<i32>} : memref<16x128xf32, #tpu.memory_space<vmem>>, vector<16x128xf32>,
    %c0_i32_8 = arith.constant 0 : i32
    %9 = arith.cmpi eq, %arg2, %c0_i32_8 : i32
    %10 = arith.extui %9 : i1 to i32
    %c0_i32_9 = arith.constant 0 : i32
    %11 = arith.cmpi ne, %10, %c0_i32_9 : i32
    scf.if %11 {
      %c0_10 = arith.constant 0 : index
      %c0_11 = arith.constant 0 : index
      %12 = vector.load %arg7[%c0_10, %c0_11] : memref<16x128xf32, #tpu.memory_space<vmem>>, vector<16x128xf32>
      %c0_12 = arith.constant 0 : index
      %c0_13 = arith.constant 0 : index
      %13 = vector.load %arg5[%c0_12, %c0_13] : memref<1x128xf32, #tpu.memory_space<vmem>>, vector<1x128xf32>
      %14 = vector.broadcast %13 : vector<1x128xf32> to vector<16x128xf32>
      %15 = arith.addf %12, %14 : vector<16x128xf32>
      %cst_14 = arith.constant 0.000000e+00 : f32
      %16 = vector.broadcast %cst_14 : f32 to vector<16x128xf32>
      %17 = arith.maximumf %15, %16 : vector<16x128xf32>
      %18 = arith.truncf %17 : vector<16x128xf32> to vector<16x128xbf16>
      %c0_15 = arith.constant 0 : index
      %c0_16 = arith.constant 0 : index
      %19 = vector.load %arg6[%c0_15, %c0_16] : memref<16x128xbf16, #tpu.memory_space<vmem>>, vector<16x128xbf16>
      tpu.vector_store %arg6[%c0_15, %c0_16], %18 {strides = array<i32>} : memref<16x128xbf16, #tpu.memory_space<vmem>>, vector<16x128xbf16>,
    } else {
    }
    return
  }
  func.func @transform_0(%arg0: i32, %arg1: i32, %arg2: i32) -> (i32, i32) {
    %c0_i32 = arith.constant 0 : i32
    return %arg0, %arg2 : i32, i32
  }
  func.func @transform_1(%arg0: i32, %arg1: i32, %arg2: i32) -> (i32, i32) {
    %c0_i32 = arith.constant 0 : i32
    return %arg2, %arg1 : i32, i32
  }
  func.func @transform_2(%arg0: i32, %arg1: i32, %arg2: i32) -> (i32, i32) {
    %c0_i32 = arith.constant 0 : i32
    %c0_i32_0 = arith.constant 0 : i32
    return %c0_i32, %arg1 : i32, i32
  }
  func.func @transform_3(%arg0: i32, %arg1: i32, %arg2: i32) -> (i32, i32) {
    %c0_i32 = arith.constant 0 : i32
    return %arg0, %arg1 : i32, i32
  }
}

module attributes {stable_mosaic.version = 11 : i64} {
  func.func @kernel(%arg0: i32, %arg1: i32, %arg2: i32, %arg3: memref<16x2304xbf16, #tpu.memory_space<vmem>>, %arg4: memref<2304x128xbf16, #tpu.memory_space<vmem>>, %arg5: memref<1x128xf32, #tpu.memory_space<vmem>>, %arg6: memref<16x128xbf16, #tpu.memory_space<vmem>>, %arg7: memref<16x128xf32, #tpu.memory_space<vmem>>) attributes {dimension_semantics = [#tpu.dimension_semantics<parallel>, #tpu.dimension_semantics<parallel>, #tpu.dimension_semantics<arbitrary>], iteration_bounds = array<i64: 1, 4, 1>, scalar_prefetch = 0 : i64, scratch_operands = 1 : i64, tpu.core_type = #tpu.core_type<tc>, window_params = [{transform_indices = @transform_0, window_bounds = array<i64: 16, 2304>}, {transform_indices = @transform_1, window_bounds = array<i64: 2304, 128>}, {transform_indices = @transform_2, window_bounds = array<i64: 1, 128>}, {transform_indices = @transform_3, window_bounds = array<i64: 16, 128>}]} {
    %c0_i32 = arith.constant 0 : i32
    %0 = arith.cmpi eq, %arg2, %c0_i32 : i32
    %1 = arith.extui %0 : i1 to i32
    %c0_i32_0 = arith.constant 0 : i32
    %2 = arith.cmpi ne, %1, %c0_i32_0 : i32
    scf.if %2 {
      %cst_10 = arith.constant 0.000000e+00 : f32
      %12 = vector.broadcast %cst_10 : f32 to vector<16x128xf32>
      %c0_11 = arith.constant 0 : index
      %c0_12 = arith.constant 0 : index
      %13 = vector.load %arg7[%c0_11, %c0_12] : memref<16x128xf32, #tpu.memory_space<vmem>>, vector<16x128xf32>
      tpu.vector_store %arg7[%c0_11, %c0_12], %12 {strides = array<i32>} : memref<16x128xf32, #tpu.memory_space<vmem>>, vector<16x128xf32>,
    } else {
    }
    %c0 = arith.constant 0 : index
    %c0_1 = arith.constant 0 : index
    %3 = vector.load %arg7[%c0, %c0_1] : memref<16x128xf32, #tpu.memory_space<vmem>>, vector<16x128xf32>
    %c0_2 = arith.constant 0 : index
    %c0_3 = arith.constant 0 : index
    %4 = vector.load %arg3[%c0_2, %c0_3] : memref<16x2304xbf16, #tpu.memory_space<vmem>>, vector<16x2304xbf16>
    %c0_4 = arith.constant 0 : index
    %c0_5 = arith.constant 0 : index
    %5 = vector.load %arg4[%c0_4, %c0_5] : memref<2304x128xbf16, #tpu.memory_space<vmem>>, vector<2304x128xbf16>
    %cst = arith.constant dense<0.000000e+00> : vector<16x128xf32>
    %6 = tpu.matmul %4, %5, %cst {dimension_numbers = #tpu.dot_dimension_numbers<[1], [0], [0], [1], [0, 0, 1, 1], [], []>} : vector<16x2304xbf16>, vector<2304x128xbf16>, vector<16x128xf32> -> vector<16x128xf32>
    %7 = arith.addf %3, %6 : vector<16x128xf32>
    %c0_6 = arith.constant 0 : index
    %c0_7 = arith.constant 0 : index
    %8 = vector.load %arg7[%c0_6, %c0_7] : memref<16x128xf32, #tpu.memory_space<vmem>>, vector<16x128xf32>
    tpu.vector_store %arg7[%c0_6, %c0_7], %7 {strides = array<i32>} : memref<16x128xf32, #tpu.memory_space<vmem>>, vector<16x128xf32>,
    %c0_i32_8 = arith.constant 0 : i32
    %9 = arith.cmpi eq, %arg2, %c0_i32_8 : i32
    %10 = arith.extui %9 : i1 to i32
    %c0_i32_9 = arith.constant 0 : i32
    %11 = arith.cmpi ne, %10, %c0_i32_9 : i32
    scf.if %11 {
      %c0_10 = arith.constant 0 : index
      %c0_11 = arith.constant 0 : index
      %12 = vector.load %arg7[%c0_10, %c0_11] : memref<16x128xf32, #tpu.memory_space<vmem>>, vector<16x128xf32>
      %c0_12 = arith.constant 0 : index
      %c0_13 = arith.constant 0 : index
      %13 = vector.load %arg5[%c0_12, %c0_13] : memref<1x128xf32, #tpu.memory_space<vmem>>, vector<1x128xf32>
      %14 = vector.broadcast %13 : vector<1x128xf32> to vector<16x128xf32>
      %15 = arith.addf %12, %14 : vector<16x128xf32>
      %cst_14 = arith.constant 0.000000e+00 : f32
      %16 = vector.broadcast %cst_14 : f32 to vector<16x128xf32>
      %17 = arith.maximumf %15, %16 : vector<16x128xf32>
      %18 = arith.truncf %17 : vector<16x128xf32> to vector<16x128xbf16>
      %c0_15 = arith.constant 0 : index
      %c0_16 = arith.constant 0 : index
      %19 = vector.load %arg6[%c0_15, %c0_16] : memref<16x128xbf16, #tpu.memory_space<vmem>>, vector<16x128xbf16>
      tpu.vector_store %arg6[%c0_15, %c0_16], %18 {strides = array<i32>} : memref<16x128xbf16, #tpu.memory_space<vmem>>, vector<16x128xbf16>,
    } else {
    }
    return
  }
  func.func @transform_0(%arg0: i32, %arg1: i32, %arg2: i32) -> (i32, i32) {
    %c0_i32 = arith.constant 0 : i32
    return %arg0, %arg2 : i32, i32
  }
  func.func @transform_1(%arg0: i32, %arg1: i32, %arg2: i32) -> (i32, i32) {
    %c0_i32 = arith.constant 0 : i32
    return %arg2, %arg1 : i32, i32
  }
  func.func @transform_2(%arg0: i32, %arg1: i32, %arg2: i32) -> (i32, i32) {
    %c0_i32 = arith.constant 0 : i32
    %c0_i32_0 = arith.constant 0 : i32
    return %c0_i32, %arg1 : i32, i32
  }
  func.func @transform_3(%arg0: i32, %arg1: i32, %arg2: i32) -> (i32, i32) {
    %c0_i32 = arith.constant 0 : i32
    return %arg0, %arg1 : i32, i32
  }
}

module attributes {stable_mosaic.version = 11 : i64} {
  func.func @kernel(%arg0: i32, %arg1: i32, %arg2: i32, %arg3: memref<16x2432xbf16, #tpu.memory_space<vmem>>, %arg4: memref<2432x128xbf16, #tpu.memory_space<vmem>>, %arg5: memref<1x128xf32, #tpu.memory_space<vmem>>, %arg6: memref<16x128xbf16, #tpu.memory_space<vmem>>, %arg7: memref<16x128xf32, #tpu.memory_space<vmem>>) attributes {dimension_semantics = [#tpu.dimension_semantics<parallel>, #tpu.dimension_semantics<parallel>, #tpu.dimension_semantics<arbitrary>], iteration_bounds = array<i64: 1, 4, 2>, scalar_prefetch = 0 : i64, scratch_operands = 1 : i64, tpu.core_type = #tpu.core_type<tc>, window_params = [{transform_indices = @transform_0, window_bounds = array<i64: 16, 2432>}, {transform_indices = @transform_1, window_bounds = array<i64: 2432, 128>}, {transform_indices = @transform_2, window_bounds = array<i64: 1, 128>}, {transform_indices = @transform_3, window_bounds = array<i64: 16, 128>}]} {
    %c0_i32 = arith.constant 0 : i32
    %0 = arith.cmpi eq, %arg2, %c0_i32 : i32
    %1 = arith.extui %0 : i1 to i32
    %c0_i32_0 = arith.constant 0 : i32
    %2 = arith.cmpi ne, %1, %c0_i32_0 : i32
    scf.if %2 {
      %cst_9 = arith.constant 0.000000e+00 : f32
      %12 = vector.broadcast %cst_9 : f32 to vector<16x128xf32>
      %c0_10 = arith.constant 0 : index
      %c0_11 = arith.constant 0 : index
      %13 = vector.load %arg7[%c0_10, %c0_11] : memref<16x128xf32, #tpu.memory_space<vmem>>, vector<16x128xf32>
      tpu.vector_store %arg7[%c0_10, %c0_11], %12 {strides = array<i32>} : memref<16x128xf32, #tpu.memory_space<vmem>>, vector<16x128xf32>,
    } else {
    }
    %c0 = arith.constant 0 : index
    %c0_1 = arith.constant 0 : index
    %3 = vector.load %arg7[%c0, %c0_1] : memref<16x128xf32, #tpu.memory_space<vmem>>, vector<16x128xf32>
    %c0_2 = arith.constant 0 : index
    %c0_3 = arith.constant 0 : index
    %4 = vector.load %arg3[%c0_2, %c0_3] : memref<16x2432xbf16, #tpu.memory_space<vmem>>, vector<16x2432xbf16>
    %c0_4 = arith.constant 0 : index
    %c0_5 = arith.constant 0 : index
    %5 = vector.load %arg4[%c0_4, %c0_5] : memref<2432x128xbf16, #tpu.memory_space<vmem>>, vector<2432x128xbf16>
    %cst = arith.constant dense<0.000000e+00> : vector<16x128xf32>
    %6 = tpu.matmul %4, %5, %cst {dimension_numbers = #tpu.dot_dimension_numbers<[1], [0], [0], [1], [0, 0, 1, 1], [], []>} : vector<16x2432xbf16>, vector<2432x128xbf16>, vector<16x128xf32> -> vector<16x128xf32>
    %7 = arith.addf %3, %6 : vector<16x128xf32>
    %c0_6 = arith.constant 0 : index
    %c0_7 = arith.constant 0 : index
    %8 = vector.load %arg7[%c0_6, %c0_7] : memref<16x128xf32, #tpu.memory_space<vmem>>, vector<16x128xf32>
    tpu.vector_store %arg7[%c0_6, %c0_7], %7 {strides = array<i32>} : memref<16x128xf32, #tpu.memory_space<vmem>>, vector<16x128xf32>,
    %c1_i32 = arith.constant 1 : i32
    %9 = arith.cmpi eq, %arg2, %c1_i32 : i32
    %10 = arith.extui %9 : i1 to i32
    %c0_i32_8 = arith.constant 0 : i32
    %11 = arith.cmpi ne, %10, %c0_i32_8 : i32
    scf.if %11 {
      %c0_9 = arith.constant 0 : index
      %c0_10 = arith.constant 0 : index
      %12 = vector.load %arg7[%c0_9, %c0_10] : memref<16x128xf32, #tpu.memory_space<vmem>>, vector<16x128xf32>
      %c0_11 = arith.constant 0 : index
      %c0_12 = arith.constant 0 : index
      %13 = vector.load %arg5[%c0_11, %c0_12] : memref<1x128xf32, #tpu.memory_space<vmem>>, vector<1x128xf32>
      %14 = vector.broadcast %13 : vector<1x128xf32> to vector<16x128xf32>
      %15 = arith.addf %12, %14 : vector<16x128xf32>
      %cst_13 = arith.constant 0.000000e+00 : f32
      %16 = vector.broadcast %cst_13 : f32 to vector<16x128xf32>
      %17 = arith.maximumf %15, %16 : vector<16x128xf32>
      %18 = arith.truncf %17 : vector<16x128xf32> to vector<16x128xbf16>
      %c0_14 = arith.constant 0 : index
      %c0_15 = arith.constant 0 : index
      %19 = vector.load %arg6[%c0_14, %c0_15] : memref<16x128xbf16, #tpu.memory_space<vmem>>, vector<16x128xbf16>
      tpu.vector_store %arg6[%c0_14, %c0_15], %18 {strides = array<i32>} : memref<16x128xbf16, #tpu.memory_space<vmem>>, vector<16x128xbf16>,
    } else {
    }
    return
  }
  func.func @transform_0(%arg0: i32, %arg1: i32, %arg2: i32) -> (i32, i32) {
    %c0_i32 = arith.constant 0 : i32
    return %arg0, %arg2 : i32, i32
  }
  func.func @transform_1(%arg0: i32, %arg1: i32, %arg2: i32) -> (i32, i32) {
    %c0_i32 = arith.constant 0 : i32
    return %arg2, %arg1 : i32, i32
  }
  func.func @transform_2(%arg0: i32, %arg1: i32, %arg2: i32) -> (i32, i32) {
    %c0_i32 = arith.constant 0 : i32
    %c0_i32_0 = arith.constant 0 : i32
    return %c0_i32, %arg1 : i32, i32
  }
  func.func @transform_3(%arg0: i32, %arg1: i32, %arg2: i32) -> (i32, i32) {
    %c0_i32 = arith.constant 0 : i32
    return %arg0, %arg1 : i32, i32
  }
}

</mosaic_0001>

<bundles_post_ra>
// kernel: _lambda_.11
= control target key start
LH: loop header
LB: loop body
LE: loop exit
PB: predicated region body
PF: predicated region fallthrough
CT: control target
= control target key end

     0   :  { %vm304_vm0 = vcmask 519168   ;;  %s871_s0 = inlined_call_operand.vmem [shape: bf16[128,64], index: 0, kind: input, shape index: {}]   ;;  %s872_s1 = inlined_call_operand.vmem [shape: bf16[128,64], index: 1, kind: input, shape index: {}]   ;;  %s873_s2 = inlined_call_operand.vmem [shape: bf16[128,64], index: 2, kind: input, shape index: {}]   ;;  %s874_s3 = inlined_call_operand.vmem [shape: bf16[128,64], index: 3, kind: input, shape index: {}]   ;;  %s875_s4 = inlined_call_operand.vmem [shape: bf16[128,64], index: 4, kind: input, shape index: {}]   ;;  %s876_s5 = inlined_call_operand.vmem [shape: bf16[128,64], index: 5, kind: input, shape index: {}]   ;;  %s877_s6 = inlined_call_operand.vmem [shape: bf16[128,64], index: 6, kind: input, shape index: {}]   ;;  %s878_s7 = inlined_call_operand.vmem [shape: bf16[128,64], index: 7, kind: input, shape index: {}]   ;;  %s879_s8 = inlined_call_operand.vmem [shape: bf16[128,64], index: 8, kind: input, shape index: {}]   ;;  %s880_s9 = inlined_call_operand.vmem [shape: bf16[128,64], index: 9, kind: output, shape index: {}]  }
   0x1   :  { %v32_v0 = vld [vmem:[%s871_s0] sm:$0xf]  ;;  %v33_v6 = vld [vmem:[%s871_s0 + $0x4] sm:$0xf]  ;;  %v34_v15 = vld [vmem:[%s871_s0 + $0x8] sm:$0xf] }
   0x2   :  { %v48_v1 = vld [vmem:[%s872_s1] sm:$0xf]  ;;  %v49_v7 = vld [vmem:[%s872_s1 + $0x4] sm:$0xf]  ;;  %v50_v16 = vld [vmem:[%s872_s1 + $0x8] sm:$0xf] }
   0x3   :  { %v80_v2 = vld [vmem:[%s873_s2] sm:$0xf]  ;;  %v64_v3 = vmax.bf16 %v48_v1, %v32_v0  ;;  %v81_v8 = vld [vmem:[%s873_s2 + $0x4] sm:$0xf]  ;;  %v65_v10 = vmax.bf16 %v49_v7, %v33_v6  ;;  %v82_v17 = vld [vmem:[%s873_s2 + $0x8] sm:$0xf]  ;;  %v66_v20 = vmax.bf16 %v50_v16, %v34_v15 }
   0x4   :  { %v112_v4 = vld [vmem:[%s874_s3] sm:$0xf]  ;;  %v113_v13 = vld [vmem:[%s874_s3 + $0x4] sm:$0xf]  ;;  %v114_v24 = vld [vmem:[%s874_s3 + $0x8] sm:$0xf] }
   0x5   :  { %v96_v5 = vmax.bf16 %v80_v2, %v64_v3  ;;  %v144_v9 = vld [vmem:[%s875_s4] sm:$0xf]  ;;  %v97_v14 = vmax.bf16 %v81_v8, %v65_v10  ;;  %v145_v19 = vld [vmem:[%s875_s4 + $0x4] sm:$0xf]  ;;  %v98_v26 = vmax.bf16 %v82_v17, %v66_v20  ;;  %v35_v27 = vld [vmem:[%s871_s0 + $0xc] sm:$0xf] }
   0x6   :  { %v176_v12 = vld [vmem:[%s876_s5] sm:$0xf]  ;;  %v177_v23 = vld [vmem:[%s876_s5 + $0x4] sm:$0xf]  ;;  %v51_v28 = vld [vmem:[%s872_s1 + $0xc] sm:$0xf] }
   0x7   :  { %v128_v11 = vmax.bf16 %v112_v4, %v96_v5  ;;  %v208_v21 = vld [vmem:[%s877_s6] sm:$0xf]  ;;  %v129_v22 = vmax.bf16 %v113_v13, %v97_v14  ;;  %v83_v29 = vld [vmem:[%s873_s2 + $0xc] sm:$0xf]  ;;  %v146_v33 = vld [vmem:[%s875_s4 + $0x8] sm:$0xf]  ;;  %v67_v34 = vmax.bf16 %v51_v28, %v35_v27  ;;  %v130_v37 = vmax.bf16 %v114_v24, %v98_v26 }
   0x8   :  { %v240_v30 = vld [vmem:[%s878_s7] sm:$0xf]  ;;  %v209_v36 = vld [vmem:[%s877_s6 + $0x4] sm:$0xf]  ;;  %v178_v38 = vld [vmem:[%s876_s5 + $0x8] sm:$0xf] }
   0x9   :  { %v160_v18 = vmax.bf16 %v144_v9, %v128_v11  ;;  %v272_v31 = vld [vmem:[%s879_s8] sm:$0xf]  ;;  %v161_v32 = vmax.bf16 %v145_v19, %v129_v22  ;;  %v115_v39 = vld [vmem:[%s874_s3 + $0xc] sm:$0xf]  ;;  %v99_v41 = vmax.bf16 %v83_v29, %v67_v34  ;;  %v36_v42 = vld [vmem:[%s871_s0 + $0x10] sm:$0xf]  ;;  %v162_v48 = vmax.bf16 %v146_v33, %v130_v37 }
   0xa   :  { %v52_v43 = vld [vmem:[%s872_s1 + $0x10] sm:$0xf]  ;;  %v241_v46 = vld [vmem:[%s878_s7 + $0x4] sm:$0xf]  ;;  %v147_v49 = vld [vmem:[%s875_s4 + $0xc] sm:$0xf] }
   0xb   :  { %v192_v25 = vmax.bf16 %v176_v12, %v160_v18  ;;  %v193_v40 = vmax.bf16 %v177_v23, %v161_v32  ;;  %v84_v44 = vld [vmem:[%s873_s2 + $0x10] sm:$0xf]  ;;  %v273_v47 = vld [vmem:[%s879_s8 + $0x4] sm:$0xf]  ;;  %v68_v50 = vmax.bf16 %v52_v43, %v36_v42  ;;  %v210_v52 = vld [vmem:[%s877_s6 + $0x8] sm:$0xf]  ;;  %v131_v53 = vmax.bf16 %v115_v39, %v99_v41 }
   0xc   :  { %v179_v54 = vld [vmem:[%s876_s5 + $0xc] sm:$0xf]  ;;  %v116_v55 = vld [vmem:[%s874_s3 + $0x10] sm:$0xf]  ;;  %v194_v57 = vmax.bf16 %v178_v38, %v162_v48  ;;  %v37_v59 = vld [vmem:[%s871_s0 + $0x14] sm:$0xf] }
   0xd   :  { %v224_v35 = vmax.bf16 %v208_v21, %v192_v25  ;;  %v225_v51 = vmax.bf16 %v209_v36, %v193_v40  ;;  %v100_v58 = vmax.bf16 %v84_v44, %v68_v50  ;;  %v53_v60 = vld [vmem:[%s872_s1 + $0x14] sm:$0xf]  ;;  %v242_v63 = vld [vmem:[%s878_s7 + $0x8] sm:$0xf]  ;;  %v163_v1 = vmax.bf16 %v147_v49, %v131_v53  ;;  %v148_v2 = vld [vmem:[%s875_s4 + $0x10] sm:$0xf] }
   0xe   :  { %v85_v61 = vld [vmem:[%s873_s2 + $0x14] sm:$0xf]  ;;  %v274_v0 = vld [vmem:[%s879_s8 + $0x8] sm:$0xf]  ;;  %v69_v3 = vmax.bf16 %v53_v60, %v37_v59  ;;  %v226_v4 = vmax.bf16 %v210_v52, %v194_v57  ;;  %v211_v5 = vld [vmem:[%s877_s6 + $0xc] sm:$0xf] }
   0xf   :  { %v256_v45 = vmax.bf16 %v240_v30, %v224_v35  ;;  %v257_v62 = vmax.bf16 %v241_v46, %v225_v51  ;;  %v132_v6 = vmax.bf16 %v116_v55, %v100_v58  ;;  %v180_v7 = vld [vmem:[%s876_s5 + $0x10] sm:$0xf]  ;;  %v117_v8 = vld [vmem:[%s874_s3 + $0x14] sm:$0xf]  ;;  %v195_v10 = vmax.bf16 %v179_v54, %v163_v1  ;;  %v38_v12 = vld [vmem:[%s871_s0 + $0x18] sm:$0xf] }
  0x10   :  { %v101_v11 = vmax.bf16 %v85_v61, %v69_v3  ;;  %v54_v13 = vld [vmem:[%s872_s1 + $0x18] sm:$0xf]  ;;  %v258_v15 = vmax.bf16 %v242_v63, %v226_v4  ;;  %v243_v16 = vld [vmem:[%s878_s7 + $0xc] sm:$0xf]  ;;  %v149_v19 = vld [vmem:[%s875_s4 + $0x14] sm:$0xf] }
  0x11   :  { %v288_v56 = vmax.bf16 %v272_v31, %v256_v45  ;;  %v289_v9 = vmax.bf16 %v273_v47, %v257_v62  ;;  %v86_v14 = vld [vmem:[%s873_s2 + $0x18] sm:$0xf]  ;;  %v275_v17 = vld [vmem:[%s879_s8 + $0xc] sm:$0xf]  ;;  %v164_v18 = vmax.bf16 %v148_v2, %v132_v6  ;;  %v70_v20 = vmax.bf16 %v54_v13, %v38_v12  ;;  %v212_v22 = vld [vmem:[%s877_s6 + $0x10] sm:$0xf] }
  0x12   :  { %v227_v21 = vmax.bf16 %v211_v5, %v195_v10  ;;  %v133_v23 = vmax.bf16 %v117_v8, %v101_v11  ;;  %v181_v24 = vld [vmem:[%s876_s5 + $0x14] sm:$0xf]  ;;  %v118_v25 = vld [vmem:[%s874_s3 + $0x18] sm:$0xf]  ;;  %v290_v26 = vmax.bf16 %v274_v0, %v258_v15  ;;  %v39_v29 = vld [vmem:[%s871_s0 + $0x1c] sm:$0xf] }
  0x13   :  { %305 = vst.msk [vmem:[%s880_s9] sm:$0xf] %vm304_vm0, %v288_v56  ;;  %306 = vst.msk [vmem:[%s880_s9 + $0x4] sm:$0xf] %vm304_vm0, %v289_v9  ;;  %v196_v27 = vmax.bf16 %v180_v7, %v164_v18  ;;  %v102_v28 = vmax.bf16 %v86_v14, %v70_v20  ;;  %v55_v30 = vld [vmem:[%s872_s1 + $0x1c] sm:$0xf] }
  0x14   :  { %v87_v31 = vld [vmem:[%s873_s2 + $0x1c] sm:$0xf]  ;;  %v259_v32 = vmax.bf16 %v243_v16, %v227_v21  ;;  %v244_v33 = vld [vmem:[%s878_s7 + $0x10] sm:$0xf]  ;;  %v165_v35 = vmax.bf16 %v149_v19, %v133_v23  ;;  %v150_v36 = vld [vmem:[%s875_s4 + $0x18] sm:$0xf]  ;;  %v71_v37 = vmax.bf16 %v55_v30, %v39_v29 }
  0x15   :  { %v276_v34 = vld [vmem:[%s879_s8 + $0x10] sm:$0xf]  ;;  %307 = vst.msk [vmem:[%s880_s9 + $0x8] sm:$0xf] %vm304_vm0, %v290_v26  ;;  %v228_v38 = vmax.bf16 %v212_v22, %v196_v27  ;;  %v213_v39 = vld [vmem:[%s877_s6 + $0x14] sm:$0xf]  ;;  %v134_v40 = vmax.bf16 %v118_v25, %v102_v28 }
  0x16   :  { %v182_v41 = vld [vmem:[%s876_s5 + $0x18] sm:$0xf]  ;;  %v119_v42 = vld [vmem:[%s874_s3 + $0x1c] sm:$0xf]  ;;  %v291_v43 = vmax.bf16 %v275_v17, %v259_v32  ;;  %v197_v44 = vmax.bf16 %v181_v24, %v165_v35  ;;  %v103_v45 = vmax.bf16 %v87_v31, %v71_v37  ;;  %v40_v46 = vld [vmem:[%s871_s0 + $0x20] sm:$0xf] }
  0x17   :  { %v56_v47 = vld [vmem:[%s872_s1 + $0x20] sm:$0xf]  ;;  %v260_v49 = vmax.bf16 %v244_v33, %v228_v38  ;;  %v245_v50 = vld [vmem:[%s878_s7 + $0x14] sm:$0xf]  ;;  %v166_v52 = vmax.bf16 %v150_v36, %v134_v40  ;;  %v151_v53 = vld [vmem:[%s875_s4 + $0x1c] sm:$0xf] }
  0x18   :  { %v88_v48 = vld [vmem:[%s873_s2 + $0x20] sm:$0xf]  ;;  %v277_v51 = vld [vmem:[%s879_s8 + $0x14] sm:$0xf]  ;;  %v72_v54 = vmax.bf16 %v56_v47, %v40_v46  ;;  %308 = vst.msk [vmem:[%s880_s9 + $0xc] sm:$0xf] %vm304_vm0, %v291_v43  ;;  %v229_v55 = vmax.bf16 %v213_v39, %v197_v44  ;;  %v135_v57 = vmax.bf16 %v119_v42, %v103_v45 }
  0x19   :  { %v214_v56 = vld [vmem:[%s877_s6 + $0x18] sm:$0xf]  ;;  %v183_v58 = vld [vmem:[%s876_s5 + $0x1c] sm:$0xf]  ;;  %v120_v59 = vld [vmem:[%s874_s3 + $0x20] sm:$0xf]  ;;  %v292_v60 = vmax.bf16 %v276_v34, %v260_v49  ;;  %v198_v61 = vmax.bf16 %v182_v41, %v166_v52 }
  0x1a   :  { %v104_v62 = vmax.bf16 %v88_v48, %v72_v54  ;;  %v41_v63 = vld [vmem:[%s871_s0 + $0x24] sm:$0xf]  ;;  %v261_v2 = vmax.bf16 %v245_v50, %v229_v55  ;;  %v246_v3 = vld [vmem:[%s878_s7 + $0x18] sm:$0xf]  ;;  %v167_v5 = vmax.bf16 %v151_v53, %v135_v57  ;;  %v152_v6 = vld [vmem:[%s875_s4 + $0x20] sm:$0xf] }
  0x1b   :  { %v57_v0 = vld [vmem:[%s872_s1 + $0x24] sm:$0xf]  ;;  %v278_v4 = vld [vmem:[%s879_s8 + $0x18] sm:$0xf]  ;;  %309 = vst.msk [vmem:[%s880_s9 + $0x10] sm:$0xf] %vm304_vm0, %v292_v60  ;;  %v230_v8 = vmax.bf16 %v214_v56, %v198_v61 }
  0x1c   :  { %v89_v1 = vld [vmem:[%s873_s2 + $0x24] sm:$0xf]  ;;  %v73_v7 = vmax.bf16 %v57_v0, %v41_v63  ;;  %v215_v9 = vld [vmem:[%s877_s6 + $0x1c] sm:$0xf]  ;;  %v136_v10 = vmax.bf16 %v120_v59, %v104_v62  ;;  %v184_v11 = vld [vmem:[%s876_s5 + $0x20] sm:$0xf]  ;;  %v293_v13 = vmax.bf16 %v277_v51, %v261_v2  ;;  %v199_v14 = vmax.bf16 %v183_v58, %v167_v5 }
  0x1d   :  { %v121_v12 = vld [vmem:[%s874_s3 + $0x24] sm:$0xf]  ;;  %v42_v16 = vld [vmem:[%s871_s0 + $0x28] sm:$0xf]  ;;  %v262_v19 = vmax.bf16 %v246_v3, %v230_v8  ;;  %v247_v20 = vld [vmem:[%s878_s7 + $0x1c] sm:$0xf] }
  0x1e   :  { %v105_v15 = vmax.bf16 %v89_v1, %v73_v7  ;;  %v58_v17 = vld [vmem:[%s872_s1 + $0x28] sm:$0xf]  ;;  %v279_v21 = vld [vmem:[%s879_s8 + $0x1c] sm:$0xf]  ;;  %v168_v22 = vmax.bf16 %v152_v6, %v136_v10  ;;  %v153_v23 = vld [vmem:[%s875_s4 + $0x24] sm:$0xf]  ;;  %v231_v25 = vmax.bf16 %v215_v9, %v199_v14 }
  0x1f   :  { %v90_v18 = vld [vmem:[%s873_s2 + $0x28] sm:$0xf]  ;;  %v74_v24 = vmax.bf16 %v58_v17, %v42_v16  ;;  %310 = vst.msk [vmem:[%s880_s9 + $0x14] sm:$0xf] %vm304_vm0, %v293_v13  ;;  %v216_v26 = vld [vmem:[%s877_s6 + $0x20] sm:$0xf]  ;;  %v294_v30 = vmax.bf16 %v278_v4, %v262_v19 }
  0x20   :  { %v137_v27 = vmax.bf16 %v121_v12, %v105_v15  ;;  %v185_v28 = vld [vmem:[%s876_s5 + $0x24] sm:$0xf]  ;;  %v122_v29 = vld [vmem:[%s874_s3 + $0x28] sm:$0xf]  ;;  %v200_v31 = vmax.bf16 %v184_v11, %v168_v22  ;;  %v43_v33 = vld [vmem:[%s871_s0 + $0x2c] sm:$0xf]  ;;  %v263_v36 = vmax.bf16 %v247_v20, %v231_v25 }
  0x21   :  { %v106_v32 = vmax.bf16 %v90_v18, %v74_v24  ;;  %v59_v34 = vld [vmem:[%s872_s1 + $0x2c] sm:$0xf]  ;;  %v248_v37 = vld [vmem:[%s878_s7 + $0x20] sm:$0xf]  ;;  %v154_v40 = vld [vmem:[%s875_s4 + $0x28] sm:$0xf] }
  0x22   :  { %v91_v35 = vld [vmem:[%s873_s2 + $0x2c] sm:$0xf]  ;;  %v280_v38 = vld [vmem:[%s879_s8 + $0x20] sm:$0xf]  ;;  %v169_v39 = vmax.bf16 %v153_v23, %v137_v27  ;;  %v75_v41 = vmax.bf16 %v59_v34, %v43_v33  ;;  %311 = vst.msk [vmem:[%s880_s9 + $0x18] sm:$0xf] %vm304_vm0, %v294_v30  ;;  %v232_v42 = vmax.bf16 %v216_v26, %v200_v31  ;;  %v295_v47 = vmax.bf16 %v279_v21, %v263_v36 }
  0x23   :  { %v217_v43 = vld [vmem:[%s877_s6 + $0x24] sm:$0xf]  ;;  %v138_v44 = vmax.bf16 %v122_v29, %v106_v32  ;;  %v186_v45 = vld [vmem:[%s876_s5 + $0x28] sm:$0xf]  ;;  %v123_v46 = vld [vmem:[%s874_s3 + $0x2c] sm:$0xf] }
  0x24   :  { %v201_v48 = vmax.bf16 %v185_v28, %v169_v39  ;;  %v107_v49 = vmax.bf16 %v91_v35, %v75_v41  ;;  %v44_v50 = vld [vmem:[%s871_s0 + $0x30] sm:$0xf]  ;;  %v264_v53 = vmax.bf16 %v248_v37, %v232_v42  ;;  %v249_v54 = vld [vmem:[%s878_s7 + $0x24] sm:$0xf]  ;;  %v155_v57 = vld [vmem:[%s875_s4 + $0x2c] sm:$0xf] }
  0x25   :  { %v60_v51 = vld [vmem:[%s872_s1 + $0x30] sm:$0xf]  ;;  %v281_v55 = vld [vmem:[%s879_s8 + $0x24] sm:$0xf]  ;;  %v170_v56 = vmax.bf16 %v154_v40, %v138_v44  ;;  %312 = vst.msk [vmem:[%s880_s9 + $0x1c] sm:$0xf] %vm304_vm0, %v295_v47 }
  0x26   :  { %v92_v52 = vld [vmem:[%s873_s2 + $0x30] sm:$0xf]  ;;  %v76_v58 = vmax.bf16 %v60_v51, %v44_v50  ;;  %v233_v59 = vmax.bf16 %v217_v43, %v201_v48  ;;  %v218_v60 = vld [vmem:[%s877_s6 + $0x28] sm:$0xf]  ;;  %v139_v61 = vmax.bf16 %v123_v46, %v107_v49  ;;  %v187_v62 = vld [vmem:[%s876_s5 + $0x2c] sm:$0xf]  ;;  %v296_v0 = vmax.bf16 %v280_v38, %v264_v53 }
  0x27   :  { %v124_v63 = vld [vmem:[%s874_s3 + $0x30] sm:$0xf]  ;;  %v202_v1 = vmax.bf16 %v186_v45, %v170_v56  ;;  %v45_v3 = vld [vmem:[%s871_s0 + $0x34] sm:$0xf]  ;;  %v250_v7 = vld [vmem:[%s878_s7 + $0x28] sm:$0xf] }
  0x28   :  { %v108_v2 = vmax.bf16 %v92_v52, %v76_v58  ;;  %v61_v4 = vld [vmem:[%s872_s1 + $0x34] sm:$0xf]  ;;  %v265_v6 = vmax.bf16 %v249_v54, %v233_v59  ;;  %v282_v8 = vld [vmem:[%s879_s8 + $0x28] sm:$0xf]  ;;  %v171_v9 = vmax.bf16 %v155_v57, %v139_v61  ;;  %v156_v10 = vld [vmem:[%s875_s4 + $0x30] sm:$0xf] }
  0x29   :  { %v93_v5 = vld [vmem:[%s873_s2 + $0x34] sm:$0xf]  ;;  %v77_v11 = vmax.bf16 %v61_v4, %v45_v3  ;;  %313 = vst.msk [vmem:[%s880_s9 + $0x20] sm:$0xf] %vm304_vm0, %v296_v0  ;;  %v234_v12 = vmax.bf16 %v218_v60, %v202_v1  ;;  %v219_v13 = vld [vmem:[%s877_s6 + $0x2c] sm:$0xf] }
  0x2a   :  { %v140_v14 = vmax.bf16 %v124_v63, %v108_v2  ;;  %v188_v15 = vld [vmem:[%s876_s5 + $0x30] sm:$0xf]  ;;  %v125_v16 = vld [vmem:[%s874_s3 + $0x34] sm:$0xf]  ;;  %v297_v17 = vmax.bf16 %v281_v55, %v265_v6  ;;  %v203_v18 = vmax.bf16 %v187_v62, %v171_v9  ;;  %v46_v20 = vld [vmem:[%s871_s0 + $0x38] sm:$0xf] }
  0x2b   :  { %v109_v19 = vmax.bf16 %v93_v5, %v77_v11  ;;  %v62_v21 = vld [vmem:[%s872_s1 + $0x38] sm:$0xf]  ;;  %v266_v23 = vmax.bf16 %v250_v7, %v234_v12  ;;  %v251_v24 = vld [vmem:[%s878_s7 + $0x2c] sm:$0xf]  ;;  %v157_v27 = vld [vmem:[%s875_s4 + $0x34] sm:$0xf] }
  0x2c   :  { %v94_v22 = vld [vmem:[%s873_s2 + $0x38] sm:$0xf]  ;;  %v283_v25 = vld [vmem:[%s879_s8 + $0x2c] sm:$0xf]  ;;  %v172_v26 = vmax.bf16 %v156_v10, %v140_v14  ;;  %v78_v28 = vmax.bf16 %v62_v21, %v46_v20  ;;  %314 = vst.msk [vmem:[%s880_s9 + $0x24] sm:$0xf] %vm304_vm0, %v297_v17  ;;  %v235_v29 = vmax.bf16 %v219_v13, %v203_v18 }
  0x2d   :  { %v220_v30 = vld [vmem:[%s877_s6 + $0x30] sm:$0xf]  ;;  %v141_v31 = vmax.bf16 %v125_v16, %v109_v19  ;;  %v189_v32 = vld [vmem:[%s876_s5 + $0x34] sm:$0xf]  ;;  %v126_v33 = vld [vmem:[%s874_s3 + $0x38] sm:$0xf]  ;;  %v298_v34 = vmax.bf16 %v282_v8, %v266_v23 }
  0x2e   :  { %v204_v35 = vmax.bf16 %v188_v15, %v172_v26  ;;  %v110_v36 = vmax.bf16 %v94_v22, %v78_v28  ;;  %v47_v37 = vld [vmem:[%s871_s0 + $0x3c] sm:$0xf]  ;;  %v267_v40 = vmax.bf16 %v251_v24, %v235_v29  ;;  %v252_v41 = vld [vmem:[%s878_s7 + $0x30] sm:$0xf]  ;;  %v158_v43 = vld [vmem:[%s875_s4 + $0x38] sm:$0xf] }
  0x2f   :  { %v63_v38 = vld [vmem:[%s872_s1 + $0x3c] sm:$0xf]  ;;  %v173_v42 = vmax.bf16 %v157_v27, %v141_v31  ;;  %315 = vst.msk [vmem:[%s880_s9 + $0x28] sm:$0xf] %vm304_vm0, %v298_v34  ;;  %v221_v46 = vld [vmem:[%s877_s6 + $0x34] sm:$0xf] }
  0x30   :  { %v95_v39 = vld [vmem:[%s873_s2 + $0x3c] sm:$0xf]  ;;  %v79_v44 = vmax.bf16 %v63_v38, %v47_v37  ;;  %v236_v45 = vmax.bf16 %v220_v30, %v204_v35  ;;  %v142_v47 = vmax.bf16 %v126_v33, %v110_v36  ;;  %v299_v49 = vmax.bf16 %v283_v25, %v267_v40  ;;  %v284_v50 = vld [vmem:[%s879_s8 + $0x30] sm:$0xf]  ;;  %v190_v52 = vld [vmem:[%s876_s5 + $0x38] sm:$0xf] }
  0x31   :  { %v127_v48 = vld [vmem:[%s874_s3 + $0x3c] sm:$0xf]  ;;  %v205_v51 = vmax.bf16 %v189_v32, %v173_v42  ;;  %v253_v55 = vld [vmem:[%s878_s7 + $0x34] sm:$0xf]  ;;  %v222_v59 = vld [vmem:[%s877_s6 + $0x38] sm:$0xf] }
  0x32   :  { %v111_v53 = vmax.bf16 %v95_v39, %v79_v44  ;;  %v268_v54 = vmax.bf16 %v252_v41, %v236_v45  ;;  %v174_v56 = vmax.bf16 %v158_v43, %v142_v47  ;;  %v159_v57 = vld [vmem:[%s875_s4 + $0x3c] sm:$0xf]  ;;  %316 = vst.msk [vmem:[%s880_s9 + $0x2c] sm:$0xf] %vm304_vm0, %v299_v49  ;;  %v285_v62 = vld [vmem:[%s879_s8 + $0x34] sm:$0xf] }
  0x33   :  { %v237_v58 = vmax.bf16 %v221_v46, %v205_v51  ;;  %v191_v0 = vld [vmem:[%s876_s5 + $0x3c] sm:$0xf]  ;;  %v254_v2 = vld [vmem:[%s878_s7 + $0x38] sm:$0xf] }
  0x34   :  { %v143_v60 = vmax.bf16 %v127_v48, %v111_v53  ;;  %v300_v61 = vmax.bf16 %v284_v50, %v268_v54  ;;  %v206_v63 = vmax.bf16 %v190_v52, %v174_v56  ;;  %v223_v5 = vld [vmem:[%s877_s6 + $0x3c] sm:$0xf]  ;;  %v286_v7 = vld [vmem:[%s879_s8 + $0x38] sm:$0xf] }
  0x35   :  { %v269_v1 = vmax.bf16 %v253_v55, %v237_v58  ;;  %v255_v10 = vld [vmem:[%s878_s7 + $0x3c] sm:$0xf] }
  0x36   :  { %v175_v3 = vmax.bf16 %v159_v57, %v143_v60  ;;  %317 = vst.msk [vmem:[%s880_s9 + $0x30] sm:$0xf] %vm304_vm0, %v300_v61  ;;  %v238_v4 = vmax.bf16 %v222_v59, %v206_v63  ;;  %v287_v13 = vld [vmem:[%s879_s8 + $0x3c] sm:$0xf] }
  0x37   :  { %v301_v6 = vmax.bf16 %v285_v62, %v269_v1 }
  0x38   :  { %v207_v8 = vmax.bf16 %v191_v0, %v175_v3  ;;  %v270_v9 = vmax.bf16 %v254_v2, %v238_v4 }
  0x39   :  { %318 = vst.msk [vmem:[%s880_s9 + $0x34] sm:$0xf] %vm304_vm0, %v301_v6 }
  0x3a   :  { %v239_v11 = vmax.bf16 %v223_v5, %v207_v8  ;;  %v302_v12 = vmax.bf16 %v286_v7, %v270_v9 }
  0x3c   :  { %v271_v14 = vmax.bf16 %v255_v10, %v239_v11  ;;  %319 = vst.msk [vmem:[%s880_s9 + $0x38] sm:$0xf] %vm304_vm0, %v302_v12 }
  0x3e   :  { %v303_v15 = vmax.bf16 %v287_v13, %v271_v14 }
  0x40   :  { %320 = vst.msk [vmem:[%s880_s9 + $0x3c] sm:$0xf] %vm304_vm0, %v303_v15 }

// kernel: _lambda_.10
= control target key start
LH: loop header
LB: loop body
LE: loop exit
PB: predicated region body
PF: predicated region fallthrough
CT: control target
= control target key end

     0   :  { %s1094_s12 = smov 0   ;;  %s1096_s13 = smov 0   ;;  %s1294_s0 = inlined_call_operand.vmem [shape: bf16[512,147], index: 0, kind: input, shape index: {}]   ;;  %s1295_s1 = inlined_call_operand.vmem [shape: bf16[147,64], index: 1, kind: input, shape index: {}]   ;;  %s1296_s2 = inlined_call_operand.vmem [shape: f32[1,64], index: 2, kind: input, shape index: {}]   ;;  %s1297_s3 = inlined_call_operand.vmem [shape: bf16[512,64], index: 3, kind: output, shape index: {}]  }
   0x1   :  { %s1098_s14 = smov 0  }
   0x2 LB: > { %s32_s15 = sadd.s32 1, %s1065_s13  ;;  %p890_p0 = scmp.ge.s32.totalorder %s1069_s14, 1  ;;  %s1069_s14 = sphi %s1098_s14, %s13_s14   ;;  %s1065_s13 = sphi %s1096_s13, %s1299_s13   ;;  %s1061_s12 = sphi %s1094_s12, %s1298_s12  }
   0x3   : > { %p34_p1 = scmp.ge.s32.totalorder %s32_s15, 4  ;;  %p191_p2 = scmp.lt.s32.totalorder %s1069_s14, 5 }
   0x5   : > { %s1301_s15 = smov (%p34_p1, %s32_s15), 0  ;;  %p192_p3 = pnand %p890_p0, %p191_p2 }
   0x6   : > { %v1013_v0 = vld [vmem:[%s1295_s1] sm:$0xff] (!%p192_p3)   ;;  %v1071_v1 = vmov (!%p192_p3), 0   ;;  %v1014_v2 = vld [vmem:[%s1295_s1 + $0x8] sm:$0xff] (!%p192_p3)   ;;  %v1015_v3 = vld [vmem:[%s1295_s1 + $0x10] sm:$0xff] (!%p192_p3)   ;;  %s891_s22 = sshll.u32 (!%p192_p3), %s1061_s12, 4  ;;  %vm272_vm0 = vcmask (!%p192_p3), 523264  }
   0x7   : > { %195 = sbr.rel (%p192_p3) target bundleno = 304 (0x130), region = 32  ;;  %501 = vmatprep.subr.bf16.mxu0 (!%p192_p3), %v1071_v1  ;;  %966 = vmatprep.subr.bf16.mxu1 (!%p192_p3), %v1071_v1  ;;  %p236_p4 = scmp.lt.s32.totalorder (!%p192_p3), %s891_s22, 63  ;;  %v1016_v4 = vld [vmem:[%s1295_s1 + $0x18] sm:$0xff] (!%p192_p3)   ;;  %v1072_v5 = vmov (!%p192_p3), 0.0   ;;  %v1017_v6 = vld [vmem:[%s1295_s1 + $0x20] sm:$0xff] (!%p192_p3)   ;;  %vm469_vm1 = vcmask (!%p192_p3), 154624  }
   0x8   : > { %502 = vmatpush1.bf16.msra.mxu0 (!%p192_p3), %v1013_v0  ;;  %976 = vmatpush1.bf16.msra.mxu1 (!%p192_p3), %v1013_v0  ;;  %273 = vst.msk [vmem:[#allocation2] sm:$0xff] (!%p192_p3), %vm272_vm0, %v1072_v5  ;;  %274 = vst.msk [vmem:[#allocation2 + $0x8] sm:$0xff] (!%p192_p3), %vm272_vm0, %v1072_v5  ;;  %v1018_v9 = vld [vmem:[%s1295_s1 + $0x28] sm:$0xff] (!%p192_p3)   ;;  %v1019_v10 = vld [vmem:[%s1295_s1 + $0x30] sm:$0xff] (!%p192_p3)   ;;  %vm494_vm2 = vcmask (!%p192_p3), 1040384   ;;  %vm495_vm3 = vcmask (!%p192_p3), 1041408  }
   0x9   : > { %503 = vmatprep.subr.bf16.mxu0 (!%p192_p3), %v1071_v1  ;;  %967 = vmatprep.subr.bf16.mxu1 (!%p192_p3), %v1071_v1  ;;  %275 = vst.msk [vmem:[#allocation2 + $0x10] sm:$0xff] (!%p192_p3), %vm272_vm0, %v1072_v5  ;;  %276 = vst.msk [vmem:[#allocation2 + $0x18] sm:$0xff] (!%p192_p3), %vm272_vm0, %v1072_v5  ;;  %v1020_v11 = vld [vmem:[%s1295_s1 + $0x38] sm:$0xff] (!%p192_p3)   ;;  %v1073_v12 = vmov (!%p192_p3), 65535   ;;  %v1021_v14 = vld [vmem:[%s1295_s1 + $0x40] sm:$0xff] (!%p192_p3)   ;;  %vm753_vm4 = vcmask (!%p192_p3), 519168  }
   0xa   : > { %277 = vst.msk [vmem:[#allocation2 + $0x20] sm:$0xff] (!%p192_p3), %vm272_vm0, %v1072_v5  ;;  %278 = vst.msk [vmem:[#allocation2 + $0x28] sm:$0xff] (!%p192_p3), %vm272_vm0, %v1072_v5  ;;  %v496_v13 = vsel (!%p192_p3), %vm494_vm2, 4294967295, %v1073_v12  ;;  %v1022_v15 = vld [vmem:[%s1295_s1 + $0x48] ss:$0 sps:$4 sm:$0x33] (!%p192_p3)  }
   0xb   : > { %279 = vst.msk [vmem:[#allocation2 + $0x30] sm:$0xff] (!%p192_p3), %vm272_vm0, %v1072_v5  ;;  %280 = vst.msk [vmem:[#allocation2 + $0x38] sm:$0xff] (!%p192_p3), %vm272_vm0, %v1072_v5  ;;  %v497_v16 = vsel (!%p192_p3), %vm495_vm3, %v496_v13, 0  ;;  %v1217_v50 = vld [vmem:[%s1296_s2] ss:$0 sm:$0xff] (!%p192_p3) }
   0xc   : > { %504 = vmatpush1.bf16.msra.mxu0 (!%p192_p3), %v1014_v2  ;;  %977 = vmatpush1.bf16.msra.mxu1 (!%p192_p3), %v1014_v2  ;;  %281 = vst.msk [vmem:[#allocation2 + $0x40] sm:$0xff] (!%p192_p3), %vm272_vm0, %v1072_v5  ;;  %282 = vst.msk [vmem:[#allocation2 + $0x48] sm:$0xff] (!%p192_p3), %vm272_vm0, %v1072_v5  ;;  %v499_v17 = vand.u32 (!%p192_p3), %v1022_v15, %v497_v16 }
   0xd   : > { %505 = vmatprep.subr.bf16.mxu0 (!%p192_p3), %v1071_v1  ;;  %968 = vmatprep.subr.bf16.mxu1 (!%p192_p3), %v1071_v1  ;;  %283 = vst.msk [vmem:[#allocation2 + $0x50] sm:$0xff] (!%p192_p3), %vm272_vm0, %v1072_v5  ;;  %284 = vst.msk [vmem:[#allocation2 + $0x58] sm:$0xff] (!%p192_p3), %vm272_vm0, %v1072_v5 }
   0xe   : > { %s1303_s22 = smov (!%p236_p4, %s891_s22), 63  ;;  %285 = vst.msk [vmem:[#allocation2 + $0x60] sm:$0xff] %vm272_vm0, %v1072_v5  ;;  %286 = vst.msk [vmem:[#allocation2 + $0x68] sm:$0xff] %vm272_vm0, %v1072_v5 }
   0xf   : > { %s949_s25 = sshll.u32 %s1303_s22, 3  ;;  %287 = vst.msk [vmem:[#allocation2 + $0x70] sm:$0xff] %vm272_vm0, %v1072_v5  ;;  %288 = vst.msk [vmem:[#allocation2 + $0x78] sm:$0xff] %vm272_vm0, %v1072_v5  ;;  %v289_v32 = vld [vmem:[#allocation2] sm:$0xff]  ;;  %v290_v36 = vld [vmem:[#allocation2 + $0x8] sm:$0xff]  ;;  %s895_s19 = sshll.u32 %s1303_s22, 2 }
  0x10   : > { %506 = vmatpush1.bf16.msra.mxu0 %v1015_v3  ;;  %978 = vmatpush1.bf16.msra.mxu1 %v1015_v3  ;;  %s1154_s28 = scalar_lea.vmem %s1294_s0, %s949_s25  ;;  %v291_v48 = vld [vmem:[#allocation2 + $0x10] sm:$0xff]  ;;  %v292_v53 = vld [vmem:[#allocation2 + $0x18] sm:$0xff]  ;;  %s1231_s22 = scalar_lea.vmem %s1297_s3, %s895_s19 }
  0x11   : > { %507 = vmatprep.subr.bf16.mxu0 %v1071_v1  ;;  %969 = vmatprep.subr.bf16.mxu1 %v1071_v1  ;;  %v1025_v7 = vld [vmem:[%s1154_s28 + $0x4] ss:$8 sps:$4 sm:$0xff]   ;;  %v1023_v18 = vld [vmem:[%s1154_s28] ss:$8 sps:$4 sm:$0xff]   ;;  %v1029_v20 = vld [vmem:[%s1154_s28 + $0x14] ss:$8 sps:$4 sm:$0xff]  }
  0x12   : > { %v1028_v8 = vld [vmem:[%s1154_s28 + $0x44] ss:$8 sps:$4 sm:$0xff]   ;;  %922 = vmatprep.mubr.msk.bf16.mxu0 %vm469_vm1, %v1025_v7  ;;  %v1026_v19 = vld [vmem:[%s1154_s28 + $0x40] ss:$8 sps:$4 sm:$0xff]   ;;  %v1031_v21 = vld [vmem:[%s1154_s28 + $0x54] ss:$8 sps:$4 sm:$0xff]  }
  0x13   : > { %926 = vmatprep.mubr.msk.bf16.mxu1 %vm469_vm1, %v1028_v8  ;;  %v1033_v22 = vld [vmem:[%s1154_s28 + $0x10] ss:$8 sps:$4 sm:$0xff]   ;;  %v1035_v24 = vld [vmem:[%s1154_s28 + $0x24] ss:$8 sps:$4 sm:$0xff]   ;;  %v1039_v26 = vld [vmem:[%s1154_s28 + $0x20] ss:$8 sps:$4 sm:$0xff]  }
  0x14   : > { %508 = vmatpush1.bf16.msra.mxu0 %v1016_v4  ;;  %979 = vmatpush1.bf16.msra.mxu1 %v1016_v4  ;;  %v1034_v23 = vld [vmem:[%s1154_s28 + $0x50] ss:$8 sps:$4 sm:$0xff]   ;;  %v1037_v25 = vld [vmem:[%s1154_s28 + $0x64] ss:$8 sps:$4 sm:$0xff]   ;;  %v1040_v27 = vld [vmem:[%s1154_s28 + $0x60] ss:$8 sps:$4 sm:$0xff]  }
  0x15   : > { %509 = vmatprep.subr.bf16.mxu0 %v1071_v1  ;;  %970 = vmatprep.subr.bf16.mxu1 %v1071_v1  ;;  %v1041_v28 = vld [vmem:[%s1154_s28 + $0x34] ss:$8 sps:$4 sm:$0xff]   ;;  %v1045_v30 = vld [vmem:[%s1154_s28 + $0x30] ss:$8 sps:$4 sm:$0xff]   ;;  %v297_v33 = vld [vmem:[#allocation2 + $0x40] sm:$0xff] }
  0x16   : > { %v1043_v29 = vld [vmem:[%s1154_s28 + $0x74] ss:$8 sps:$4 sm:$0xff]   ;;  %v1046_v31 = vld [vmem:[%s1154_s28 + $0x70] ss:$8 sps:$4 sm:$0xff]   ;;  %v298_v37 = vld [vmem:[#allocation2 + $0x48] sm:$0xff] }
  0x17   : > { %v299_v49 = vld [vmem:[#allocation2 + $0x50] sm:$0xff]  ;;  %v300_v54 = vld [vmem:[#allocation2 + $0x58] sm:$0xff]  ;;  %v301_v12 = vld [vmem:[#allocation2 + $0x60] sm:$0xff] }
  0x18   : > { %510 = vmatpush1.bf16.msra.mxu0 %v1017_v6  ;;  %980 = vmatpush1.bf16.msra.mxu1 %v1017_v6 }
  0x19   : > { %511 = vmatprep.subr.bf16.mxu0 %v1071_v1  ;;  %971 = vmatprep.subr.bf16.mxu1 %v1071_v1 }
  0x1c   : > { %512 = vmatpush1.bf16.msra.mxu0 %v1018_v9  ;;  %981 = vmatpush1.bf16.msra.mxu1 %v1018_v9 }
  0x1d   : > { %513 = vmatprep.subr.bf16.mxu0 %v1071_v1  ;;  %972 = vmatprep.subr.bf16.mxu1 %v1071_v1 }
  0x20   : > { %514 = vmatpush1.bf16.msra.mxu0 %v1019_v10  ;;  %982 = vmatpush1.bf16.msra.mxu1 %v1019_v10 }
  0x21   : > { %515 = vmatprep.subr.bf16.mxu0 %v1071_v1  ;;  %973 = vmatprep.subr.bf16.mxu1 %v1071_v1 }
  0x24   : > { %516 = vmatpush1.bf16.msra.mxu0 %v1020_v11  ;;  %983 = vmatpush1.bf16.msra.mxu1 %v1020_v11  ;;  %v293_v11 = vld [vmem:[#allocation2 + $0x20] sm:$0xff] }
  0x25   : > { %517 = vmatprep.subr.bf16.mxu0 %v1071_v1  ;;  %974 = vmatprep.subr.bf16.mxu1 %v1071_v1 }
  0x28   : > { %518 = vmatpush1.bf16.msra.mxu0 %v1021_v14  ;;  %984 = vmatpush1.bf16.msra.mxu1 %v1021_v14 }
  0x29   : > { %519 = vmatprep.subr.bf16.mxu0 %v1071_v1  ;;  %975 = vmatprep.subr.bf16.mxu1 %v1071_v1 }
  0x2c   : > { %520 = vmatpush1.bf16.msra.mxu0 %v499_v17  ;;  %985 = vmatpush1.bf16.msra.mxu1 %v499_v17 }
  0x2f   : > { %534 = vmatmul.mubr.bf16.vlgmr.msra.gmra.mrb[0].mxu0 %v1023_v18  ;;  %566 = vmatmul.mubr.bf16.vlgmr.msra.gmra.mrb[0].mxu1 %v1026_v19  ;;  %v294_v19 = vld [vmem:[#allocation2 + $0x28] sm:$0xff] }
  0x30   : > { %923 = vmatprep.mubr.msk.bf16.mxu0 %vm469_vm1, %v1029_v20  ;;  %927 = vmatprep.mubr.msk.bf16.mxu1 %vm469_vm1, %v1031_v21  ;;  %v302_v20 = vld [vmem:[#allocation2 + $0x68] sm:$0xff] }
  0x37   : > { %542 = vmatmul.mubr.bf16.gmra.mrb[4].mxu0 %v1033_v22  ;;  %574 = vmatmul.mubr.bf16.gmra.mrb[4].mxu1 %v1034_v23 }
  0x38   : > { %924 = vmatprep.mubr.msk.bf16.mxu0 %vm469_vm1, %v1035_v24  ;;  %928 = vmatprep.mubr.msk.bf16.mxu1 %vm469_vm1, %v1037_v25 }
  0x3f   : > { %550 = vmatmul.mubr.bf16.gmra.mrb[8].mxu0 %v1039_v26  ;;  %582 = vmatmul.mubr.bf16.gmra.mrb[8].mxu1 %v1040_v27 }
  0x40   : > { %925 = vmatprep.mubr.msk.bf16.mxu0 %vm469_vm1, %v1041_v28  ;;  %929 = vmatprep.mubr.msk.bf16.mxu1 %vm469_vm1, %v1043_v29 }
  0x47   : > { %558 = vmatmul.mubr.bf16.gmra.mrb[12].mxu0 %v1045_v30  ;;  %590 = vmatmul.mubr.bf16.gmra.mrb[12].mxu1 %v1046_v31 }
 0x102   : > { %v535_v34 = vpop.f32.mrb[0].mxu0  ;;  %v567_v35 = vpop.f32.mrb[0].mxu1 }
 0x103   : > { %v598_v38 = vadd.f32 %v535_v34, %v289_v32  ;;  %v606_v39 = vadd.f32 %v567_v35, %v297_v33  ;;  %v537_v40 = vpop.f32.mrb[1].mxu0  ;;  %v569_v41 = vpop.f32.mrb[1].mxu1 }
 0x104   : > { %v538_v42 = vpop.f32.mrb[2].mxu0  ;;  %v570_v43 = vpop.f32.mrb[2].mxu1 }
 0x105   : > { %615 = vst.msk [vmem:[#allocation2] sm:$0xff] %vm272_vm0, %v598_v38  ;;  %623 = vst.msk [vmem:[#allocation2 + $0x40] sm:$0xff] %vm272_vm0, %v606_v39  ;;  %v599_v44 = vadd.f32 %v538_v42, %v290_v36  ;;  %v607_v45 = vadd.f32 %v570_v43, %v298_v37  ;;  %v540_v46 = vpop.f32.mrb[3].mxu0  ;;  %v572_v47 = vpop.f32.mrb[3].mxu1  ;;  %v295_v43 = vld [vmem:[#allocation2 + $0x30] sm:$0xff] }
 0x107   : > { %616 = vst.msk [vmem:[#allocation2 + $0x8] sm:$0xff] %vm272_vm0, %v599_v44  ;;  %624 = vst.msk [vmem:[#allocation2 + $0x48] sm:$0xff] %vm272_vm0, %v607_v45  ;;  %v303_v44 = vld [vmem:[#allocation2 + $0x70] sm:$0xff] }
 0x10a   : > { %v543_v51 = vpop.f32.mrb[4].mxu0  ;;  %v575_v52 = vpop.f32.mrb[4].mxu1 }
 0x10b   : > { %v600_v55 = vadd.f32 %v543_v51, %v291_v48  ;;  %v608_v56 = vadd.f32 %v575_v52, %v299_v49  ;;  %v545_v57 = vpop.f32.mrb[5].mxu0  ;;  %v577_v58 = vpop.f32.mrb[5].mxu1  ;;  %v296_v52 = vld [vmem:[#allocation2 + $0x38] sm:$0xff] }
 0x10c   : > { %v634_v59 = vld [vmem:[#allocation2] sm:$0xff]  ;;  %v546_v61 = vpop.f32.mrb[6].mxu0  ;;  %v578_v62 = vpop.f32.mrb[6].mxu1 }
 0x10d   : > { %v642_v60 = vld [vmem:[#allocation2 + $0x40] sm:$0xff]  ;;  %v657_v63 = vadd.f32 %v1217_v50, %v634_v59  ;;  %617 = vst.msk [vmem:[#allocation2 + $0x10] sm:$0xff] %vm272_vm0, %v600_v55  ;;  %625 = vst.msk [vmem:[#allocation2 + $0x50] sm:$0xff] %vm272_vm0, %v608_v56  ;;  %v601_v1 = vadd.f32 %v546_v61, %v292_v53  ;;  %v609_v2 = vadd.f32 %v578_v62, %v300_v54  ;;  %v548_v3 = vpop.f32.mrb[7].mxu0  ;;  %v580_v4 = vpop.f32.mrb[7].mxu1  ;;  %v304_v53 = vld [vmem:[#allocation2 + $0x78] sm:$0xff] }
 0x10e   : > { %v665_v0 = vadd.f32 %v1217_v50, %v642_v60  ;;  %v635_v5 = vld [vmem:[#allocation2 + $0x8] sm:$0xff] }
 0x10f   : > { %v643_v6 = vld [vmem:[#allocation2 + $0x48] sm:$0xff]  ;;  %v673_v7 = vmax.f32 %v657_v63, 0.0  ;;  %v658_v9 = vadd.f32 %v1217_v50, %v635_v5  ;;  %618 = vst.msk [vmem:[#allocation2 + $0x18] sm:$0xff] %vm272_vm0, %v601_v1  ;;  %626 = vst.msk [vmem:[#allocation2 + $0x58] sm:$0xff] %vm272_vm0, %v609_v2 }
 0x110   : > { %v681_v8 = vmax.f32 %v665_v0, 0.0  ;;  %v666_v10 = vadd.f32 %v1217_v50, %v643_v6 }
 0x111   : > { %v950_v13 = vpack.c.bf16 %v673_v7, %v673_v7  ;;  %v674_v15 = vmax.f32 %v658_v9, 0.0 }
 0x112   : > { %v958_v14 = vpack.c.bf16 %v681_v8, %v681_v8  ;;  %v682_v16 = vmax.f32 %v666_v10, 0.0  ;;  %v551_v17 = vpop.f32.mrb[8].mxu0  ;;  %v583_v18 = vpop.f32.mrb[8].mxu1 }
 0x113   : > { %754 = vst.msk [vmem:[%s1231_s22] sm:$0xf] %vm753_vm4, %v950_v13  ;;  %v951_v21 = vpack.c.bf16 %v674_v15, %v674_v15  ;;  %v602_v23 = vadd.f32 %v551_v17, %v293_v11  ;;  %v610_v24 = vadd.f32 %v583_v18, %v301_v12  ;;  %v553_v25 = vpop.f32.mrb[9].mxu0  ;;  %v585_v26 = vpop.f32.mrb[9].mxu1 }
 0x114   : > { %762 = vst.msk [vmem:[%s1231_s22 + $0x20] sm:$0xf] %vm753_vm4, %v958_v14  ;;  %v959_v22 = vpack.c.bf16 %v682_v16, %v682_v16  ;;  %v636_v27 = vld [vmem:[#allocation2 + $0x10] sm:$0xff]  ;;  %v554_v29 = vpop.f32.mrb[10].mxu0  ;;  %v586_v30 = vpop.f32.mrb[10].mxu1 }
 0x115   : > { %v644_v28 = vld [vmem:[#allocation2 + $0x50] sm:$0xff]  ;;  %755 = vst.msk [vmem:[%s1231_s22 + $0x4] sm:$0xf] %vm753_vm4, %v951_v21  ;;  %v659_v31 = vadd.f32 %v1217_v50, %v636_v27  ;;  %v603_v33 = vadd.f32 %v554_v29, %v294_v19  ;;  %v611_v34 = vadd.f32 %v586_v30, %v302_v20  ;;  %v556_v35 = vpop.f32.mrb[11].mxu0  ;;  %v588_v36 = vpop.f32.mrb[11].mxu1 }
 0x116   : > { %763 = vst.msk [vmem:[%s1231_s22 + $0x24] sm:$0xf] %vm753_vm4, %v959_v22  ;;  %v667_v32 = vadd.f32 %v1217_v50, %v644_v28  ;;  %v637_v37 = vld [vmem:[#allocation2 + $0x18] sm:$0xff] }
 0x117   : > { %619 = vst.msk [vmem:[#allocation2 + $0x20] sm:$0xff] %vm272_vm0, %v602_v23  ;;  %627 = vst.msk [vmem:[#allocation2 + $0x60] sm:$0xff] %vm272_vm0, %v610_v24  ;;  %v645_v38 = vld [vmem:[#allocation2 + $0x58] sm:$0xff]  ;;  %v675_v39 = vmax.f32 %v659_v31, 0.0  ;;  %v660_v41 = vadd.f32 %v1217_v50, %v637_v37 }
 0x118   : > { %v683_v40 = vmax.f32 %v667_v32, 0.0  ;;  %v668_v42 = vadd.f32 %v1217_v50, %v645_v38  ;;  %620 = vst.msk [vmem:[#allocation2 + $0x28] sm:$0xff] %vm272_vm0, %v603_v33  ;;  %628 = vst.msk [vmem:[#allocation2 + $0x68] sm:$0xff] %vm272_vm0, %v611_v34 }
 0x119   : > { %v952_v45 = vpack.c.bf16 %v675_v39, %v675_v39  ;;  %v676_v47 = vmax.f32 %v660_v41, 0.0 }
 0x11a   : > { %v960_v46 = vpack.c.bf16 %v683_v40, %v683_v40  ;;  %v684_v48 = vmax.f32 %v668_v42, 0.0  ;;  %v559_v49 = vpop.f32.mrb[12].mxu0  ;;  %v591_v51 = vpop.f32.mrb[12].mxu1 }
 0x11b   : > { %756 = vst.msk [vmem:[%s1231_s22 + $0x8] sm:$0xf] %vm753_vm4, %v952_v45  ;;  %v953_v54 = vpack.c.bf16 %v676_v47, %v676_v47  ;;  %v604_v56 = vadd.f32 %v559_v49, %v295_v43  ;;  %v612_v57 = vadd.f32 %v591_v51, %v303_v44  ;;  %v561_v58 = vpop.f32.mrb[13].mxu0  ;;  %v593_v59 = vpop.f32.mrb[13].mxu1 }
 0x11c   : > { %764 = vst.msk [vmem:[%s1231_s22 + $0x28] sm:$0xf] %vm753_vm4, %v960_v46  ;;  %v961_v55 = vpack.c.bf16 %v684_v48, %v684_v48  ;;  %v562_v62 = vpop.f32.mrb[14].mxu0  ;;  %v594_v63 = vpop.f32.mrb[14].mxu1 }
 0x11d   : > { %757 = vst.msk [vmem:[%s1231_s22 + $0xc] sm:$0xf] %vm753_vm4, %v953_v54  ;;  %v605_v2 = vadd.f32 %v562_v62, %v296_v52  ;;  %v613_v3 = vadd.f32 %v594_v63, %v304_v53  ;;  %v564_v4 = vpop.f32.mrb[15].mxu0  ;;  %v596_v5 = vpop.f32.mrb[15].mxu1 }
 0x11e   : > { %v638_v60 = vld [vmem:[#allocation2 + $0x20] sm:$0xff]  ;;  %765 = vst.msk [vmem:[%s1231_s22 + $0x2c] sm:$0xf] %vm753_vm4, %v961_v55 }
 0x11f   : > { %v646_v61 = vld [vmem:[#allocation2 + $0x60] sm:$0xff]  ;;  %v661_v0 = vadd.f32 %v1217_v50, %v638_v60  ;;  %621 = vst.msk [vmem:[#allocation2 + $0x30] sm:$0xff] %vm272_vm0, %v604_v56  ;;  %629 = vst.msk [vmem:[#allocation2 + $0x70] sm:$0xff] %vm272_vm0, %v612_v57  ;;  %v639_v6 = vld [vmem:[#allocation2 + $0x28] sm:$0xff] }
 0x120   : > { %v669_v1 = vadd.f32 %v1217_v50, %v646_v61  ;;  %v647_v7 = vld [vmem:[#allocation2 + $0x68] sm:$0xff]  ;;  %v662_v10 = vadd.f32 %v1217_v50, %v639_v6  ;;  %622 = vst.msk [vmem:[#allocation2 + $0x38] sm:$0xff] %vm272_vm0, %v605_v2  ;;  %630 = vst.msk [vmem:[#allocation2 + $0x78] sm:$0xff] %vm272_vm0, %v613_v3 }
 0x121   : > { %v677_v8 = vmax.f32 %v661_v0, 0.0  ;;  %v670_v11 = vadd.f32 %v1217_v50, %v647_v7 }
 0x122   : > { %v685_v9 = vmax.f32 %v669_v1, 0.0  ;;  %v678_v14 = vmax.f32 %v662_v10, 0.0 }
 0x123   : > { %v954_v12 = vpack.c.bf16 %v677_v8, %v677_v8  ;;  %v686_v15 = vmax.f32 %v670_v11, 0.0 }
 0x124   : > { %v962_v13 = vpack.c.bf16 %v685_v9, %v685_v9  ;;  %v955_v16 = vpack.c.bf16 %v678_v14, %v678_v14 }
 0x125   : > { %758 = vst.msk [vmem:[%s1231_s22 + $0x10] sm:$0xf] %vm753_vm4, %v954_v12  ;;  %v963_v17 = vpack.c.bf16 %v686_v15, %v686_v15 }
 0x126   : > { %766 = vst.msk [vmem:[%s1231_s22 + $0x30] sm:$0xf] %vm753_vm4, %v962_v13  ;;  %v640_v18 = vld [vmem:[#allocation2 + $0x30] sm:$0xff]  ;;  %759 = vst.msk [vmem:[%s1231_s22 + $0x14] sm:$0xf] %vm753_vm4, %v955_v16 }
 0x127   : > { %v648_v19 = vld [vmem:[#allocation2 + $0x70] sm:$0xff]  ;;  %767 = vst.msk [vmem:[%s1231_s22 + $0x34] sm:$0xf] %vm753_vm4, %v963_v17  ;;  %v663_v20 = vadd.f32 %v1217_v50, %v640_v18  ;;  %v641_v22 = vld [vmem:[#allocation2 + $0x38] sm:$0xff] }
 0x128   : > { %v671_v21 = vadd.f32 %v1217_v50, %v648_v19  ;;  %v649_v23 = vld [vmem:[#allocation2 + $0x78] sm:$0xff]  ;;  %v664_v26 = vadd.f32 %v1217_v50, %v641_v22 }
 0x129   : > { %v679_v24 = vmax.f32 %v663_v20, 0.0  ;;  %v672_v27 = vadd.f32 %v1217_v50, %v649_v23 }
 0x12a   : > { %v687_v25 = vmax.f32 %v671_v21, 0.0  ;;  %v680_v30 = vmax.f32 %v664_v26, 0.0 }
 0x12b   : > { %v956_v28 = vpack.c.bf16 %v679_v24, %v679_v24  ;;  %v688_v31 = vmax.f32 %v672_v27, 0.0 }
 0x12c   : > { %v964_v29 = vpack.c.bf16 %v687_v25, %v687_v25  ;;  %v957_v32 = vpack.c.bf16 %v680_v30, %v680_v30 }
 0x12d   : > { %760 = vst.msk [vmem:[%s1231_s22 + $0x18] sm:$0xf] %vm753_vm4, %v956_v28  ;;  %v965_v33 = vpack.c.bf16 %v688_v31, %v688_v31 }
 0x12e   : > { %768 = vst.msk [vmem:[%s1231_s22 + $0x38] sm:$0xf] %vm753_vm4, %v964_v29  ;;  %761 = vst.msk [vmem:[%s1231_s22 + $0x1c] sm:$0xf] %vm753_vm4, %v957_v32 }
 0x12f   : > { %769 = vst.msk [vmem:[%s1231_s22 + $0x3c] sm:$0xf] %vm753_vm4, %v965_v33 }
 0x130 PF: > { %s13_s14 = sadd.s32 1, %s1069_s14   ;;  %s1298_s12 = smov %s1065_s13 }
 0x131   : > { %p10_p5 = scmp.ge.s32.totalorder %s13_s14, 6   ;;  %s1299_s13 = smov %s1301_s15 }
 0x133   :  { %12 = sbr.rel (!%p10_p5) target bundleno = 2 (0x2), region = 76 }

// kernel: _lambda_.12
= control target key start
LH: loop header
LB: loop body
LE: loop exit
PB: predicated region body
PF: predicated region fallthrough
CT: control target
= control target key end

     0   :  { %vm19_vm0 = vcmask 523264   ;;  %vm1058_vm1 = vcmask 519168   ;;  %s1871_s1 = inlined_call_operand.vmem [shape: bf16[576,64], index: 1, kind: input, shape index: {}]   ;;  %s1872_s0 = inlined_call_operand.vmem [shape: bf16[128,576], index: 0, kind: input, shape index: {}]   ;;  %s1873_s2 = inlined_call_operand.vmem [shape: f32[1,64], index: 2, kind: input, shape index: {}]   ;;  %s1874_s3 = inlined_call_operand.vmem [shape: bf16[128,64], index: 3, kind: output, shape index: {}]  }
   0x1   :  { %v1369_v0 = vld [vmem:[%s1871_s1 + $0x40] sm:$0xff]   ;;  %v1373_v4 = vld [vmem:[%s1871_s1 + $0x48] sm:$0xff]   ;;  %v1377_v8 = vld [vmem:[%s1871_s1 + $0x50] sm:$0xff]  }
   0x2   :  { %v1370_v1 = vld [vmem:[%s1871_s1 + $0xc0] sm:$0xff]   ;;  %1196 = vmatprep.subr.bf16.mxu0 %v1369_v0  ;;  %v1374_v5 = vld [vmem:[%s1871_s1 + $0xc8] sm:$0xff]   ;;  %v1378_v9 = vld [vmem:[%s1871_s1 + $0xd0] sm:$0xff]  }
   0x3   :  { %v1371_v2 = vld [vmem:[%s1871_s1] sm:$0xff]   ;;  %1260 = vmatprep.subr.bf16.mxu1 %v1370_v1  ;;  %v1375_v6 = vld [vmem:[%s1871_s1 + $0x8] sm:$0xff]   ;;  %v1379_v10 = vld [vmem:[%s1871_s1 + $0x10] sm:$0xff]  }
   0x4   :  { %v1372_v3 = vld [vmem:[%s1871_s1 + $0x80] sm:$0xff]   ;;  %1197 = vmatpush3.bf16.msra.mxu0 %v1371_v2  ;;  %v1376_v7 = vld [vmem:[%s1871_s1 + $0x88] sm:$0xff]   ;;  %v1380_v11 = vld [vmem:[%s1871_s1 + $0x90] sm:$0xff]  }
   0x5   :  { %1261 = vmatpush3.bf16.msra.mxu1 %v1372_v3  ;;  %1198 = vmatprep.subr.bf16.mxu0 %v1373_v4  ;;  %v1381_v12 = vld [vmem:[%s1871_s1 + $0x58] sm:$0xff]   ;;  %v1385_v16 = vld [vmem:[%s1871_s1 + $0x60] sm:$0xff]   ;;  %v1389_v20 = vld [vmem:[%s1871_s1 + $0x68] sm:$0xff]  }
   0x6   :  { %1262 = vmatprep.subr.bf16.mxu1 %v1374_v5  ;;  %v1382_v13 = vld [vmem:[%s1871_s1 + $0xd8] sm:$0xff]   ;;  %v1386_v17 = vld [vmem:[%s1871_s1 + $0xe0] sm:$0xff]   ;;  %v1390_v21 = vld [vmem:[%s1871_s1 + $0xe8] sm:$0xff]  }
   0x7   :  { %v1383_v14 = vld [vmem:[%s1871_s1 + $0x18] sm:$0xff]   ;;  %v1387_v18 = vld [vmem:[%s1871_s1 + $0x20] sm:$0xff]   ;;  %v1391_v22 = vld [vmem:[%s1871_s1 + $0x28] sm:$0xff]  }
   0x8   :  { %1199 = vmatpush3.bf16.msra.mxu0 %v1375_v6  ;;  %v1384_v15 = vld [vmem:[%s1871_s1 + $0x98] sm:$0xff]   ;;  %v1388_v19 = vld [vmem:[%s1871_s1 + $0xa0] sm:$0xff]   ;;  %v1392_v23 = vld [vmem:[%s1871_s1 + $0xa8] sm:$0xff]  }
   0x9   :  { %1263 = vmatpush3.bf16.msra.mxu1 %v1376_v7  ;;  %1200 = vmatprep.subr.bf16.mxu0 %v1377_v8  ;;  %v1393_v24 = vld [vmem:[%s1871_s1 + $0x70] sm:$0xff]   ;;  %v1397_v28 = vld [vmem:[%s1871_s1 + $0x78] sm:$0xff]   ;;  %v1406_v35 = vld [vmem:[%s1872_s0 + $0xc] ss:$20 sps:$4 sm:$0xff]  }
   0xa   :  { %1264 = vmatprep.subr.bf16.mxu1 %v1378_v9  ;;  %v1394_v25 = vld [vmem:[%s1871_s1 + $0xf0] sm:$0xff]   ;;  %v1398_v29 = vld [vmem:[%s1871_s1 + $0xf8] sm:$0xff]   ;;  %v1407_v36 = vld [vmem:[%s1871_s1 + $0x100] sm:$0xff]   ;;  %742 = vmatprep.mubr.bf16.mxu1 %v1406_v35 }
   0xb   :  { %v1395_v26 = vld [vmem:[%s1871_s1 + $0x30] sm:$0xff]   ;;  %v1399_v30 = vld [vmem:[%s1871_s1 + $0x38] sm:$0xff]   ;;  %v1408_v37 = vld [vmem:[%s1872_s0 + $0x2c] ss:$20 sps:$4 sm:$0xff]  }
   0xc   :  { %1201 = vmatpush3.bf16.msra.mxu0 %v1379_v10  ;;  %v1396_v27 = vld [vmem:[%s1871_s1 + $0xb0] sm:$0xff]   ;;  %v1400_v31 = vld [vmem:[%s1871_s1 + $0xb8] sm:$0xff]   ;;  %v1420_v42 = vld [vmem:[%s1871_s1 + $0x108] sm:$0xff]  }
   0xd   :  { %1265 = vmatpush3.bf16.msra.mxu1 %v1380_v11  ;;  %1202 = vmatprep.subr.bf16.mxu0 %v1381_v12  ;;  %v1401_v32 = vld [vmem:[%s1872_s0] ss:$20 sps:$4 sm:$0xff]   ;;  %v1403_v33 = vld [vmem:[%s1872_s0 + $0x4] ss:$20 sps:$4 sm:$0xff]   ;;  %v1404_v34 = vld [vmem:[%s1872_s0 + $0x8] ss:$20 sps:$4 sm:$0xff]  }
   0xe   :  { %1266 = vmatprep.subr.bf16.mxu1 %v1382_v13  ;;  %645 = vmatprep.mubr.bf16.mxu0 %v1403_v33  ;;  %v1410_v38 = vld [vmem:[%s1872_s0 + $0x34] ss:$20 sps:$4 sm:$0xff]   ;;  %v1413_v40 = vld [vmem:[%s1872_s0 + $0x30] ss:$20 sps:$4 sm:$0xff]   ;;  %v1419_v45 = vld [vmem:[%s1872_s0 + $0x58] ss:$20 sps:$4 sm:$0xff]  }
   0xf   :  { %v1412_v39 = vld [vmem:[%s1872_s0 + $0x28] ss:$20 sps:$4 sm:$0xff]   ;;  %v1418_v44 = vld [vmem:[%s1872_s0 + $0x50] ss:$20 sps:$4 sm:$0xff]   ;;  %v1425_v50 = vld [vmem:[%s1872_s0 + $0x78] ss:$20 sps:$4 sm:$0xff]  }
  0x10   :  { %1203 = vmatpush3.bf16.msra.mxu0 %v1383_v14  ;;  %v1414_v41 = vld [vmem:[%s1872_s0 + $0x54] ss:$20 sps:$4 sm:$0xff]   ;;  %v1416_v43 = vld [vmem:[%s1872_s0 + $0x5c] ss:$20 sps:$4 sm:$0xff]   ;;  %v1423_v48 = vld [vmem:[%s1872_s0 + $0x84] ss:$20 sps:$4 sm:$0xff]  }
  0x11   :  { %1267 = vmatpush3.bf16.msra.mxu1 %v1384_v15  ;;  %1204 = vmatprep.subr.bf16.mxu0 %v1385_v16  ;;  %v1433_v46 = vld [vmem:[%s1871_s1 + $0x110] sm:$0xff]   ;;  %v1446_v49 = vld [vmem:[%s1871_s1 + $0x118] sm:$0xff]   ;;  %v1429_v53 = vld [vmem:[%s1872_s0 + $0xac] ss:$20 sps:$4 sm:$0xff]   ;;  %v1461_v12 = vmov 0.0  }
  0x12   :  { %1268 = vmatprep.subr.bf16.mxu1 %v1386_v17  ;;  %v1421_v47 = vld [vmem:[%s1872_s0 + $0x7c] ss:$20 sps:$4 sm:$0xff]   ;;  %v1426_v51 = vld [vmem:[%s1872_s0 + $0x80] ss:$20 sps:$4 sm:$0xff]   ;;  %v1427_v52 = vld [vmem:[%s1872_s0 + $0xa4] ss:$20 sps:$4 sm:$0xff]  }
  0x13   :  { %v1431_v54 = vld [vmem:[%s1872_s0 + $0xa0] ss:$20 sps:$4 sm:$0xff]   ;;  %v1432_v55 = vld [vmem:[%s1872_s0 + $0xa8] ss:$20 sps:$4 sm:$0xff]   ;;  %v1439_v59 = vld [vmem:[%s1872_s0 + $0xd0] ss:$20 sps:$4 sm:$0xff]  }
  0x14   :  { %1205 = vmatpush3.bf16.msra.mxu0 %v1387_v18  ;;  %v1434_v56 = vld [vmem:[%s1872_s0 + $0xcc] ss:$20 sps:$4 sm:$0xff]   ;;  %v1436_v57 = vld [vmem:[%s1872_s0 + $0xd4] ss:$20 sps:$4 sm:$0xff]   ;;  %v1442_v61 = vld [vmem:[%s1872_s0 + $0xfc] ss:$20 sps:$4 sm:$0xff]  }
  0x15   :  { %1269 = vmatpush3.bf16.msra.mxu1 %v1388_v19  ;;  %1206 = vmatprep.subr.bf16.mxu0 %v1389_v20  ;;  %v1438_v58 = vld [vmem:[%s1872_s0 + $0xc8] ss:$20 sps:$4 sm:$0xff]   ;;  %v1444_v62 = vld [vmem:[%s1872_s0 + $0xf0] ss:$20 sps:$4 sm:$0xff]   ;;  %v1445_v63 = vld [vmem:[%s1872_s0 + $0xf8] ss:$20 sps:$4 sm:$0xff]  }
  0x16   :  { %1270 = vmatprep.subr.bf16.mxu1 %v1390_v21  ;;  %v1440_v60 = vld [vmem:[%s1872_s0 + $0xf4] ss:$20 sps:$4 sm:$0xff]   ;;  %v1447_v0 = vld [vmem:[%s1872_s0 + $0x11c] ss:$20 sps:$4 sm:$0xff]   ;;  %v1449_v1 = vld [vmem:[%s1872_s0 + $0x124] ss:$20 sps:$4 sm:$0xff]  }
  0x17   :  { %v1451_v2 = vld [vmem:[%s1872_s0 + $0x118] ss:$20 sps:$4 sm:$0xff]   ;;  %v1452_v3 = vld [vmem:[%s1872_s0 + $0x120] ss:$20 sps:$4 sm:$0xff]   ;;  %v1453_v4 = vld [vmem:[%s1872_s0 + $0x10] ss:$20 sps:$4 sm:$0xff]  }
  0x18   :  { %1207 = vmatpush3.bf16.msra.mxu0 %v1391_v22  ;;  %v1454_v5 = vld [vmem:[%s1872_s0 + $0xb0] ss:$20 sps:$4 sm:$0xff]   ;;  %v1455_v6 = vld [vmem:[%s1872_s0 + $0x38] ss:$20 sps:$4 sm:$0xff]   ;;  %v1457_v8 = vld [vmem:[%s1872_s0 + $0x60] ss:$20 sps:$4 sm:$0xff]  }
  0x19   :  { %1271 = vmatpush3.bf16.msra.mxu1 %v1392_v23  ;;  %1208 = vmatprep.subr.bf16.mxu0 %v1393_v24  ;;  %v1456_v7 = vld [vmem:[%s1872_s0 + $0xd8] ss:$20 sps:$4 sm:$0xff]   ;;  %v1458_v9 = vld [vmem:[%s1872_s0 + $0x100] ss:$20 sps:$4 sm:$0xff]   ;;  %v1459_v10 = vld [vmem:[%s1872_s0 + $0x88] ss:$20 sps:$4 sm:$0xff]  }
  0x1a   :  { %1272 = vmatprep.subr.bf16.mxu1 %v1394_v25  ;;  %v1460_v11 = vld [vmem:[%s1872_s0 + $0x128] ss:$20 sps:$4 sm:$0xff]   ;;  %22 = vst.msk [vmem:[#allocation2 + $0x10] sm:$0xff] %vm19_vm0, %v1461_v12  ;;  %20 = vst.msk [vmem:[#allocation2] sm:$0xff] %vm19_vm0, %v1461_v12 }
  0x1b   :  { %21 = vst.msk [vmem:[#allocation2 + $0x8] sm:$0xff] %vm19_vm0, %v1461_v12  ;;  %23 = vst.msk [vmem:[#allocation2 + $0x18] sm:$0xff] %vm19_vm0, %v1461_v12 }
  0x1c   :  { %1209 = vmatpush3.bf16.msra.mxu0 %v1395_v26  ;;  %24 = vst.msk [vmem:[#allocation2 + $0x20] sm:$0xff] %vm19_vm0, %v1461_v12  ;;  %25 = vst.msk [vmem:[#allocation2 + $0x28] sm:$0xff] %vm19_vm0, %v1461_v12 }
  0x1d   :  { %1273 = vmatpush3.bf16.msra.mxu1 %v1396_v27  ;;  %1210 = vmatprep.subr.bf16.mxu0 %v1397_v28  ;;  %26 = vst.msk [vmem:[#allocation2 + $0x30] sm:$0xff] %vm19_vm0, %v1461_v12  ;;  %27 = vst.msk [vmem:[#allocation2 + $0x38] sm:$0xff] %vm19_vm0, %v1461_v12 }
  0x1e   :  { %1274 = vmatprep.subr.bf16.mxu1 %v1398_v29  ;;  %28 = vst.msk [vmem:[#allocation2 + $0x40] sm:$0xff] %vm19_vm0, %v1461_v12  ;;  %29 = vst.msk [vmem:[#allocation2 + $0x48] sm:$0xff] %vm19_vm0, %v1461_v12 }
  0x1f   :  { %30 = vst.msk [vmem:[#allocation2 + $0x50] sm:$0xff] %vm19_vm0, %v1461_v12  ;;  %31 = vst.msk [vmem:[#allocation2 + $0x58] sm:$0xff] %vm19_vm0, %v1461_v12 }
  0x20   :  { %1211 = vmatpush3.bf16.msra.mxu0 %v1399_v30  ;;  %32 = vst.msk [vmem:[#allocation2 + $0x60] sm:$0xff] %vm19_vm0, %v1461_v12  ;;  %33 = vst.msk [vmem:[#allocation2 + $0x68] sm:$0xff] %vm19_vm0, %v1461_v12 }
  0x21   :  { %1275 = vmatpush3.bf16.msra.mxu1 %v1400_v31  ;;  %1336 = vmatprep.subr.bf16.mxu0 %v1407_v36  ;;  %34 = vst.msk [vmem:[#allocation2 + $0x70] sm:$0xff] %vm19_vm0, %v1461_v12  ;;  %35 = vst.msk [vmem:[#allocation2 + $0x78] sm:$0xff] %vm19_vm0, %v1461_v12 }
  0x22   :  { %1360 = vmatprep.subr.bf16.mxu1 %v1407_v36 }
  0x23   :  { %646 = vmatmul.mubr.bf16.vlgmr.msra.gmra.mrb[0].mxu0 %v1401_v32 }
  0x24   :  { %743 = vmatmul.mubr.bf16.vlgmr.msra.gmra.mrb[0].mxu1 %v1404_v34  ;;  %1337 = vmatpush3.bf16.msra.mxu0 %v1407_v36 }
  0x25   :  { %1364 = vmatpush3.bf16.msra.mxu1 %v1407_v36  ;;  %653 = vmatprep.mubr.bf16.mxu0 %v1408_v37 }
  0x26   :  { %750 = vmatprep.mubr.bf16.mxu1 %v1410_v38  ;;  %1338 = vmatprep.subr.bf16.mxu0 %v1420_v42 }
  0x27   :  { %1361 = vmatprep.subr.bf16.mxu1 %v1420_v42 }
  0x28   :  { %1339 = vmatpush3.bf16.msra.mxu0 %v1420_v42 }
  0x29   :  { %1365 = vmatpush3.bf16.msra.mxu1 %v1420_v42  ;;  %1340 = vmatprep.subr.bf16.mxu0 %v1433_v46 }
  0x2a   :  { %1362 = vmatprep.subr.bf16.mxu1 %v1433_v46 }
  0x2b   :  { %654 = vmatmul.mubr.bf16.gmra.mrb[4].mxu0 %v1412_v39 }
  0x2c   :  { %751 = vmatmul.mubr.bf16.gmra.mrb[4].mxu1 %v1413_v40  ;;  %661 = vmatprep.mubr.bf16.mxu0 %v1414_v41 }
  0x2d   :  { %758 = vmatprep.mubr.bf16.mxu1 %v1416_v43  ;;  %1341 = vmatpush3.bf16.msra.mxu0 %v1433_v46 }
  0x2e   :  { %1366 = vmatpush3.bf16.msra.mxu1 %v1433_v46  ;;  %1342 = vmatprep.subr.bf16.mxu0 %v1446_v49 }
  0x2f   :  { %1363 = vmatprep.subr.bf16.mxu1 %v1446_v49 }
  0x31   :  { %1343 = vmatpush3.bf16.msra.mxu0 %v1446_v49 }
  0x32   :  { %1367 = vmatpush3.bf16.msra.mxu1 %v1446_v49 }
  0x33   :  { %662 = vmatmul.mubr.bf16.gmra.mrb[8].mxu0 %v1418_v44 }
  0x34   :  { %759 = vmatmul.mubr.bf16.gmra.mrb[8].mxu1 %v1419_v45  ;;  %669 = vmatprep.mubr.bf16.mxu0 %v1421_v47 }
  0x35   :  { %766 = vmatprep.mubr.bf16.mxu1 %v1423_v48 }
  0x3b   :  { %670 = vmatmul.mubr.bf16.gmra.mrb[12].mxu0 %v1425_v50 }
  0x3c   :  { %767 = vmatmul.mubr.bf16.gmra.mrb[12].mxu1 %v1426_v51  ;;  %677 = vmatprep.mubr.bf16.mxu0 %v1427_v52 }
  0x3d   :  { %774 = vmatprep.mubr.bf16.mxu1 %v1429_v53 }
  0x43   :  { %678 = vmatmul.mubr.bf16.gmra.mrb[16].mxu0 %v1431_v54 }
  0x44   :  { %775 = vmatmul.mubr.bf16.gmra.mrb[16].mxu1 %v1432_v55  ;;  %685 = vmatprep.mubr.bf16.mxu0 %v1434_v56 }
  0x45   :  { %782 = vmatprep.mubr.bf16.mxu1 %v1436_v57 }
  0x4b   :  { %686 = vmatmul.mubr.bf16.gmra.mrb[20].mxu0 %v1438_v58 }
  0x4c   :  { %783 = vmatmul.mubr.bf16.gmra.mrb[20].mxu1 %v1439_v59  ;;  %693 = vmatprep.mubr.bf16.mxu0 %v1440_v60 }
  0x4d   :  { %790 = vmatprep.mubr.bf16.mxu1 %v1442_v61 }
  0x53   :  { %694 = vmatmul.mubr.bf16.gmra.mrb[24].mxu0 %v1444_v62 }
  0x54   :  { %791 = vmatmul.mubr.bf16.gmra.mrb[24].mxu1 %v1445_v63  ;;  %701 = vmatprep.mubr.bf16.mxu0 %v1447_v0 }
  0x55   :  { %798 = vmatprep.mubr.bf16.mxu1 %v1449_v1 }
  0x5b   :  { %702 = vmatmul.mubr.bf16.gmra.mrb[28].mxu0 %v1451_v2 }
  0x5c   :  { %799 = vmatmul.mubr.bf16.gmra.mrb[28].mxu1 %v1452_v3  ;;  %1344 = vmatprep.mubr.msk.bf16.mxu0 %vm19_vm0, %v1453_v4 }
  0x5d   :  { %1352 = vmatprep.mubr.msk.bf16.mxu1 %vm19_vm0, %v1454_v5 }
  0x63   :  { %1345 = vmatmul.mubr.msk.bf16.vlgmr.msra.gmra.mrb[32].mxu0 %vm19_vm0, %v1455_v6 }
  0x64   :  { %1353 = vmatmul.mubr.msk.bf16.vlgmr.msra.gmra.mrb[32].mxu1 %vm19_vm0, %v1456_v7  ;;  %1348 = vmatprep.mubr.msk.bf16.mxu0 %vm19_vm0, %v1457_v8 }
  0x65   :  { %1356 = vmatprep.mubr.msk.bf16.mxu1 %vm19_vm0, %v1458_v9 }
  0x6b   :  { %1349 = vmatmul.mubr.msk.bf16.gmra.mrb[36].mxu0 %vm19_vm0, %v1459_v10 }
  0x6c   :  { %1357 = vmatmul.mubr.msk.bf16.gmra.mrb[36].mxu1 %vm19_vm0, %v1460_v11 }
  0xf6   :  { %v1212_v13 = vpop.f32.mrb[0].mxu0 }
  0xf7   :  { %v1276_v14 = vpop.f32.mrb[0].mxu1  ;;  %v1213_v15 = vpop.f32.mrb[1].mxu0 }
  0xf8   :  { %v1214_v16 = vadd.f32 %v1213_v15, %v1212_v13  ;;  %v1277_v17 = vpop.f32.mrb[1].mxu1  ;;  %v1215_v18 = vpop.f32.mrb[2].mxu0 }
  0xf9   :  { %v1278_v19 = vadd.f32 %v1277_v17, %v1276_v14  ;;  %v1279_v20 = vpop.f32.mrb[2].mxu1  ;;  %v1216_v21 = vpop.f32.mrb[3].mxu0 }
  0xfa   :  { %v1217_v22 = vadd.f32 %v1216_v21, %v1215_v18  ;;  %v1280_v23 = vpop.f32.mrb[3].mxu1 }
  0xfb   :  { %v1281_v24 = vadd.f32 %v1280_v23, %v1279_v20  ;;  %v1734_v25 = vadd.f32 %v1278_v19, %v1214_v16 }
  0xfd   :  { %v1736_v26 = vadd.f32 %v1281_v24, %v1217_v22 }
  0xfe   :  { %v1218_v27 = vpop.f32.mrb[4].mxu0 }
  0xff   :  { %v1282_v28 = vpop.f32.mrb[4].mxu1  ;;  %v1219_v29 = vpop.f32.mrb[5].mxu0 }
 0x100   :  { %v1220_v30 = vadd.f32 %v1219_v29, %v1218_v27  ;;  %v1283_v31 = vpop.f32.mrb[5].mxu1  ;;  %v1221_v32 = vpop.f32.mrb[6].mxu0 }
 0x101   :  { %v1284_v33 = vadd.f32 %v1283_v31, %v1282_v28  ;;  %v1285_v34 = vpop.f32.mrb[6].mxu1  ;;  %v1222_v35 = vpop.f32.mrb[7].mxu0 }
 0x102   :  { %v1223_v36 = vadd.f32 %v1222_v35, %v1221_v32  ;;  %v1286_v37 = vpop.f32.mrb[7].mxu1 }
 0x103   :  { %v1287_v38 = vadd.f32 %v1286_v37, %v1285_v34  ;;  %v1738_v39 = vadd.f32 %v1284_v33, %v1220_v30 }
 0x105   :  { %v1740_v40 = vadd.f32 %v1287_v38, %v1223_v36 }
 0x106   :  { %v1224_v41 = vpop.f32.mrb[8].mxu0 }
 0x107   :  { %v1288_v42 = vpop.f32.mrb[8].mxu1  ;;  %v1225_v43 = vpop.f32.mrb[9].mxu0 }
 0x108   :  { %v1226_v44 = vadd.f32 %v1225_v43, %v1224_v41  ;;  %v1289_v45 = vpop.f32.mrb[9].mxu1  ;;  %v1227_v46 = vpop.f32.mrb[10].mxu0 }
 0x109   :  { %v1290_v47 = vadd.f32 %v1289_v45, %v1288_v42  ;;  %v1291_v48 = vpop.f32.mrb[10].mxu1  ;;  %v1228_v49 = vpop.f32.mrb[11].mxu0 }
 0x10a   :  { %v1229_v50 = vadd.f32 %v1228_v49, %v1227_v46  ;;  %v1292_v51 = vpop.f32.mrb[11].mxu1 }
 0x10b   :  { %v1293_v52 = vadd.f32 %v1292_v51, %v1291_v48  ;;  %v1742_v53 = vadd.f32 %v1290_v47, %v1226_v44 }
 0x10d   :  { %v1744_v54 = vadd.f32 %v1293_v52, %v1229_v50 }
 0x10e   :  { %v1230_v55 = vpop.f32.mrb[12].mxu0 }
 0x10f   :  { %v1294_v56 = vpop.f32.mrb[12].mxu1  ;;  %v1231_v57 = vpop.f32.mrb[13].mxu0 }
 0x110   :  { %v1232_v58 = vadd.f32 %v1231_v57, %v1230_v55  ;;  %v1295_v59 = vpop.f32.mrb[13].mxu1  ;;  %v1233_v60 = vpop.f32.mrb[14].mxu0 }
 0x111   :  { %v1296_v61 = vadd.f32 %v1295_v59, %v1294_v56  ;;  %v1297_v62 = vpop.f32.mrb[14].mxu1  ;;  %v1234_v63 = vpop.f32.mrb[15].mxu0 }
 0x112   :  { %v1235_v0 = vadd.f32 %v1234_v63, %v1233_v60  ;;  %v1298_v1 = vpop.f32.mrb[15].mxu1 }
 0x113   :  { %v1299_v2 = vadd.f32 %v1298_v1, %v1297_v62  ;;  %v1746_v3 = vadd.f32 %v1296_v61, %v1232_v58 }
 0x115   :  { %v1748_v4 = vadd.f32 %v1299_v2, %v1235_v0 }
 0x116   :  { %v1236_v5 = vpop.f32.mrb[16].mxu0 }
 0x117   :  { %v1300_v6 = vpop.f32.mrb[16].mxu1  ;;  %v1237_v7 = vpop.f32.mrb[17].mxu0 }
 0x118   :  { %v1238_v8 = vadd.f32 %v1237_v7, %v1236_v5  ;;  %v1301_v9 = vpop.f32.mrb[17].mxu1  ;;  %v1239_v10 = vpop.f32.mrb[18].mxu0  ;;  %v38_v5 = vld [vmem:[#allocation2 + $0x10] sm:$0xff] }
 0x119   :  { %v1302_v11 = vadd.f32 %v1301_v9, %v1300_v6  ;;  %v1303_v12 = vpop.f32.mrb[18].mxu1  ;;  %v1240_v13 = vpop.f32.mrb[19].mxu0 }
 0x11a   :  { %v1241_v14 = vadd.f32 %v1240_v13, %v1239_v10  ;;  %v1304_v15 = vpop.f32.mrb[19].mxu1  ;;  %v36_v10 = vld [vmem:[#allocation2] sm:$0xff] }
 0x11b   :  { %v1305_v16 = vadd.f32 %v1304_v15, %v1303_v12  ;;  %v777_v17 = vadd.f32 %v1302_v11, %v1238_v8  ;;  %v46_v8 = vld [vmem:[#allocation2 + $0x50] sm:$0xff] }
 0x11d   :  { %v1750_v18 = vadd.f32 %v1305_v16, %v1241_v14  ;;  %v44_v14 = vld [vmem:[#allocation2 + $0x40] sm:$0xff]  ;;  %v39_v16 = vld [vmem:[#allocation2 + $0x18] sm:$0xff] }
 0x11e   :  { %v1242_v19 = vpop.f32.mrb[20].mxu0 }
 0x11f   :  { %v1306_v20 = vpop.f32.mrb[20].mxu1  ;;  %v1243_v21 = vpop.f32.mrb[21].mxu0 }
 0x120   :  { %v1244_v22 = vadd.f32 %v1243_v21, %v1242_v19  ;;  %v1307_v23 = vpop.f32.mrb[21].mxu1  ;;  %v1245_v24 = vpop.f32.mrb[22].mxu0 }
 0x121   :  { %v1308_v27 = vadd.f32 %v1307_v23, %v1306_v20  ;;  %v1309_v28 = vpop.f32.mrb[22].mxu1  ;;  %v1246_v29 = vpop.f32.mrb[23].mxu0  ;;  %v47_v23 = vld [vmem:[#allocation2 + $0x58] sm:$0xff] }
 0x122   :  { %v1247_v30 = vadd.f32 %v1246_v29, %v1245_v24  ;;  %v1310_v31 = vpop.f32.mrb[23].mxu1 }
 0x123   :  { %v1311_v32 = vadd.f32 %v1310_v31, %v1309_v28  ;;  %v785_v33 = vadd.f32 %v1308_v27, %v1244_v22  ;;  %v37_v27 = vld [vmem:[#allocation2 + $0x8] sm:$0xff] }
 0x125   :  { %v788_v34 = vadd.f32 %v1311_v32, %v1247_v30  ;;  %v45_v32 = vld [vmem:[#allocation2 + $0x48] sm:$0xff] }
 0x126   :  { %v1248_v35 = vpop.f32.mrb[24].mxu0 }
 0x127   :  { %v1312_v36 = vpop.f32.mrb[24].mxu1  ;;  %v1249_v37 = vpop.f32.mrb[25].mxu0 }
 0x128   :  { %v1250_v38 = vadd.f32 %v1249_v37, %v1248_v35  ;;  %v1313_v41 = vpop.f32.mrb[25].mxu1  ;;  %v1251_v42 = vpop.f32.mrb[26].mxu0 }
 0x129   :  { %v1314_v43 = vadd.f32 %v1313_v41, %v1312_v36  ;;  %v1315_v44 = vpop.f32.mrb[26].mxu1  ;;  %v1252_v45 = vpop.f32.mrb[27].mxu0 }
 0x12a   :  { %v1253_v46 = vadd.f32 %v1252_v45, %v1251_v42  ;;  %v1316_v47 = vpop.f32.mrb[27].mxu1  ;;  %v40_v42 = vld [vmem:[#allocation2 + $0x20] sm:$0xff] }
 0x12b   :  { %v1317_v48 = vadd.f32 %v1316_v47, %v1315_v44  ;;  %v1752_v49 = vadd.f32 %v1314_v43, %v1250_v38  ;;  %v50_v38 = vld [vmem:[#allocation2 + $0x70] sm:$0xff]  ;;  %v1775_v44 = vld [vmem:[%s1873_s2] ss:$0 sm:$0xff] }
 0x12c   :  { %v48_v47 = vld [vmem:[#allocation2 + $0x60] sm:$0xff] }
 0x12d   :  { %v1754_v50 = vadd.f32 %v1317_v48, %v1253_v46 }
 0x12e   :  { %v1254_v51 = vpop.f32.mrb[28].mxu0 }
 0x12f   :  { %v1318_v52 = vpop.f32.mrb[28].mxu1  ;;  %v1255_v55 = vpop.f32.mrb[29].mxu0 }
 0x130   :  { %v1256_v56 = vadd.f32 %v1255_v55, %v1254_v51  ;;  %v1319_v57 = vpop.f32.mrb[29].mxu1  ;;  %v1257_v58 = vpop.f32.mrb[30].mxu0  ;;  %v43_v51 = vld [vmem:[#allocation2 + $0x38] sm:$0xff] }
 0x131   :  { %v1320_v59 = vadd.f32 %v1319_v57, %v1318_v52  ;;  %v1321_v60 = vpop.f32.mrb[30].mxu1  ;;  %v1258_v61 = vpop.f32.mrb[31].mxu0  ;;  %v51_v57 = vld [vmem:[#allocation2 + $0x78] sm:$0xff] }
 0x132   :  { %v1259_v62 = vadd.f32 %v1258_v61, %v1257_v58  ;;  %v1322_v63 = vpop.f32.mrb[31].mxu1 }
 0x133   :  { %v1323_v0 = vadd.f32 %v1322_v63, %v1321_v60  ;;  %v801_v1 = vadd.f32 %v1320_v59, %v1256_v56  ;;  %v41_v59 = vld [vmem:[#allocation2 + $0x28] sm:$0xff] }
 0x135   :  { %v1756_v2 = vadd.f32 %v1323_v0, %v1259_v62 }
 0x136   :  { %v1346_v6 = vpop.f32.mrb[32].mxu0 }
 0x137   :  { %v850_v7 = vadd.f32 %v1346_v6, %v1738_v39  ;;  %v1354_v9 = vpop.f32.mrb[32].mxu1  ;;  %v841_v11 = vpop.f32.mrb[33].mxu0 }
 0x138   :  { %v882_v12 = vadd.f32 %v1354_v9, %v785_v33  ;;  %v842_v13 = vadd.f32 %v841_v11, %v1734_v25  ;;  %v873_v15 = vpop.f32.mrb[33].mxu1  ;;  %v1347_v19 = vpop.f32.mrb[34].mxu0 }
 0x139   :  { %v906_v20 = vadd.f32 %v850_v7, %v38_v5  ;;  %v874_v21 = vadd.f32 %v873_v15, %v777_v17  ;;  %v853_v22 = vadd.f32 %v1347_v19, %v1740_v40  ;;  %v1355_v24 = vpop.f32.mrb[34].mxu1  ;;  %v844_v28 = vpop.f32.mrb[35].mxu0 }
 0x13a   :  { %v914_v39 = vadd.f32 %v882_v12, %v46_v8  ;;  %v904_v29 = vadd.f32 %v842_v13, %v36_v10  ;;  %v885_v30 = vadd.f32 %v1355_v24, %v788_v34  ;;  %v845_v31 = vadd.f32 %v844_v28, %v1736_v26  ;;  %v876_v33 = vpop.f32.mrb[35].mxu1  ;;  %v42_v26 = vld [vmem:[#allocation2 + $0x30] sm:$0xff] }
 0x13b   :  { %922 = vst.msk [vmem:[#allocation2 + $0x10] sm:$0xff] %vm19_vm0, %v906_v20  ;;  %v912_v25 = vadd.f32 %v874_v21, %v44_v14  ;;  %v907_v35 = vadd.f32 %v853_v22, %v39_v16  ;;  %v877_v36 = vadd.f32 %v876_v33, %v1750_v18 }
 0x13c   :  { %930 = vst.msk [vmem:[#allocation2 + $0x50] sm:$0xff] %vm19_vm0, %v914_v39  ;;  %920 = vst.msk [vmem:[#allocation2] sm:$0xff] %vm19_vm0, %v904_v29  ;;  %v915_v40 = vadd.f32 %v885_v30, %v47_v23  ;;  %v905_v17 = vadd.f32 %v845_v31, %v37_v27 }
 0x13d   :  { %928 = vst.msk [vmem:[#allocation2 + $0x40] sm:$0xff] %vm19_vm0, %v912_v25  ;;  %923 = vst.msk [vmem:[#allocation2 + $0x18] sm:$0xff] %vm19_vm0, %v907_v35  ;;  %v913_v34 = vadd.f32 %v877_v36, %v45_v32 }
 0x13e   :  { %931 = vst.msk [vmem:[#allocation2 + $0x58] sm:$0xff] %vm19_vm0, %v915_v40  ;;  %921 = vst.msk [vmem:[#allocation2 + $0x8] sm:$0xff] %vm19_vm0, %v905_v17  ;;  %v1350_v37 = vpop.f32.mrb[36].mxu0 }
 0x13f   :  { %929 = vst.msk [vmem:[#allocation2 + $0x48] sm:$0xff] %vm19_vm0, %v913_v34  ;;  %v866_v18 = vadd.f32 %v1350_v37, %v1746_v3  ;;  %v1358_v41 = vpop.f32.mrb[36].mxu1  ;;  %v857_v43 = vpop.f32.mrb[37].mxu0 }
 0x140   :  { %v898_v45 = vadd.f32 %v1358_v41, %v801_v1  ;;  %v858_v46 = vadd.f32 %v857_v43, %v1742_v53  ;;  %v889_v48 = vpop.f32.mrb[37].mxu1  ;;  %v1351_v52 = vpop.f32.mrb[38].mxu0  ;;  %v49_v1 = vld [vmem:[#allocation2 + $0x68] sm:$0xff] }
 0x141   :  { %v910_v55 = vadd.f32 %v866_v18, %v42_v26  ;;  %v890_v3 = vadd.f32 %v889_v48, %v1752_v49  ;;  %v869_v56 = vadd.f32 %v1351_v52, %v1748_v4  ;;  %v1359_v58 = vpop.f32.mrb[38].mxu1  ;;  %v860_v60 = vpop.f32.mrb[39].mxu0 }
 0x142   :  { %v941_v61 = vld [vmem:[#allocation2 + $0x10] sm:$0xff]  ;;  %v918_v62 = vadd.f32 %v898_v45, %v50_v38  ;;  %v908_v63 = vadd.f32 %v858_v46, %v40_v42  ;;  %v901_v0 = vadd.f32 %v1359_v58, %v1756_v2  ;;  %v861_v53 = vadd.f32 %v860_v60, %v1744_v54  ;;  %v892_v5 = vpop.f32.mrb[39].mxu1 }
 0x143   :  { %v964_v6 = vadd.f32 %v1775_v44, %v941_v61  ;;  %v949_v7 = vld [vmem:[#allocation2 + $0x50] sm:$0xff]  ;;  %v939_v8 = vld [vmem:[#allocation2] sm:$0xff]  ;;  %926 = vst.msk [vmem:[#allocation2 + $0x30] sm:$0xff] %vm19_vm0, %v910_v55  ;;  %v916_v4 = vadd.f32 %v890_v3, %v48_v47  ;;  %v911_v49 = vadd.f32 %v869_v56, %v43_v51  ;;  %v893_v9 = vadd.f32 %v892_v5, %v1754_v50 }
 0x144   :  { %v972_v10 = vadd.f32 %v1775_v44, %v949_v7  ;;  %v962_v11 = vadd.f32 %v1775_v44, %v939_v8  ;;  %v947_v12 = vld [vmem:[#allocation2 + $0x40] sm:$0xff]  ;;  %v942_v2 = vld [vmem:[#allocation2 + $0x18] sm:$0xff]  ;;  %934 = vst.msk [vmem:[#allocation2 + $0x70] sm:$0xff] %vm19_vm0, %v918_v62  ;;  %924 = vst.msk [vmem:[#allocation2 + $0x20] sm:$0xff] %vm19_vm0, %v908_v63  ;;  %v919_v54 = vadd.f32 %v901_v0, %v51_v57 }
 0x145   :  { %v909_v13 = vadd.f32 %v861_v53, %v41_v59  ;;  %v980_v14 = vmax.f32 %v964_v6, 0.0  ;;  %v970_v15 = vadd.f32 %v1775_v44, %v947_v12  ;;  %v965_v16 = vadd.f32 %v1775_v44, %v942_v2  ;;  %v950_v19 = vld [vmem:[#allocation2 + $0x58] sm:$0xff]  ;;  %v940_v20 = vld [vmem:[#allocation2 + $0x8] sm:$0xff]  ;;  %932 = vst.msk [vmem:[#allocation2 + $0x60] sm:$0xff] %vm19_vm0, %v916_v4  ;;  %927 = vst.msk [vmem:[#allocation2 + $0x38] sm:$0xff] %vm19_vm0, %v911_v49 }
 0x146   :  { %v917_v50 = vadd.f32 %v893_v9, %v49_v1  ;;  %v988_v21 = vmax.f32 %v972_v10, 0.0  ;;  %v978_v22 = vmax.f32 %v962_v11, 0.0  ;;  %v973_v23 = vadd.f32 %v1775_v44, %v950_v19  ;;  %v948_v27 = vld [vmem:[#allocation2 + $0x48] sm:$0xff]  ;;  %935 = vst.msk [vmem:[#allocation2 + $0x78] sm:$0xff] %vm19_vm0, %v919_v54 }
 0x147   :  { %v963_v24 = vadd.f32 %v1775_v44, %v940_v20  ;;  %925 = vst.msk [vmem:[#allocation2 + $0x28] sm:$0xff] %vm19_vm0, %v909_v13  ;;  %v1182_v28 = vpack.c.bf16 %v980_v14, %v980_v14  ;;  %v986_v39 = vmax.f32 %v970_v15, 0.0  ;;  %v981_v29 = vmax.f32 %v965_v16, 0.0 }
 0x148   :  { %v971_v30 = vadd.f32 %v1775_v44, %v948_v27  ;;  %933 = vst.msk [vmem:[#allocation2 + $0x68] sm:$0xff] %vm19_vm0, %v917_v50  ;;  %v1190_v31 = vpack.c.bf16 %v988_v21, %v988_v21  ;;  %v1180_v32 = vpack.c.bf16 %v978_v22, %v978_v22  ;;  %v989_v33 = vmax.f32 %v973_v23, 0.0 }
 0x149   :  { %v979_v25 = vmax.f32 %v963_v24, 0.0  ;;  %1061 = vst.msk [vmem:[%s1874_s3 + $0x8] sm:$0xf] %vm1058_vm1, %v1182_v28  ;;  %v1188_v35 = vpack.c.bf16 %v986_v39, %v986_v39  ;;  %v1183_v36 = vpack.c.bf16 %v981_v29, %v981_v29 }
 0x14a   :  { %v987_v40 = vmax.f32 %v971_v30, 0.0  ;;  %1069 = vst.msk [vmem:[%s1874_s3 + $0x28] sm:$0xf] %vm1058_vm1, %v1190_v31  ;;  %1059 = vst.msk [vmem:[%s1874_s3] sm:$0xf] %vm1058_vm1, %v1180_v32  ;;  %v1191_v17 = vpack.c.bf16 %v989_v33, %v989_v33  ;;  %v945_v26 = vld [vmem:[#allocation2 + $0x30] sm:$0xff] }
 0x14b   :  { %v1181_v34 = vpack.c.bf16 %v979_v25, %v979_v25  ;;  %1067 = vst.msk [vmem:[%s1874_s3 + $0x20] sm:$0xf] %vm1058_vm1, %v1188_v35  ;;  %1062 = vst.msk [vmem:[%s1874_s3 + $0xc] sm:$0xf] %vm1058_vm1, %v1183_v36  ;;  %v968_v18 = vadd.f32 %v1775_v44, %v945_v26  ;;  %v953_v38 = vld [vmem:[#allocation2 + $0x70] sm:$0xff]  ;;  %v943_v41 = vld [vmem:[#allocation2 + $0x20] sm:$0xff] }
 0x14c   :  { %v1189_v37 = vpack.c.bf16 %v987_v40, %v987_v40  ;;  %1070 = vst.msk [vmem:[%s1874_s3 + $0x2c] sm:$0xf] %vm1058_vm1, %v1191_v17  ;;  %v976_v42 = vadd.f32 %v1775_v44, %v953_v38  ;;  %v966_v43 = vadd.f32 %v1775_v44, %v943_v41  ;;  %v951_v45 = vld [vmem:[#allocation2 + $0x60] sm:$0xff]  ;;  %v946_v46 = vld [vmem:[#allocation2 + $0x38] sm:$0xff] }
 0x14d   :  { %1060 = vst.msk [vmem:[%s1874_s3 + $0x4] sm:$0xf] %vm1058_vm1, %v1181_v34  ;;  %v984_v47 = vmax.f32 %v968_v18, 0.0  ;;  %v974_v48 = vadd.f32 %v1775_v44, %v951_v45  ;;  %v969_v51 = vadd.f32 %v1775_v44, %v946_v46  ;;  %v954_v52 = vld [vmem:[#allocation2 + $0x78] sm:$0xff] }
 0x14e   :  { %1068 = vst.msk [vmem:[%s1874_s3 + $0x24] sm:$0xf] %vm1058_vm1, %v1189_v37  ;;  %v944_v55 = vld [vmem:[#allocation2 + $0x28] sm:$0xff]  ;;  %v992_v3 = vmax.f32 %v976_v42, 0.0  ;;  %v982_v56 = vmax.f32 %v966_v43, 0.0  ;;  %v977_v57 = vadd.f32 %v1775_v44, %v954_v52 }
 0x14f   :  { %v967_v58 = vadd.f32 %v1775_v44, %v944_v55  ;;  %v952_v59 = vld [vmem:[#allocation2 + $0x68] sm:$0xff]  ;;  %v1186_v60 = vpack.c.bf16 %v984_v47, %v984_v47  ;;  %v990_v61 = vmax.f32 %v974_v48, 0.0  ;;  %v985_v62 = vmax.f32 %v969_v51, 0.0 }
 0x150   :  { %v975_v63 = vadd.f32 %v1775_v44, %v952_v59  ;;  %v1194_v0 = vpack.c.bf16 %v992_v3, %v992_v3  ;;  %v1184_v53 = vpack.c.bf16 %v982_v56, %v982_v56  ;;  %v993_v1 = vmax.f32 %v977_v57, 0.0 }
 0x151   :  { %v983_v5 = vmax.f32 %v967_v58, 0.0  ;;  %1065 = vst.msk [vmem:[%s1874_s3 + $0x18] sm:$0xf] %vm1058_vm1, %v1186_v60  ;;  %v1192_v6 = vpack.c.bf16 %v990_v61, %v990_v61  ;;  %v1187_v7 = vpack.c.bf16 %v985_v62, %v985_v62 }
 0x152   :  { %v991_v8 = vmax.f32 %v975_v63, 0.0  ;;  %1073 = vst.msk [vmem:[%s1874_s3 + $0x38] sm:$0xf] %vm1058_vm1, %v1194_v0  ;;  %1063 = vst.msk [vmem:[%s1874_s3 + $0x10] sm:$0xf] %vm1058_vm1, %v1184_v53  ;;  %v1195_v44 = vpack.c.bf16 %v993_v1, %v993_v1 }
 0x153   :  { %v1185_v4 = vpack.c.bf16 %v983_v5, %v983_v5  ;;  %1071 = vst.msk [vmem:[%s1874_s3 + $0x30] sm:$0xf] %vm1058_vm1, %v1192_v6  ;;  %1066 = vst.msk [vmem:[%s1874_s3 + $0x1c] sm:$0xf] %vm1058_vm1, %v1187_v7 }
 0x154   :  { %v1193_v49 = vpack.c.bf16 %v991_v8, %v991_v8  ;;  %1074 = vst.msk [vmem:[%s1874_s3 + $0x3c] sm:$0xf] %vm1058_vm1, %v1195_v44 }
 0x155   :  { %1064 = vst.msk [vmem:[%s1874_s3 + $0x14] sm:$0xf] %vm1058_vm1, %v1185_v4 }
 0x156   :  { %1072 = vst.msk [vmem:[%s1874_s3 + $0x34] sm:$0xf] %vm1058_vm1, %v1193_v49 }

// kernel: _lambda_.13
= control target key start
LH: loop header
LB: loop body
LE: loop exit
PB: predicated region body
PF: predicated region fallthrough
CT: control target
= control target key end

     0   :  { %vm22_vm0 = vcmask 523264   ;;  %vm1109_vm1 = vcmask 519168   ;;  %s2060_s1 = inlined_call_operand.vmem [shape: bf16[576,64], index: 1, kind: input, shape index: {}]   ;;  %s2061_s0 = inlined_call_operand.vmem [shape: bf16[128,576], index: 0, kind: input, shape index: {}]   ;;  %s2062_s3 = inlined_call_operand.vmem [shape: bf16[128,64], index: 3, kind: input, shape index: {}]   ;;  %s2063_s2 = inlined_call_operand.vmem [shape: f32[1,64], index: 2, kind: input, shape index: {}]   ;;  %s2064_s4 = inlined_call_operand.vmem [shape: bf16[128,64], index: 4, kind: output, shape index: {}]  }
   0x1   :  { %v1459_v0 = vld [vmem:[%s2060_s1 + $0x40] sm:$0xff]   ;;  %v1463_v4 = vld [vmem:[%s2060_s1 + $0x48] sm:$0xff]   ;;  %v1467_v8 = vld [vmem:[%s2060_s1 + $0x50] sm:$0xff]  }
   0x2   :  { %v1460_v1 = vld [vmem:[%s2060_s1 + $0xc0] sm:$0xff]   ;;  %1286 = vmatprep.subr.bf16.mxu0 %v1459_v0  ;;  %v1464_v5 = vld [vmem:[%s2060_s1 + $0xc8] sm:$0xff]   ;;  %v1468_v9 = vld [vmem:[%s2060_s1 + $0xd0] sm:$0xff]  }
   0x3   :  { %v1461_v2 = vld [vmem:[%s2060_s1] sm:$0xff]   ;;  %1350 = vmatprep.subr.bf16.mxu1 %v1460_v1  ;;  %v1465_v6 = vld [vmem:[%s2060_s1 + $0x8] sm:$0xff]   ;;  %v1469_v10 = vld [vmem:[%s2060_s1 + $0x10] sm:$0xff]  }
   0x4   :  { %v1462_v3 = vld [vmem:[%s2060_s1 + $0x80] sm:$0xff]   ;;  %1287 = vmatpush3.bf16.msra.mxu0 %v1461_v2  ;;  %v1466_v7 = vld [vmem:[%s2060_s1 + $0x88] sm:$0xff]   ;;  %v1470_v11 = vld [vmem:[%s2060_s1 + $0x90] sm:$0xff]  }
   0x5   :  { %1351 = vmatpush3.bf16.msra.mxu1 %v1462_v3  ;;  %1288 = vmatprep.subr.bf16.mxu0 %v1463_v4  ;;  %v1471_v12 = vld [vmem:[%s2060_s1 + $0x58] sm:$0xff]   ;;  %v1475_v16 = vld [vmem:[%s2060_s1 + $0x60] sm:$0xff]   ;;  %v1479_v20 = vld [vmem:[%s2060_s1 + $0x68] sm:$0xff]  }
   0x6   :  { %1352 = vmatprep.subr.bf16.mxu1 %v1464_v5  ;;  %v1472_v13 = vld [vmem:[%s2060_s1 + $0xd8] sm:$0xff]   ;;  %v1476_v17 = vld [vmem:[%s2060_s1 + $0xe0] sm:$0xff]   ;;  %v1480_v21 = vld [vmem:[%s2060_s1 + $0xe8] sm:$0xff]  }
   0x7   :  { %v1473_v14 = vld [vmem:[%s2060_s1 + $0x18] sm:$0xff]   ;;  %v1477_v18 = vld [vmem:[%s2060_s1 + $0x20] sm:$0xff]   ;;  %v1481_v22 = vld [vmem:[%s2060_s1 + $0x28] sm:$0xff]  }
   0x8   :  { %1289 = vmatpush3.bf16.msra.mxu0 %v1465_v6  ;;  %v1474_v15 = vld [vmem:[%s2060_s1 + $0x98] sm:$0xff]   ;;  %v1478_v19 = vld [vmem:[%s2060_s1 + $0xa0] sm:$0xff]   ;;  %v1482_v23 = vld [vmem:[%s2060_s1 + $0xa8] sm:$0xff]  }
   0x9   :  { %1353 = vmatpush3.bf16.msra.mxu1 %v1466_v7  ;;  %1290 = vmatprep.subr.bf16.mxu0 %v1467_v8  ;;  %v1483_v24 = vld [vmem:[%s2060_s1 + $0x70] sm:$0xff]   ;;  %v1487_v28 = vld [vmem:[%s2060_s1 + $0x78] sm:$0xff]   ;;  %v1496_v35 = vld [vmem:[%s2061_s0 + $0xc] ss:$20 sps:$4 sm:$0xff]  }
   0xa   :  { %1354 = vmatprep.subr.bf16.mxu1 %v1468_v9  ;;  %v1484_v25 = vld [vmem:[%s2060_s1 + $0xf0] sm:$0xff]   ;;  %v1488_v29 = vld [vmem:[%s2060_s1 + $0xf8] sm:$0xff]   ;;  %v1497_v36 = vld [vmem:[%s2060_s1 + $0x100] sm:$0xff]   ;;  %745 = vmatprep.mubr.bf16.mxu1 %v1496_v35 }
   0xb   :  { %v1485_v26 = vld [vmem:[%s2060_s1 + $0x30] sm:$0xff]   ;;  %v1489_v30 = vld [vmem:[%s2060_s1 + $0x38] sm:$0xff]   ;;  %v1498_v37 = vld [vmem:[%s2061_s0 + $0x2c] ss:$20 sps:$4 sm:$0xff]  }
   0xc   :  { %1291 = vmatpush3.bf16.msra.mxu0 %v1469_v10  ;;  %v1486_v27 = vld [vmem:[%s2060_s1 + $0xb0] sm:$0xff]   ;;  %v1490_v31 = vld [vmem:[%s2060_s1 + $0xb8] sm:$0xff]   ;;  %v1510_v42 = vld [vmem:[%s2060_s1 + $0x108] sm:$0xff]  }
   0xd   :  { %1355 = vmatpush3.bf16.msra.mxu1 %v1470_v11  ;;  %1292 = vmatprep.subr.bf16.mxu0 %v1471_v12  ;;  %v1491_v32 = vld [vmem:[%s2061_s0] ss:$20 sps:$4 sm:$0xff]   ;;  %v1493_v33 = vld [vmem:[%s2061_s0 + $0x4] ss:$20 sps:$4 sm:$0xff]   ;;  %v1494_v34 = vld [vmem:[%s2061_s0 + $0x8] ss:$20 sps:$4 sm:$0xff]  }
   0xe   :  { %1356 = vmatprep.subr.bf16.mxu1 %v1472_v13  ;;  %648 = vmatprep.mubr.bf16.mxu0 %v1493_v33  ;;  %v1500_v38 = vld [vmem:[%s2061_s0 + $0x34] ss:$20 sps:$4 sm:$0xff]   ;;  %v1503_v40 = vld [vmem:[%s2061_s0 + $0x30] ss:$20 sps:$4 sm:$0xff]   ;;  %v1509_v45 = vld [vmem:[%s2061_s0 + $0x58] ss:$20 sps:$4 sm:$0xff]  }
   0xf   :  { %v1502_v39 = vld [vmem:[%s2061_s0 + $0x28] ss:$20 sps:$4 sm:$0xff]   ;;  %v1508_v44 = vld [vmem:[%s2061_s0 + $0x50] ss:$20 sps:$4 sm:$0xff]   ;;  %v1515_v50 = vld [vmem:[%s2061_s0 + $0x78] ss:$20 sps:$4 sm:$0xff]  }
  0x10   :  { %1293 = vmatpush3.bf16.msra.mxu0 %v1473_v14  ;;  %v1504_v41 = vld [vmem:[%s2061_s0 + $0x54] ss:$20 sps:$4 sm:$0xff]   ;;  %v1506_v43 = vld [vmem:[%s2061_s0 + $0x5c] ss:$20 sps:$4 sm:$0xff]   ;;  %v1513_v48 = vld [vmem:[%s2061_s0 + $0x84] ss:$20 sps:$4 sm:$0xff]  }
  0x11   :  { %1357 = vmatpush3.bf16.msra.mxu1 %v1474_v15  ;;  %1294 = vmatprep.subr.bf16.mxu0 %v1475_v16  ;;  %v1523_v46 = vld [vmem:[%s2060_s1 + $0x110] sm:$0xff]   ;;  %v1536_v49 = vld [vmem:[%s2060_s1 + $0x118] sm:$0xff]   ;;  %v1519_v53 = vld [vmem:[%s2061_s0 + $0xac] ss:$20 sps:$4 sm:$0xff]   ;;  %v1551_v12 = vmov 0.0  }
  0x12   :  { %1358 = vmatprep.subr.bf16.mxu1 %v1476_v17  ;;  %v1511_v47 = vld [vmem:[%s2061_s0 + $0x7c] ss:$20 sps:$4 sm:$0xff]   ;;  %v1516_v51 = vld [vmem:[%s2061_s0 + $0x80] ss:$20 sps:$4 sm:$0xff]   ;;  %v1517_v52 = vld [vmem:[%s2061_s0 + $0xa4] ss:$20 sps:$4 sm:$0xff]  }
  0x13   :  { %v1521_v54 = vld [vmem:[%s2061_s0 + $0xa0] ss:$20 sps:$4 sm:$0xff]   ;;  %v1522_v55 = vld [vmem:[%s2061_s0 + $0xa8] ss:$20 sps:$4 sm:$0xff]   ;;  %v1529_v59 = vld [vmem:[%s2061_s0 + $0xd0] ss:$20 sps:$4 sm:$0xff]  }
  0x14   :  { %1295 = vmatpush3.bf16.msra.mxu0 %v1477_v18  ;;  %v1524_v56 = vld [vmem:[%s2061_s0 + $0xcc] ss:$20 sps:$4 sm:$0xff]   ;;  %v1526_v57 = vld [vmem:[%s2061_s0 + $0xd4] ss:$20 sps:$4 sm:$0xff]   ;;  %v1532_v61 = vld [vmem:[%s2061_s0 + $0xfc] ss:$20 sps:$4 sm:$0xff]  }
  0x15   :  { %1359 = vmatpush3.bf16.msra.mxu1 %v1478_v19  ;;  %1296 = vmatprep.subr.bf16.mxu0 %v1479_v20  ;;  %v1528_v58 = vld [vmem:[%s2061_s0 + $0xc8] ss:$20 sps:$4 sm:$0xff]   ;;  %v1534_v62 = vld [vmem:[%s2061_s0 + $0xf0] ss:$20 sps:$4 sm:$0xff]   ;;  %v1535_v63 = vld [vmem:[%s2061_s0 + $0xf8] ss:$20 sps:$4 sm:$0xff]  }
  0x16   :  { %1360 = vmatprep.subr.bf16.mxu1 %v1480_v21  ;;  %v1530_v60 = vld [vmem:[%s2061_s0 + $0xf4] ss:$20 sps:$4 sm:$0xff]   ;;  %v1537_v0 = vld [vmem:[%s2061_s0 + $0x11c] ss:$20 sps:$4 sm:$0xff]   ;;  %v1539_v1 = vld [vmem:[%s2061_s0 + $0x124] ss:$20 sps:$4 sm:$0xff]  }
  0x17   :  { %v1541_v2 = vld [vmem:[%s2061_s0 + $0x118] ss:$20 sps:$4 sm:$0xff]   ;;  %v1542_v3 = vld [vmem:[%s2061_s0 + $0x120] ss:$20 sps:$4 sm:$0xff]   ;;  %v1543_v4 = vld [vmem:[%s2061_s0 + $0x10] ss:$20 sps:$4 sm:$0xff]  }
  0x18   :  { %1297 = vmatpush3.bf16.msra.mxu0 %v1481_v22  ;;  %v1544_v5 = vld [vmem:[%s2061_s0 + $0xb0] ss:$20 sps:$4 sm:$0xff]   ;;  %v1545_v6 = vld [vmem:[%s2061_s0 + $0x38] ss:$20 sps:$4 sm:$0xff]   ;;  %v1547_v8 = vld [vmem:[%s2061_s0 + $0x60] ss:$20 sps:$4 sm:$0xff]  }
  0x19   :  { %1361 = vmatpush3.bf16.msra.mxu1 %v1482_v23  ;;  %1298 = vmatprep.subr.bf16.mxu0 %v1483_v24  ;;  %v1546_v7 = vld [vmem:[%s2061_s0 + $0xd8] ss:$20 sps:$4 sm:$0xff]   ;;  %v1548_v9 = vld [vmem:[%s2061_s0 + $0x100] ss:$20 sps:$4 sm:$0xff]   ;;  %v1549_v10 = vld [vmem:[%s2061_s0 + $0x88] ss:$20 sps:$4 sm:$0xff]  }
  0x1a   :  { %1362 = vmatprep.subr.bf16.mxu1 %v1484_v25  ;;  %v1550_v11 = vld [vmem:[%s2061_s0 + $0x128] ss:$20 sps:$4 sm:$0xff]   ;;  %25 = vst.msk [vmem:[#allocation2 + $0x10] sm:$0xff] %vm22_vm0, %v1551_v12  ;;  %23 = vst.msk [vmem:[#allocation2] sm:$0xff] %vm22_vm0, %v1551_v12 }
  0x1b   :  { %24 = vst.msk [vmem:[#allocation2 + $0x8] sm:$0xff] %vm22_vm0, %v1551_v12  ;;  %26 = vst.msk [vmem:[#allocation2 + $0x18] sm:$0xff] %vm22_vm0, %v1551_v12 }
  0x1c   :  { %1299 = vmatpush3.bf16.msra.mxu0 %v1485_v26  ;;  %27 = vst.msk [vmem:[#allocation2 + $0x20] sm:$0xff] %vm22_vm0, %v1551_v12  ;;  %28 = vst.msk [vmem:[#allocation2 + $0x28] sm:$0xff] %vm22_vm0, %v1551_v12 }
  0x1d   :  { %1363 = vmatpush3.bf16.msra.mxu1 %v1486_v27  ;;  %1300 = vmatprep.subr.bf16.mxu0 %v1487_v28  ;;  %29 = vst.msk [vmem:[#allocation2 + $0x30] sm:$0xff] %vm22_vm0, %v1551_v12  ;;  %30 = vst.msk [vmem:[#allocation2 + $0x38] sm:$0xff] %vm22_vm0, %v1551_v12 }
  0x1e   :  { %1364 = vmatprep.subr.bf16.mxu1 %v1488_v29  ;;  %31 = vst.msk [vmem:[#allocation2 + $0x40] sm:$0xff] %vm22_vm0, %v1551_v12  ;;  %32 = vst.msk [vmem:[#allocation2 + $0x48] sm:$0xff] %vm22_vm0, %v1551_v12 }
  0x1f   :  { %33 = vst.msk [vmem:[#allocation2 + $0x50] sm:$0xff] %vm22_vm0, %v1551_v12  ;;  %34 = vst.msk [vmem:[#allocation2 + $0x58] sm:$0xff] %vm22_vm0, %v1551_v12 }
  0x20   :  { %1301 = vmatpush3.bf16.msra.mxu0 %v1489_v30  ;;  %35 = vst.msk [vmem:[#allocation2 + $0x60] sm:$0xff] %vm22_vm0, %v1551_v12  ;;  %36 = vst.msk [vmem:[#allocation2 + $0x68] sm:$0xff] %vm22_vm0, %v1551_v12 }
  0x21   :  { %1365 = vmatpush3.bf16.msra.mxu1 %v1490_v31  ;;  %1426 = vmatprep.subr.bf16.mxu0 %v1497_v36  ;;  %37 = vst.msk [vmem:[#allocation2 + $0x70] sm:$0xff] %vm22_vm0, %v1551_v12  ;;  %38 = vst.msk [vmem:[#allocation2 + $0x78] sm:$0xff] %vm22_vm0, %v1551_v12 }
  0x22   :  { %1450 = vmatprep.subr.bf16.mxu1 %v1497_v36 }
  0x23   :  { %649 = vmatmul.mubr.bf16.vlgmr.msra.gmra.mrb[0].mxu0 %v1491_v32 }
  0x24   :  { %746 = vmatmul.mubr.bf16.vlgmr.msra.gmra.mrb[0].mxu1 %v1494_v34  ;;  %1427 = vmatpush3.bf16.msra.mxu0 %v1497_v36 }
  0x25   :  { %1454 = vmatpush3.bf16.msra.mxu1 %v1497_v36  ;;  %656 = vmatprep.mubr.bf16.mxu0 %v1498_v37 }
  0x26   :  { %753 = vmatprep.mubr.bf16.mxu1 %v1500_v38  ;;  %1428 = vmatprep.subr.bf16.mxu0 %v1510_v42 }
  0x27   :  { %1451 = vmatprep.subr.bf16.mxu1 %v1510_v42 }
  0x28   :  { %1429 = vmatpush3.bf16.msra.mxu0 %v1510_v42 }
  0x29   :  { %1455 = vmatpush3.bf16.msra.mxu1 %v1510_v42  ;;  %1430 = vmatprep.subr.bf16.mxu0 %v1523_v46 }
  0x2a   :  { %1452 = vmatprep.subr.bf16.mxu1 %v1523_v46 }
  0x2b   :  { %657 = vmatmul.mubr.bf16.gmra.mrb[4].mxu0 %v1502_v39 }
  0x2c   :  { %754 = vmatmul.mubr.bf16.gmra.mrb[4].mxu1 %v1503_v40  ;;  %664 = vmatprep.mubr.bf16.mxu0 %v1504_v41 }
  0x2d   :  { %761 = vmatprep.mubr.bf16.mxu1 %v1506_v43  ;;  %1431 = vmatpush3.bf16.msra.mxu0 %v1523_v46 }
  0x2e   :  { %1456 = vmatpush3.bf16.msra.mxu1 %v1523_v46  ;;  %1432 = vmatprep.subr.bf16.mxu0 %v1536_v49 }
  0x2f   :  { %1453 = vmatprep.subr.bf16.mxu1 %v1536_v49 }
  0x31   :  { %1433 = vmatpush3.bf16.msra.mxu0 %v1536_v49 }
  0x32   :  { %1457 = vmatpush3.bf16.msra.mxu1 %v1536_v49 }
  0x33   :  { %665 = vmatmul.mubr.bf16.gmra.mrb[8].mxu0 %v1508_v44 }
  0x34   :  { %762 = vmatmul.mubr.bf16.gmra.mrb[8].mxu1 %v1509_v45  ;;  %672 = vmatprep.mubr.bf16.mxu0 %v1511_v47 }
  0x35   :  { %769 = vmatprep.mubr.bf16.mxu1 %v1513_v48 }
  0x3b   :  { %673 = vmatmul.mubr.bf16.gmra.mrb[12].mxu0 %v1515_v50 }
  0x3c   :  { %770 = vmatmul.mubr.bf16.gmra.mrb[12].mxu1 %v1516_v51  ;;  %680 = vmatprep.mubr.bf16.mxu0 %v1517_v52 }
  0x3d   :  { %777 = vmatprep.mubr.bf16.mxu1 %v1519_v53 }
  0x43   :  { %681 = vmatmul.mubr.bf16.gmra.mrb[16].mxu0 %v1521_v54 }
  0x44   :  { %778 = vmatmul.mubr.bf16.gmra.mrb[16].mxu1 %v1522_v55  ;;  %688 = vmatprep.mubr.bf16.mxu0 %v1524_v56 }
  0x45   :  { %785 = vmatprep.mubr.bf16.mxu1 %v1526_v57 }
  0x4b   :  { %689 = vmatmul.mubr.bf16.gmra.mrb[20].mxu0 %v1528_v58 }
  0x4c   :  { %786 = vmatmul.mubr.bf16.gmra.mrb[20].mxu1 %v1529_v59  ;;  %696 = vmatprep.mubr.bf16.mxu0 %v1530_v60 }
  0x4d   :  { %793 = vmatprep.mubr.bf16.mxu1 %v1532_v61 }
  0x53   :  { %697 = vmatmul.mubr.bf16.gmra.mrb[24].mxu0 %v1534_v62 }
  0x54   :  { %794 = vmatmul.mubr.bf16.gmra.mrb[24].mxu1 %v1535_v63  ;;  %704 = vmatprep.mubr.bf16.mxu0 %v1537_v0 }
  0x55   :  { %801 = vmatprep.mubr.bf16.mxu1 %v1539_v1 }
  0x5b   :  { %705 = vmatmul.mubr.bf16.gmra.mrb[28].mxu0 %v1541_v2 }
  0x5c   :  { %802 = vmatmul.mubr.bf16.gmra.mrb[28].mxu1 %v1542_v3  ;;  %1434 = vmatprep.mubr.msk.bf16.mxu0 %vm22_vm0, %v1543_v4 }
  0x5d   :  { %1442 = vmatprep.mubr.msk.bf16.mxu1 %vm22_vm0, %v1544_v5 }
  0x63   :  { %1435 = vmatmul.mubr.msk.bf16.vlgmr.msra.gmra.mrb[32].mxu0 %vm22_vm0, %v1545_v6 }
  0x64   :  { %1443 = vmatmul.mubr.msk.bf16.vlgmr.msra.gmra.mrb[32].mxu1 %vm22_vm0, %v1546_v7  ;;  %1438 = vmatprep.mubr.msk.bf16.mxu0 %vm22_vm0, %v1547_v8 }
  0x65   :  { %1446 = vmatprep.mubr.msk.bf16.mxu1 %vm22_vm0, %v1548_v9 }
  0x6b   :  { %1439 = vmatmul.mubr.msk.bf16.gmra.mrb[36].mxu0 %vm22_vm0, %v1549_v10 }
  0x6c   :  { %1447 = vmatmul.mubr.msk.bf16.gmra.mrb[36].mxu1 %vm22_vm0, %v1550_v11 }
  0xf6   :  { %v1302_v13 = vpop.f32.mrb[0].mxu0 }
  0xf7   :  { %v1366_v14 = vpop.f32.mrb[0].mxu1  ;;  %v1303_v15 = vpop.f32.mrb[1].mxu0 }
  0xf8   :  { %v1304_v16 = vadd.f32 %v1303_v15, %v1302_v13  ;;  %v1367_v17 = vpop.f32.mrb[1].mxu1  ;;  %v1305_v18 = vpop.f32.mrb[2].mxu0 }
  0xf9   :  { %v1368_v19 = vadd.f32 %v1367_v17, %v1366_v14  ;;  %v1369_v20 = vpop.f32.mrb[2].mxu1  ;;  %v1306_v21 = vpop.f32.mrb[3].mxu0 }
  0xfa   :  { %v1307_v22 = vadd.f32 %v1306_v21, %v1305_v18  ;;  %v1370_v23 = vpop.f32.mrb[3].mxu1 }
  0xfb   :  { %v1371_v24 = vadd.f32 %v1370_v23, %v1369_v20  ;;  %v1829_v25 = vadd.f32 %v1368_v19, %v1304_v16 }
  0xfd   :  { %v1831_v26 = vadd.f32 %v1371_v24, %v1307_v22 }
  0xfe   :  { %v1308_v27 = vpop.f32.mrb[4].mxu0 }
  0xff   :  { %v1372_v28 = vpop.f32.mrb[4].mxu1  ;;  %v1309_v29 = vpop.f32.mrb[5].mxu0 }
 0x100   :  { %v1310_v30 = vadd.f32 %v1309_v29, %v1308_v27  ;;  %v1373_v31 = vpop.f32.mrb[5].mxu1  ;;  %v1311_v32 = vpop.f32.mrb[6].mxu0 }
 0x101   :  { %v1374_v33 = vadd.f32 %v1373_v31, %v1372_v28  ;;  %v1375_v34 = vpop.f32.mrb[6].mxu1  ;;  %v1312_v35 = vpop.f32.mrb[7].mxu0 }
 0x102   :  { %v1313_v36 = vadd.f32 %v1312_v35, %v1311_v32  ;;  %v1376_v37 = vpop.f32.mrb[7].mxu1 }
 0x103   :  { %v1377_v38 = vadd.f32 %v1376_v37, %v1375_v34  ;;  %v1833_v39 = vadd.f32 %v1374_v33, %v1310_v30 }
 0x105   :  { %v1835_v40 = vadd.f32 %v1377_v38, %v1313_v36 }
 0x106   :  { %v1314_v41 = vpop.f32.mrb[8].mxu0 }
 0x107   :  { %v1378_v42 = vpop.f32.mrb[8].mxu1  ;;  %v1315_v43 = vpop.f32.mrb[9].mxu0 }
 0x108   :  { %v1316_v44 = vadd.f32 %v1315_v43, %v1314_v41  ;;  %v1379_v45 = vpop.f32.mrb[9].mxu1  ;;  %v1317_v46 = vpop.f32.mrb[10].mxu0 }
 0x109   :  { %v1380_v47 = vadd.f32 %v1379_v45, %v1378_v42  ;;  %v1381_v48 = vpop.f32.mrb[10].mxu1  ;;  %v1318_v49 = vpop.f32.mrb[11].mxu0 }
 0x10a   :  { %v1319_v50 = vadd.f32 %v1318_v49, %v1317_v46  ;;  %v1382_v51 = vpop.f32.mrb[11].mxu1 }
 0x10b   :  { %v1383_v52 = vadd.f32 %v1382_v51, %v1381_v48  ;;  %v1837_v53 = vadd.f32 %v1380_v47, %v1316_v44 }
 0x10d   :  { %v1839_v54 = vadd.f32 %v1383_v52, %v1319_v50 }
 0x10e   :  { %v1320_v55 = vpop.f32.mrb[12].mxu0 }
 0x10f   :  { %v1384_v56 = vpop.f32.mrb[12].mxu1  ;;  %v1321_v57 = vpop.f32.mrb[13].mxu0 }
 0x110   :  { %v1322_v58 = vadd.f32 %v1321_v57, %v1320_v55  ;;  %v1385_v59 = vpop.f32.mrb[13].mxu1  ;;  %v1323_v60 = vpop.f32.mrb[14].mxu0 }
 0x111   :  { %v1386_v61 = vadd.f32 %v1385_v59, %v1384_v56  ;;  %v1387_v62 = vpop.f32.mrb[14].mxu1  ;;  %v1324_v63 = vpop.f32.mrb[15].mxu0 }
 0x112   :  { %v1325_v0 = vadd.f32 %v1324_v63, %v1323_v60  ;;  %v1388_v1 = vpop.f32.mrb[15].mxu1 }
 0x113   :  { %v1389_v2 = vadd.f32 %v1388_v1, %v1387_v62  ;;  %v1841_v3 = vadd.f32 %v1386_v61, %v1322_v58 }
 0x115   :  { %v1843_v4 = vadd.f32 %v1389_v2, %v1325_v0 }
 0x116   :  { %v1326_v5 = vpop.f32.mrb[16].mxu0 }
 0x117   :  { %v1390_v6 = vpop.f32.mrb[16].mxu1  ;;  %v1327_v7 = vpop.f32.mrb[17].mxu0 }
 0x118   :  { %v1328_v8 = vadd.f32 %v1327_v7, %v1326_v5  ;;  %v1391_v9 = vpop.f32.mrb[17].mxu1  ;;  %v1329_v10 = vpop.f32.mrb[18].mxu0  ;;  %v41_v5 = vld [vmem:[#allocation2 + $0x10] sm:$0xff] }
 0x119   :  { %v1392_v11 = vadd.f32 %v1391_v9, %v1390_v6  ;;  %v1393_v12 = vpop.f32.mrb[18].mxu1  ;;  %v1330_v13 = vpop.f32.mrb[19].mxu0 }
 0x11a   :  { %v1331_v14 = vadd.f32 %v1330_v13, %v1329_v10  ;;  %v1394_v15 = vpop.f32.mrb[19].mxu1  ;;  %v39_v10 = vld [vmem:[#allocation2] sm:$0xff]  ;;  %v1861_v13 = vld [vmem:[%s2062_s3 + $0x8] sm:$0xff]  }
 0x11b   :  { %v1395_v16 = vadd.f32 %v1394_v15, %v1393_v12  ;;  %v1845_v17 = vadd.f32 %v1392_v11, %v1328_v8  ;;  %v49_v8 = vld [vmem:[#allocation2 + $0x50] sm:$0xff]  ;;  %v47_v12 = vld [vmem:[#allocation2 + $0x40] sm:$0xff] }
 0x11d   :  { %v1847_v18 = vadd.f32 %v1395_v16, %v1331_v14 }
 0x11e   :  { %v1332_v19 = vpop.f32.mrb[20].mxu0 }
 0x11f   :  { %v1396_v20 = vpop.f32.mrb[20].mxu1  ;;  %v1333_v21 = vpop.f32.mrb[21].mxu0 }
 0x120   :  { %v1334_v22 = vadd.f32 %v1333_v21, %v1332_v19  ;;  %v1397_v23 = vpop.f32.mrb[21].mxu1  ;;  %v1335_v24 = vpop.f32.mrb[22].mxu0  ;;  %v42_v19 = vld [vmem:[#allocation2 + $0x18] sm:$0xff] }
 0x121   :  { %v1398_v27 = vadd.f32 %v1397_v23, %v1396_v20  ;;  %v1399_v28 = vpop.f32.mrb[22].mxu1  ;;  %v1336_v29 = vpop.f32.mrb[23].mxu0  ;;  %v50_v21 = vld [vmem:[#allocation2 + $0x58] sm:$0xff]  ;;  %v1872_v23 = vld [vmem:[%s2062_s3] sm:$0xff]  }
 0x122   :  { %v1337_v30 = vadd.f32 %v1336_v29, %v1335_v24  ;;  %v1400_v31 = vpop.f32.mrb[23].mxu1 }
 0x123   :  { %v1401_v32 = vadd.f32 %v1400_v31, %v1399_v28  ;;  %v788_v33 = vadd.f32 %v1398_v27, %v1334_v22  ;;  %v40_v28 = vld [vmem:[#allocation2 + $0x8] sm:$0xff] }
 0x125   :  { %v791_v34 = vadd.f32 %v1401_v32, %v1337_v30  ;;  %v1879_v32 = vld [vmem:[%s2062_s3 + $0x20] sm:$0xff]  }
 0x126   :  { %v1338_v35 = vpop.f32.mrb[24].mxu0 }
 0x127   :  { %v1402_v36 = vpop.f32.mrb[24].mxu1  ;;  %v1339_v37 = vpop.f32.mrb[25].mxu0 }
 0x128   :  { %v1340_v38 = vadd.f32 %v1339_v37, %v1338_v35  ;;  %v1403_v41 = vpop.f32.mrb[25].mxu1  ;;  %v1341_v42 = vpop.f32.mrb[26].mxu0 }
 0x129   :  { %v1404_v43 = vadd.f32 %v1403_v41, %v1402_v36  ;;  %v1405_v44 = vpop.f32.mrb[26].mxu1  ;;  %v1342_v45 = vpop.f32.mrb[27].mxu0  ;;  %v48_v36 = vld [vmem:[#allocation2 + $0x48] sm:$0xff] }
 0x12a   :  { %v1343_v46 = vadd.f32 %v1342_v45, %v1341_v42  ;;  %v1406_v47 = vpop.f32.mrb[27].mxu1  ;;  %v1888_v42 = vld [vmem:[%s2062_s3 + $0x18] sm:$0xff]   ;;  %v1902_v45 = vld [vmem:[%s2062_s3 + $0x10] sm:$0xff]  }
 0x12b   :  { %v1407_v48 = vadd.f32 %v1406_v47, %v1405_v44  ;;  %v1849_v49 = vadd.f32 %v1404_v43, %v1340_v38  ;;  %v1249_v43 = vunpack.c.l.bf16 %v1872_v23  ;;  %v1265_v47 = vunpack.c.l.bf16 %v1879_v32 }
 0x12d   :  { %v1851_v50 = vadd.f32 %v1407_v48, %v1343_v46  ;;  %v1907_v46 = vld [vmem:[%s2062_s3 + $0x30] sm:$0xff]   ;;  %v1254_v48 = vunpack.c.h.bf16 %v1861_v13 }
 0x12e   :  { %v1344_v51 = vpop.f32.mrb[28].mxu0 }
 0x12f   :  { %v1408_v52 = vpop.f32.mrb[28].mxu1  ;;  %v1345_v55 = vpop.f32.mrb[29].mxu0 }
 0x130   :  { %v1346_v56 = vadd.f32 %v1345_v55, %v1344_v51  ;;  %v1409_v57 = vpop.f32.mrb[29].mxu1  ;;  %v1347_v58 = vpop.f32.mrb[30].mxu0  ;;  %v1250_v55 = vunpack.c.h.bf16 %v1872_v23 }
 0x131   :  { %v1410_v59 = vadd.f32 %v1409_v57, %v1408_v52  ;;  %v1411_v60 = vpop.f32.mrb[30].mxu1  ;;  %v1348_v61 = vpop.f32.mrb[31].mxu0  ;;  %v45_v57 = vld [vmem:[#allocation2 + $0x30] sm:$0xff] }
 0x132   :  { %v1349_v62 = vadd.f32 %v1348_v61, %v1347_v58  ;;  %v1412_v63 = vpop.f32.mrb[31].mxu1 }
 0x133   :  { %v1413_v0 = vadd.f32 %v1412_v63, %v1411_v60  ;;  %v1853_v1 = vadd.f32 %v1410_v59, %v1346_v56  ;;  %v1266_v56 = vunpack.c.h.bf16 %v1879_v32  ;;  %v1261_v59 = vunpack.c.l.bf16 %v1888_v42 }
 0x135   :  { %v1855_v2 = vadd.f32 %v1413_v0, %v1349_v62  ;;  %v53_v62 = vld [vmem:[#allocation2 + $0x70] sm:$0xff]  ;;  %v43_v0 = vld [vmem:[#allocation2 + $0x20] sm:$0xff] }
 0x136   :  { %v1436_v6 = vpop.f32.mrb[32].mxu0 }
 0x137   :  { %v853_v7 = vadd.f32 %v1436_v6, %v1833_v39  ;;  %v1444_v9 = vpop.f32.mrb[32].mxu1  ;;  %v844_v11 = vpop.f32.mrb[33].mxu0  ;;  %v1867_v39 = vld [vmem:[%s2062_s3 + $0x28] sm:$0xff]   ;;  %v1257_v6 = vunpack.c.l.bf16 %v1902_v45 }
 0x138   :  { %v885_v14 = vadd.f32 %v1444_v9, %v788_v33  ;;  %v845_v15 = vadd.f32 %v844_v11, %v1829_v25  ;;  %v876_v16 = vpop.f32.mrb[33].mxu1  ;;  %v1437_v20 = vpop.f32.mrb[34].mxu0  ;;  %v1270_v51 = vunpack.c.h.bf16 %v1867_v39  ;;  %v1928_v9 = vld [vmem:[%s2063_s2] ss:$0 sm:$0xff] }
 0x139   :  { %v909_v22 = vadd.f32 %v853_v7, %v41_v5  ;;  %v877_v24 = vadd.f32 %v876_v16, %v1845_v17  ;;  %v856_v27 = vadd.f32 %v1437_v20, %v1835_v40  ;;  %v1445_v25 = vpop.f32.mrb[34].mxu1  ;;  %v847_v29 = vpop.f32.mrb[35].mxu0  ;;  %v1253_v17 = vunpack.c.l.bf16 %v1861_v13  ;;  %v51_v11 = vld [vmem:[#allocation2 + $0x60] sm:$0xff] }
 0x13a   :  { %v917_v30 = vadd.f32 %v885_v14, %v49_v8  ;;  %v907_v31 = vadd.f32 %v845_v15, %v39_v10  ;;  %v888_v33 = vadd.f32 %v1445_v25, %v791_v34  ;;  %v848_v35 = vadd.f32 %v847_v29, %v1831_v26  ;;  %v879_v37 = vpop.f32.mrb[35].mxu1  ;;  %v1893_v34 = vld [vmem:[%s2062_s3 + $0x38] sm:$0xff]   ;;  %v44_v25 = vld [vmem:[#allocation2 + $0x28] sm:$0xff] }
 0x13b   :  { %925 = vst.msk [vmem:[#allocation2 + $0x10] sm:$0xff] %vm22_vm0, %v909_v22  ;;  %v915_v40 = vadd.f32 %v877_v24, %v47_v12  ;;  %v910_v38 = vadd.f32 %v856_v27, %v42_v19  ;;  %v880_v41 = vadd.f32 %v879_v37, %v1847_v18  ;;  %v1269_v26 = vunpack.c.l.bf16 %v1867_v39  ;;  %v46_v14 = vld [vmem:[#allocation2 + $0x38] sm:$0xff] }
 0x13c   :  { %933 = vst.msk [vmem:[#allocation2 + $0x50] sm:$0xff] %vm22_vm0, %v917_v30  ;;  %923 = vst.msk [vmem:[#allocation2] sm:$0xff] %vm22_vm0, %v907_v31  ;;  %v918_v44 = vadd.f32 %v888_v33, %v50_v21  ;;  %v908_v18 = vadd.f32 %v848_v35, %v40_v28  ;;  %v1277_v60 = vunpack.c.l.bf16 %v1893_v34  ;;  %v1273_v7 = vunpack.c.l.bf16 %v1907_v46  ;;  %v54_v24 = vld [vmem:[#allocation2 + $0x78] sm:$0xff]  ;;  %v52_v35 = vld [vmem:[#allocation2 + $0x68] sm:$0xff] }
 0x13d   :  { %931 = vst.msk [vmem:[#allocation2 + $0x40] sm:$0xff] %vm22_vm0, %v915_v40  ;;  %926 = vst.msk [vmem:[#allocation2 + $0x18] sm:$0xff] %vm22_vm0, %v910_v38  ;;  %v916_v52 = vadd.f32 %v880_v41, %v48_v36  ;;  %v1262_v8 = vunpack.c.h.bf16 %v1888_v42  ;;  %v1278_v16 = vunpack.c.h.bf16 %v1893_v34  ;;  %v1258_v19 = vunpack.c.h.bf16 %v1902_v45 }
 0x13e   :  { %934 = vst.msk [vmem:[#allocation2 + $0x58] sm:$0xff] %vm22_vm0, %v918_v44  ;;  %924 = vst.msk [vmem:[#allocation2 + $0x8] sm:$0xff] %vm22_vm0, %v908_v18  ;;  %v1440_v58 = vpop.f32.mrb[36].mxu0 }
 0x13f   :  { %932 = vst.msk [vmem:[#allocation2 + $0x48] sm:$0xff] %vm22_vm0, %v916_v52  ;;  %v869_v61 = vadd.f32 %v1440_v58, %v1841_v3  ;;  %v1448_v63 = vpop.f32.mrb[36].mxu1  ;;  %v860_v5 = vpop.f32.mrb[37].mxu0 }
 0x140   :  { %v901_v10 = vadd.f32 %v1448_v63, %v1853_v1  ;;  %v861_v3 = vadd.f32 %v860_v5, %v1837_v53  ;;  %v892_v12 = vpop.f32.mrb[37].mxu1  ;;  %v1441_v15 = vpop.f32.mrb[38].mxu0  ;;  %v1274_v1 = vunpack.c.h.bf16 %v1907_v46 }
 0x141   :  { %v913_v20 = vadd.f32 %v869_v61, %v45_v57  ;;  %v893_v21 = vadd.f32 %v892_v12, %v1849_v49  ;;  %v872_v22 = vadd.f32 %v1441_v15, %v1843_v4  ;;  %v1449_v27 = vpop.f32.mrb[38].mxu1  ;;  %v863_v28 = vpop.f32.mrb[39].mxu0 }
 0x142   :  { %v944_v53 = vld [vmem:[#allocation2 + $0x10] sm:$0xff]  ;;  %v921_v29 = vadd.f32 %v901_v10, %v53_v62  ;;  %v911_v30 = vadd.f32 %v861_v3, %v43_v0  ;;  %v904_v31 = vadd.f32 %v1449_v27, %v1855_v2  ;;  %v864_v33 = vadd.f32 %v863_v28, %v1839_v54  ;;  %v895_v36 = vpop.f32.mrb[39].mxu1 }
 0x143   :  { %v967_v37 = vadd.f32 %v1928_v9, %v944_v53  ;;  %v952_v49 = vld [vmem:[#allocation2 + $0x50] sm:$0xff]  ;;  %v942_v40 = vld [vmem:[#allocation2] sm:$0xff]  ;;  %929 = vst.msk [vmem:[#allocation2 + $0x30] sm:$0xff] %vm22_vm0, %v913_v20  ;;  %v919_v4 = vadd.f32 %v893_v21, %v51_v11  ;;  %v914_v38 = vadd.f32 %v872_v22, %v46_v14  ;;  %v896_v41 = vadd.f32 %v895_v36, %v1851_v50 }
 0x144   :  { %v975_v44 = vadd.f32 %v1928_v9, %v952_v49  ;;  %v965_v18 = vadd.f32 %v1928_v9, %v942_v40  ;;  %v950_v52 = vld [vmem:[#allocation2 + $0x40] sm:$0xff]  ;;  %v945_v2 = vld [vmem:[#allocation2 + $0x18] sm:$0xff]  ;;  %937 = vst.msk [vmem:[#allocation2 + $0x70] sm:$0xff] %vm22_vm0, %v921_v29  ;;  %927 = vst.msk [vmem:[#allocation2 + $0x20] sm:$0xff] %vm22_vm0, %v911_v30  ;;  %v922_v54 = vadd.f32 %v904_v31, %v54_v24 }
 0x145   :  { %v912_v57 = vadd.f32 %v864_v33, %v44_v25  ;;  %v1015_v58 = vadd.f32 %v1253_v17, %v967_v37  ;;  %v973_v61 = vadd.f32 %v1928_v9, %v950_v52  ;;  %v968_v62 = vadd.f32 %v1928_v9, %v945_v2  ;;  %v953_v50 = vld [vmem:[#allocation2 + $0x58] sm:$0xff]  ;;  %v943_v63 = vld [vmem:[#allocation2 + $0x8] sm:$0xff]  ;;  %935 = vst.msk [vmem:[#allocation2 + $0x60] sm:$0xff] %vm22_vm0, %v919_v4 }
 0x146   :  { %930 = vst.msk [vmem:[#allocation2 + $0x38] sm:$0xff] %vm22_vm0, %v914_v38  ;;  %v920_v0 = vadd.f32 %v896_v41, %v52_v35  ;;  %v1023_v5 = vadd.f32 %v1269_v26, %v975_v44  ;;  %v1013_v10 = vadd.f32 %v1249_v43, %v965_v18  ;;  %v976_v3 = vadd.f32 %v1928_v9, %v953_v50  ;;  %v951_v11 = vld [vmem:[#allocation2 + $0x48] sm:$0xff] }
 0x147   :  { %v966_v17 = vadd.f32 %v1928_v9, %v943_v63  ;;  %938 = vst.msk [vmem:[#allocation2 + $0x78] sm:$0xff] %vm22_vm0, %v922_v54  ;;  %928 = vst.msk [vmem:[#allocation2 + $0x28] sm:$0xff] %vm22_vm0, %v912_v57  ;;  %v1031_v12 = vmax.f32 %v1015_v58, 0.0  ;;  %v1021_v14 = vadd.f32 %v1265_v47, %v973_v61  ;;  %v1016_v15 = vadd.f32 %v1254_v48, %v968_v62 }
 0x148   :  { %v974_v26 = vadd.f32 %v1928_v9, %v951_v11  ;;  %936 = vst.msk [vmem:[#allocation2 + $0x68] sm:$0xff] %vm22_vm0, %v920_v0  ;;  %v1039_v43 = vmax.f32 %v1023_v5, 0.0  ;;  %v1029_v20 = vmax.f32 %v1013_v10, 0.0  ;;  %v1024_v21 = vadd.f32 %v1270_v51, %v976_v3 }
 0x149   :  { %v1014_v22 = vadd.f32 %v1250_v55, %v966_v17  ;;  %v1233_v24 = vpack.c.bf16 %v1031_v12, %v1031_v12  ;;  %v1037_v27 = vmax.f32 %v1021_v14, 0.0  ;;  %v1032_v25 = vmax.f32 %v1016_v15, 0.0 }
 0x14a   :  { %v1022_v47 = vadd.f32 %v1266_v56, %v974_v26  ;;  %v1241_v13 = vpack.c.bf16 %v1039_v43, %v1039_v43  ;;  %v1231_v48 = vpack.c.bf16 %v1029_v20, %v1029_v20  ;;  %v1040_v28 = vmax.f32 %v1024_v21, 0.0  ;;  %v948_v29 = vld [vmem:[#allocation2 + $0x30] sm:$0xff] }
 0x14b   :  { %v1030_v53 = vmax.f32 %v1014_v22, 0.0  ;;  %1112 = vst.msk [vmem:[%s2064_s4 + $0x8] sm:$0xf] %vm1109_vm1, %v1233_v24  ;;  %v1239_v39 = vpack.c.bf16 %v1037_v27, %v1037_v27  ;;  %v1234_v51 = vpack.c.bf16 %v1032_v25, %v1032_v25  ;;  %v971_v55 = vadd.f32 %v1928_v9, %v948_v29  ;;  %v956_v30 = vld [vmem:[#allocation2 + $0x70] sm:$0xff]  ;;  %v946_v31 = vld [vmem:[#allocation2 + $0x20] sm:$0xff] }
 0x14c   :  { %v1038_v23 = vmax.f32 %v1022_v47, 0.0  ;;  %1120 = vst.msk [vmem:[%s2064_s4 + $0x28] sm:$0xf] %vm1109_vm1, %v1241_v13  ;;  %1110 = vst.msk [vmem:[%s2064_s4] sm:$0xf] %vm1109_vm1, %v1231_v48  ;;  %v1242_v32 = vpack.c.bf16 %v1040_v28, %v1040_v28  ;;  %v979_v33 = vadd.f32 %v1928_v9, %v956_v30  ;;  %v969_v35 = vadd.f32 %v1928_v9, %v946_v31  ;;  %v954_v36 = vld [vmem:[#allocation2 + $0x60] sm:$0xff] }
 0x14d   :  { %v1232_v56 = vpack.c.bf16 %v1030_v53, %v1030_v53  ;;  %v949_v37 = vld [vmem:[#allocation2 + $0x38] sm:$0xff]  ;;  %1118 = vst.msk [vmem:[%s2064_s4 + $0x20] sm:$0xf] %vm1109_vm1, %v1239_v39  ;;  %1113 = vst.msk [vmem:[%s2064_s4 + $0xc] sm:$0xf] %vm1109_vm1, %v1234_v51  ;;  %v1019_v40 = vadd.f32 %v1261_v59, %v971_v55  ;;  %v977_v4 = vadd.f32 %v1928_v9, %v954_v36 }
 0x14e   :  { %v1240_v49 = vpack.c.bf16 %v1038_v23, %v1038_v23  ;;  %v972_v38 = vadd.f32 %v1928_v9, %v949_v37  ;;  %v957_v41 = vld [vmem:[#allocation2 + $0x78] sm:$0xff]  ;;  %v947_v44 = vld [vmem:[#allocation2 + $0x28] sm:$0xff]  ;;  %1121 = vst.msk [vmem:[%s2064_s4 + $0x2c] sm:$0xf] %vm1109_vm1, %v1242_v32  ;;  %v1027_v18 = vadd.f32 %v1277_v60, %v979_v33  ;;  %v1017_v59 = vadd.f32 %v1257_v6, %v969_v35 }
 0x14f   :  { %1111 = vst.msk [vmem:[%s2064_s4 + $0x4] sm:$0xf] %vm1109_vm1, %v1232_v56  ;;  %v980_v52 = vadd.f32 %v1928_v9, %v957_v41  ;;  %v970_v2 = vadd.f32 %v1928_v9, %v947_v44  ;;  %v955_v54 = vld [vmem:[#allocation2 + $0x68] sm:$0xff]  ;;  %v1035_v57 = vmax.f32 %v1019_v40, 0.0  ;;  %v1025_v58 = vadd.f32 %v1273_v7, %v977_v4 }
 0x150   :  { %1119 = vst.msk [vmem:[%s2064_s4 + $0x24] sm:$0xf] %vm1109_vm1, %v1240_v49  ;;  %v1020_v60 = vadd.f32 %v1262_v8, %v972_v38  ;;  %v978_v61 = vadd.f32 %v1928_v9, %v955_v54  ;;  %v1043_v6 = vmax.f32 %v1027_v18, 0.0  ;;  %v1033_v62 = vmax.f32 %v1017_v59, 0.0 }
 0x151   :  { %v1028_v50 = vadd.f32 %v1278_v16, %v980_v52  ;;  %v1018_v63 = vadd.f32 %v1258_v19, %v970_v2  ;;  %v1237_v0 = vpack.c.bf16 %v1035_v57, %v1035_v57  ;;  %v1041_v5 = vmax.f32 %v1025_v58, 0.0 }
 0x152   :  { %v1036_v10 = vmax.f32 %v1020_v60, 0.0  ;;  %v1026_v3 = vadd.f32 %v1274_v1, %v978_v61  ;;  %v1245_v7 = vpack.c.bf16 %v1043_v6, %v1043_v6  ;;  %v1235_v17 = vpack.c.bf16 %v1033_v62, %v1033_v62 }
 0x153   :  { %v1044_v42 = vmax.f32 %v1028_v50, 0.0  ;;  %v1034_v8 = vmax.f32 %v1018_v63, 0.0  ;;  %1116 = vst.msk [vmem:[%s2064_s4 + $0x18] sm:$0xf] %vm1109_vm1, %v1237_v0  ;;  %v1243_v34 = vpack.c.bf16 %v1041_v5, %v1041_v5 }
 0x154   :  { %v1238_v9 = vpack.c.bf16 %v1036_v10, %v1036_v10  ;;  %v1042_v16 = vmax.f32 %v1026_v3, 0.0  ;;  %1124 = vst.msk [vmem:[%s2064_s4 + $0x38] sm:$0xf] %vm1109_vm1, %v1245_v7  ;;  %1114 = vst.msk [vmem:[%s2064_s4 + $0x10] sm:$0xf] %vm1109_vm1, %v1235_v17 }
 0x155   :  { %v1246_v45 = vpack.c.bf16 %v1044_v42, %v1044_v42  ;;  %v1236_v46 = vpack.c.bf16 %v1034_v8, %v1034_v8  ;;  %1122 = vst.msk [vmem:[%s2064_s4 + $0x30] sm:$0xf] %vm1109_vm1, %v1243_v34 }
 0x156   :  { %1117 = vst.msk [vmem:[%s2064_s4 + $0x1c] sm:$0xf] %vm1109_vm1, %v1238_v9  ;;  %v1244_v19 = vpack.c.bf16 %v1042_v16, %v1042_v16 }
 0x157   :  { %1125 = vst.msk [vmem:[%s2064_s4 + $0x3c] sm:$0xf] %vm1109_vm1, %v1246_v45  ;;  %1115 = vst.msk [vmem:[%s2064_s4 + $0x14] sm:$0xf] %vm1109_vm1, %v1236_v46 }
 0x158   :  { %1123 = vst.msk [vmem:[%s2064_s4 + $0x34] sm:$0xf] %vm1109_vm1, %v1244_v19 }

// kernel: _lambda_.14
= control target key start
LH: loop header
LB: loop body
LE: loop exit
PB: predicated region body
PF: predicated region fallthrough
CT: control target
= control target key end

     0   :  { %vm377_vm0 = vcmask 523264   ;;  %s944_s1 = inlined_call_operand.vmem [shape: bf16[576,128], index: 1, kind: input, shape index: {}]   ;;  %s945_s0 = inlined_call_operand.vmem [shape: bf16[32,576], index: 0, kind: input, shape index: {}]   ;;  %s946_s2 = inlined_call_operand.vmem [shape: f32[1,128], index: 2, kind: input, shape index: {}]   ;;  %s947_s3 = inlined_call_operand.vmem [shape: bf16[32,128], index: 3, kind: output, shape index: {}]  }
   0x1   :  { %v727_v0 = vld [vmem:[%s944_s1 + $0x40] sm:$0xff]   ;;  %v731_v4 = vld [vmem:[%s944_s1 + $0x48] sm:$0xff]   ;;  %v735_v8 = vld [vmem:[%s944_s1 + $0x50] sm:$0xff]  }
   0x2   :  { %v728_v1 = vld [vmem:[%s944_s1 + $0xc0] sm:$0xff]   ;;  %653 = vmatprep.subr.bf16.mxu0 %v727_v0  ;;  %v732_v5 = vld [vmem:[%s944_s1 + $0xc8] sm:$0xff]   ;;  %v736_v9 = vld [vmem:[%s944_s1 + $0xd0] sm:$0xff]  }
   0x3   :  { %v729_v2 = vld [vmem:[%s944_s1] sm:$0xff]   ;;  %681 = vmatprep.subr.bf16.mxu1 %v728_v1  ;;  %v733_v6 = vld [vmem:[%s944_s1 + $0x8] sm:$0xff]   ;;  %v737_v10 = vld [vmem:[%s944_s1 + $0x10] sm:$0xff]  }
   0x4   :  { %v730_v3 = vld [vmem:[%s944_s1 + $0x80] sm:$0xff]   ;;  %654 = vmatpush3.bf16.msra.mxu0 %v729_v2  ;;  %v734_v7 = vld [vmem:[%s944_s1 + $0x88] sm:$0xff]   ;;  %v738_v11 = vld [vmem:[%s944_s1 + $0x90] sm:$0xff]  }
   0x5   :  { %682 = vmatpush3.bf16.msra.mxu1 %v730_v3  ;;  %655 = vmatprep.subr.bf16.mxu0 %v731_v4  ;;  %v739_v12 = vld [vmem:[%s944_s1 + $0x58] sm:$0xff]   ;;  %v743_v16 = vld [vmem:[%s944_s1 + $0x60] sm:$0xff]   ;;  %v747_v20 = vld [vmem:[%s944_s1 + $0x68] sm:$0xff]  }
   0x6   :  { %683 = vmatprep.subr.bf16.mxu1 %v732_v5  ;;  %v740_v13 = vld [vmem:[%s944_s1 + $0xd8] sm:$0xff]   ;;  %v744_v17 = vld [vmem:[%s944_s1 + $0xe0] sm:$0xff]   ;;  %v748_v21 = vld [vmem:[%s944_s1 + $0xe8] sm:$0xff]  }
   0x7   :  { %v741_v14 = vld [vmem:[%s944_s1 + $0x18] sm:$0xff]   ;;  %v745_v18 = vld [vmem:[%s944_s1 + $0x20] sm:$0xff]   ;;  %v749_v22 = vld [vmem:[%s944_s1 + $0x28] sm:$0xff]  }
   0x8   :  { %656 = vmatpush3.bf16.msra.mxu0 %v733_v6  ;;  %v742_v15 = vld [vmem:[%s944_s1 + $0x98] sm:$0xff]   ;;  %v746_v19 = vld [vmem:[%s944_s1 + $0xa0] sm:$0xff]   ;;  %v750_v23 = vld [vmem:[%s944_s1 + $0xa8] sm:$0xff]  }
   0x9   :  { %684 = vmatpush3.bf16.msra.mxu1 %v734_v7  ;;  %657 = vmatprep.subr.bf16.mxu0 %v735_v8  ;;  %v751_v24 = vld [vmem:[%s944_s1 + $0x70] sm:$0xff]   ;;  %v755_v28 = vld [vmem:[%s944_s1 + $0x78] sm:$0xff]   ;;  %v764_v35 = vld [vmem:[%s945_s0 + $0xc] ss:$20 sps:$4 sm:$0xff]  }
   0xa   :  { %685 = vmatprep.subr.bf16.mxu1 %v736_v9  ;;  %v752_v25 = vld [vmem:[%s944_s1 + $0xf0] sm:$0xff]   ;;  %v756_v29 = vld [vmem:[%s944_s1 + $0xf8] sm:$0xff]   ;;  %v765_v36 = vld [vmem:[%s944_s1 + $0x100] sm:$0xff]   ;;  %465 = vmatprep.mubr.bf16.mxu1 %v764_v35 }
   0xb   :  { %v753_v26 = vld [vmem:[%s944_s1 + $0x30] sm:$0xff]   ;;  %v757_v30 = vld [vmem:[%s944_s1 + $0x38] sm:$0xff]   ;;  %v766_v37 = vld [vmem:[%s944_s1 + $0x108] sm:$0xff]  }
   0xc   :  { %658 = vmatpush3.bf16.msra.mxu0 %v737_v10  ;;  %v754_v27 = vld [vmem:[%s944_s1 + $0xb0] sm:$0xff]   ;;  %v758_v31 = vld [vmem:[%s944_s1 + $0xb8] sm:$0xff]   ;;  %v767_v38 = vld [vmem:[%s945_s0 + $0x2c] ss:$20 sps:$4 sm:$0xff]  }
   0xd   :  { %686 = vmatpush3.bf16.msra.mxu1 %v738_v11  ;;  %659 = vmatprep.subr.bf16.mxu0 %v739_v12  ;;  %v759_v32 = vld [vmem:[%s945_s0] ss:$20 sps:$4 sm:$0xff]   ;;  %v761_v33 = vld [vmem:[%s945_s0 + $0x4] ss:$20 sps:$4 sm:$0xff]   ;;  %v762_v34 = vld [vmem:[%s945_s0 + $0x8] ss:$20 sps:$4 sm:$0xff]  }
   0xe   :  { %687 = vmatprep.subr.bf16.mxu1 %v740_v13  ;;  %416 = vmatprep.mubr.bf16.mxu0 %v761_v33  ;;  %v769_v39 = vld [vmem:[%s945_s0 + $0x34] ss:$20 sps:$4 sm:$0xff]   ;;  %v772_v42 = vld [vmem:[%s945_s0 + $0x30] ss:$20 sps:$4 sm:$0xff]   ;;  %v774_v44 = vld [vmem:[%s944_s1 + $0x118] sm:$0xff]  }
   0xf   :  { %v771_v40 = vld [vmem:[%s945_s0 + $0x28] ss:$20 sps:$4 sm:$0xff]   ;;  %v773_v41 = vld [vmem:[%s944_s1 + $0x110] sm:$0xff]   ;;  %v776_v45 = vld [vmem:[%s945_s0 + $0x38] ss:$20 sps:$4 sm:$0xff]  }
  0x10   :  { %660 = vmatpush3.bf16.msra.mxu0 %v741_v14  ;;  %v775_v43 = vld [vmem:[%s945_s0 + $0x10] ss:$20 sps:$4 sm:$0xff]   ;;  %v633_v11 = vld [vmem:[%s946_s2] ss:$0 sm:$0xff] }
  0x11   :  { %688 = vmatpush3.bf16.msra.mxu1 %v742_v15  ;;  %661 = vmatprep.subr.bf16.mxu0 %v743_v16 }
  0x12   :  { %689 = vmatprep.subr.bf16.mxu1 %v744_v17 }
  0x14   :  { %662 = vmatpush3.bf16.msra.mxu0 %v745_v18 }
  0x15   :  { %690 = vmatpush3.bf16.msra.mxu1 %v746_v19  ;;  %663 = vmatprep.subr.bf16.mxu0 %v747_v20 }
  0x16   :  { %691 = vmatprep.subr.bf16.mxu1 %v748_v21 }
  0x18   :  { %664 = vmatpush3.bf16.msra.mxu0 %v749_v22 }
  0x19   :  { %692 = vmatpush3.bf16.msra.mxu1 %v750_v23  ;;  %665 = vmatprep.subr.bf16.mxu0 %v751_v24 }
  0x1a   :  { %693 = vmatprep.subr.bf16.mxu1 %v752_v25 }
  0x1c   :  { %666 = vmatpush3.bf16.msra.mxu0 %v753_v26 }
  0x1d   :  { %694 = vmatpush3.bf16.msra.mxu1 %v754_v27  ;;  %667 = vmatprep.subr.bf16.mxu0 %v755_v28 }
  0x1e   :  { %695 = vmatprep.subr.bf16.mxu1 %v756_v29 }
  0x20   :  { %668 = vmatpush3.bf16.msra.mxu0 %v757_v30 }
  0x21   :  { %696 = vmatpush3.bf16.msra.mxu1 %v758_v31  ;;  %715 = vmatprep.subr.bf16.mxu0 %v765_v36 }
  0x23   :  { %417 = vmatmul.mubr.bf16.vlgmr.msra.gmra.mrb[0].mxu0 %v759_v32 }
  0x24   :  { %466 = vmatmul.mubr.bf16.vlgmr.msra.gmra.mrb[0].mxu1 %v762_v34  ;;  %716 = vmatpush3.bf16.msra.mxu0 %v765_v36 }
  0x25   :  { %717 = vmatprep.subr.bf16.mxu0 %v766_v37  ;;  %424 = vmatprep.mubr.bf16.mxu0 %v767_v38 }
  0x26   :  { %473 = vmatprep.mubr.bf16.mxu1 %v769_v39 }
  0x28   :  { %718 = vmatpush3.bf16.msra.mxu0 %v766_v37 }
  0x29   :  { %719 = vmatprep.subr.bf16.mxu0 %v773_v41 }
  0x2b   :  { %425 = vmatmul.mubr.bf16.gmra.mrb[4].mxu0 %v771_v40 }
  0x2c   :  { %474 = vmatmul.mubr.bf16.gmra.mrb[4].mxu1 %v772_v42  ;;  %723 = vmatprep.mubr.msk.bf16.mxu0 %vm377_vm0, %v775_v43 }
  0x2d   :  { %720 = vmatpush3.bf16.msra.mxu0 %v773_v41 }
  0x2e   :  { %721 = vmatprep.subr.bf16.mxu0 %v774_v44 }
  0x31   :  { %722 = vmatpush3.bf16.msra.mxu0 %v774_v44 }
  0x34   :  { %724 = vmatmul.mubr.msk.bf16.vlgmr.msra.gmra.mrb[8].mxu0 %vm377_vm0, %v776_v45 }
  0xf6   :  { %v669_v46 = vpop.f32.mrb[0].mxu0 }
  0xf7   :  { %v697_v47 = vpop.f32.mrb[0].mxu1  ;;  %v670_v48 = vpop.f32.mrb[1].mxu0 }
  0xf8   :  { %v671_v49 = vadd.f32 %v670_v48, %v669_v46  ;;  %v698_v50 = vpop.f32.mrb[1].mxu1  ;;  %v672_v51 = vpop.f32.mrb[2].mxu0 }
  0xf9   :  { %v699_v52 = vadd.f32 %v698_v50, %v697_v47  ;;  %v700_v53 = vpop.f32.mrb[2].mxu1  ;;  %v673_v54 = vpop.f32.mrb[3].mxu0 }
  0xfa   :  { %v674_v55 = vadd.f32 %v673_v54, %v672_v51  ;;  %v701_v56 = vpop.f32.mrb[3].mxu1 }
  0xfb   :  { %v702_v57 = vadd.f32 %v701_v56, %v700_v53  ;;  %v468_v58 = vadd.f32 %v699_v52, %v671_v49 }
  0xfd   :  { %v471_v59 = vadd.f32 %v702_v57, %v674_v55 }
  0xfe   :  { %v675_v60 = vpop.f32.mrb[4].mxu0 }
  0xff   :  { %v703_v61 = vpop.f32.mrb[4].mxu1  ;;  %v676_v62 = vpop.f32.mrb[5].mxu0 }
 0x100   :  { %v677_v63 = vadd.f32 %v676_v62, %v675_v60  ;;  %v704_v0 = vpop.f32.mrb[5].mxu1  ;;  %v678_v1 = vpop.f32.mrb[6].mxu0 }
 0x101   :  { %v705_v2 = vadd.f32 %v704_v0, %v703_v61  ;;  %v706_v3 = vpop.f32.mrb[6].mxu1  ;;  %v679_v4 = vpop.f32.mrb[7].mxu0 }
 0x102   :  { %v680_v5 = vadd.f32 %v679_v4, %v678_v1  ;;  %v707_v6 = vpop.f32.mrb[7].mxu1 }
 0x103   :  { %v708_v7 = vadd.f32 %v707_v6, %v706_v3  ;;  %v476_v8 = vadd.f32 %v705_v2, %v677_v63 }
 0x105   :  { %v479_v9 = vadd.f32 %v708_v7, %v680_v5 }
 0x107   :  { %v725_v10 = vpop.f32.mrb[8].mxu0 }
 0x108   :  { %v525_v12 = vadd.f32 %v725_v10, %v476_v8  ;;  %v516_v13 = vpop.f32.mrb[9].mxu0 }
 0x109   :  { %v517_v14 = vadd.f32 %v516_v13, %v468_v58  ;;  %v726_v15 = vpop.f32.mrb[10].mxu0 }
 0x10a   :  { %v555_v16 = vadd.f32 %v633_v11, %v525_v12  ;;  %v528_v17 = vadd.f32 %v726_v15, %v479_v9  ;;  %v519_v18 = vpop.f32.mrb[11].mxu0 }
 0x10b   :  { %v553_v19 = vadd.f32 %v633_v11, %v517_v14  ;;  %v520_v20 = vadd.f32 %v519_v18, %v471_v59 }
 0x10c   :  { %v556_v21 = vadd.f32 %v633_v11, %v528_v17  ;;  %v559_v23 = vmax.f32 %v555_v16, 0.0 }
 0x10d   :  { %v554_v22 = vadd.f32 %v633_v11, %v520_v20  ;;  %v557_v25 = vmax.f32 %v553_v19, 0.0 }
 0x10e   :  { %v560_v24 = vmax.f32 %v556_v21, 0.0 }
 0x10f   :  { %v558_v26 = vmax.f32 %v554_v22, 0.0 }
 0x110   :  { %v650_v27 = vpack.c.bf16 %v560_v24, %v559_v23 }
 0x111   :  { %v645_v28 = vpack.c.bf16 %v558_v26, %v557_v25 }
 0x112   :  { %652 = vst [vmem:[%s947_s3 + $0x8] sm:$0xff] %v650_v27  }
 0x113   :  { %646 = vst [vmem:[%s947_s3] sm:$0xff] %v645_v28  }

// kernel: _lambda_.15
= control target key start
LH: loop header
LB: loop body
LE: loop exit
PB: predicated region body
PF: predicated region fallthrough
CT: control target
= control target key end

     0   :  { %v1396_v45 = vmov 0   ;;  %vm753_vm0 = vcmask 523264   ;;  %s1728_s1 = inlined_call_operand.vmem [shape: bf16[1216,128], index: 1, kind: input, shape index: {}]   ;;  %s1729_s0 = inlined_call_operand.vmem [shape: bf16[32,1216], index: 0, kind: input, shape index: {}]   ;;  %s1730_s2 = inlined_call_operand.vmem [shape: f32[1,128], index: 2, kind: input, shape index: {}]   ;;  %s1731_s3 = inlined_call_operand.vmem [shape: bf16[32,128], index: 3, kind: output, shape index: {}]  }
   0x1   :  { %v1290_v0 = vld [vmem:[%s1728_s1 + $0x40] sm:$0xff]   ;;  %v1292_v2 = vld [vmem:[%s1728_s1 + $0x48] sm:$0xff]   ;;  %v1294_v4 = vld [vmem:[%s1728_s1 + $0x50] sm:$0xff]  }
   0x2   :  { %v1291_v1 = vld [vmem:[%s1728_s1] sm:$0xff]   ;;  %1177 = vmatprep.subr.bf16.mxu1 %v1290_v0  ;;  %v1293_v3 = vld [vmem:[%s1728_s1 + $0x8] sm:$0xff]   ;;  %v1295_v5 = vld [vmem:[%s1728_s1 + $0x10] sm:$0xff]  }
   0x3   :  { %1178 = vmatpush3.bf16.msra.mxu1 %v1291_v1  ;;  %v1296_v6 = vld [vmem:[%s1728_s1 + $0x58] sm:$0xff]   ;;  %v1300_v8 = vld [vmem:[%s1728_s1 + $0x140] sm:$0xff]   ;;  %v1304_v12 = vld [vmem:[%s1728_s1 + $0x148] sm:$0xff]  }
   0x4   :  { %1179 = vmatprep.subr.bf16.mxu1 %v1292_v2  ;;  %v1297_v7 = vld [vmem:[%s1728_s1 + $0x18] sm:$0xff]   ;;  %v1301_v9 = vld [vmem:[%s1728_s1 + $0x100] sm:$0xff]   ;;  %1233 = vmatprep.subr.bf16.mxu0 %v1300_v8  ;;  %v1305_v13 = vld [vmem:[%s1728_s1 + $0x108] sm:$0xff]  }
   0x5   :  { %v1298_v10 = vld [vmem:[%s1728_s1 + $0x60] sm:$0xff]   ;;  %1234 = vmatpush3.bf16.msra.mxu0 %v1301_v9  ;;  %v1302_v14 = vld [vmem:[%s1728_s1 + $0x68] sm:$0xff]   ;;  %v1308_v16 = vld [vmem:[%s1728_s1 + $0x150] sm:$0xff]  }
   0x6   :  { %v1299_v11 = vld [vmem:[%s1728_s1 + $0x20] sm:$0xff]   ;;  %1235 = vmatprep.subr.bf16.mxu0 %v1304_v12  ;;  %v1303_v15 = vld [vmem:[%s1728_s1 + $0x28] sm:$0xff]   ;;  %v1309_v17 = vld [vmem:[%s1728_s1 + $0x110] sm:$0xff]  }
   0x7   :  { %1180 = vmatpush3.bf16.msra.mxu1 %v1293_v3  ;;  %v1306_v18 = vld [vmem:[%s1728_s1 + $0x70] sm:$0xff]   ;;  %v1312_v20 = vld [vmem:[%s1728_s1 + $0x158] sm:$0xff]   ;;  %v1315_v22 = vld [vmem:[%s1729_s0 + $0x4] ss:$40 sps:$4 sm:$0xff]  }
   0x8   :  { %1181 = vmatprep.subr.bf16.mxu1 %v1294_v4  ;;  %v1307_v19 = vld [vmem:[%s1728_s1 + $0x30] sm:$0xff]   ;;  %v1310_v21 = vld [vmem:[%s1728_s1 + $0x78] sm:$0xff]   ;;  %792 = vmatprep.mubr.bf16.mxu1 %v1315_v22  ;;  %v1317_v25 = vld [vmem:[%s1728_s1 + $0xc0] sm:$0xff]  }
   0x9   :  { %1236 = vmatpush3.bf16.msra.mxu0 %v1305_v13  ;;  %v1316_v23 = vld [vmem:[%s1728_s1 + $0x118] sm:$0xff]   ;;  %v1313_v26 = vld [vmem:[%s1729_s0] ss:$40 sps:$4 sm:$0xff]   ;;  %v1325_v34 = vld [vmem:[%s1728_s1 + $0xd0] sm:$0xff]  }
   0xa   :  { %1237 = vmatprep.subr.bf16.mxu0 %v1308_v16  ;;  %v1311_v24 = vld [vmem:[%s1728_s1 + $0x38] sm:$0xff]   ;;  %v1319_v27 = vld [vmem:[%s1728_s1 + $0x160] sm:$0xff]   ;;  %v1321_v30 = vld [vmem:[%s1728_s1 + $0xc8] sm:$0xff]  }
   0xb   :  { %1182 = vmatpush3.bf16.msra.mxu1 %v1295_v5  ;;  %v1320_v28 = vld [vmem:[%s1728_s1 + $0x120] sm:$0xff]   ;;  %v1323_v31 = vld [vmem:[%s1728_s1 + $0x168] sm:$0xff]   ;;  %v1327_v35 = vld [vmem:[%s1728_s1 + $0x170] sm:$0xff]  }
   0xc   :  { %1183 = vmatprep.subr.bf16.mxu1 %v1296_v6  ;;  %v1318_v29 = vld [vmem:[%s1728_s1 + $0x80] sm:$0xff]   ;;  %v1324_v32 = vld [vmem:[%s1728_s1 + $0x128] sm:$0xff]   ;;  %v1328_v36 = vld [vmem:[%s1728_s1 + $0x130] sm:$0xff]  }
   0xd   :  { %1238 = vmatpush3.bf16.msra.mxu0 %v1309_v17  ;;  %v1322_v33 = vld [vmem:[%s1728_s1 + $0x88] sm:$0xff]   ;;  %v1326_v37 = vld [vmem:[%s1728_s1 + $0x90] sm:$0xff]   ;;  %v1329_v38 = vld [vmem:[%s1728_s1 + $0xd8] sm:$0xff]  }
   0xe   :  { %1239 = vmatprep.subr.bf16.mxu0 %v1312_v20  ;;  %v1331_v39 = vld [vmem:[%s1728_s1 + $0x178] sm:$0xff]   ;;  %v1333_v42 = vld [vmem:[%s1728_s1 + $0xe0] sm:$0xff]   ;;  %v1339_v49 = vld [vmem:[%s1728_s1 + $0xe8] sm:$0xff]  }
   0xf   :  { %1184 = vmatpush3.bf16.msra.mxu1 %v1297_v7  ;;  %v1332_v40 = vld [vmem:[%s1728_s1 + $0x138] sm:$0xff]   ;;  %v1338_v46 = vld [vmem:[%s1728_s1 + $0x200] sm:$0xff]   ;;  %v1344_v51 = vld [vmem:[%s1728_s1 + $0x208] sm:$0xff]  }
  0x10   :  { %1185 = vmatprep.subr.bf16.mxu1 %v1298_v10  ;;  %v1330_v41 = vld [vmem:[%s1728_s1 + $0x98] sm:$0xff]   ;;  %v1334_v47 = vld [vmem:[%s1728_s1 + $0xa0] sm:$0xff]   ;;  %v1342_v52 = vld [vmem:[%s1728_s1 + $0xa8] sm:$0xff]  }
  0x11   :  { %1240 = vmatpush3.bf16.msra.mxu0 %v1316_v23  ;;  %v1335_v43 = vld [vmem:[%s1729_s0 + $0x10] ss:$40 sps:$4 sm:$0xff]   ;;  %v1337_v44 = vld [vmem:[%s1729_s0 + $0x14] ss:$40 sps:$4 sm:$0xff]   ;;  %v1354_v60 = vld [vmem:[%s1728_s1 + $0x1c0] sm:$0xff]  }
  0x12   :  { %1241 = vmatprep.subr.bf16.mxu0 %v1319_v27  ;;  %890 = vmatprep.mubr.bf16.mxu0 %v1337_v44  ;;  %v1340_v48 = vld [vmem:[%s1729_s0 + $0x54] ss:$40 sps:$4 sm:$0xff]   ;;  %v1343_v50 = vld [vmem:[%s1729_s0 + $0x50] ss:$40 sps:$4 sm:$0xff]   ;;  %v1356_v61 = vld [vmem:[%s1728_s1 + $0x220] sm:$0xff]  }
  0x13   :  { %1186 = vmatpush3.bf16.msra.mxu1 %v1299_v11  ;;  %v1345_v53 = vld [vmem:[%s1728_s1 + $0xf0] sm:$0xff]   ;;  %v1348_v56 = vld [vmem:[%s1728_s1 + $0xf8] sm:$0xff]   ;;  %v1355_v63 = vld [vmem:[%s1728_s1 + $0x180] sm:$0xff]  }
  0x14   :  { %1187 = vmatprep.subr.bf16.mxu1 %v1302_v14  ;;  %v1347_v54 = vld [vmem:[%s1728_s1 + $0x210] sm:$0xff]   ;;  %v1353_v58 = vld [vmem:[%s1728_s1 + $0x218] sm:$0xff]   ;;  %v1357_v1 = vld [vmem:[%s1728_s1 + $0x1c8] sm:$0xff]  }
  0x15   :  { %1242 = vmatpush3.bf16.msra.mxu0 %v1320_v28  ;;  %v1346_v55 = vld [vmem:[%s1728_s1 + $0xb0] sm:$0xff]   ;;  %v1349_v59 = vld [vmem:[%s1728_s1 + $0xb8] sm:$0xff]   ;;  %v1361_v2 = vld [vmem:[%s1728_s1 + $0x228] sm:$0xff]  }
  0x16   :  { %1243 = vmatprep.subr.bf16.mxu0 %v1323_v31  ;;  %v1352_v57 = vld [vmem:[%s1729_s0 + $0xc] ss:$40 sps:$4 sm:$0xff]   ;;  %v1350_v62 = vld [vmem:[%s1729_s0 + $0x8] ss:$40 sps:$4 sm:$0xff]   ;;  %v1359_v0 = vld [vmem:[%s1729_s0 + $0x5c] ss:$40 sps:$4 sm:$0xff]  }
  0x17   :  { %1188 = vmatpush3.bf16.msra.mxu1 %v1303_v15  ;;  %v1358_v3 = vld [vmem:[%s1728_s1 + $0x188] sm:$0xff]   ;;  %v1363_v5 = vld [vmem:[%s1728_s1 + $0x1d0] sm:$0xff]   ;;  %v1362_v8 = vld [vmem:[%s1729_s0 + $0x58] ss:$40 sps:$4 sm:$0xff]  }
  0x18   :  { %1189 = vmatprep.subr.bf16.mxu1 %v1306_v18  ;;  %v1364_v4 = vld [vmem:[%s1729_s0 + $0x64] ss:$40 sps:$4 sm:$0xff]   ;;  %v1367_v6 = vld [vmem:[%s1729_s0 + $0x60] ss:$40 sps:$4 sm:$0xff]   ;;  %v1368_v7 = vld [vmem:[%s1728_s1 + $0x230] sm:$0xff]  }
  0x19   :  { %1244 = vmatpush3.bf16.msra.mxu0 %v1324_v32  ;;  %v1366_v9 = vld [vmem:[%s1728_s1 + $0x190] sm:$0xff]   ;;  %v1369_v10 = vld [vmem:[%s1728_s1 + $0x1d8] sm:$0xff]   ;;  %v1372_v13 = vld [vmem:[%s1728_s1 + $0x1e0] sm:$0xff]  }
  0x1a   :  { %1245 = vmatprep.subr.bf16.mxu0 %v1327_v35  ;;  %v1371_v11 = vld [vmem:[%s1728_s1 + $0x238] sm:$0xff]   ;;  %v1374_v14 = vld [vmem:[%s1728_s1 + $0x240] sm:$0xff]   ;;  %v1375_v16 = vld [vmem:[%s1728_s1 + $0x1e8] sm:$0xff]  }
  0x1b   :  { %1190 = vmatpush3.bf16.msra.mxu1 %v1307_v19  ;;  %v1370_v12 = vld [vmem:[%s1728_s1 + $0x198] sm:$0xff]   ;;  %v1373_v15 = vld [vmem:[%s1728_s1 + $0x1a0] sm:$0xff]   ;;  %v1377_v17 = vld [vmem:[%s1728_s1 + $0x248] sm:$0xff]  }
  0x1c   :  { %1191 = vmatprep.subr.bf16.mxu1 %v1310_v21  ;;  %v1376_v18 = vld [vmem:[%s1728_s1 + $0x1a8] sm:$0xff]   ;;  %v1378_v19 = vld [vmem:[%s1728_s1 + $0x1f0] sm:$0xff]   ;;  %v1385_v21 = vld [vmem:[%s1729_s0 + $0x1c] ss:$40 sps:$4 sm:$0xff]  }
  0x1d   :  { %1246 = vmatpush3.bf16.msra.mxu0 %v1328_v36  ;;  %v1380_v20 = vld [vmem:[%s1728_s1 + $0x250] sm:$0xff]   ;;  %v1389_v22 = vld [vmem:[%s1729_s0 + $0x24] ss:$40 sps:$4 sm:$0xff]   ;;  %v1387_v27 = vld [vmem:[%s1729_s0 + $0x20] ss:$40 sps:$4 sm:$0xff]  }
  0x1e   :  { %1247 = vmatprep.subr.bf16.mxu0 %v1331_v39  ;;  %v1379_v23 = vld [vmem:[%s1728_s1 + $0x1b0] sm:$0xff]  }
  0x1f   :  { %1192 = vmatpush3.bf16.msra.mxu1 %v1311_v24  ;;  %v1381_v24 = vld [vmem:[%s1728_s1 + $0x1f8] sm:$0xff]   ;;  %v1392_v32 = vld [vmem:[%s1729_s0 + $0x68] ss:$40 sps:$4 sm:$0xff]  }
  0x20   :  { %1205 = vmatprep.subr.bf16.mxu1 %v1317_v25  ;;  %v1386_v25 = vld [vmem:[%s1728_s1 + $0x258] sm:$0xff]  }
  0x21   :  { %1248 = vmatpush3.bf16.msra.mxu0 %v1332_v40  ;;  %v1393_v28 = vld [vmem:[%s1729_s0 + $0x74] ss:$40 sps:$4 sm:$0xff]   ;;  %v1395_v31 = vld [vmem:[%s1729_s0 + $0x70] ss:$40 sps:$4 sm:$0xff]  }
  0x22   :  { %793 = vmatmul.mubr.bf16.vlgmr.msra.gmra.mrb[0].mxu1 %v1313_v26  ;;  %956 = vmatprep.subr.bf16.mxu0 %v1396_v45  ;;  %v1382_v26 = vld [vmem:[%s1728_s1 + $0x1b8] sm:$0xff]  }
  0x23   :  { %1206 = vmatpush3.bf16.msra.mxu1 %v1318_v29  ;;  %800 = vmatprep.mubr.bf16.mxu1 %v1340_v48  ;;  %v1383_v29 = vld [vmem:[%s1729_s0 + $0x18] ss:$40 sps:$4 sm:$0xff]  }
  0x24   :  { %1207 = vmatprep.subr.bf16.mxu1 %v1321_v30  ;;  %891 = vmatmul.mubr.bf16.vlgmr.msra.gmra.mrb[0].mxu0 %v1335_v43  ;;  %v1390_v30 = vld [vmem:[%s1729_s0 + $0x6c] ss:$40 sps:$4 sm:$0xff]  }
  0x25   :  { %957 = vmatpush1.bf16.msra.mxu0 %v1338_v46  ;;  %898 = vmatprep.mubr.bf16.mxu0 %v1364_v4 }
  0x26   :  { %958 = vmatprep.subr.bf16.mxu0 %v1396_v45 }
  0x27   :  { %1208 = vmatpush3.bf16.msra.mxu1 %v1322_v33 }
  0x28   :  { %1209 = vmatprep.subr.bf16.mxu1 %v1325_v34 }
  0x29   :  { %959 = vmatpush1.bf16.msra.mxu0 %v1344_v51 }
  0x2a   :  { %801 = vmatmul.mubr.bf16.gmra.mrb[4].mxu1 %v1343_v50  ;;  %960 = vmatprep.subr.bf16.mxu0 %v1396_v45 }
  0x2b   :  { %1210 = vmatpush3.bf16.msra.mxu1 %v1326_v37  ;;  %841 = vmatprep.mubr.bf16.mxu1 %v1352_v57 }
  0x2c   :  { %1211 = vmatprep.subr.bf16.mxu1 %v1329_v38  ;;  %899 = vmatmul.mubr.bf16.gmra.mrb[4].mxu0 %v1367_v6 }
  0x2d   :  { %961 = vmatpush1.bf16.msra.mxu0 %v1347_v54  ;;  %1155 = vmatprep.mubr.msk.bf16.mxu0 %vm753_vm0, %v1389_v22 }
  0x2e   :  { %962 = vmatprep.subr.bf16.mxu0 %v1396_v45 }
  0x2f   :  { %1212 = vmatpush3.bf16.msra.mxu1 %v1330_v41 }
  0x30   :  { %1213 = vmatprep.subr.bf16.mxu1 %v1333_v42 }
  0x31   :  { %963 = vmatpush1.bf16.msra.mxu0 %v1353_v58 }
  0x32   :  { %964 = vmatprep.subr.bf16.mxu0 %v1396_v45 }
  0x33   :  { %1214 = vmatpush3.bf16.msra.mxu1 %v1334_v47 }
  0x34   :  { %1215 = vmatprep.subr.bf16.mxu1 %v1339_v49 }
  0x35   :  { %965 = vmatpush1.bf16.msra.mxu0 %v1356_v61 }
  0x36   :  { %966 = vmatprep.subr.bf16.mxu0 %v1396_v45 }
  0x37   :  { %1216 = vmatpush3.bf16.msra.mxu1 %v1342_v52 }
  0x38   :  { %1217 = vmatprep.subr.bf16.mxu1 %v1345_v53 }
  0x39   :  { %967 = vmatpush1.bf16.msra.mxu0 %v1361_v2 }
  0x3a   :  { %968 = vmatprep.subr.bf16.mxu0 %v1396_v45 }
  0x3b   :  { %1218 = vmatpush3.bf16.msra.mxu1 %v1346_v55 }
  0x3c   :  { %1219 = vmatprep.subr.bf16.mxu1 %v1348_v56 }
  0x3d   :  { %969 = vmatpush1.bf16.msra.mxu0 %v1368_v7 }
  0x3e   :  { %970 = vmatprep.subr.bf16.mxu0 %v1396_v45 }
  0x3f   :  { %1220 = vmatpush3.bf16.msra.mxu1 %v1349_v59 }
  0x40   :  { %1261 = vmatprep.subr.bf16.mxu1 %v1354_v60 }
  0x41   :  { %971 = vmatpush1.bf16.msra.mxu0 %v1371_v11 }
  0x42   :  { %842 = vmatmul.mubr.bf16.vlgmr.msra.gmra.mrb[8].mxu1 %v1350_v62  ;;  %972 = vmatprep.subr.bf16.mxu0 %v1396_v45 }
  0x43   :  { %1262 = vmatpush3.bf16.msra.mxu1 %v1355_v63  ;;  %849 = vmatprep.mubr.bf16.mxu1 %v1359_v0 }
  0x44   :  { %1263 = vmatprep.subr.bf16.mxu1 %v1357_v1 }
  0x45   :  { %973 = vmatpush1.bf16.msra.mxu0 %v1374_v14 }
  0x46   :  { %974 = vmatprep.subr.bf16.mxu0 %v1396_v45 }
  0x47   :  { %1264 = vmatpush3.bf16.msra.mxu1 %v1358_v3 }
  0x48   :  { %1265 = vmatprep.subr.bf16.mxu1 %v1363_v5 }
  0x49   :  { %975 = vmatpush1.bf16.msra.mxu0 %v1377_v17 }
  0x4a   :  { %850 = vmatmul.mubr.bf16.gmra.mrb[12].mxu1 %v1362_v8  ;;  %976 = vmatprep.subr.bf16.mxu0 %v1396_v45 }
  0x4b   :  { %1266 = vmatpush3.bf16.msra.mxu1 %v1366_v9  ;;  %939 = vmatprep.mubr.bf16.mxu1 %v1385_v21 }
  0x4c   :  { %1267 = vmatprep.subr.bf16.mxu1 %v1369_v10 }
  0x4d   :  { %977 = vmatpush1.bf16.msra.mxu0 %v1380_v20 }
  0x4e   :  { %978 = vmatprep.subr.bf16.mxu0 %v1396_v45 }
  0x4f   :  { %1268 = vmatpush3.bf16.msra.mxu1 %v1370_v12 }
  0x50   :  { %1269 = vmatprep.subr.bf16.mxu1 %v1372_v13 }
  0x51   :  { %979 = vmatpush1.bf16.msra.mxu0 %v1386_v25 }
  0x53   :  { %1270 = vmatpush3.bf16.msra.mxu1 %v1373_v15 }
  0x54   :  { %1271 = vmatprep.subr.bf16.mxu1 %v1375_v16  ;;  %989 = vmatmul.mubr.bf16.vlgmr.msra.gmra.mrb[8].mxu0 %v1387_v27 }
  0x55   :  { %1156 = vmatprep.mubr.msk.bf16.mxu0 %vm753_vm0, %v1393_v28 }
  0x57   :  { %1272 = vmatpush3.bf16.msra.mxu1 %v1376_v18 }
  0x58   :  { %1273 = vmatprep.subr.bf16.mxu1 %v1378_v19 }
  0x5b   :  { %1274 = vmatpush3.bf16.msra.mxu1 %v1379_v23 }
  0x5c   :  { %1275 = vmatprep.subr.bf16.mxu1 %v1381_v24  ;;  %997 = vmatmul.mubr.bf16.gmra.mrb[12].mxu0 %v1395_v31  ;;  %v1157_v24 = vld [vmem:[%s1730_s2] ss:$0 sm:$0xff] }
  0x5f   :  { %1276 = vmatpush3.bf16.msra.mxu1 %v1382_v26 }
  0x62   :  { %940 = vmatmul.mubr.bf16.vlgmr.msra.gmra.mrb[16].mxu1 %v1383_v29 }
  0x63   :  { %947 = vmatprep.mubr.bf16.mxu1 %v1390_v30 }
  0x6a   :  { %948 = vmatmul.mubr.bf16.gmra.mrb[20].mxu1 %v1392_v32 }
  0xf5   :  { %v1193_v33 = vpop.f32.mrb[0].mxu1 }
  0xf6   :  { %v1194_v34 = vpop.f32.mrb[1].mxu1 }
  0xf7   :  { %v1195_v35 = vadd.f32 %v1194_v34, %v1193_v33  ;;  %v1196_v36 = vpop.f32.mrb[2].mxu1  ;;  %v1249_v39 = vpop.f32.mrb[0].mxu0 }
  0xf8   :  { %v1197_v37 = vpop.f32.mrb[3].mxu1  ;;  %v1250_v40 = vpop.f32.mrb[1].mxu0 }
  0xf9   :  { %v1198_v38 = vadd.f32 %v1197_v37, %v1196_v36  ;;  %v1251_v41 = vadd.f32 %v1250_v40, %v1249_v39  ;;  %v1252_v42 = vpop.f32.mrb[2].mxu0 }
  0xfa   :  { %v1253_v44 = vpop.f32.mrb[3].mxu0 }
  0xfb   :  { %v1254_v45 = vadd.f32 %v1253_v44, %v1252_v42 }
  0xfd   :  { %v1199_v43 = vpop.f32.mrb[4].mxu1 }
  0xfe   :  { %v1200_v46 = vpop.f32.mrb[5].mxu1 }
  0xff   :  { %v1201_v47 = vadd.f32 %v1200_v46, %v1199_v43  ;;  %v1202_v48 = vpop.f32.mrb[6].mxu1  ;;  %v1255_v58 = vpop.f32.mrb[4].mxu0 }
 0x100   :  { %v1203_v49 = vpop.f32.mrb[7].mxu1  ;;  %v1256_v59 = vpop.f32.mrb[5].mxu0 }
 0x101   :  { %v1204_v50 = vadd.f32 %v1203_v49, %v1202_v48  ;;  %v1257_v61 = vadd.f32 %v1256_v59, %v1255_v58  ;;  %v1258_v62 = vpop.f32.mrb[6].mxu0 }
 0x102   :  { %v1259_v0 = vpop.f32.mrb[7].mxu0 }
 0x103   :  { %v1260_v2 = vadd.f32 %v1259_v0, %v1258_v62 }
 0x115   :  { %v1221_v51 = vpop.f32.mrb[8].mxu1 }
 0x116   :  { %v1222_v52 = vpop.f32.mrb[9].mxu1 }
 0x117   :  { %v1223_v53 = vadd.f32 %v1222_v52, %v1221_v51  ;;  %v1224_v54 = vpop.f32.mrb[10].mxu1 }
 0x118   :  { %v1225_v55 = vpop.f32.mrb[11].mxu1 }
 0x119   :  { %v844_v56 = vadd.f32 %v1223_v53, %v1195_v35  ;;  %v1226_v57 = vadd.f32 %v1225_v55, %v1224_v54 }
 0x11b   :  { %v847_v60 = vadd.f32 %v1226_v57, %v1198_v38  ;;  %v893_v63 = vadd.f32 %v1251_v41, %v844_v56 }
 0x11d   :  { %v1227_v1 = vpop.f32.mrb[12].mxu1  ;;  %v896_v3 = vadd.f32 %v1254_v45, %v847_v60 }
 0x11e   :  { %v1228_v4 = vpop.f32.mrb[13].mxu1 }
 0x11f   :  { %v1229_v5 = vadd.f32 %v1228_v4, %v1227_v1  ;;  %v1230_v6 = vpop.f32.mrb[14].mxu1 }
 0x120   :  { %v1231_v7 = vpop.f32.mrb[15].mxu1 }
 0x121   :  { %v852_v8 = vadd.f32 %v1229_v5, %v1201_v47  ;;  %v1232_v9 = vadd.f32 %v1231_v7, %v1230_v6 }
 0x123   :  { %v855_v10 = vadd.f32 %v1232_v9, %v1204_v50  ;;  %v901_v11 = vadd.f32 %v1257_v61, %v852_v8 }
 0x125   :  { %v904_v12 = vadd.f32 %v1260_v2, %v855_v10 }
 0x127   :  { %v990_v13 = vpop.f32.mrb[8].mxu0 }
 0x128   :  { %v992_v14 = vpop.f32.mrb[9].mxu0 }
 0x129   :  { %v993_v15 = vpop.f32.mrb[10].mxu0 }
 0x12a   :  { %v995_v17 = vpop.f32.mrb[11].mxu0 }
 0x12f   :  { %v998_v25 = vpop.f32.mrb[12].mxu0 }
 0x130   :  { %v1000_v28 = vpop.f32.mrb[13].mxu0 }
 0x131   :  { %v1001_v29 = vpop.f32.mrb[14].mxu0 }
 0x132   :  { %v1003_v33 = vpop.f32.mrb[15].mxu0 }
 0x135   :  { %v1277_v16 = vpop.f32.mrb[16].mxu1 }
 0x136   :  { %v1278_v18 = vpop.f32.mrb[17].mxu1 }
 0x137   :  { %v1279_v19 = vadd.f32 %v1278_v18, %v1277_v16  ;;  %v1280_v20 = vpop.f32.mrb[18].mxu1 }
 0x138   :  { %v1281_v21 = vpop.f32.mrb[19].mxu1 }
 0x139   :  { %v942_v22 = vadd.f32 %v1279_v19, %v893_v63  ;;  %v1282_v23 = vadd.f32 %v1281_v21, %v1280_v20 }
 0x13b   :  { %v991_v26 = vadd.f32 %v990_v13, %v942_v22  ;;  %v945_v27 = vadd.f32 %v1282_v23, %v896_v3 }
 0x13d   :  { %v1027_v30 = vadd.f32 %v1157_v24, %v991_v26  ;;  %v994_v31 = vadd.f32 %v993_v15, %v945_v27  ;;  %v1283_v32 = vpop.f32.mrb[20].mxu1 }
 0x13e   :  { %v1284_v34 = vpop.f32.mrb[21].mxu1 }
 0x13f   :  { %v1028_v35 = vadd.f32 %v1157_v24, %v994_v31  ;;  %v1285_v36 = vadd.f32 %v1284_v34, %v1283_v32  ;;  %v1286_v37 = vpop.f32.mrb[22].mxu1  ;;  %v1031_v39 = vmax.f32 %v1027_v30, 0.0 }
 0x140   :  { %v1287_v38 = vpop.f32.mrb[23].mxu1 }
 0x141   :  { %v1032_v40 = vmax.f32 %v1028_v35, 0.0  ;;  %v950_v41 = vadd.f32 %v1285_v36, %v901_v11  ;;  %v1288_v42 = vadd.f32 %v1287_v38, %v1286_v37 }
 0x143   :  { %v1169_v43 = vpack.c.bf16 %v1032_v40, %v1031_v39  ;;  %v999_v44 = vadd.f32 %v998_v25, %v950_v41  ;;  %v953_v45 = vadd.f32 %v1288_v42, %v904_v12 }
 0x145   :  { %1170 = vst [vmem:[%s1731_s3] sm:$0xff] %v1169_v43   ;;  %v1029_v46 = vadd.f32 %v1157_v24, %v999_v44  ;;  %v1002_v47 = vadd.f32 %v1001_v29, %v953_v45 }
 0x147   :  { %v1030_v48 = vadd.f32 %v1157_v24, %v1002_v47  ;;  %v1033_v49 = vmax.f32 %v1029_v46, 0.0 }
 0x149   :  { %v1034_v50 = vmax.f32 %v1030_v48, 0.0 }
 0x14b   :  { %v1174_v51 = vpack.c.bf16 %v1034_v50, %v1033_v49 }
 0x14d   :  { %1176 = vst [vmem:[%s1731_s3 + $0x8] sm:$0xff] %v1174_v51  }

// kernel: _lambda_.16
= control target key start
LH: loop header
LB: loop body
LE: loop exit
PB: predicated region body
PF: predicated region fallthrough
CT: control target
= control target key end

     0   :  { %s2305_s12 = smov 0   ;;  %s2307_s13 = smov 0   ;;  %s2779_s0 = inlined_call_operand.vmem [shape: bf16[16,1152], index: 0, kind: input, shape index: {}]   ;;  %s2780_s1 = inlined_call_operand.vmem [shape: bf16[1152,256], index: 1, kind: input, shape index: {}]   ;;  %s2781_s2 = inlined_call_operand.vmem [shape: f32[1,256], index: 2, kind: input, shape index: {}]   ;;  %s2782_s3 = inlined_call_operand.vmem [shape: bf16[16,256], index: 3, kind: output, shape index: {}]  }
   0x1   :  { %s2309_s14 = smov 0   ;;  %s2311_s15 = smov 0  }
   0x2   :  { %s2313_s16 = smov 0  }
   0x3 LB: > { %s28_s17 = sadd.s32 1, %s2277_s15  ;;  %s1894_s18 = sadd.s32 4294967295, %s2281_s16   ;;  %s2281_s16 = sphi %s2313_s16, %s13_s16   ;;  %s2277_s15 = sphi %s2311_s15, %s2787_s15   ;;  %s2273_s14 = sphi %s2309_s14, %s2786_s14   ;;  %s2269_s13 = sphi %s2307_s13, %s2785_s13   ;;  %s2265_s12 = sphi %s2305_s12, %s2784_s12  }
   0x4   : > { %p30_p0 = scmp.ge.s32.totalorder %s28_s17, 2  ;;  %p76_p1 = scmp.ne.s32.totalorder %s2269_s13, %s2265_s12 }
   0x5   : > { %p77_p2 = scmp.eq.s32.totalorder %s2281_s16, 0  ;;  %p134_p4 = scmp.eq.s32.totalorder %s1894_s18, 1 }
   0x6   : > { %s2789_s17 = smov (%p30_p0, %s28_s17), 0  ;;  %s69_s20 = sadd.s32 1, %s2269_s13 }
   0x7   : > { %p78_p3 = por %p77_p2, %p76_p1  ;;  %s65_s19 = ssub.s32 %s2277_s15, %s2789_s17 }
   0x8   : > { %p67_p5 = scmp.eq.s32.totalorder %s65_s19, 0  ;;  %p2340_p6 = por %p134_p4, %p76_p1 }
   0x9   : > { %p1898_p7 = scmp.ge.s32.totalorder %s2281_s16, 2 }
   0xa   : > { %s2345_s22 = scalar_select %p67_p5, %s2269_s13, %s69_s20  }
   0xb   : > { %171 = sbr.rel (%p1898_p7) target bundleno = 118 (0x76), region = 20 }
  0x12   : > { %174 = sbr.rel (!%p78_p3) target bundleno = 118 (0x76), region = 24  ;;  %s176_s23 = sand.u32 (%p78_p3), 1, %s2269_s13  }
  0x13   : > { %s1899_s24 = sshll.u32 (%p78_p3), %s2277_s15, 2  ;;  %s2114_s25 = smul.u32 (%p78_p3), 576, %s176_s23 }
  0x14   : > { %s2353_s28 = scalar_lea.vmem (%p78_p3), %s2780_s1, %s1899_s24 }
  0x15   : > { %v199_v0 = vld [vmem:[%s2353_s28] sm:$0xf] (%p78_p3)  ;;  %v201_v1 = vld [vmem:[%s2353_s28 + $0x8] sm:$0xf] (%p78_p3)  ;;  %v203_v2 = vld [vmem:[%s2353_s28 + $0x10] sm:$0xf] (%p78_p3) }
  0x16   : > { %v205_v3 = vld [vmem:[%s2353_s28 + $0x18] sm:$0xf] (%p78_p3)  ;;  %v207_v4 = vld [vmem:[%s2353_s28 + $0x20] sm:$0xf] (%p78_p3)  ;;  %s2360_s29 = scalar_lea.vmem (%p78_p3), [#allocation3], %s2114_s25 }
  0x17   : > { %200 = vst [vmem:[%s2360_s29] sm:$0xf] (%p78_p3), %v199_v0  ;;  %202 = vst [vmem:[%s2360_s29 + $0x4] sm:$0xf] (%p78_p3), %v201_v1  ;;  %v209_v5 = vld [vmem:[%s2353_s28 + $0x28] sm:$0xf] (%p78_p3) }
  0x18   : > { %204 = vst [vmem:[%s2360_s29 + $0x8] sm:$0xf] (%p78_p3), %v203_v2  ;;  %206 = vst [vmem:[%s2360_s29 + $0xc] sm:$0xf] (%p78_p3), %v205_v3  ;;  %v211_v6 = vld [vmem:[%s2353_s28 + $0x30] sm:$0xf] (%p78_p3) }
  0x19   : > { %208 = vst [vmem:[%s2360_s29 + $0x10] sm:$0xf] %v207_v4  ;;  %v213_v7 = vld [vmem:[%s2353_s28 + $0x38] sm:$0xf]  ;;  %210 = vst [vmem:[%s2360_s29 + $0x14] sm:$0xf] %v209_v5 }
  0x1a   : > { %212 = vst [vmem:[%s2360_s29 + $0x18] sm:$0xf] %v211_v6  ;;  %214 = vst [vmem:[%s2360_s29 + $0x1c] sm:$0xf] %v213_v7  ;;  %v215_v8 = vld [vmem:[%s2353_s28 + $0x40] sm:$0xf] }
  0x1b   : > { %v217_v9 = vld [vmem:[%s2353_s28 + $0x48] sm:$0xf]  ;;  %v219_v10 = vld [vmem:[%s2353_s28 + $0x50] sm:$0xf]  ;;  %216 = vst [vmem:[%s2360_s29 + $0x20] sm:$0xf] %v215_v8 }
  0x1c   : > { %218 = vst [vmem:[%s2360_s29 + $0x24] sm:$0xf] %v217_v9  ;;  %220 = vst [vmem:[%s2360_s29 + $0x28] sm:$0xf] %v219_v10  ;;  %v221_v11 = vld [vmem:[%s2353_s28 + $0x58] sm:$0xf] }
  0x1d   : > { %v223_v12 = vld [vmem:[%s2353_s28 + $0x60] sm:$0xf]  ;;  %v225_v13 = vld [vmem:[%s2353_s28 + $0x68] sm:$0xf]  ;;  %222 = vst [vmem:[%s2360_s29 + $0x2c] sm:$0xf] %v221_v11 }
  0x1e   : > { %224 = vst [vmem:[%s2360_s29 + $0x30] sm:$0xf] %v223_v12  ;;  %226 = vst [vmem:[%s2360_s29 + $0x34] sm:$0xf] %v225_v13  ;;  %v227_v14 = vld [vmem:[%s2353_s28 + $0x70] sm:$0xf] }
  0x1f   : > { %v229_v15 = vld [vmem:[%s2353_s28 + $0x78] sm:$0xf]  ;;  %v231_v16 = vld [vmem:[%s2353_s28 + $0x80] sm:$0xf]  ;;  %228 = vst [vmem:[%s2360_s29 + $0x38] sm:$0xf] %v227_v14 }
  0x20   : > { %230 = vst [vmem:[%s2360_s29 + $0x3c] sm:$0xf] %v229_v15  ;;  %232 = vst [vmem:[%s2360_s29 + $0x40] sm:$0xf] %v231_v16  ;;  %v233_v17 = vld [vmem:[%s2353_s28 + $0x88] sm:$0xf] }
  0x21   : > { %v235_v18 = vld [vmem:[%s2353_s28 + $0x90] sm:$0xf]  ;;  %v237_v19 = vld [vmem:[%s2353_s28 + $0x98] sm:$0xf]  ;;  %234 = vst [vmem:[%s2360_s29 + $0x44] sm:$0xf] %v233_v17 }
  0x22   : > { %236 = vst [vmem:[%s2360_s29 + $0x48] sm:$0xf] %v235_v18  ;;  %238 = vst [vmem:[%s2360_s29 + $0x4c] sm:$0xf] %v237_v19  ;;  %v239_v20 = vld [vmem:[%s2353_s28 + $0xa0] sm:$0xf] }
  0x23   : > { %v241_v21 = vld [vmem:[%s2353_s28 + $0xa8] sm:$0xf]  ;;  %v243_v22 = vld [vmem:[%s2353_s28 + $0xb0] sm:$0xf]  ;;  %240 = vst [vmem:[%s2360_s29 + $0x50] sm:$0xf] %v239_v20 }
  0x24   : > { %242 = vst [vmem:[%s2360_s29 + $0x54] sm:$0xf] %v241_v21  ;;  %244 = vst [vmem:[%s2360_s29 + $0x58] sm:$0xf] %v243_v22  ;;  %v245_v23 = vld [vmem:[%s2353_s28 + $0xb8] sm:$0xf] }
  0x25   : > { %v247_v24 = vld [vmem:[%s2353_s28 + $0xc0] sm:$0xf]  ;;  %v249_v25 = vld [vmem:[%s2353_s28 + $0xc8] sm:$0xf]  ;;  %246 = vst [vmem:[%s2360_s29 + $0x5c] sm:$0xf] %v245_v23 }
  0x26   : > { %248 = vst [vmem:[%s2360_s29 + $0x60] sm:$0xf] %v247_v24  ;;  %250 = vst [vmem:[%s2360_s29 + $0x64] sm:$0xf] %v249_v25  ;;  %v251_v26 = vld [vmem:[%s2353_s28 + $0xd0] sm:$0xf] }
  0x27   : > { %v253_v27 = vld [vmem:[%s2353_s28 + $0xd8] sm:$0xf]  ;;  %v255_v28 = vld [vmem:[%s2353_s28 + $0xe0] sm:$0xf]  ;;  %252 = vst [vmem:[%s2360_s29 + $0x68] sm:$0xf] %v251_v26 }
  0x28   : > { %254 = vst [vmem:[%s2360_s29 + $0x6c] sm:$0xf] %v253_v27  ;;  %256 = vst [vmem:[%s2360_s29 + $0x70] sm:$0xf] %v255_v28  ;;  %v257_v29 = vld [vmem:[%s2353_s28 + $0xe8] sm:$0xf] }
  0x29   : > { %v259_v30 = vld [vmem:[%s2353_s28 + $0xf0] sm:$0xf]  ;;  %v261_v31 = vld [vmem:[%s2353_s28 + $0xf8] sm:$0xf]  ;;  %258 = vst [vmem:[%s2360_s29 + $0x74] sm:$0xf] %v257_v29 }
  0x2a   : > { %260 = vst [vmem:[%s2360_s29 + $0x78] sm:$0xf] %v259_v30  ;;  %262 = vst [vmem:[%s2360_s29 + $0x7c] sm:$0xf] %v261_v31  ;;  %v263_v32 = vld [vmem:[%s2353_s28 + $0x100] sm:$0xf] }
  0x2b   : > { %v265_v33 = vld [vmem:[%s2353_s28 + $0x108] sm:$0xf]  ;;  %v267_v34 = vld [vmem:[%s2353_s28 + $0x110] sm:$0xf]  ;;  %264 = vst [vmem:[%s2360_s29 + $0x80] sm:$0xf] %v263_v32 }
  0x2c   : > { %266 = vst [vmem:[%s2360_s29 + $0x84] sm:$0xf] %v265_v33  ;;  %268 = vst [vmem:[%s2360_s29 + $0x88] sm:$0xf] %v267_v34  ;;  %v269_v35 = vld [vmem:[%s2353_s28 + $0x118] sm:$0xf] }
  0x2d   : > { %v271_v36 = vld [vmem:[%s2353_s28 + $0x120] sm:$0xf]  ;;  %v273_v37 = vld [vmem:[%s2353_s28 + $0x128] sm:$0xf]  ;;  %270 = vst [vmem:[%s2360_s29 + $0x8c] sm:$0xf] %v269_v35 }
  0x2e   : > { %272 = vst [vmem:[%s2360_s29 + $0x90] sm:$0xf] %v271_v36  ;;  %274 = vst [vmem:[%s2360_s29 + $0x94] sm:$0xf] %v273_v37  ;;  %v275_v38 = vld [vmem:[%s2353_s28 + $0x130] sm:$0xf] }
  0x2f   : > { %v277_v39 = vld [vmem:[%s2353_s28 + $0x138] sm:$0xf]  ;;  %v279_v40 = vld [vmem:[%s2353_s28 + $0x140] sm:$0xf]  ;;  %276 = vst [vmem:[%s2360_s29 + $0x98] sm:$0xf] %v275_v38 }
  0x30   : > { %278 = vst [vmem:[%s2360_s29 + $0x9c] sm:$0xf] %v277_v39  ;;  %280 = vst [vmem:[%s2360_s29 + $0xa0] sm:$0xf] %v279_v40  ;;  %v281_v41 = vld [vmem:[%s2353_s28 + $0x148] sm:$0xf] }
  0x31   : > { %v283_v42 = vld [vmem:[%s2353_s28 + $0x150] sm:$0xf]  ;;  %v285_v43 = vld [vmem:[%s2353_s28 + $0x158] sm:$0xf]  ;;  %282 = vst [vmem:[%s2360_s29 + $0xa4] sm:$0xf] %v281_v41 }
  0x32   : > { %284 = vst [vmem:[%s2360_s29 + $0xa8] sm:$0xf] %v283_v42  ;;  %286 = vst [vmem:[%s2360_s29 + $0xac] sm:$0xf] %v285_v43  ;;  %v287_v44 = vld [vmem:[%s2353_s28 + $0x160] sm:$0xf] }
  0x33   : > { %v289_v45 = vld [vmem:[%s2353_s28 + $0x168] sm:$0xf]  ;;  %v291_v46 = vld [vmem:[%s2353_s28 + $0x170] sm:$0xf]  ;;  %288 = vst [vmem:[%s2360_s29 + $0xb0] sm:$0xf] %v287_v44 }
  0x34   : > { %290 = vst [vmem:[%s2360_s29 + $0xb4] sm:$0xf] %v289_v45  ;;  %292 = vst [vmem:[%s2360_s29 + $0xb8] sm:$0xf] %v291_v46  ;;  %v293_v47 = vld [vmem:[%s2353_s28 + $0x178] sm:$0xf] }
  0x35   : > { %v295_v48 = vld [vmem:[%s2353_s28 + $0x180] sm:$0xf]  ;;  %v297_v49 = vld [vmem:[%s2353_s28 + $0x188] sm:$0xf]  ;;  %294 = vst [vmem:[%s2360_s29 + $0xbc] sm:$0xf] %v293_v47 }
  0x36   : > { %296 = vst [vmem:[%s2360_s29 + $0xc0] sm:$0xf] %v295_v48  ;;  %298 = vst [vmem:[%s2360_s29 + $0xc4] sm:$0xf] %v297_v49  ;;  %v299_v50 = vld [vmem:[%s2353_s28 + $0x190] sm:$0xf] }
  0x37   : > { %v301_v51 = vld [vmem:[%s2353_s28 + $0x198] sm:$0xf]  ;;  %v303_v52 = vld [vmem:[%s2353_s28 + $0x1a0] sm:$0xf]  ;;  %300 = vst [vmem:[%s2360_s29 + $0xc8] sm:$0xf] %v299_v50 }
  0x38   : > { %302 = vst [vmem:[%s2360_s29 + $0xcc] sm:$0xf] %v301_v51  ;;  %304 = vst [vmem:[%s2360_s29 + $0xd0] sm:$0xf] %v303_v52  ;;  %v305_v53 = vld [vmem:[%s2353_s28 + $0x1a8] sm:$0xf] }
  0x39   : > { %v307_v54 = vld [vmem:[%s2353_s28 + $0x1b0] sm:$0xf]  ;;  %v309_v55 = vld [vmem:[%s2353_s28 + $0x1b8] sm:$0xf]  ;;  %306 = vst [vmem:[%s2360_s29 + $0xd4] sm:$0xf] %v305_v53 }
  0x3a   : > { %308 = vst [vmem:[%s2360_s29 + $0xd8] sm:$0xf] %v307_v54  ;;  %310 = vst [vmem:[%s2360_s29 + $0xdc] sm:$0xf] %v309_v55  ;;  %v311_v56 = vld [vmem:[%s2353_s28 + $0x1c0] sm:$0xf] }
  0x3b   : > { %v313_v57 = vld [vmem:[%s2353_s28 + $0x1c8] sm:$0xf]  ;;  %v315_v58 = vld [vmem:[%s2353_s28 + $0x1d0] sm:$0xf]  ;;  %312 = vst [vmem:[%s2360_s29 + $0xe0] sm:$0xf] %v311_v56 }
  0x3c   : > { %314 = vst [vmem:[%s2360_s29 + $0xe4] sm:$0xf] %v313_v57  ;;  %316 = vst [vmem:[%s2360_s29 + $0xe8] sm:$0xf] %v315_v58  ;;  %v317_v59 = vld [vmem:[%s2353_s28 + $0x1d8] sm:$0xf] }
  0x3d   : > { %v319_v60 = vld [vmem:[%s2353_s28 + $0x1e0] sm:$0xf]  ;;  %v321_v61 = vld [vmem:[%s2353_s28 + $0x1e8] sm:$0xf]  ;;  %318 = vst [vmem:[%s2360_s29 + $0xec] sm:$0xf] %v317_v59 }
  0x3e   : > { %320 = vst [vmem:[%s2360_s29 + $0xf0] sm:$0xf] %v319_v60  ;;  %322 = vst [vmem:[%s2360_s29 + $0xf4] sm:$0xf] %v321_v61  ;;  %v323_v62 = vld [vmem:[%s2353_s28 + $0x1f0] sm:$0xf] }
  0x3f   : > { %v325_v63 = vld [vmem:[%s2353_s28 + $0x1f8] sm:$0xf]  ;;  %v327_v0 = vld [vmem:[%s2353_s28 + $0x200] sm:$0xf]  ;;  %324 = vst [vmem:[%s2360_s29 + $0xf8] sm:$0xf] %v323_v62 }
  0x40   : > { %326 = vst [vmem:[%s2360_s29 + $0xfc] sm:$0xf] %v325_v63  ;;  %328 = vst [vmem:[%s2360_s29 + $0x100] sm:$0xf] %v327_v0  ;;  %v329_v1 = vld [vmem:[%s2353_s28 + $0x208] sm:$0xf] }
  0x41   : > { %v331_v2 = vld [vmem:[%s2353_s28 + $0x210] sm:$0xf]  ;;  %v333_v3 = vld [vmem:[%s2353_s28 + $0x218] sm:$0xf]  ;;  %330 = vst [vmem:[%s2360_s29 + $0x104] sm:$0xf] %v329_v1 }
  0x42   : > { %332 = vst [vmem:[%s2360_s29 + $0x108] sm:$0xf] %v331_v2  ;;  %334 = vst [vmem:[%s2360_s29 + $0x10c] sm:$0xf] %v333_v3  ;;  %v335_v4 = vld [vmem:[%s2353_s28 + $0x220] sm:$0xf] }
  0x43   : > { %v337_v5 = vld [vmem:[%s2353_s28 + $0x228] sm:$0xf]  ;;  %v339_v6 = vld [vmem:[%s2353_s28 + $0x230] sm:$0xf]  ;;  %336 = vst [vmem:[%s2360_s29 + $0x110] sm:$0xf] %v335_v4 }
  0x44   : > { %338 = vst [vmem:[%s2360_s29 + $0x114] sm:$0xf] %v337_v5  ;;  %340 = vst [vmem:[%s2360_s29 + $0x118] sm:$0xf] %v339_v6  ;;  %v341_v7 = vld [vmem:[%s2353_s28 + $0x238] sm:$0xf] }
  0x45   : > { %v343_v8 = vld [vmem:[%s2353_s28 + $0x240] sm:$0xf]  ;;  %v345_v9 = vld [vmem:[%s2353_s28 + $0x248] sm:$0xf]  ;;  %342 = vst [vmem:[%s2360_s29 + $0x11c] sm:$0xf] %v341_v7 }
  0x46   : > { %344 = vst [vmem:[%s2360_s29 + $0x120] sm:$0xf] %v343_v8  ;;  %346 = vst [vmem:[%s2360_s29 + $0x124] sm:$0xf] %v345_v9  ;;  %v347_v10 = vld [vmem:[%s2353_s28 + $0x250] sm:$0xf] }
  0x47   : > { %v349_v11 = vld [vmem:[%s2353_s28 + $0x258] sm:$0xf]  ;;  %v351_v12 = vld [vmem:[%s2353_s28 + $0x260] sm:$0xf]  ;;  %348 = vst [vmem:[%s2360_s29 + $0x128] sm:$0xf] %v347_v10 }
  0x48   : > { %350 = vst [vmem:[%s2360_s29 + $0x12c] sm:$0xf] %v349_v11  ;;  %352 = vst [vmem:[%s2360_s29 + $0x130] sm:$0xf] %v351_v12  ;;  %v353_v13 = vld [vmem:[%s2353_s28 + $0x268] sm:$0xf] }
  0x49   : > { %v355_v14 = vld [vmem:[%s2353_s28 + $0x270] sm:$0xf]  ;;  %v357_v15 = vld [vmem:[%s2353_s28 + $0x278] sm:$0xf]  ;;  %354 = vst [vmem:[%s2360_s29 + $0x134] sm:$0xf] %v353_v13 }
  0x4a   : > { %356 = vst [vmem:[%s2360_s29 + $0x138] sm:$0xf] %v355_v14  ;;  %358 = vst [vmem:[%s2360_s29 + $0x13c] sm:$0xf] %v357_v15  ;;  %v359_v16 = vld [vmem:[%s2353_s28 + $0x280] sm:$0xf] }
  0x4b   : > { %v361_v17 = vld [vmem:[%s2353_s28 + $0x288] sm:$0xf]  ;;  %v363_v18 = vld [vmem:[%s2353_s28 + $0x290] sm:$0xf]  ;;  %360 = vst [vmem:[%s2360_s29 + $0x140] sm:$0xf] %v359_v16 }
  0x4c   : > { %362 = vst [vmem:[%s2360_s29 + $0x144] sm:$0xf] %v361_v17  ;;  %364 = vst [vmem:[%s2360_s29 + $0x148] sm:$0xf] %v363_v18  ;;  %v365_v19 = vld [vmem:[%s2353_s28 + $0x298] sm:$0xf] }
  0x4d   : > { %v367_v20 = vld [vmem:[%s2353_s28 + $0x2a0] sm:$0xf]  ;;  %v369_v21 = vld [vmem:[%s2353_s28 + $0x2a8] sm:$0xf]  ;;  %366 = vst [vmem:[%s2360_s29 + $0x14c] sm:$0xf] %v365_v19 }
  0x4e   : > { %368 = vst [vmem:[%s2360_s29 + $0x150] sm:$0xf] %v367_v20  ;;  %370 = vst [vmem:[%s2360_s29 + $0x154] sm:$0xf] %v369_v21  ;;  %v371_v22 = vld [vmem:[%s2353_s28 + $0x2b0] sm:$0xf] }
  0x4f   : > { %v373_v23 = vld [vmem:[%s2353_s28 + $0x2b8] sm:$0xf]  ;;  %v375_v24 = vld [vmem:[%s2353_s28 + $0x2c0] sm:$0xf]  ;;  %372 = vst [vmem:[%s2360_s29 + $0x158] sm:$0xf] %v371_v22 }
  0x50   : > { %374 = vst [vmem:[%s2360_s29 + $0x15c] sm:$0xf] %v373_v23  ;;  %376 = vst [vmem:[%s2360_s29 + $0x160] sm:$0xf] %v375_v24  ;;  %v377_v25 = vld [vmem:[%s2353_s28 + $0x2c8] sm:$0xf] }
  0x51   : > { %v379_v26 = vld [vmem:[%s2353_s28 + $0x2d0] sm:$0xf]  ;;  %v381_v27 = vld [vmem:[%s2353_s28 + $0x2d8] sm:$0xf]  ;;  %378 = vst [vmem:[%s2360_s29 + $0x164] sm:$0xf] %v377_v25 }
  0x52   : > { %380 = vst [vmem:[%s2360_s29 + $0x168] sm:$0xf] %v379_v26  ;;  %382 = vst [vmem:[%s2360_s29 + $0x16c] sm:$0xf] %v381_v27  ;;  %v383_v28 = vld [vmem:[%s2353_s28 + $0x2e0] sm:$0xf] }
  0x53   : > { %v385_v29 = vld [vmem:[%s2353_s28 + $0x2e8] sm:$0xf]  ;;  %v387_v30 = vld [vmem:[%s2353_s28 + $0x2f0] sm:$0xf]  ;;  %384 = vst [vmem:[%s2360_s29 + $0x170] sm:$0xf] %v383_v28 }
  0x54   : > { %386 = vst [vmem:[%s2360_s29 + $0x174] sm:$0xf] %v385_v29  ;;  %388 = vst [vmem:[%s2360_s29 + $0x178] sm:$0xf] %v387_v30  ;;  %v389_v31 = vld [vmem:[%s2353_s28 + $0x2f8] sm:$0xf] }
  0x55   : > { %v391_v32 = vld [vmem:[%s2353_s28 + $0x300] sm:$0xf]  ;;  %v393_v33 = vld [vmem:[%s2353_s28 + $0x308] sm:$0xf]  ;;  %390 = vst [vmem:[%s2360_s29 + $0x17c] sm:$0xf] %v389_v31 }
  0x56   : > { %392 = vst [vmem:[%s2360_s29 + $0x180] sm:$0xf] %v391_v32  ;;  %394 = vst [vmem:[%s2360_s29 + $0x184] sm:$0xf] %v393_v33  ;;  %v395_v34 = vld [vmem:[%s2353_s28 + $0x310] sm:$0xf] }
  0x57   : > { %v397_v35 = vld [vmem:[%s2353_s28 + $0x318] sm:$0xf]  ;;  %v399_v36 = vld [vmem:[%s2353_s28 + $0x320] sm:$0xf]  ;;  %396 = vst [vmem:[%s2360_s29 + $0x188] sm:$0xf] %v395_v34 }
  0x58   : > { %398 = vst [vmem:[%s2360_s29 + $0x18c] sm:$0xf] %v397_v35  ;;  %400 = vst [vmem:[%s2360_s29 + $0x190] sm:$0xf] %v399_v36  ;;  %v401_v37 = vld [vmem:[%s2353_s28 + $0x328] sm:$0xf] }
  0x59   : > { %v403_v38 = vld [vmem:[%s2353_s28 + $0x330] sm:$0xf]  ;;  %v405_v39 = vld [vmem:[%s2353_s28 + $0x338] sm:$0xf]  ;;  %402 = vst [vmem:[%s2360_s29 + $0x194] sm:$0xf] %v401_v37 }
  0x5a   : > { %404 = vst [vmem:[%s2360_s29 + $0x198] sm:$0xf] %v403_v38  ;;  %406 = vst [vmem:[%s2360_s29 + $0x19c] sm:$0xf] %v405_v39  ;;  %v407_v40 = vld [vmem:[%s2353_s28 + $0x340] sm:$0xf] }
  0x5b   : > { %v409_v41 = vld [vmem:[%s2353_s28 + $0x348] sm:$0xf]  ;;  %v411_v42 = vld [vmem:[%s2353_s28 + $0x350] sm:$0xf]  ;;  %408 = vst [vmem:[%s2360_s29 + $0x1a0] sm:$0xf] %v407_v40 }
  0x5c   : > { %410 = vst [vmem:[%s2360_s29 + $0x1a4] sm:$0xf] %v409_v41  ;;  %412 = vst [vmem:[%s2360_s29 + $0x1a8] sm:$0xf] %v411_v42  ;;  %v413_v43 = vld [vmem:[%s2353_s28 + $0x358] sm:$0xf] }
  0x5d   : > { %v415_v44 = vld [vmem:[%s2353_s28 + $0x360] sm:$0xf]  ;;  %v417_v45 = vld [vmem:[%s2353_s28 + $0x368] sm:$0xf]  ;;  %414 = vst [vmem:[%s2360_s29 + $0x1ac] sm:$0xf] %v413_v43 }
  0x5e   : > { %416 = vst [vmem:[%s2360_s29 + $0x1b0] sm:$0xf] %v415_v44  ;;  %418 = vst [vmem:[%s2360_s29 + $0x1b4] sm:$0xf] %v417_v45  ;;  %v419_v46 = vld [vmem:[%s2353_s28 + $0x370] sm:$0xf] }
  0x5f   : > { %v421_v47 = vld [vmem:[%s2353_s28 + $0x378] sm:$0xf]  ;;  %v423_v48 = vld [vmem:[%s2353_s28 + $0x380] sm:$0xf]  ;;  %420 = vst [vmem:[%s2360_s29 + $0x1b8] sm:$0xf] %v419_v46 }
  0x60   : > { %422 = vst [vmem:[%s2360_s29 + $0x1bc] sm:$0xf] %v421_v47  ;;  %424 = vst [vmem:[%s2360_s29 + $0x1c0] sm:$0xf] %v423_v48  ;;  %v425_v49 = vld [vmem:[%s2353_s28 + $0x388] sm:$0xf] }
  0x61   : > { %v427_v50 = vld [vmem:[%s2353_s28 + $0x390] sm:$0xf]  ;;  %v429_v51 = vld [vmem:[%s2353_s28 + $0x398] sm:$0xf]  ;;  %426 = vst [vmem:[%s2360_s29 + $0x1c4] sm:$0xf] %v425_v49 }
  0x62   : > { %428 = vst [vmem:[%s2360_s29 + $0x1c8] sm:$0xf] %v427_v50  ;;  %430 = vst [vmem:[%s2360_s29 + $0x1cc] sm:$0xf] %v429_v51  ;;  %v431_v52 = vld [vmem:[%s2353_s28 + $0x3a0] sm:$0xf] }
  0x63   : > { %v433_v53 = vld [vmem:[%s2353_s28 + $0x3a8] sm:$0xf]  ;;  %v435_v54 = vld [vmem:[%s2353_s28 + $0x3b0] sm:$0xf]  ;;  %432 = vst [vmem:[%s2360_s29 + $0x1d0] sm:$0xf] %v431_v52 }
  0x64   : > { %434 = vst [vmem:[%s2360_s29 + $0x1d4] sm:$0xf] %v433_v53  ;;  %436 = vst [vmem:[%s2360_s29 + $0x1d8] sm:$0xf] %v435_v54  ;;  %v437_v55 = vld [vmem:[%s2353_s28 + $0x3b8] sm:$0xf] }
  0x65   : > { %v439_v56 = vld [vmem:[%s2353_s28 + $0x3c0] sm:$0xf]  ;;  %v441_v57 = vld [vmem:[%s2353_s28 + $0x3c8] sm:$0xf]  ;;  %438 = vst [vmem:[%s2360_s29 + $0x1dc] sm:$0xf] %v437_v55 }
  0x66   : > { %440 = vst [vmem:[%s2360_s29 + $0x1e0] sm:$0xf] %v439_v56  ;;  %442 = vst [vmem:[%s2360_s29 + $0x1e4] sm:$0xf] %v441_v57  ;;  %v443_v58 = vld [vmem:[%s2353_s28 + $0x3d0] sm:$0xf] }
  0x67   : > { %v445_v59 = vld [vmem:[%s2353_s28 + $0x3d8] sm:$0xf]  ;;  %v447_v60 = vld [vmem:[%s2353_s28 + $0x3e0] sm:$0xf]  ;;  %444 = vst [vmem:[%s2360_s29 + $0x1e8] sm:$0xf] %v443_v58 }
  0x68   : > { %446 = vst [vmem:[%s2360_s29 + $0x1ec] sm:$0xf] %v445_v59  ;;  %448 = vst [vmem:[%s2360_s29 + $0x1f0] sm:$0xf] %v447_v60  ;;  %v449_v61 = vld [vmem:[%s2353_s28 + $0x3e8] sm:$0xf] }
  0x69   : > { %v451_v62 = vld [vmem:[%s2353_s28 + $0x3f0] sm:$0xf]  ;;  %v453_v63 = vld [vmem:[%s2353_s28 + $0x3f8] sm:$0xf]  ;;  %450 = vst [vmem:[%s2360_s29 + $0x1f4] sm:$0xf] %v449_v61 }
  0x6a   : > { %452 = vst [vmem:[%s2360_s29 + $0x1f8] sm:$0xf] %v451_v62  ;;  %454 = vst [vmem:[%s2360_s29 + $0x1fc] sm:$0xf] %v453_v63  ;;  %v455_v0 = vld [vmem:[%s2353_s28 + $0x400] sm:$0xf] }
  0x6b   : > { %v457_v1 = vld [vmem:[%s2353_s28 + $0x408] sm:$0xf]  ;;  %v459_v2 = vld [vmem:[%s2353_s28 + $0x410] sm:$0xf]  ;;  %456 = vst [vmem:[%s2360_s29 + $0x200] sm:$0xf] %v455_v0 }
  0x6c   : > { %458 = vst [vmem:[%s2360_s29 + $0x204] sm:$0xf] %v457_v1  ;;  %460 = vst [vmem:[%s2360_s29 + $0x208] sm:$0xf] %v459_v2  ;;  %v461_v3 = vld [vmem:[%s2353_s28 + $0x418] sm:$0xf] }
  0x6d   : > { %v463_v4 = vld [vmem:[%s2353_s28 + $0x420] sm:$0xf]  ;;  %v465_v5 = vld [vmem:[%s2353_s28 + $0x428] sm:$0xf]  ;;  %462 = vst [vmem:[%s2360_s29 + $0x20c] sm:$0xf] %v461_v3 }
  0x6e   : > { %464 = vst [vmem:[%s2360_s29 + $0x210] sm:$0xf] %v463_v4  ;;  %466 = vst [vmem:[%s2360_s29 + $0x214] sm:$0xf] %v465_v5  ;;  %v467_v6 = vld [vmem:[%s2353_s28 + $0x430] sm:$0xf] }
  0x6f   : > { %v469_v7 = vld [vmem:[%s2353_s28 + $0x438] sm:$0xf]  ;;  %v471_v8 = vld [vmem:[%s2353_s28 + $0x440] sm:$0xf]  ;;  %468 = vst [vmem:[%s2360_s29 + $0x218] sm:$0xf] %v467_v6 }
  0x70   : > { %470 = vst [vmem:[%s2360_s29 + $0x21c] sm:$0xf] %v469_v7  ;;  %472 = vst [vmem:[%s2360_s29 + $0x220] sm:$0xf] %v471_v8  ;;  %v473_v9 = vld [vmem:[%s2353_s28 + $0x448] sm:$0xf] }
  0x71   : > { %v475_v10 = vld [vmem:[%s2353_s28 + $0x450] sm:$0xf]  ;;  %v477_v11 = vld [vmem:[%s2353_s28 + $0x458] sm:$0xf]  ;;  %474 = vst [vmem:[%s2360_s29 + $0x224] sm:$0xf] %v473_v9 }
  0x72   : > { %476 = vst [vmem:[%s2360_s29 + $0x228] sm:$0xf] %v475_v10  ;;  %478 = vst [vmem:[%s2360_s29 + $0x22c] sm:$0xf] %v477_v11  ;;  %v479_v12 = vld [vmem:[%s2353_s28 + $0x460] sm:$0xf] }
  0x73   : > { %v481_v13 = vld [vmem:[%s2353_s28 + $0x468] sm:$0xf]  ;;  %v483_v14 = vld [vmem:[%s2353_s28 + $0x470] sm:$0xf]  ;;  %480 = vst [vmem:[%s2360_s29 + $0x230] sm:$0xf] %v479_v12 }
  0x74   : > { %482 = vst [vmem:[%s2360_s29 + $0x234] sm:$0xf] %v481_v13  ;;  %484 = vst [vmem:[%s2360_s29 + $0x238] sm:$0xf] %v483_v14  ;;  %v485_v15 = vld [vmem:[%s2353_s28 + $0x478] sm:$0xf] }
  0x75   : > { %486 = vst [vmem:[%s2360_s29 + $0x23c] sm:$0xf] %v485_v15 }
  0x76 PF: > { %p1900_p8 = scmp.ge.s32.totalorder %s2281_s16, 1  ;;  %p802_p9 = scmp.lt.s32.totalorder %s2281_s16, 3 }
  0x78   : > { %p803_p10 = pnand %p1900_p8, %p802_p9 }
  0x79   : > { %s809_s30 = sand.u32 (!%p803_p10), 1, %s2265_s12   ;;  %v2192_v16 = vld [vmem:[%s2779_s0 + $0x4] ss:$36 sps:$4 sm:$0xff] (!%p803_p10)   ;;  %v2195_v17 = vld [vmem:[%s2779_s0 + $0xc] ss:$36 sps:$4 sm:$0xff] (!%p803_p10)   ;;  %vm2284_vm0 = vmmov (!%p803_p10), 0  }
  0x7a   : > { %806 = sbr.rel (%p803_p10) target bundleno = 455 (0x1c7), region = 69  ;;  %1534 = vmatprep.mubr.bf16.mxu0 (!%p803_p10), %v2192_v16  ;;  %1575 = vmatprep.mubr.bf16.mxu1 (!%p803_p10), %v2195_v17  ;;  %v2190_v48 = vld [vmem:[%s2779_s0] ss:$36 sps:$4 sm:$0xff] (!%p803_p10)   ;;  %v2193_v50 = vld [vmem:[%s2779_s0 + $0x8] ss:$36 sps:$4 sm:$0xff] (!%p803_p10)   ;;  %p857_p11 = scmp.lt.s32.totalorder (!%p803_p10), %s2273_s14, 1 }
  0x7b   : > { %s2115_s4 = smul.u32 (!%p803_p10), 576, %s809_s30  ;;  %v2229_v52 = vld [vmem:[%s2779_s0 + $0x14] ss:$36 sps:$4 sm:$0xff] (!%p803_p10)   ;;  %s1901_s10 = sshll.u32 (!%p803_p10), %s809_s30, 3 }
  0x7c   : > { %s843_s11 = scalar_lea.vmem (!%p803_p10), [#allocation4], %s1901_s10 }
  0x7d   : > { %s2656_s9 = scalar_lea.vmem (!%p803_p10), [#allocation3], %s2115_s4 }
  0x7e   : > { %v2158_v18 = vld [vmem:[%s2656_s9 + $0x40] sm:$0xff] (!%p803_p10)   ;;  %v2162_v22 = vld [vmem:[%s2656_s9 + $0x48] sm:$0xff] (!%p803_p10)   ;;  %v2166_v26 = vld [vmem:[%s2656_s9 + $0x50] sm:$0xff] (!%p803_p10)  }
  0x7f   : > { %v2159_v19 = vld [vmem:[%s2656_s9 + $0xc0] sm:$0xff] (!%p803_p10)   ;;  %1997 = vmatprep.subr.bf16.mxu0 (!%p803_p10), %v2158_v18  ;;  %v2163_v23 = vld [vmem:[%s2656_s9 + $0xc8] sm:$0xff] (!%p803_p10)   ;;  %v2167_v27 = vld [vmem:[%s2656_s9 + $0xd0] sm:$0xff] (!%p803_p10)  }
  0x80   : > { %v2160_v20 = vld [vmem:[%s2656_s9] sm:$0xff] (!%p803_p10)   ;;  %2019 = vmatprep.subr.bf16.mxu1 (!%p803_p10), %v2159_v19  ;;  %v2164_v24 = vld [vmem:[%s2656_s9 + $0x8] sm:$0xff] (!%p803_p10)   ;;  %v2168_v28 = vld [vmem:[%s2656_s9 + $0x10] sm:$0xff] (!%p803_p10)  }
  0x81   : > { %v2161_v21 = vld [vmem:[%s2656_s9 + $0x80] sm:$0xff]   ;;  %1998 = vmatpush3.bf16.msra.mxu0 %v2160_v20  ;;  %v2165_v25 = vld [vmem:[%s2656_s9 + $0x88] sm:$0xff]   ;;  %v2169_v29 = vld [vmem:[%s2656_s9 + $0x90] sm:$0xff]   ;;  %s858_s6 = scalar_select %p857_p11, %s2273_s14, 1 }
  0x82   : > { %2020 = vmatpush3.bf16.msra.mxu1 %v2161_v21  ;;  %1999 = vmatprep.subr.bf16.mxu0 %v2162_v22  ;;  %v2170_v30 = vld [vmem:[%s2656_s9 + $0x58] sm:$0xff]   ;;  %v2174_v34 = vld [vmem:[%s2656_s9 + $0x60] sm:$0xff]   ;;  %v2178_v38 = vld [vmem:[%s2656_s9 + $0x68] sm:$0xff]   ;;  %s1987_s18 = sshll.u32 (%p2340_p6), %s2273_s14, 2 }
  0x83   : > { %2021 = vmatprep.subr.bf16.mxu1 %v2163_v23  ;;  %v2171_v31 = vld [vmem:[%s2656_s9 + $0xd8] sm:$0xff]   ;;  %v2175_v35 = vld [vmem:[%s2656_s9 + $0xe0] sm:$0xff]   ;;  %v2179_v39 = vld [vmem:[%s2656_s9 + $0xe8] sm:$0xff]   ;;  %v2283_v23 = vmov 0.0   ;;  %s1748_s23 = scalar_lea.vmem (%p2340_p6), %s2782_s3, %s1987_s18 }
  0x84   : > { %v2172_v32 = vld [vmem:[%s2656_s9 + $0x18] sm:$0xff]   ;;  %v2176_v36 = vld [vmem:[%s2656_s9 + $0x20] sm:$0xff]   ;;  %v2180_v40 = vld [vmem:[%s2656_s9 + $0x28] sm:$0xff]  }
  0x85   : > { %2000 = vmatpush3.bf16.msra.mxu0 %v2164_v24  ;;  %v2173_v33 = vld [vmem:[%s2656_s9 + $0x98] sm:$0xff]   ;;  %v2177_v37 = vld [vmem:[%s2656_s9 + $0xa0] sm:$0xff]   ;;  %v2181_v41 = vld [vmem:[%s2656_s9 + $0xa8] sm:$0xff]  }
  0x86   : > { %2022 = vmatpush3.bf16.msra.mxu1 %v2165_v25  ;;  %2001 = vmatprep.subr.bf16.mxu0 %v2166_v26  ;;  %v2182_v42 = vld [vmem:[%s2656_s9 + $0x70] sm:$0xff]   ;;  %v2186_v46 = vld [vmem:[%s2656_s9 + $0x78] sm:$0xff]   ;;  %v2196_v53 = vld [vmem:[%s2656_s9 + $0x140] sm:$0xff]  }
  0x87   : > { %2023 = vmatprep.subr.bf16.mxu1 %v2167_v27  ;;  %v2183_v43 = vld [vmem:[%s2656_s9 + $0xf0] sm:$0xff]   ;;  %v2187_v47 = vld [vmem:[%s2656_s9 + $0xf8] sm:$0xff]   ;;  %v2197_v54 = vld [vmem:[%s2656_s9 + $0x100] sm:$0xff]  }
  0x88   : > { %v2184_v44 = vld [vmem:[%s2656_s9 + $0x30] sm:$0xff]   ;;  %v2188_v49 = vld [vmem:[%s2656_s9 + $0x38] sm:$0xff]   ;;  %v2198_v55 = vld [vmem:[%s2656_s9 + $0x1c0] sm:$0xff]  }
  0x89   : > { %2002 = vmatpush3.bf16.msra.mxu0 %v2168_v28  ;;  %v2185_v45 = vld [vmem:[%s2656_s9 + $0xb0] sm:$0xff]   ;;  %v2189_v51 = vld [vmem:[%s2656_s9 + $0xb8] sm:$0xff]   ;;  %v2199_v56 = vld [vmem:[%s2656_s9 + $0x180] sm:$0xff]  }
  0x8a   : > { %2024 = vmatpush3.bf16.msra.mxu1 %v2169_v29  ;;  %2003 = vmatprep.subr.bf16.mxu0 %v2170_v30  ;;  %v2200_v57 = vld [vmem:[%s2656_s9 + $0x148] sm:$0xff]   ;;  %v2204_v61 = vld [vmem:[%s2656_s9 + $0x150] sm:$0xff]   ;;  %v2208_v1 = vld [vmem:[%s2656_s9 + $0x158] sm:$0xff]  }
  0x8b   : > { %2025 = vmatprep.subr.bf16.mxu1 %v2171_v31  ;;  %v2201_v58 = vld [vmem:[%s2656_s9 + $0x108] sm:$0xff]   ;;  %v2205_v62 = vld [vmem:[%s2656_s9 + $0x110] sm:$0xff]   ;;  %v2209_v2 = vld [vmem:[%s2656_s9 + $0x118] sm:$0xff]  }
  0x8c   : > { %v2202_v59 = vld [vmem:[%s2656_s9 + $0x1c8] sm:$0xff]   ;;  %v2206_v63 = vld [vmem:[%s2656_s9 + $0x1d0] sm:$0xff]   ;;  %v2210_v3 = vld [vmem:[%s2656_s9 + $0x1d8] sm:$0xff]  }
  0x8d   : > { %2004 = vmatpush3.bf16.msra.mxu0 %v2172_v32  ;;  %v2203_v60 = vld [vmem:[%s2656_s9 + $0x188] sm:$0xff]   ;;  %v2207_v0 = vld [vmem:[%s2656_s9 + $0x190] sm:$0xff]   ;;  %v2211_v4 = vld [vmem:[%s2656_s9 + $0x198] sm:$0xff]  }
  0x8e   : > { %2026 = vmatpush3.bf16.msra.mxu1 %v2173_v33  ;;  %2005 = vmatprep.subr.bf16.mxu0 %v2174_v34  ;;  %v2212_v5 = vld [vmem:[%s2656_s9 + $0x160] sm:$0xff]   ;;  %v2216_v9 = vld [vmem:[%s2656_s9 + $0x168] sm:$0xff]   ;;  %v2220_v13 = vld [vmem:[%s2656_s9 + $0x170] sm:$0xff]  }
  0x8f   : > { %2027 = vmatprep.subr.bf16.mxu1 %v2175_v35  ;;  %v2213_v6 = vld [vmem:[%s2656_s9 + $0x120] sm:$0xff]   ;;  %v2217_v10 = vld [vmem:[%s2656_s9 + $0x128] sm:$0xff]   ;;  %v2221_v14 = vld [vmem:[%s2656_s9 + $0x130] sm:$0xff]  }
  0x90   : > { %v2214_v7 = vld [vmem:[%s2656_s9 + $0x1e0] sm:$0xff]   ;;  %v2218_v11 = vld [vmem:[%s2656_s9 + $0x1e8] sm:$0xff]   ;;  %v2222_v15 = vld [vmem:[%s2656_s9 + $0x1f0] sm:$0xff]  }
  0x91   : > { %2006 = vmatpush3.bf16.msra.mxu0 %v2176_v36  ;;  %v2215_v8 = vld [vmem:[%s2656_s9 + $0x1a0] sm:$0xff]   ;;  %v2219_v12 = vld [vmem:[%s2656_s9 + $0x1a8] sm:$0xff]   ;;  %v2223_v16 = vld [vmem:[%s2656_s9 + $0x1b0] sm:$0xff]  }
  0x92   : > { %2028 = vmatpush3.bf16.msra.mxu1 %v2177_v37  ;;  %2007 = vmatprep.subr.bf16.mxu0 %v2178_v38  ;;  %v2224_v17 = vld [vmem:[%s2656_s9 + $0x178] sm:$0xff]   ;;  %v2227_v19 = vld [vmem:[%s2779_s0 + $0x10] ss:$36 sps:$4 sm:$0xff]   ;;  %v2234_v25 = vld [vmem:[%s2656_s9 + $0x200] sm:$0xff]  }
  0x93   : > { %2029 = vmatprep.subr.bf16.mxu1 %v2179_v39  ;;  %v2225_v18 = vld [vmem:[%s2656_s9 + $0x138] sm:$0xff]   ;;  %v2235_v26 = vld [vmem:[%s2656_s9 + $0x208] sm:$0xff]   ;;  %v2236_v27 = vld [vmem:[%s2656_s9 + $0x210] sm:$0xff]  }
  0x94   : > { %v2226_v20 = vld [vmem:[%s2656_s9 + $0x1f8] sm:$0xff]   ;;  %v2238_v29 = vld [vmem:[%s2656_s9 + $0x220] sm:$0xff]   ;;  %v2239_v30 = vld [vmem:[%s2656_s9 + $0x228] sm:$0xff]  }
  0x95   : > { %2008 = vmatpush3.bf16.msra.mxu0 %v2180_v40  ;;  %v2230_v21 = vld [vmem:[%s2656_s9 + $0x1b8] sm:$0xff]   ;;  %v2240_v31 = vld [vmem:[%s2656_s9 + $0x230] sm:$0xff]   ;;  %v2242_v33 = vld [vmem:[%s2779_s0 + $0x20] ss:$36 sps:$4 sm:$0xff]  }
  0x96   : > { %2030 = vmatpush3.bf16.msra.mxu1 %v2181_v41  ;;  %2009 = vmatprep.subr.bf16.mxu0 %v2182_v42  ;;  %v2231_v22 = vld [vmem:[%s2779_s0 + $0x18] ss:$36 sps:$4 sm:$0xff]  }
  0x97   : > { %2031 = vmatprep.subr.bf16.mxu1 %v2183_v43  ;;  %v2233_v24 = vld [vmem:[%s2779_s0 + $0x1c] ss:$36 sps:$4 sm:$0xff]  }
  0x98   : > { %v2237_v28 = vld [vmem:[%s2656_s9 + $0x218] sm:$0xff]  }
  0x99   : > { %2010 = vmatpush3.bf16.msra.mxu0 %v2184_v44  ;;  %v2241_v32 = vld [vmem:[%s2656_s9 + $0x238] sm:$0xff]   ;;  %s859_s9 = scalar_lea.vmem %s2781_s2, %s858_s6 }
  0x9a   : > { %2032 = vmatpush3.bf16.msra.mxu1 %v2185_v45  ;;  %2011 = vmatprep.subr.bf16.mxu0 %v2186_v46 }
  0x9b   : > { %2033 = vmatprep.subr.bf16.mxu1 %v2187_v47 }
  0x9d   : > { %2012 = vmatpush3.bf16.msra.mxu0 %v2188_v49 }
  0x9e   : > { %2034 = vmatpush3.bf16.msra.mxu1 %v2189_v51  ;;  %2041 = vmatprep.subr.bf16.mxu0 %v2196_v53 }
  0x9f   : > { %2063 = vmatprep.subr.bf16.mxu1 %v2198_v55 }
  0xa0   : > { %1535 = vmatmul.mubr.bf16.vlgmr.msra.gmra.mrb[0].mxu0 %v2190_v48 }
  0xa1   : > { %1576 = vmatmul.mubr.bf16.vlgmr.msra.gmra.mrb[0].mxu1 %v2193_v50  ;;  %2042 = vmatpush3.bf16.msra.mxu0 %v2197_v54 }
  0xa2   : > { %1616 = vmatprep.mubr.bf16.mxu0 %v2229_v52  ;;  %2064 = vmatpush3.bf16.msra.mxu1 %v2199_v56 }
  0xa3   : > { %2043 = vmatprep.subr.bf16.mxu0 %v2200_v57  ;;  %2065 = vmatprep.subr.bf16.mxu1 %v2202_v59 }
  0xa4   : > { %1657 = vmatprep.mubr.bf16.mxu1 %v2233_v24 }
  0xa5   : > { %2044 = vmatpush3.bf16.msra.mxu0 %v2201_v58 }
  0xa6   : > { %2066 = vmatpush3.bf16.msra.mxu1 %v2203_v60  ;;  %2045 = vmatprep.subr.bf16.mxu0 %v2204_v61 }
  0xa7   : > { %2067 = vmatprep.subr.bf16.mxu1 %v2206_v63 }
  0xa9   : > { %2046 = vmatpush3.bf16.msra.mxu0 %v2205_v62 }
  0xaa   : > { %2068 = vmatpush3.bf16.msra.mxu1 %v2207_v0  ;;  %2047 = vmatprep.subr.bf16.mxu0 %v2208_v1  ;;  %v1983_v1 = vld [vmem:[%s859_s9] ss:$0 sm:$0xff] }
  0xab   : > { %2069 = vmatprep.subr.bf16.mxu1 %v2210_v3 }
  0xad   : > { %2048 = vmatpush3.bf16.msra.mxu0 %v2209_v2 }
  0xae   : > { %2070 = vmatpush3.bf16.msra.mxu1 %v2211_v4  ;;  %2049 = vmatprep.subr.bf16.mxu0 %v2212_v5 }
  0xaf   : > { %2071 = vmatprep.subr.bf16.mxu1 %v2214_v7 }
  0xb1   : > { %2050 = vmatpush3.bf16.msra.mxu0 %v2213_v6 }
  0xb2   : > { %2072 = vmatpush3.bf16.msra.mxu1 %v2215_v8  ;;  %2051 = vmatprep.subr.bf16.mxu0 %v2216_v9 }
  0xb3   : > { %2073 = vmatprep.subr.bf16.mxu1 %v2218_v11 }
  0xb5   : > { %2052 = vmatpush3.bf16.msra.mxu0 %v2217_v10 }
  0xb6   : > { %2074 = vmatpush3.bf16.msra.mxu1 %v2219_v12  ;;  %2053 = vmatprep.subr.bf16.mxu0 %v2220_v13 }
  0xb7   : > { %2075 = vmatprep.subr.bf16.mxu1 %v2222_v15 }
  0xb9   : > { %2054 = vmatpush3.bf16.msra.mxu0 %v2221_v14 }
  0xba   : > { %2076 = vmatpush3.bf16.msra.mxu1 %v2223_v16  ;;  %2055 = vmatprep.subr.bf16.mxu0 %v2224_v17 }
  0xbb   : > { %2077 = vmatprep.subr.bf16.mxu1 %v2226_v20 }
  0xbd   : > { %2056 = vmatpush3.bf16.msra.mxu0 %v2225_v18 }
  0xbe   : > { %2094 = vmatprep.subr.bf16.mxu0 %v2283_v23  ;;  %2078 = vmatpush3.bf16.msra.mxu1 %v2230_v21 }
  0xc0   : > { %1617 = vmatmul.mubr.bf16.vlgmr.msra.gmra.mrb[4].mxu0 %v2227_v19 }
  0xc1   : > { %2095 = vmatpush3.bf16.msra.mxu0 %v2234_v25  ;;  %2110 = vmatprep.mubr.msk.bf16.mxu0 %vm2284_vm0, %v2283_v23 }
  0xc2   : > { %1658 = vmatmul.mubr.bf16.vlgmr.msra.gmra.mrb[4].mxu1 %v2231_v22  ;;  %2096 = vmatprep.subr.bf16.mxu0 %v2283_v23 }
  0xc5   : > { %2097 = vmatpush3.bf16.msra.mxu0 %v2235_v26 }
  0xc6   : > { %2098 = vmatprep.subr.bf16.mxu0 %v2283_v23 }
  0xc9   : > { %2099 = vmatpush3.bf16.msra.mxu0 %v2236_v27 }
  0xca   : > { %2100 = vmatprep.subr.bf16.mxu0 %v2283_v23 }
  0xcd   : > { %2101 = vmatpush3.bf16.msra.mxu0 %v2237_v28 }
  0xce   : > { %2102 = vmatprep.subr.bf16.mxu0 %v2283_v23 }
  0xd1   : > { %2103 = vmatpush3.bf16.msra.mxu0 %v2238_v29 }
  0xd2   : > { %2104 = vmatprep.subr.bf16.mxu0 %v2283_v23 }
  0xd5   : > { %2105 = vmatpush3.bf16.msra.mxu0 %v2239_v30 }
  0xd6   : > { %2106 = vmatprep.subr.bf16.mxu0 %v2283_v23 }
  0xd9   : > { %2107 = vmatpush3.bf16.msra.mxu0 %v2240_v31 }
  0xda   : > { %2108 = vmatprep.subr.bf16.mxu0 %v2283_v23 }
  0xdd   : > { %2109 = vmatpush3.bf16.msra.mxu0 %v2241_v32 }
  0xe0   : > { %2111 = vmatmul.mubr.bf16.vlgmr.msra.gmra.mrb[8].mxu0 %v2242_v33 }
 0x173   : > { %v2013_v34 = vpop.f32.mrb[0].mxu0 }
 0x174   : > { %v2035_v35 = vpop.f32.mrb[0].mxu1  ;;  %v2014_v36 = vpop.f32.mrb[1].mxu0 }
 0x175   : > { %v2015_v37 = vadd.f32 %v2014_v36, %v2013_v34  ;;  %v2036_v38 = vpop.f32.mrb[1].mxu1  ;;  %v2016_v39 = vpop.f32.mrb[2].mxu0 }
 0x176   : > { %v2037_v40 = vadd.f32 %v2036_v38, %v2035_v35  ;;  %v2038_v41 = vpop.f32.mrb[2].mxu1  ;;  %v2017_v42 = vpop.f32.mrb[3].mxu0 }
 0x177   : > { %v2018_v43 = vadd.f32 %v2017_v42, %v2016_v39  ;;  %v2039_v44 = vpop.f32.mrb[3].mxu1 }
 0x178   : > { %v1578_v45 = vadd.f32 %v2037_v40, %v2015_v37  ;;  %v2040_v46 = vadd.f32 %v2039_v44, %v2038_v41 }
 0x17a   : > { %v1581_v47 = vadd.f32 %v2040_v46, %v2018_v43 }
 0x193   : > { %v2057_v48 = vpop.f32.mrb[4].mxu0 }
 0x194   : > { %v2058_v49 = vpop.f32.mrb[5].mxu0 }
 0x195   : > { %v2059_v50 = vadd.f32 %v2058_v49, %v2057_v48  ;;  %v2060_v51 = vpop.f32.mrb[6].mxu0  ;;  %v2079_v52 = vpop.f32.mrb[4].mxu1 }
 0x196   : > { %v2061_v53 = vpop.f32.mrb[7].mxu0  ;;  %v2080_v54 = vpop.f32.mrb[5].mxu1 }
 0x197   : > { %v1619_v55 = vadd.f32 %v2059_v50, %v1578_v45  ;;  %v2062_v56 = vadd.f32 %v2061_v53, %v2060_v51  ;;  %v2081_v57 = vadd.f32 %v2080_v54, %v2079_v52  ;;  %v2082_v58 = vpop.f32.mrb[6].mxu1 }
 0x198   : > { %v2083_v59 = vpop.f32.mrb[7].mxu1 }
 0x199   : > { %v1622_v60 = vadd.f32 %v2062_v56, %v1581_v47  ;;  %v2084_v61 = vadd.f32 %v2083_v59, %v2082_v58  ;;  %v1660_v62 = vadd.f32 %v2081_v57, %v1619_v55 }
 0x19b   : > { %v1663_v63 = vadd.f32 %v2084_v61, %v1622_v60 }
 0x1b3   : > { %v1700_v0 = vpop.f32.mrb[8].mxu0 }
 0x1b4   : > { %v1701_v2 = vadd.f32 %v1700_v0, %v1660_v62  ;;  %v2112_v3 = vpop.f32.mrb[9].mxu0 }
 0x1b5   : > { %v1703_v4 = vpop.f32.mrb[10].mxu0 }
 0x1b6   : > { %v1723_v5 = vadd.f32 %v1983_v1, %v1701_v2  ;;  %v1704_v6 = vadd.f32 %v1703_v4, %v1663_v63  ;;  %v2113_v7 = vpop.f32.mrb[11].mxu0 }
 0x1b8   : > { %v1724_v8 = vadd.f32 %v1983_v1, %v1704_v6  ;;  %v1725_v9 = vmax.f32 %v1723_v5, 0.0  ;;  %1743 = sbr.rel (!%p2340_p6) target bundleno = 455 (0x1c7), region = 85 }
 0x1ba   : > { %v1726_v10 = vmax.f32 %v1724_v8, 0.0 }
 0x1bc   : > { %v1995_v11 = vpack.c.bf16 %v1726_v10, %v1725_v9 }
 0x1be   : > { %1996 = vst [vmem:[%s843_s11] sm:$0xff] %v1995_v11  }
 0x1c5   : > { %v1764_v12 = vld [vmem:[%s843_s11] sm:$0xf]  ;;  %v1766_v13 = vld [vmem:[%s843_s11 + $0x4] sm:$0xf] }
 0x1c6   : > { %1765 = vst [vmem:[%s1748_s23] sm:$0xf] %v1764_v12  ;;  %1767 = vst [vmem:[%s1748_s23 + $0x8] sm:$0xf] %v1766_v13 }
 0x1c7 PF: > { %s13_s16 = sadd.s32 1, %s2281_s16   ;;  %s2784_s12 = smov %s2269_s13 }
 0x1c8   : > { %p10_p12 = scmp.ge.s32.totalorder %s13_s16, 4   ;;  %s2785_s13 = smov %s2345_s22 }
 0x1c9   : > { %s2786_s14 = smov %s2277_s15  ;;  %s2787_s15 = smov %s2789_s17 }
 0x1ca   :  { %12 = sbr.rel (!%p10_p12) target bundleno = 3 (0x3), region = 163 }

// kernel: _lambda_.17
= control target key start
LH: loop header
LB: loop body
LE: loop exit
PB: predicated region body
PF: predicated region fallthrough
CT: control target
= control target key end

     0   :  { %s4145_s12 = smov 0   ;;  %s4147_s13 = smov 0   ;;  %s5049_s0 = inlined_call_operand.vmem [shape: bf16[16,2432], index: 0, kind: input, shape index: {}]   ;;  %s5050_s1 = inlined_call_operand.vmem [shape: bf16[2432,256], index: 1, kind: input, shape index: {}]   ;;  %s5051_s2 = inlined_call_operand.vmem [shape: f32[1,256], index: 2, kind: input, shape index: {}]   ;;  %s5052_s3 = inlined_call_operand.vmem [shape: bf16[16,256], index: 3, kind: output, shape index: {}]  }
   0x1   :  { %s4149_s14 = smov 0   ;;  %s4151_s15 = smov 0  }
   0x2   :  { %s4153_s16 = smov 0  }
   0x3 LB: > { %s28_s17 = sadd.s32 1, %s4117_s15  ;;  %s3439_s18 = sadd.s32 4294967295, %s4121_s16   ;;  %s4121_s16 = sphi %s4153_s16, %s13_s16   ;;  %s4117_s15 = sphi %s4151_s15, %s5057_s15   ;;  %s4113_s14 = sphi %s4149_s14, %s5056_s14   ;;  %s4109_s13 = sphi %s4147_s13, %s5055_s13   ;;  %s4105_s12 = sphi %s4145_s12, %s5054_s12  }
   0x4   : > { %p30_p0 = scmp.ge.s32.totalorder %s28_s17, 2  ;;  %p76_p1 = scmp.ne.s32.totalorder %s4109_s13, %s4105_s12 }
   0x5   : > { %p77_p2 = scmp.eq.s32.totalorder %s4121_s16, 0  ;;  %p134_p4 = scmp.eq.s32.totalorder %s3439_s18, 1 }
   0x6   : > { %s5059_s17 = smov (%p30_p0, %s28_s17), 0  ;;  %s69_s20 = sadd.s32 1, %s4109_s13 }
   0x7   : > { %p78_p3 = por %p77_p2, %p76_p1  ;;  %s65_s19 = ssub.s32 %s4117_s15, %s5059_s17 }
   0x8   : > { %p67_p5 = scmp.eq.s32.totalorder %s65_s19, 0  ;;  %p4180_p6 = por %p134_p4, %p76_p1 }
   0x9   : > { %p3443_p7 = scmp.ge.s32.totalorder %s4121_s16, 2 }
   0xa   : > { %s4185_s22 = scalar_select %p67_p5, %s4109_s13, %s69_s20  }
   0xb   : > { %171 = sbr.rel (%p3443_p7) target bundleno = 225 (0xe1), region = 20 }
  0x12   : > { %174 = sbr.rel (!%p78_p3) target bundleno = 225 (0xe1), region = 24  ;;  %s176_s23 = sand.u32 (%p78_p3), 1, %s4109_s13  }
  0x13   : > { %s3444_s24 = sshll.u32 (%p78_p3), %s4117_s15, 2  ;;  %s3859_s25 = smul.u32 (%p78_p3), 1216, %s176_s23 }
  0x14   : > { %s4193_s28 = scalar_lea.vmem (%p78_p3), %s5050_s1, %s3444_s24 }
  0x15   : > { %v199_v0 = vld [vmem:[%s4193_s28] sm:$0xf] (%p78_p3)  ;;  %v201_v1 = vld [vmem:[%s4193_s28 + $0x8] sm:$0xf] (%p78_p3)  ;;  %v203_v2 = vld [vmem:[%s4193_s28 + $0x10] sm:$0xf] (%p78_p3) }
  0x16   : > { %v205_v3 = vld [vmem:[%s4193_s28 + $0x18] sm:$0xf] (%p78_p3)  ;;  %v207_v4 = vld [vmem:[%s4193_s28 + $0x20] sm:$0xf] (%p78_p3)  ;;  %s4200_s29 = scalar_lea.vmem (%p78_p3), [#allocation3], %s3859_s25 }
  0x17   : > { %200 = vst [vmem:[%s4200_s29] sm:$0xf] (%p78_p3), %v199_v0  ;;  %202 = vst [vmem:[%s4200_s29 + $0x4] sm:$0xf] (%p78_p3), %v201_v1  ;;  %v209_v5 = vld [vmem:[%s4193_s28 + $0x28] sm:$0xf] (%p78_p3) }
  0x18   : > { %204 = vst [vmem:[%s4200_s29 + $0x8] sm:$0xf] (%p78_p3), %v203_v2  ;;  %206 = vst [vmem:[%s4200_s29 + $0xc] sm:$0xf] (%p78_p3), %v205_v3  ;;  %v211_v6 = vld [vmem:[%s4193_s28 + $0x30] sm:$0xf] (%p78_p3) }
  0x19   : > { %208 = vst [vmem:[%s4200_s29 + $0x10] sm:$0xf] %v207_v4  ;;  %v213_v7 = vld [vmem:[%s4193_s28 + $0x38] sm:$0xf]  ;;  %210 = vst [vmem:[%s4200_s29 + $0x14] sm:$0xf] %v209_v5 }
  0x1a   : > { %212 = vst [vmem:[%s4200_s29 + $0x18] sm:$0xf] %v211_v6  ;;  %214 = vst [vmem:[%s4200_s29 + $0x1c] sm:$0xf] %v213_v7  ;;  %v215_v8 = vld [vmem:[%s4193_s28 + $0x40] sm:$0xf] }
  0x1b   : > { %v217_v9 = vld [vmem:[%s4193_s28 + $0x48] sm:$0xf]  ;;  %v219_v10 = vld [vmem:[%s4193_s28 + $0x50] sm:$0xf]  ;;  %216 = vst [vmem:[%s4200_s29 + $0x20] sm:$0xf] %v215_v8 }
  0x1c   : > { %218 = vst [vmem:[%s4200_s29 + $0x24] sm:$0xf] %v217_v9  ;;  %220 = vst [vmem:[%s4200_s29 + $0x28] sm:$0xf] %v219_v10  ;;  %v221_v11 = vld [vmem:[%s4193_s28 + $0x58] sm:$0xf] }
  0x1d   : > { %v223_v12 = vld [vmem:[%s4193_s28 + $0x60] sm:$0xf]  ;;  %v225_v13 = vld [vmem:[%s4193_s28 + $0x68] sm:$0xf]  ;;  %222 = vst [vmem:[%s4200_s29 + $0x2c] sm:$0xf] %v221_v11 }
  0x1e   : > { %224 = vst [vmem:[%s4200_s29 + $0x30] sm:$0xf] %v223_v12  ;;  %226 = vst [vmem:[%s4200_s29 + $0x34] sm:$0xf] %v225_v13  ;;  %v227_v14 = vld [vmem:[%s4193_s28 + $0x70] sm:$0xf] }
  0x1f   : > { %v229_v15 = vld [vmem:[%s4193_s28 + $0x78] sm:$0xf]  ;;  %v231_v16 = vld [vmem:[%s4193_s28 + $0x80] sm:$0xf]  ;;  %228 = vst [vmem:[%s4200_s29 + $0x38] sm:$0xf] %v227_v14 }
  0x20   : > { %230 = vst [vmem:[%s4200_s29 + $0x3c] sm:$0xf] %v229_v15  ;;  %232 = vst [vmem:[%s4200_s29 + $0x40] sm:$0xf] %v231_v16  ;;  %v233_v17 = vld [vmem:[%s4193_s28 + $0x88] sm:$0xf] }
  0x21   : > { %v235_v18 = vld [vmem:[%s4193_s28 + $0x90] sm:$0xf]  ;;  %v237_v19 = vld [vmem:[%s4193_s28 + $0x98] sm:$0xf]  ;;  %234 = vst [vmem:[%s4200_s29 + $0x44] sm:$0xf] %v233_v17 }
  0x22   : > { %236 = vst [vmem:[%s4200_s29 + $0x48] sm:$0xf] %v235_v18  ;;  %238 = vst [vmem:[%s4200_s29 + $0x4c] sm:$0xf] %v237_v19  ;;  %v239_v20 = vld [vmem:[%s4193_s28 + $0xa0] sm:$0xf] }
  0x23   : > { %v241_v21 = vld [vmem:[%s4193_s28 + $0xa8] sm:$0xf]  ;;  %v243_v22 = vld [vmem:[%s4193_s28 + $0xb0] sm:$0xf]  ;;  %240 = vst [vmem:[%s4200_s29 + $0x50] sm:$0xf] %v239_v20 }
  0x24   : > { %242 = vst [vmem:[%s4200_s29 + $0x54] sm:$0xf] %v241_v21  ;;  %244 = vst [vmem:[%s4200_s29 + $0x58] sm:$0xf] %v243_v22  ;;  %v245_v23 = vld [vmem:[%s4193_s28 + $0xb8] sm:$0xf] }
  0x25   : > { %v247_v24 = vld [vmem:[%s4193_s28 + $0xc0] sm:$0xf]  ;;  %v249_v25 = vld [vmem:[%s4193_s28 + $0xc8] sm:$0xf]  ;;  %246 = vst [vmem:[%s4200_s29 + $0x5c] sm:$0xf] %v245_v23 }
  0x26   : > { %248 = vst [vmem:[%s4200_s29 + $0x60] sm:$0xf] %v247_v24  ;;  %250 = vst [vmem:[%s4200_s29 + $0x64] sm:$0xf] %v249_v25  ;;  %v251_v26 = vld [vmem:[%s4193_s28 + $0xd0] sm:$0xf] }
  0x27   : > { %v253_v27 = vld [vmem:[%s4193_s28 + $0xd8] sm:$0xf]  ;;  %v255_v28 = vld [vmem:[%s4193_s28 + $0xe0] sm:$0xf]  ;;  %252 = vst [vmem:[%s4200_s29 + $0x68] sm:$0xf] %v251_v26 }
  0x28   : > { %254 = vst [vmem:[%s4200_s29 + $0x6c] sm:$0xf] %v253_v27  ;;  %256 = vst [vmem:[%s4200_s29 + $0x70] sm:$0xf] %v255_v28  ;;  %v257_v29 = vld [vmem:[%s4193_s28 + $0xe8] sm:$0xf] }
  0x29   : > { %v259_v30 = vld [vmem:[%s4193_s28 + $0xf0] sm:$0xf]  ;;  %v261_v31 = vld [vmem:[%s4193_s28 + $0xf8] sm:$0xf]  ;;  %258 = vst [vmem:[%s4200_s29 + $0x74] sm:$0xf] %v257_v29 }
  0x2a   : > { %260 = vst [vmem:[%s4200_s29 + $0x78] sm:$0xf] %v259_v30  ;;  %262 = vst [vmem:[%s4200_s29 + $0x7c] sm:$0xf] %v261_v31  ;;  %v263_v32 = vld [vmem:[%s4193_s28 + $0x100] sm:$0xf] }
  0x2b   : > { %v265_v33 = vld [vmem:[%s4193_s28 + $0x108] sm:$0xf]  ;;  %v267_v34 = vld [vmem:[%s4193_s28 + $0x110] sm:$0xf]  ;;  %264 = vst [vmem:[%s4200_s29 + $0x80] sm:$0xf] %v263_v32 }
  0x2c   : > { %266 = vst [vmem:[%s4200_s29 + $0x84] sm:$0xf] %v265_v33  ;;  %268 = vst [vmem:[%s4200_s29 + $0x88] sm:$0xf] %v267_v34  ;;  %v269_v35 = vld [vmem:[%s4193_s28 + $0x118] sm:$0xf] }
  0x2d   : > { %v271_v36 = vld [vmem:[%s4193_s28 + $0x120] sm:$0xf]  ;;  %v273_v37 = vld [vmem:[%s4193_s28 + $0x128] sm:$0xf]  ;;  %270 = vst [vmem:[%s4200_s29 + $0x8c] sm:$0xf] %v269_v35 }
  0x2e   : > { %272 = vst [vmem:[%s4200_s29 + $0x90] sm:$0xf] %v271_v36  ;;  %274 = vst [vmem:[%s4200_s29 + $0x94] sm:$0xf] %v273_v37  ;;  %v275_v38 = vld [vmem:[%s4193_s28 + $0x130] sm:$0xf] }
  0x2f   : > { %v277_v39 = vld [vmem:[%s4193_s28 + $0x138] sm:$0xf]  ;;  %v279_v40 = vld [vmem:[%s4193_s28 + $0x140] sm:$0xf]  ;;  %276 = vst [vmem:[%s4200_s29 + $0x98] sm:$0xf] %v275_v38 }
  0x30   : > { %278 = vst [vmem:[%s4200_s29 + $0x9c] sm:$0xf] %v277_v39  ;;  %280 = vst [vmem:[%s4200_s29 + $0xa0] sm:$0xf] %v279_v40  ;;  %v281_v41 = vld [vmem:[%s4193_s28 + $0x148] sm:$0xf] }
  0x31   : > { %v283_v42 = vld [vmem:[%s4193_s28 + $0x150] sm:$0xf]  ;;  %v285_v43 = vld [vmem:[%s4193_s28 + $0x158] sm:$0xf]  ;;  %282 = vst [vmem:[%s4200_s29 + $0xa4] sm:$0xf] %v281_v41 }
  0x32   : > { %284 = vst [vmem:[%s4200_s29 + $0xa8] sm:$0xf] %v283_v42  ;;  %286 = vst [vmem:[%s4200_s29 + $0xac] sm:$0xf] %v285_v43  ;;  %v287_v44 = vld [vmem:[%s4193_s28 + $0x160] sm:$0xf] }
  0x33   : > { %v289_v45 = vld [vmem:[%s4193_s28 + $0x168] sm:$0xf]  ;;  %v291_v46 = vld [vmem:[%s4193_s28 + $0x170] sm:$0xf]  ;;  %288 = vst [vmem:[%s4200_s29 + $0xb0] sm:$0xf] %v287_v44 }
  0x34   : > { %290 = vst [vmem:[%s4200_s29 + $0xb4] sm:$0xf] %v289_v45  ;;  %292 = vst [vmem:[%s4200_s29 + $0xb8] sm:$0xf] %v291_v46  ;;  %v293_v47 = vld [vmem:[%s4193_s28 + $0x178] sm:$0xf] }
  0x35   : > { %v295_v48 = vld [vmem:[%s4193_s28 + $0x180] sm:$0xf]  ;;  %v297_v49 = vld [vmem:[%s4193_s28 + $0x188] sm:$0xf]  ;;  %294 = vst [vmem:[%s4200_s29 + $0xbc] sm:$0xf] %v293_v47 }
  0x36   : > { %296 = vst [vmem:[%s4200_s29 + $0xc0] sm:$0xf] %v295_v48  ;;  %298 = vst [vmem:[%s4200_s29 + $0xc4] sm:$0xf] %v297_v49  ;;  %v299_v50 = vld [vmem:[%s4193_s28 + $0x190] sm:$0xf] }
  0x37   : > { %v301_v51 = vld [vmem:[%s4193_s28 + $0x198] sm:$0xf]  ;;  %v303_v52 = vld [vmem:[%s4193_s28 + $0x1a0] sm:$0xf]  ;;  %300 = vst [vmem:[%s4200_s29 + $0xc8] sm:$0xf] %v299_v50 }
  0x38   : > { %302 = vst [vmem:[%s4200_s29 + $0xcc] sm:$0xf] %v301_v51  ;;  %304 = vst [vmem:[%s4200_s29 + $0xd0] sm:$0xf] %v303_v52  ;;  %v305_v53 = vld [vmem:[%s4193_s28 + $0x1a8] sm:$0xf] }
  0x39   : > { %v307_v54 = vld [vmem:[%s4193_s28 + $0x1b0] sm:$0xf]  ;;  %v309_v55 = vld [vmem:[%s4193_s28 + $0x1b8] sm:$0xf]  ;;  %306 = vst [vmem:[%s4200_s29 + $0xd4] sm:$0xf] %v305_v53 }
  0x3a   : > { %308 = vst [vmem:[%s4200_s29 + $0xd8] sm:$0xf] %v307_v54  ;;  %310 = vst [vmem:[%s4200_s29 + $0xdc] sm:$0xf] %v309_v55  ;;  %v311_v56 = vld [vmem:[%s4193_s28 + $0x1c0] sm:$0xf] }
  0x3b   : > { %v313_v57 = vld [vmem:[%s4193_s28 + $0x1c8] sm:$0xf]  ;;  %v315_v58 = vld [vmem:[%s4193_s28 + $0x1d0] sm:$0xf]  ;;  %312 = vst [vmem:[%s4200_s29 + $0xe0] sm:$0xf] %v311_v56 }
  0x3c   : > { %314 = vst [vmem:[%s4200_s29 + $0xe4] sm:$0xf] %v313_v57  ;;  %316 = vst [vmem:[%s4200_s29 + $0xe8] sm:$0xf] %v315_v58  ;;  %v317_v59 = vld [vmem:[%s4193_s28 + $0x1d8] sm:$0xf] }
  0x3d   : > { %v319_v60 = vld [vmem:[%s4193_s28 + $0x1e0] sm:$0xf]  ;;  %v321_v61 = vld [vmem:[%s4193_s28 + $0x1e8] sm:$0xf]  ;;  %318 = vst [vmem:[%s4200_s29 + $0xec] sm:$0xf] %v317_v59 }
  0x3e   : > { %320 = vst [vmem:[%s4200_s29 + $0xf0] sm:$0xf] %v319_v60  ;;  %322 = vst [vmem:[%s4200_s29 + $0xf4] sm:$0xf] %v321_v61  ;;  %v323_v62 = vld [vmem:[%s4193_s28 + $0x1f0] sm:$0xf] }
  0x3f   : > { %v325_v63 = vld [vmem:[%s4193_s28 + $0x1f8] sm:$0xf]  ;;  %v327_v0 = vld [vmem:[%s4193_s28 + $0x200] sm:$0xf]  ;;  %324 = vst [vmem:[%s4200_s29 + $0xf8] sm:$0xf] %v323_v62 }
  0x40   : > { %326 = vst [vmem:[%s4200_s29 + $0xfc] sm:$0xf] %v325_v63  ;;  %328 = vst [vmem:[%s4200_s29 + $0x100] sm:$0xf] %v327_v0  ;;  %v329_v1 = vld [vmem:[%s4193_s28 + $0x208] sm:$0xf] }
  0x41   : > { %v331_v2 = vld [vmem:[%s4193_s28 + $0x210] sm:$0xf]  ;;  %v333_v3 = vld [vmem:[%s4193_s28 + $0x218] sm:$0xf]  ;;  %330 = vst [vmem:[%s4200_s29 + $0x104] sm:$0xf] %v329_v1 }
  0x42   : > { %332 = vst [vmem:[%s4200_s29 + $0x108] sm:$0xf] %v331_v2  ;;  %334 = vst [vmem:[%s4200_s29 + $0x10c] sm:$0xf] %v333_v3  ;;  %v335_v4 = vld [vmem:[%s4193_s28 + $0x220] sm:$0xf] }
  0x43   : > { %v337_v5 = vld [vmem:[%s4193_s28 + $0x228] sm:$0xf]  ;;  %v339_v6 = vld [vmem:[%s4193_s28 + $0x230] sm:$0xf]  ;;  %336 = vst [vmem:[%s4200_s29 + $0x110] sm:$0xf] %v335_v4 }
  0x44   : > { %338 = vst [vmem:[%s4200_s29 + $0x114] sm:$0xf] %v337_v5  ;;  %340 = vst [vmem:[%s4200_s29 + $0x118] sm:$0xf] %v339_v6  ;;  %v341_v7 = vld [vmem:[%s4193_s28 + $0x238] sm:$0xf] }
  0x45   : > { %v343_v8 = vld [vmem:[%s4193_s28 + $0x240] sm:$0xf]  ;;  %v345_v9 = vld [vmem:[%s4193_s28 + $0x248] sm:$0xf]  ;;  %342 = vst [vmem:[%s4200_s29 + $0x11c] sm:$0xf] %v341_v7 }
  0x46   : > { %344 = vst [vmem:[%s4200_s29 + $0x120] sm:$0xf] %v343_v8  ;;  %346 = vst [vmem:[%s4200_s29 + $0x124] sm:$0xf] %v345_v9  ;;  %v347_v10 = vld [vmem:[%s4193_s28 + $0x250] sm:$0xf] }
  0x47   : > { %v349_v11 = vld [vmem:[%s4193_s28 + $0x258] sm:$0xf]  ;;  %v351_v12 = vld [vmem:[%s4193_s28 + $0x260] sm:$0xf]  ;;  %348 = vst [vmem:[%s4200_s29 + $0x128] sm:$0xf] %v347_v10 }
  0x48   : > { %350 = vst [vmem:[%s4200_s29 + $0x12c] sm:$0xf] %v349_v11  ;;  %352 = vst [vmem:[%s4200_s29 + $0x130] sm:$0xf] %v351_v12  ;;  %v353_v13 = vld [vmem:[%s4193_s28 + $0x268] sm:$0xf] }
  0x49   : > { %v355_v14 = vld [vmem:[%s4193_s28 + $0x270] sm:$0xf]  ;;  %v357_v15 = vld [vmem:[%s4193_s28 + $0x278] sm:$0xf]  ;;  %354 = vst [vmem:[%s4200_s29 + $0x134] sm:$0xf] %v353_v13 }
  0x4a   : > { %356 = vst [vmem:[%s4200_s29 + $0x138] sm:$0xf] %v355_v14  ;;  %358 = vst [vmem:[%s4200_s29 + $0x13c] sm:$0xf] %v357_v15  ;;  %v359_v16 = vld [vmem:[%s4193_s28 + $0x280] sm:$0xf] }
  0x4b   : > { %v361_v17 = vld [vmem:[%s4193_s28 + $0x288] sm:$0xf]  ;;  %v363_v18 = vld [vmem:[%s4193_s28 + $0x290] sm:$0xf]  ;;  %360 = vst [vmem:[%s4200_s29 + $0x140] sm:$0xf] %v359_v16 }
  0x4c   : > { %362 = vst [vmem:[%s4200_s29 + $0x144] sm:$0xf] %v361_v17  ;;  %364 = vst [vmem:[%s4200_s29 + $0x148] sm:$0xf] %v363_v18  ;;  %v365_v19 = vld [vmem:[%s4193_s28 + $0x298] sm:$0xf] }
  0x4d   : > { %v367_v20 = vld [vmem:[%s4193_s28 + $0x2a0] sm:$0xf]  ;;  %v369_v21 = vld [vmem:[%s4193_s28 + $0x2a8] sm:$0xf]  ;;  %366 = vst [vmem:[%s4200_s29 + $0x14c] sm:$0xf] %v365_v19 }
  0x4e   : > { %368 = vst [vmem:[%s4200_s29 + $0x150] sm:$0xf] %v367_v20  ;;  %370 = vst [vmem:[%s4200_s29 + $0x154] sm:$0xf] %v369_v21  ;;  %v371_v22 = vld [vmem:[%s4193_s28 + $0x2b0] sm:$0xf] }
  0x4f   : > { %v373_v23 = vld [vmem:[%s4193_s28 + $0x2b8] sm:$0xf]  ;;  %v375_v24 = vld [vmem:[%s4193_s28 + $0x2c0] sm:$0xf]  ;;  %372 = vst [vmem:[%s4200_s29 + $0x158] sm:$0xf] %v371_v22 }
  0x50   : > { %374 = vst [vmem:[%s4200_s29 + $0x15c] sm:$0xf] %v373_v23  ;;  %376 = vst [vmem:[%s4200_s29 + $0x160] sm:$0xf] %v375_v24  ;;  %v377_v25 = vld [vmem:[%s4193_s28 + $0x2c8] sm:$0xf] }
  0x51   : > { %v379_v26 = vld [vmem:[%s4193_s28 + $0x2d0] sm:$0xf]  ;;  %v381_v27 = vld [vmem:[%s4193_s28 + $0x2d8] sm:$0xf]  ;;  %378 = vst [vmem:[%s4200_s29 + $0x164] sm:$0xf] %v377_v25 }
  0x52   : > { %380 = vst [vmem:[%s4200_s29 + $0x168] sm:$0xf] %v379_v26  ;;  %382 = vst [vmem:[%s4200_s29 + $0x16c] sm:$0xf] %v381_v27  ;;  %v383_v28 = vld [vmem:[%s4193_s28 + $0x2e0] sm:$0xf] }
  0x53   : > { %v385_v29 = vld [vmem:[%s4193_s28 + $0x2e8] sm:$0xf]  ;;  %v387_v30 = vld [vmem:[%s4193_s28 + $0x2f0] sm:$0xf]  ;;  %384 = vst [vmem:[%s4200_s29 + $0x170] sm:$0xf] %v383_v28 }
  0x54   : > { %386 = vst [vmem:[%s4200_s29 + $0x174] sm:$0xf] %v385_v29  ;;  %388 = vst [vmem:[%s4200_s29 + $0x178] sm:$0xf] %v387_v30  ;;  %v389_v31 = vld [vmem:[%s4193_s28 + $0x2f8] sm:$0xf] }
  0x55   : > { %v391_v32 = vld [vmem:[%s4193_s28 + $0x300] sm:$0xf]  ;;  %v393_v33 = vld [vmem:[%s4193_s28 + $0x308] sm:$0xf]  ;;  %390 = vst [vmem:[%s4200_s29 + $0x17c] sm:$0xf] %v389_v31 }
  0x56   : > { %392 = vst [vmem:[%s4200_s29 + $0x180] sm:$0xf] %v391_v32  ;;  %394 = vst [vmem:[%s4200_s29 + $0x184] sm:$0xf] %v393_v33  ;;  %v395_v34 = vld [vmem:[%s4193_s28 + $0x310] sm:$0xf] }
  0x57   : > { %v397_v35 = vld [vmem:[%s4193_s28 + $0x318] sm:$0xf]  ;;  %v399_v36 = vld [vmem:[%s4193_s28 + $0x320] sm:$0xf]  ;;  %396 = vst [vmem:[%s4200_s29 + $0x188] sm:$0xf] %v395_v34 }
  0x58   : > { %398 = vst [vmem:[%s4200_s29 + $0x18c] sm:$0xf] %v397_v35  ;;  %400 = vst [vmem:[%s4200_s29 + $0x190] sm:$0xf] %v399_v36  ;;  %v401_v37 = vld [vmem:[%s4193_s28 + $0x328] sm:$0xf] }
  0x59   : > { %v403_v38 = vld [vmem:[%s4193_s28 + $0x330] sm:$0xf]  ;;  %v405_v39 = vld [vmem:[%s4193_s28 + $0x338] sm:$0xf]  ;;  %402 = vst [vmem:[%s4200_s29 + $0x194] sm:$0xf] %v401_v37 }
  0x5a   : > { %404 = vst [vmem:[%s4200_s29 + $0x198] sm:$0xf] %v403_v38  ;;  %406 = vst [vmem:[%s4200_s29 + $0x19c] sm:$0xf] %v405_v39  ;;  %v407_v40 = vld [vmem:[%s4193_s28 + $0x340] sm:$0xf] }
  0x5b   : > { %v409_v41 = vld [vmem:[%s4193_s28 + $0x348] sm:$0xf]  ;;  %v411_v42 = vld [vmem:[%s4193_s28 + $0x350] sm:$0xf]  ;;  %408 = vst [vmem:[%s4200_s29 + $0x1a0] sm:$0xf] %v407_v40 }
  0x5c   : > { %410 = vst [vmem:[%s4200_s29 + $0x1a4] sm:$0xf] %v409_v41  ;;  %412 = vst [vmem:[%s4200_s29 + $0x1a8] sm:$0xf] %v411_v42  ;;  %v413_v43 = vld [vmem:[%s4193_s28 + $0x358] sm:$0xf] }
  0x5d   : > { %v415_v44 = vld [vmem:[%s4193_s28 + $0x360] sm:$0xf]  ;;  %v417_v45 = vld [vmem:[%s4193_s28 + $0x368] sm:$0xf]  ;;  %414 = vst [vmem:[%s4200_s29 + $0x1ac] sm:$0xf] %v413_v43 }
  0x5e   : > { %416 = vst [vmem:[%s4200_s29 + $0x1b0] sm:$0xf] %v415_v44  ;;  %418 = vst [vmem:[%s4200_s29 + $0x1b4] sm:$0xf] %v417_v45  ;;  %v419_v46 = vld [vmem:[%s4193_s28 + $0x370] sm:$0xf] }
  0x5f   : > { %v421_v47 = vld [vmem:[%s4193_s28 + $0x378] sm:$0xf]  ;;  %v423_v48 = vld [vmem:[%s4193_s28 + $0x380] sm:$0xf]  ;;  %420 = vst [vmem:[%s4200_s29 + $0x1b8] sm:$0xf] %v419_v46 }
  0x60   : > { %422 = vst [vmem:[%s4200_s29 + $0x1bc] sm:$0xf] %v421_v47  ;;  %424 = vst [vmem:[%s4200_s29 + $0x1c0] sm:$0xf] %v423_v48  ;;  %v425_v49 = vld [vmem:[%s4193_s28 + $0x388] sm:$0xf] }
  0x61   : > { %v427_v50 = vld [vmem:[%s4193_s28 + $0x390] sm:$0xf]  ;;  %v429_v51 = vld [vmem:[%s4193_s28 + $0x398] sm:$0xf]  ;;  %426 = vst [vmem:[%s4200_s29 + $0x1c4] sm:$0xf] %v425_v49 }
  0x62   : > { %428 = vst [vmem:[%s4200_s29 + $0x1c8] sm:$0xf] %v427_v50  ;;  %430 = vst [vmem:[%s4200_s29 + $0x1cc] sm:$0xf] %v429_v51  ;;  %v431_v52 = vld [vmem:[%s4193_s28 + $0x3a0] sm:$0xf] }
  0x63   : > { %v433_v53 = vld [vmem:[%s4193_s28 + $0x3a8] sm:$0xf]  ;;  %v435_v54 = vld [vmem:[%s4193_s28 + $0x3b0] sm:$0xf]  ;;  %432 = vst [vmem:[%s4200_s29 + $0x1d0] sm:$0xf] %v431_v52 }
  0x64   : > { %434 = vst [vmem:[%s4200_s29 + $0x1d4] sm:$0xf] %v433_v53  ;;  %436 = vst [vmem:[%s4200_s29 + $0x1d8] sm:$0xf] %v435_v54  ;;  %v437_v55 = vld [vmem:[%s4193_s28 + $0x3b8] sm:$0xf] }
  0x65   : > { %v439_v56 = vld [vmem:[%s4193_s28 + $0x3c0] sm:$0xf]  ;;  %v441_v57 = vld [vmem:[%s4193_s28 + $0x3c8] sm:$0xf]  ;;  %438 = vst [vmem:[%s4200_s29 + $0x1dc] sm:$0xf] %v437_v55 }
  0x66   : > { %440 = vst [vmem:[%s4200_s29 + $0x1e0] sm:$0xf] %v439_v56  ;;  %442 = vst [vmem:[%s4200_s29 + $0x1e4] sm:$0xf] %v441_v57  ;;  %v443_v58 = vld [vmem:[%s4193_s28 + $0x3d0] sm:$0xf] }
  0x67   : > { %v445_v59 = vld [vmem:[%s4193_s28 + $0x3d8] sm:$0xf]  ;;  %v447_v60 = vld [vmem:[%s4193_s28 + $0x3e0] sm:$0xf]  ;;  %444 = vst [vmem:[%s4200_s29 + $0x1e8] sm:$0xf] %v443_v58 }
  0x68   : > { %446 = vst [vmem:[%s4200_s29 + $0x1ec] sm:$0xf] %v445_v59  ;;  %448 = vst [vmem:[%s4200_s29 + $0x1f0] sm:$0xf] %v447_v60  ;;  %v449_v61 = vld [vmem:[%s4193_s28 + $0x3e8] sm:$0xf] }
  0x69   : > { %v451_v62 = vld [vmem:[%s4193_s28 + $0x3f0] sm:$0xf]  ;;  %v453_v63 = vld [vmem:[%s4193_s28 + $0x3f8] sm:$0xf]  ;;  %450 = vst [vmem:[%s4200_s29 + $0x1f4] sm:$0xf] %v449_v61 }
  0x6a   : > { %452 = vst [vmem:[%s4200_s29 + $0x1f8] sm:$0xf] %v451_v62  ;;  %454 = vst [vmem:[%s4200_s29 + $0x1fc] sm:$0xf] %v453_v63  ;;  %v455_v0 = vld [vmem:[%s4193_s28 + $0x400] sm:$0xf] }
  0x6b   : > { %v457_v1 = vld [vmem:[%s4193_s28 + $0x408] sm:$0xf]  ;;  %v459_v2 = vld [vmem:[%s4193_s28 + $0x410] sm:$0xf]  ;;  %456 = vst [vmem:[%s4200_s29 + $0x200] sm:$0xf] %v455_v0 }
  0x6c   : > { %458 = vst [vmem:[%s4200_s29 + $0x204] sm:$0xf] %v457_v1  ;;  %460 = vst [vmem:[%s4200_s29 + $0x208] sm:$0xf] %v459_v2  ;;  %v461_v3 = vld [vmem:[%s4193_s28 + $0x418] sm:$0xf] }
  0x6d   : > { %v463_v4 = vld [vmem:[%s4193_s28 + $0x420] sm:$0xf]  ;;  %v465_v5 = vld [vmem:[%s4193_s28 + $0x428] sm:$0xf]  ;;  %462 = vst [vmem:[%s4200_s29 + $0x20c] sm:$0xf] %v461_v3 }
  0x6e   : > { %464 = vst [vmem:[%s4200_s29 + $0x210] sm:$0xf] %v463_v4  ;;  %466 = vst [vmem:[%s4200_s29 + $0x214] sm:$0xf] %v465_v5  ;;  %v467_v6 = vld [vmem:[%s4193_s28 + $0x430] sm:$0xf] }
  0x6f   : > { %v469_v7 = vld [vmem:[%s4193_s28 + $0x438] sm:$0xf]  ;;  %v471_v8 = vld [vmem:[%s4193_s28 + $0x440] sm:$0xf]  ;;  %468 = vst [vmem:[%s4200_s29 + $0x218] sm:$0xf] %v467_v6 }
  0x70   : > { %470 = vst [vmem:[%s4200_s29 + $0x21c] sm:$0xf] %v469_v7  ;;  %472 = vst [vmem:[%s4200_s29 + $0x220] sm:$0xf] %v471_v8  ;;  %v473_v9 = vld [vmem:[%s4193_s28 + $0x448] sm:$0xf] }
  0x71   : > { %v475_v10 = vld [vmem:[%s4193_s28 + $0x450] sm:$0xf]  ;;  %v477_v11 = vld [vmem:[%s4193_s28 + $0x458] sm:$0xf]  ;;  %474 = vst [vmem:[%s4200_s29 + $0x224] sm:$0xf] %v473_v9 }
  0x72   : > { %476 = vst [vmem:[%s4200_s29 + $0x228] sm:$0xf] %v475_v10  ;;  %478 = vst [vmem:[%s4200_s29 + $0x22c] sm:$0xf] %v477_v11  ;;  %v479_v12 = vld [vmem:[%s4193_s28 + $0x460] sm:$0xf] }
  0x73   : > { %v481_v13 = vld [vmem:[%s4193_s28 + $0x468] sm:$0xf]  ;;  %v483_v14 = vld [vmem:[%s4193_s28 + $0x470] sm:$0xf]  ;;  %480 = vst [vmem:[%s4200_s29 + $0x230] sm:$0xf] %v479_v12 }
  0x74   : > { %482 = vst [vmem:[%s4200_s29 + $0x234] sm:$0xf] %v481_v13  ;;  %484 = vst [vmem:[%s4200_s29 + $0x238] sm:$0xf] %v483_v14  ;;  %v485_v15 = vld [vmem:[%s4193_s28 + $0x478] sm:$0xf] }
  0x75   : > { %v487_v16 = vld [vmem:[%s4193_s28 + $0x480] sm:$0xf]  ;;  %v489_v17 = vld [vmem:[%s4193_s28 + $0x488] sm:$0xf]  ;;  %486 = vst [vmem:[%s4200_s29 + $0x23c] sm:$0xf] %v485_v15 }
  0x76   : > { %488 = vst [vmem:[%s4200_s29 + $0x240] sm:$0xf] %v487_v16  ;;  %490 = vst [vmem:[%s4200_s29 + $0x244] sm:$0xf] %v489_v17  ;;  %v491_v18 = vld [vmem:[%s4193_s28 + $0x490] sm:$0xf] }
  0x77   : > { %v493_v19 = vld [vmem:[%s4193_s28 + $0x498] sm:$0xf]  ;;  %v495_v20 = vld [vmem:[%s4193_s28 + $0x4a0] sm:$0xf]  ;;  %492 = vst [vmem:[%s4200_s29 + $0x248] sm:$0xf] %v491_v18 }
  0x78   : > { %494 = vst [vmem:[%s4200_s29 + $0x24c] sm:$0xf] %v493_v19  ;;  %496 = vst [vmem:[%s4200_s29 + $0x250] sm:$0xf] %v495_v20  ;;  %v497_v21 = vld [vmem:[%s4193_s28 + $0x4a8] sm:$0xf] }
  0x79   : > { %v499_v22 = vld [vmem:[%s4193_s28 + $0x4b0] sm:$0xf]  ;;  %v501_v23 = vld [vmem:[%s4193_s28 + $0x4b8] sm:$0xf]  ;;  %498 = vst [vmem:[%s4200_s29 + $0x254] sm:$0xf] %v497_v21 }
  0x7a   : > { %500 = vst [vmem:[%s4200_s29 + $0x258] sm:$0xf] %v499_v22  ;;  %502 = vst [vmem:[%s4200_s29 + $0x25c] sm:$0xf] %v501_v23  ;;  %v503_v24 = vld [vmem:[%s4193_s28 + $0x4c0] sm:$0xf] }
  0x7b   : > { %v505_v25 = vld [vmem:[%s4193_s28 + $0x4c8] sm:$0xf]  ;;  %v507_v26 = vld [vmem:[%s4193_s28 + $0x4d0] sm:$0xf]  ;;  %504 = vst [vmem:[%s4200_s29 + $0x260] sm:$0xf] %v503_v24 }
  0x7c   : > { %506 = vst [vmem:[%s4200_s29 + $0x264] sm:$0xf] %v505_v25  ;;  %508 = vst [vmem:[%s4200_s29 + $0x268] sm:$0xf] %v507_v26  ;;  %v509_v27 = vld [vmem:[%s4193_s28 + $0x4d8] sm:$0xf] }
  0x7d   : > { %v511_v28 = vld [vmem:[%s4193_s28 + $0x4e0] sm:$0xf]  ;;  %v513_v29 = vld [vmem:[%s4193_s28 + $0x4e8] sm:$0xf]  ;;  %510 = vst [vmem:[%s4200_s29 + $0x26c] sm:$0xf] %v509_v27 }
  0x7e   : > { %512 = vst [vmem:[%s4200_s29 + $0x270] sm:$0xf] %v511_v28  ;;  %514 = vst [vmem:[%s4200_s29 + $0x274] sm:$0xf] %v513_v29  ;;  %v515_v30 = vld [vmem:[%s4193_s28 + $0x4f0] sm:$0xf] }
  0x7f   : > { %v517_v31 = vld [vmem:[%s4193_s28 + $0x4f8] sm:$0xf]  ;;  %v519_v32 = vld [vmem:[%s4193_s28 + $0x500] sm:$0xf]  ;;  %516 = vst [vmem:[%s4200_s29 + $0x278] sm:$0xf] %v515_v30 }
  0x80   : > { %518 = vst [vmem:[%s4200_s29 + $0x27c] sm:$0xf] %v517_v31  ;;  %520 = vst [vmem:[%s4200_s29 + $0x280] sm:$0xf] %v519_v32  ;;  %v521_v33 = vld [vmem:[%s4193_s28 + $0x508] sm:$0xf] }
  0x81   : > { %v523_v34 = vld [vmem:[%s4193_s28 + $0x510] sm:$0xf]  ;;  %v525_v35 = vld [vmem:[%s4193_s28 + $0x518] sm:$0xf]  ;;  %522 = vst [vmem:[%s4200_s29 + $0x284] sm:$0xf] %v521_v33 }
  0x82   : > { %524 = vst [vmem:[%s4200_s29 + $0x288] sm:$0xf] %v523_v34  ;;  %526 = vst [vmem:[%s4200_s29 + $0x28c] sm:$0xf] %v525_v35  ;;  %v527_v36 = vld [vmem:[%s4193_s28 + $0x520] sm:$0xf] }
  0x83   : > { %v529_v37 = vld [vmem:[%s4193_s28 + $0x528] sm:$0xf]  ;;  %v531_v38 = vld [vmem:[%s4193_s28 + $0x530] sm:$0xf]  ;;  %528 = vst [vmem:[%s4200_s29 + $0x290] sm:$0xf] %v527_v36 }
  0x84   : > { %530 = vst [vmem:[%s4200_s29 + $0x294] sm:$0xf] %v529_v37  ;;  %532 = vst [vmem:[%s4200_s29 + $0x298] sm:$0xf] %v531_v38  ;;  %v533_v39 = vld [vmem:[%s4193_s28 + $0x538] sm:$0xf] }
  0x85   : > { %v535_v40 = vld [vmem:[%s4193_s28 + $0x540] sm:$0xf]  ;;  %v537_v41 = vld [vmem:[%s4193_s28 + $0x548] sm:$0xf]  ;;  %534 = vst [vmem:[%s4200_s29 + $0x29c] sm:$0xf] %v533_v39 }
  0x86   : > { %536 = vst [vmem:[%s4200_s29 + $0x2a0] sm:$0xf] %v535_v40  ;;  %538 = vst [vmem:[%s4200_s29 + $0x2a4] sm:$0xf] %v537_v41  ;;  %v539_v42 = vld [vmem:[%s4193_s28 + $0x550] sm:$0xf] }
  0x87   : > { %v541_v43 = vld [vmem:[%s4193_s28 + $0x558] sm:$0xf]  ;;  %v543_v44 = vld [vmem:[%s4193_s28 + $0x560] sm:$0xf]  ;;  %540 = vst [vmem:[%s4200_s29 + $0x2a8] sm:$0xf] %v539_v42 }
  0x88   : > { %542 = vst [vmem:[%s4200_s29 + $0x2ac] sm:$0xf] %v541_v43  ;;  %544 = vst [vmem:[%s4200_s29 + $0x2b0] sm:$0xf] %v543_v44  ;;  %v545_v45 = vld [vmem:[%s4193_s28 + $0x568] sm:$0xf] }
  0x89   : > { %v547_v46 = vld [vmem:[%s4193_s28 + $0x570] sm:$0xf]  ;;  %v549_v47 = vld [vmem:[%s4193_s28 + $0x578] sm:$0xf]  ;;  %546 = vst [vmem:[%s4200_s29 + $0x2b4] sm:$0xf] %v545_v45 }
  0x8a   : > { %548 = vst [vmem:[%s4200_s29 + $0x2b8] sm:$0xf] %v547_v46  ;;  %550 = vst [vmem:[%s4200_s29 + $0x2bc] sm:$0xf] %v549_v47  ;;  %v551_v48 = vld [vmem:[%s4193_s28 + $0x580] sm:$0xf] }
  0x8b   : > { %v553_v49 = vld [vmem:[%s4193_s28 + $0x588] sm:$0xf]  ;;  %v555_v50 = vld [vmem:[%s4193_s28 + $0x590] sm:$0xf]  ;;  %552 = vst [vmem:[%s4200_s29 + $0x2c0] sm:$0xf] %v551_v48 }
  0x8c   : > { %554 = vst [vmem:[%s4200_s29 + $0x2c4] sm:$0xf] %v553_v49  ;;  %556 = vst [vmem:[%s4200_s29 + $0x2c8] sm:$0xf] %v555_v50  ;;  %v557_v51 = vld [vmem:[%s4193_s28 + $0x598] sm:$0xf] }
  0x8d   : > { %v559_v52 = vld [vmem:[%s4193_s28 + $0x5a0] sm:$0xf]  ;;  %v561_v53 = vld [vmem:[%s4193_s28 + $0x5a8] sm:$0xf]  ;;  %558 = vst [vmem:[%s4200_s29 + $0x2cc] sm:$0xf] %v557_v51 }
  0x8e   : > { %560 = vst [vmem:[%s4200_s29 + $0x2d0] sm:$0xf] %v559_v52  ;;  %562 = vst [vmem:[%s4200_s29 + $0x2d4] sm:$0xf] %v561_v53  ;;  %v563_v54 = vld [vmem:[%s4193_s28 + $0x5b0] sm:$0xf] }
  0x8f   : > { %v565_v55 = vld [vmem:[%s4193_s28 + $0x5b8] sm:$0xf]  ;;  %v567_v56 = vld [vmem:[%s4193_s28 + $0x5c0] sm:$0xf]  ;;  %564 = vst [vmem:[%s4200_s29 + $0x2d8] sm:$0xf] %v563_v54 }
  0x90   : > { %566 = vst [vmem:[%s4200_s29 + $0x2dc] sm:$0xf] %v565_v55  ;;  %568 = vst [vmem:[%s4200_s29 + $0x2e0] sm:$0xf] %v567_v56  ;;  %v569_v57 = vld [vmem:[%s4193_s28 + $0x5c8] sm:$0xf] }
  0x91   : > { %v571_v58 = vld [vmem:[%s4193_s28 + $0x5d0] sm:$0xf]  ;;  %v573_v59 = vld [vmem:[%s4193_s28 + $0x5d8] sm:$0xf]  ;;  %570 = vst [vmem:[%s4200_s29 + $0x2e4] sm:$0xf] %v569_v57 }
  0x92   : > { %572 = vst [vmem:[%s4200_s29 + $0x2e8] sm:$0xf] %v571_v58  ;;  %574 = vst [vmem:[%s4200_s29 + $0x2ec] sm:$0xf] %v573_v59  ;;  %v575_v60 = vld [vmem:[%s4193_s28 + $0x5e0] sm:$0xf] }
  0x93   : > { %v577_v61 = vld [vmem:[%s4193_s28 + $0x5e8] sm:$0xf]  ;;  %v579_v62 = vld [vmem:[%s4193_s28 + $0x5f0] sm:$0xf]  ;;  %576 = vst [vmem:[%s4200_s29 + $0x2f0] sm:$0xf] %v575_v60 }
  0x94   : > { %578 = vst [vmem:[%s4200_s29 + $0x2f4] sm:$0xf] %v577_v61  ;;  %580 = vst [vmem:[%s4200_s29 + $0x2f8] sm:$0xf] %v579_v62  ;;  %v581_v63 = vld [vmem:[%s4193_s28 + $0x5f8] sm:$0xf] }
  0x95   : > { %v583_v0 = vld [vmem:[%s4193_s28 + $0x600] sm:$0xf]  ;;  %v585_v1 = vld [vmem:[%s4193_s28 + $0x608] sm:$0xf]  ;;  %582 = vst [vmem:[%s4200_s29 + $0x2fc] sm:$0xf] %v581_v63 }
  0x96   : > { %584 = vst [vmem:[%s4200_s29 + $0x300] sm:$0xf] %v583_v0  ;;  %586 = vst [vmem:[%s4200_s29 + $0x304] sm:$0xf] %v585_v1  ;;  %v587_v2 = vld [vmem:[%s4193_s28 + $0x610] sm:$0xf] }
  0x97   : > { %v589_v3 = vld [vmem:[%s4193_s28 + $0x618] sm:$0xf]  ;;  %v591_v4 = vld [vmem:[%s4193_s28 + $0x620] sm:$0xf]  ;;  %588 = vst [vmem:[%s4200_s29 + $0x308] sm:$0xf] %v587_v2 }
  0x98   : > { %590 = vst [vmem:[%s4200_s29 + $0x30c] sm:$0xf] %v589_v3  ;;  %592 = vst [vmem:[%s4200_s29 + $0x310] sm:$0xf] %v591_v4  ;;  %v593_v5 = vld [vmem:[%s4193_s28 + $0x628] sm:$0xf] }
  0x99   : > { %v595_v6 = vld [vmem:[%s4193_s28 + $0x630] sm:$0xf]  ;;  %v597_v7 = vld [vmem:[%s4193_s28 + $0x638] sm:$0xf]  ;;  %594 = vst [vmem:[%s4200_s29 + $0x314] sm:$0xf] %v593_v5 }
  0x9a   : > { %596 = vst [vmem:[%s4200_s29 + $0x318] sm:$0xf] %v595_v6  ;;  %598 = vst [vmem:[%s4200_s29 + $0x31c] sm:$0xf] %v597_v7  ;;  %v599_v8 = vld [vmem:[%s4193_s28 + $0x640] sm:$0xf] }
  0x9b   : > { %v601_v9 = vld [vmem:[%s4193_s28 + $0x648] sm:$0xf]  ;;  %v603_v10 = vld [vmem:[%s4193_s28 + $0x650] sm:$0xf]  ;;  %600 = vst [vmem:[%s4200_s29 + $0x320] sm:$0xf] %v599_v8 }
  0x9c   : > { %602 = vst [vmem:[%s4200_s29 + $0x324] sm:$0xf] %v601_v9  ;;  %604 = vst [vmem:[%s4200_s29 + $0x328] sm:$0xf] %v603_v10  ;;  %v605_v11 = vld [vmem:[%s4193_s28 + $0x658] sm:$0xf] }
  0x9d   : > { %v607_v12 = vld [vmem:[%s4193_s28 + $0x660] sm:$0xf]  ;;  %v609_v13 = vld [vmem:[%s4193_s28 + $0x668] sm:$0xf]  ;;  %606 = vst [vmem:[%s4200_s29 + $0x32c] sm:$0xf] %v605_v11 }
  0x9e   : > { %608 = vst [vmem:[%s4200_s29 + $0x330] sm:$0xf] %v607_v12  ;;  %610 = vst [vmem:[%s4200_s29 + $0x334] sm:$0xf] %v609_v13  ;;  %v611_v14 = vld [vmem:[%s4193_s28 + $0x670] sm:$0xf] }
  0x9f   : > { %v613_v15 = vld [vmem:[%s4193_s28 + $0x678] sm:$0xf]  ;;  %v615_v16 = vld [vmem:[%s4193_s28 + $0x680] sm:$0xf]  ;;  %612 = vst [vmem:[%s4200_s29 + $0x338] sm:$0xf] %v611_v14 }
  0xa0   : > { %614 = vst [vmem:[%s4200_s29 + $0x33c] sm:$0xf] %v613_v15  ;;  %616 = vst [vmem:[%s4200_s29 + $0x340] sm:$0xf] %v615_v16  ;;  %v617_v17 = vld [vmem:[%s4193_s28 + $0x688] sm:$0xf] }
  0xa1   : > { %v619_v18 = vld [vmem:[%s4193_s28 + $0x690] sm:$0xf]  ;;  %v621_v19 = vld [vmem:[%s4193_s28 + $0x698] sm:$0xf]  ;;  %618 = vst [vmem:[%s4200_s29 + $0x344] sm:$0xf] %v617_v17 }
  0xa2   : > { %620 = vst [vmem:[%s4200_s29 + $0x348] sm:$0xf] %v619_v18  ;;  %622 = vst [vmem:[%s4200_s29 + $0x34c] sm:$0xf] %v621_v19  ;;  %v623_v20 = vld [vmem:[%s4193_s28 + $0x6a0] sm:$0xf] }
  0xa3   : > { %v625_v21 = vld [vmem:[%s4193_s28 + $0x6a8] sm:$0xf]  ;;  %v627_v22 = vld [vmem:[%s4193_s28 + $0x6b0] sm:$0xf]  ;;  %624 = vst [vmem:[%s4200_s29 + $0x350] sm:$0xf] %v623_v20 }
  0xa4   : > { %626 = vst [vmem:[%s4200_s29 + $0x354] sm:$0xf] %v625_v21  ;;  %628 = vst [vmem:[%s4200_s29 + $0x358] sm:$0xf] %v627_v22  ;;  %v629_v23 = vld [vmem:[%s4193_s28 + $0x6b8] sm:$0xf] }
  0xa5   : > { %v631_v24 = vld [vmem:[%s4193_s28 + $0x6c0] sm:$0xf]  ;;  %v633_v25 = vld [vmem:[%s4193_s28 + $0x6c8] sm:$0xf]  ;;  %630 = vst [vmem:[%s4200_s29 + $0x35c] sm:$0xf] %v629_v23 }
  0xa6   : > { %632 = vst [vmem:[%s4200_s29 + $0x360] sm:$0xf] %v631_v24  ;;  %634 = vst [vmem:[%s4200_s29 + $0x364] sm:$0xf] %v633_v25  ;;  %v635_v26 = vld [vmem:[%s4193_s28 + $0x6d0] sm:$0xf] }
  0xa7   : > { %v637_v27 = vld [vmem:[%s4193_s28 + $0x6d8] sm:$0xf]  ;;  %v639_v28 = vld [vmem:[%s4193_s28 + $0x6e0] sm:$0xf]  ;;  %636 = vst [vmem:[%s4200_s29 + $0x368] sm:$0xf] %v635_v26 }
  0xa8   : > { %638 = vst [vmem:[%s4200_s29 + $0x36c] sm:$0xf] %v637_v27  ;;  %640 = vst [vmem:[%s4200_s29 + $0x370] sm:$0xf] %v639_v28  ;;  %v641_v29 = vld [vmem:[%s4193_s28 + $0x6e8] sm:$0xf] }
  0xa9   : > { %v643_v30 = vld [vmem:[%s4193_s28 + $0x6f0] sm:$0xf]  ;;  %v645_v31 = vld [vmem:[%s4193_s28 + $0x6f8] sm:$0xf]  ;;  %642 = vst [vmem:[%s4200_s29 + $0x374] sm:$0xf] %v641_v29 }
  0xaa   : > { %644 = vst [vmem:[%s4200_s29 + $0x378] sm:$0xf] %v643_v30  ;;  %646 = vst [vmem:[%s4200_s29 + $0x37c] sm:$0xf] %v645_v31  ;;  %v647_v32 = vld [vmem:[%s4193_s28 + $0x700] sm:$0xf] }
  0xab   : > { %v649_v33 = vld [vmem:[%s4193_s28 + $0x708] sm:$0xf]  ;;  %v651_v34 = vld [vmem:[%s4193_s28 + $0x710] sm:$0xf]  ;;  %648 = vst [vmem:[%s4200_s29 + $0x380] sm:$0xf] %v647_v32 }
  0xac   : > { %650 = vst [vmem:[%s4200_s29 + $0x384] sm:$0xf] %v649_v33  ;;  %652 = vst [vmem:[%s4200_s29 + $0x388] sm:$0xf] %v651_v34  ;;  %v653_v35 = vld [vmem:[%s4193_s28 + $0x718] sm:$0xf] }
  0xad   : > { %v655_v36 = vld [vmem:[%s4193_s28 + $0x720] sm:$0xf]  ;;  %v657_v37 = vld [vmem:[%s4193_s28 + $0x728] sm:$0xf]  ;;  %654 = vst [vmem:[%s4200_s29 + $0x38c] sm:$0xf] %v653_v35 }
  0xae   : > { %656 = vst [vmem:[%s4200_s29 + $0x390] sm:$0xf] %v655_v36  ;;  %658 = vst [vmem:[%s4200_s29 + $0x394] sm:$0xf] %v657_v37  ;;  %v659_v38 = vld [vmem:[%s4193_s28 + $0x730] sm:$0xf] }
  0xaf   : > { %v661_v39 = vld [vmem:[%s4193_s28 + $0x738] sm:$0xf]  ;;  %v663_v40 = vld [vmem:[%s4193_s28 + $0x740] sm:$0xf]  ;;  %660 = vst [vmem:[%s4200_s29 + $0x398] sm:$0xf] %v659_v38 }
  0xb0   : > { %662 = vst [vmem:[%s4200_s29 + $0x39c] sm:$0xf] %v661_v39  ;;  %664 = vst [vmem:[%s4200_s29 + $0x3a0] sm:$0xf] %v663_v40  ;;  %v665_v41 = vld [vmem:[%s4193_s28 + $0x748] sm:$0xf] }
  0xb1   : > { %v667_v42 = vld [vmem:[%s4193_s28 + $0x750] sm:$0xf]  ;;  %v669_v43 = vld [vmem:[%s4193_s28 + $0x758] sm:$0xf]  ;;  %666 = vst [vmem:[%s4200_s29 + $0x3a4] sm:$0xf] %v665_v41 }
  0xb2   : > { %668 = vst [vmem:[%s4200_s29 + $0x3a8] sm:$0xf] %v667_v42  ;;  %670 = vst [vmem:[%s4200_s29 + $0x3ac] sm:$0xf] %v669_v43  ;;  %v671_v44 = vld [vmem:[%s4193_s28 + $0x760] sm:$0xf] }
  0xb3   : > { %v673_v45 = vld [vmem:[%s4193_s28 + $0x768] sm:$0xf]  ;;  %v675_v46 = vld [vmem:[%s4193_s28 + $0x770] sm:$0xf]  ;;  %672 = vst [vmem:[%s4200_s29 + $0x3b0] sm:$0xf] %v671_v44 }
  0xb4   : > { %674 = vst [vmem:[%s4200_s29 + $0x3b4] sm:$0xf] %v673_v45  ;;  %676 = vst [vmem:[%s4200_s29 + $0x3b8] sm:$0xf] %v675_v46  ;;  %v677_v47 = vld [vmem:[%s4193_s28 + $0x778] sm:$0xf] }
  0xb5   : > { %v679_v48 = vld [vmem:[%s4193_s28 + $0x780] sm:$0xf]  ;;  %v681_v49 = vld [vmem:[%s4193_s28 + $0x788] sm:$0xf]  ;;  %678 = vst [vmem:[%s4200_s29 + $0x3bc] sm:$0xf] %v677_v47 }
  0xb6   : > { %680 = vst [vmem:[%s4200_s29 + $0x3c0] sm:$0xf] %v679_v48  ;;  %682 = vst [vmem:[%s4200_s29 + $0x3c4] sm:$0xf] %v681_v49  ;;  %v683_v50 = vld [vmem:[%s4193_s28 + $0x790] sm:$0xf] }
  0xb7   : > { %v685_v51 = vld [vmem:[%s4193_s28 + $0x798] sm:$0xf]  ;;  %v687_v52 = vld [vmem:[%s4193_s28 + $0x7a0] sm:$0xf]  ;;  %684 = vst [vmem:[%s4200_s29 + $0x3c8] sm:$0xf] %v683_v50 }
  0xb8   : > { %686 = vst [vmem:[%s4200_s29 + $0x3cc] sm:$0xf] %v685_v51  ;;  %688 = vst [vmem:[%s4200_s29 + $0x3d0] sm:$0xf] %v687_v52  ;;  %v689_v53 = vld [vmem:[%s4193_s28 + $0x7a8] sm:$0xf] }
  0xb9   : > { %v691_v54 = vld [vmem:[%s4193_s28 + $0x7b0] sm:$0xf]  ;;  %v693_v55 = vld [vmem:[%s4193_s28 + $0x7b8] sm:$0xf]  ;;  %690 = vst [vmem:[%s4200_s29 + $0x3d4] sm:$0xf] %v689_v53 }
  0xba   : > { %692 = vst [vmem:[%s4200_s29 + $0x3d8] sm:$0xf] %v691_v54  ;;  %694 = vst [vmem:[%s4200_s29 + $0x3dc] sm:$0xf] %v693_v55  ;;  %v695_v56 = vld [vmem:[%s4193_s28 + $0x7c0] sm:$0xf] }
  0xbb   : > { %v697_v57 = vld [vmem:[%s4193_s28 + $0x7c8] sm:$0xf]  ;;  %v699_v58 = vld [vmem:[%s4193_s28 + $0x7d0] sm:$0xf]  ;;  %696 = vst [vmem:[%s4200_s29 + $0x3e0] sm:$0xf] %v695_v56 }
  0xbc   : > { %698 = vst [vmem:[%s4200_s29 + $0x3e4] sm:$0xf] %v697_v57  ;;  %700 = vst [vmem:[%s4200_s29 + $0x3e8] sm:$0xf] %v699_v58  ;;  %v701_v59 = vld [vmem:[%s4193_s28 + $0x7d8] sm:$0xf] }
  0xbd   : > { %v703_v60 = vld [vmem:[%s4193_s28 + $0x7e0] sm:$0xf]  ;;  %v705_v61 = vld [vmem:[%s4193_s28 + $0x7e8] sm:$0xf]  ;;  %702 = vst [vmem:[%s4200_s29 + $0x3ec] sm:$0xf] %v701_v59 }
  0xbe   : > { %704 = vst [vmem:[%s4200_s29 + $0x3f0] sm:$0xf] %v703_v60  ;;  %706 = vst [vmem:[%s4200_s29 + $0x3f4] sm:$0xf] %v705_v61  ;;  %v707_v62 = vld [vmem:[%s4193_s28 + $0x7f0] sm:$0xf] }
  0xbf   : > { %v709_v63 = vld [vmem:[%s4193_s28 + $0x7f8] sm:$0xf]  ;;  %v711_v0 = vld [vmem:[%s4193_s28 + $0x800] sm:$0xf]  ;;  %708 = vst [vmem:[%s4200_s29 + $0x3f8] sm:$0xf] %v707_v62 }
  0xc0   : > { %710 = vst [vmem:[%s4200_s29 + $0x3fc] sm:$0xf] %v709_v63  ;;  %712 = vst [vmem:[%s4200_s29 + $0x400] sm:$0xf] %v711_v0  ;;  %v713_v1 = vld [vmem:[%s4193_s28 + $0x808] sm:$0xf] }
  0xc1   : > { %v715_v2 = vld [vmem:[%s4193_s28 + $0x810] sm:$0xf]  ;;  %v717_v3 = vld [vmem:[%s4193_s28 + $0x818] sm:$0xf]  ;;  %714 = vst [vmem:[%s4200_s29 + $0x404] sm:$0xf] %v713_v1 }
  0xc2   : > { %716 = vst [vmem:[%s4200_s29 + $0x408] sm:$0xf] %v715_v2  ;;  %718 = vst [vmem:[%s4200_s29 + $0x40c] sm:$0xf] %v717_v3  ;;  %v719_v4 = vld [vmem:[%s4193_s28 + $0x820] sm:$0xf] }
  0xc3   : > { %v721_v5 = vld [vmem:[%s4193_s28 + $0x828] sm:$0xf]  ;;  %v723_v6 = vld [vmem:[%s4193_s28 + $0x830] sm:$0xf]  ;;  %720 = vst [vmem:[%s4200_s29 + $0x410] sm:$0xf] %v719_v4 }
  0xc4   : > { %722 = vst [vmem:[%s4200_s29 + $0x414] sm:$0xf] %v721_v5  ;;  %724 = vst [vmem:[%s4200_s29 + $0x418] sm:$0xf] %v723_v6  ;;  %v725_v7 = vld [vmem:[%s4193_s28 + $0x838] sm:$0xf] }
  0xc5   : > { %v727_v8 = vld [vmem:[%s4193_s28 + $0x840] sm:$0xf]  ;;  %v729_v9 = vld [vmem:[%s4193_s28 + $0x848] sm:$0xf]  ;;  %726 = vst [vmem:[%s4200_s29 + $0x41c] sm:$0xf] %v725_v7 }
  0xc6   : > { %728 = vst [vmem:[%s4200_s29 + $0x420] sm:$0xf] %v727_v8  ;;  %730 = vst [vmem:[%s4200_s29 + $0x424] sm:$0xf] %v729_v9  ;;  %v731_v10 = vld [vmem:[%s4193_s28 + $0x850] sm:$0xf] }
  0xc7   : > { %v733_v11 = vld [vmem:[%s4193_s28 + $0x858] sm:$0xf]  ;;  %v735_v12 = vld [vmem:[%s4193_s28 + $0x860] sm:$0xf]  ;;  %732 = vst [vmem:[%s4200_s29 + $0x428] sm:$0xf] %v731_v10 }
  0xc8   : > { %734 = vst [vmem:[%s4200_s29 + $0x42c] sm:$0xf] %v733_v11  ;;  %736 = vst [vmem:[%s4200_s29 + $0x430] sm:$0xf] %v735_v12  ;;  %v737_v13 = vld [vmem:[%s4193_s28 + $0x868] sm:$0xf] }
  0xc9   : > { %v739_v14 = vld [vmem:[%s4193_s28 + $0x870] sm:$0xf]  ;;  %v741_v15 = vld [vmem:[%s4193_s28 + $0x878] sm:$0xf]  ;;  %738 = vst [vmem:[%s4200_s29 + $0x434] sm:$0xf] %v737_v13 }
  0xca   : > { %740 = vst [vmem:[%s4200_s29 + $0x438] sm:$0xf] %v739_v14  ;;  %742 = vst [vmem:[%s4200_s29 + $0x43c] sm:$0xf] %v741_v15  ;;  %v743_v16 = vld [vmem:[%s4193_s28 + $0x880] sm:$0xf] }
  0xcb   : > { %v745_v17 = vld [vmem:[%s4193_s28 + $0x888] sm:$0xf]  ;;  %v747_v18 = vld [vmem:[%s4193_s28 + $0x890] sm:$0xf]  ;;  %744 = vst [vmem:[%s4200_s29 + $0x440] sm:$0xf] %v743_v16 }
  0xcc   : > { %746 = vst [vmem:[%s4200_s29 + $0x444] sm:$0xf] %v745_v17  ;;  %748 = vst [vmem:[%s4200_s29 + $0x448] sm:$0xf] %v747_v18  ;;  %v749_v19 = vld [vmem:[%s4193_s28 + $0x898] sm:$0xf] }
  0xcd   : > { %v751_v20 = vld [vmem:[%s4193_s28 + $0x8a0] sm:$0xf]  ;;  %v753_v21 = vld [vmem:[%s4193_s28 + $0x8a8] sm:$0xf]  ;;  %750 = vst [vmem:[%s4200_s29 + $0x44c] sm:$0xf] %v749_v19 }
  0xce   : > { %752 = vst [vmem:[%s4200_s29 + $0x450] sm:$0xf] %v751_v20  ;;  %754 = vst [vmem:[%s4200_s29 + $0x454] sm:$0xf] %v753_v21  ;;  %v755_v22 = vld [vmem:[%s4193_s28 + $0x8b0] sm:$0xf] }
  0xcf   : > { %v757_v23 = vld [vmem:[%s4193_s28 + $0x8b8] sm:$0xf]  ;;  %v759_v24 = vld [vmem:[%s4193_s28 + $0x8c0] sm:$0xf]  ;;  %756 = vst [vmem:[%s4200_s29 + $0x458] sm:$0xf] %v755_v22 }
  0xd0   : > { %758 = vst [vmem:[%s4200_s29 + $0x45c] sm:$0xf] %v757_v23  ;;  %760 = vst [vmem:[%s4200_s29 + $0x460] sm:$0xf] %v759_v24  ;;  %v761_v25 = vld [vmem:[%s4193_s28 + $0x8c8] sm:$0xf] }
  0xd1   : > { %v763_v26 = vld [vmem:[%s4193_s28 + $0x8d0] sm:$0xf]  ;;  %v765_v27 = vld [vmem:[%s4193_s28 + $0x8d8] sm:$0xf]  ;;  %762 = vst [vmem:[%s4200_s29 + $0x464] sm:$0xf] %v761_v25 }
  0xd2   : > { %764 = vst [vmem:[%s4200_s29 + $0x468] sm:$0xf] %v763_v26  ;;  %766 = vst [vmem:[%s4200_s29 + $0x46c] sm:$0xf] %v765_v27  ;;  %v767_v28 = vld [vmem:[%s4193_s28 + $0x8e0] sm:$0xf] }
  0xd3   : > { %v769_v29 = vld [vmem:[%s4193_s28 + $0x8e8] sm:$0xf]  ;;  %v771_v30 = vld [vmem:[%s4193_s28 + $0x8f0] sm:$0xf]  ;;  %768 = vst [vmem:[%s4200_s29 + $0x470] sm:$0xf] %v767_v28 }
  0xd4   : > { %770 = vst [vmem:[%s4200_s29 + $0x474] sm:$0xf] %v769_v29  ;;  %772 = vst [vmem:[%s4200_s29 + $0x478] sm:$0xf] %v771_v30  ;;  %v773_v31 = vld [vmem:[%s4193_s28 + $0x8f8] sm:$0xf] }
  0xd5   : > { %v775_v32 = vld [vmem:[%s4193_s28 + $0x900] sm:$0xf]  ;;  %v777_v33 = vld [vmem:[%s4193_s28 + $0x908] sm:$0xf]  ;;  %774 = vst [vmem:[%s4200_s29 + $0x47c] sm:$0xf] %v773_v31 }
  0xd6   : > { %776 = vst [vmem:[%s4200_s29 + $0x480] sm:$0xf] %v775_v32  ;;  %778 = vst [vmem:[%s4200_s29 + $0x484] sm:$0xf] %v777_v33  ;;  %v779_v34 = vld [vmem:[%s4193_s28 + $0x910] sm:$0xf] }
  0xd7   : > { %v781_v35 = vld [vmem:[%s4193_s28 + $0x918] sm:$0xf]  ;;  %v783_v36 = vld [vmem:[%s4193_s28 + $0x920] sm:$0xf]  ;;  %780 = vst [vmem:[%s4200_s29 + $0x488] sm:$0xf] %v779_v34 }
  0xd8   : > { %782 = vst [vmem:[%s4200_s29 + $0x48c] sm:$0xf] %v781_v35  ;;  %784 = vst [vmem:[%s4200_s29 + $0x490] sm:$0xf] %v783_v36  ;;  %v785_v37 = vld [vmem:[%s4193_s28 + $0x928] sm:$0xf] }
  0xd9   : > { %v787_v38 = vld [vmem:[%s4193_s28 + $0x930] sm:$0xf]  ;;  %v789_v39 = vld [vmem:[%s4193_s28 + $0x938] sm:$0xf]  ;;  %786 = vst [vmem:[%s4200_s29 + $0x494] sm:$0xf] %v785_v37 }
  0xda   : > { %788 = vst [vmem:[%s4200_s29 + $0x498] sm:$0xf] %v787_v38  ;;  %790 = vst [vmem:[%s4200_s29 + $0x49c] sm:$0xf] %v789_v39  ;;  %v791_v40 = vld [vmem:[%s4193_s28 + $0x940] sm:$0xf] }
  0xdb   : > { %v793_v41 = vld [vmem:[%s4193_s28 + $0x948] sm:$0xf]  ;;  %v795_v42 = vld [vmem:[%s4193_s28 + $0x950] sm:$0xf]  ;;  %792 = vst [vmem:[%s4200_s29 + $0x4a0] sm:$0xf] %v791_v40 }
  0xdc   : > { %794 = vst [vmem:[%s4200_s29 + $0x4a4] sm:$0xf] %v793_v41  ;;  %796 = vst [vmem:[%s4200_s29 + $0x4a8] sm:$0xf] %v795_v42  ;;  %v797_v43 = vld [vmem:[%s4193_s28 + $0x958] sm:$0xf] }
  0xdd   : > { %v799_v44 = vld [vmem:[%s4193_s28 + $0x960] sm:$0xf]  ;;  %v801_v45 = vld [vmem:[%s4193_s28 + $0x968] sm:$0xf]  ;;  %798 = vst [vmem:[%s4200_s29 + $0x4ac] sm:$0xf] %v797_v43 }
  0xde   : > { %800 = vst [vmem:[%s4200_s29 + $0x4b0] sm:$0xf] %v799_v44  ;;  %802 = vst [vmem:[%s4200_s29 + $0x4b4] sm:$0xf] %v801_v45  ;;  %v803_v46 = vld [vmem:[%s4193_s28 + $0x970] sm:$0xf] }
  0xdf   : > { %v805_v47 = vld [vmem:[%s4193_s28 + $0x978] sm:$0xf]  ;;  %804 = vst [vmem:[%s4200_s29 + $0x4b8] sm:$0xf] %v803_v46 }
  0xe0   : > { %806 = vst [vmem:[%s4200_s29 + $0x4bc] sm:$0xf] %v805_v47 }
  0xe1 PF: > { %p3445_p8 = scmp.ge.s32.totalorder %s4121_s16, 1  ;;  %p1442_p9 = scmp.lt.s32.totalorder %s4121_s16, 3 }
  0xe3   : > { %p1443_p10 = pnand %p3445_p8, %p1442_p9 }
  0xe4   : > { %s1449_s30 = sand.u32 (!%p1443_p10), 1, %s4105_s12   ;;  %v3937_v48 = vld [vmem:[%s5049_s0 + $0x4] ss:$76 sps:$4 sm:$0xff] (!%p1443_p10)   ;;  %v3940_v49 = vld [vmem:[%s5049_s0 + $0xc] ss:$76 sps:$4 sm:$0xff] (!%p1443_p10)   ;;  %vm4124_vm0 = vmmov (!%p1443_p10), 0  }
  0xe5   : > { %1446 = sbr.rel (%p1443_p10) target bundleno = 631 (0x277), region = 69  ;;  %2874 = vmatprep.mubr.bf16.mxu0 (!%p1443_p10), %v3937_v48  ;;  %2915 = vmatprep.mubr.bf16.mxu1 (!%p1443_p10), %v3940_v49  ;;  %v3935_v16 = vld [vmem:[%s5049_s0] ss:$76 sps:$4 sm:$0xff] (!%p1443_p10)   ;;  %v3938_v18 = vld [vmem:[%s5049_s0 + $0x8] ss:$76 sps:$4 sm:$0xff] (!%p1443_p10)   ;;  %p1497_p11 = scmp.lt.s32.totalorder (!%p1443_p10), %s4113_s14, 1 }
  0xe6   : > { %s3860_s4 = smul.u32 (!%p1443_p10), 1216, %s1449_s30  ;;  %v3974_v20 = vld [vmem:[%s5049_s0 + $0x14] ss:$76 sps:$4 sm:$0xff] (!%p1443_p10)   ;;  %s3446_s19 = sshll.u32 (!%p1443_p10), %s1449_s30, 3 }
  0xe7   : > { %s1483_s20 = scalar_lea.vmem (!%p1443_p10), [#allocation4], %s3446_s19 }
  0xe8   : > { %s4816_s9 = scalar_lea.vmem (!%p1443_p10), [#allocation3], %s3860_s4 }
  0xe9   : > { %v3903_v50 = vld [vmem:[%s4816_s9 + $0x40] sm:$0xff] (!%p1443_p10)   ;;  %v3907_v54 = vld [vmem:[%s4816_s9 + $0x48] sm:$0xff] (!%p1443_p10)   ;;  %v3911_v58 = vld [vmem:[%s4816_s9 + $0x50] sm:$0xff] (!%p1443_p10)  }
  0xea   : > { %v3904_v51 = vld [vmem:[%s4816_s9 + $0xc0] sm:$0xff] (!%p1443_p10)   ;;  %3632 = vmatprep.subr.bf16.mxu0 (!%p1443_p10), %v3903_v50  ;;  %v3908_v55 = vld [vmem:[%s4816_s9 + $0xc8] sm:$0xff] (!%p1443_p10)   ;;  %v3912_v59 = vld [vmem:[%s4816_s9 + $0xd0] sm:$0xff] (!%p1443_p10)  }
  0xeb   : > { %v3905_v52 = vld [vmem:[%s4816_s9] sm:$0xff] (!%p1443_p10)   ;;  %3654 = vmatprep.subr.bf16.mxu1 (!%p1443_p10), %v3904_v51  ;;  %v3909_v56 = vld [vmem:[%s4816_s9 + $0x8] sm:$0xff] (!%p1443_p10)   ;;  %v3913_v60 = vld [vmem:[%s4816_s9 + $0x10] sm:$0xff] (!%p1443_p10)  }
  0xec   : > { %v3906_v53 = vld [vmem:[%s4816_s9 + $0x80] sm:$0xff]   ;;  %3633 = vmatpush3.bf16.msra.mxu0 %v3905_v52  ;;  %v3910_v57 = vld [vmem:[%s4816_s9 + $0x88] sm:$0xff]   ;;  %v3914_v61 = vld [vmem:[%s4816_s9 + $0x90] sm:$0xff]   ;;  %s3622_s23 = sshll.u32 (%p4180_p6), %s4113_s14, 2 }
  0xed   : > { %3655 = vmatpush3.bf16.msra.mxu1 %v3906_v53  ;;  %3634 = vmatprep.subr.bf16.mxu0 %v3907_v54  ;;  %v3915_v62 = vld [vmem:[%s4816_s9 + $0x58] sm:$0xff]   ;;  %v3919_v2 = vld [vmem:[%s4816_s9 + $0x60] sm:$0xff]   ;;  %v3923_v6 = vld [vmem:[%s4816_s9 + $0x68] sm:$0xff]   ;;  %s3293_s26 = scalar_lea.vmem (%p4180_p6), %s5052_s3, %s3622_s23 }
  0xee   : > { %3656 = vmatprep.subr.bf16.mxu1 %v3908_v55  ;;  %v3916_v63 = vld [vmem:[%s4816_s9 + $0xd8] sm:$0xff]   ;;  %v3920_v3 = vld [vmem:[%s4816_s9 + $0xe0] sm:$0xff]   ;;  %v3924_v7 = vld [vmem:[%s4816_s9 + $0xe8] sm:$0xff]  }
  0xef   : > { %v3917_v0 = vld [vmem:[%s4816_s9 + $0x18] sm:$0xff]   ;;  %v3921_v4 = vld [vmem:[%s4816_s9 + $0x20] sm:$0xff]   ;;  %v3925_v8 = vld [vmem:[%s4816_s9 + $0x28] sm:$0xff]  }
  0xf0   : > { %3635 = vmatpush3.bf16.msra.mxu0 %v3909_v56  ;;  %v3918_v1 = vld [vmem:[%s4816_s9 + $0x98] sm:$0xff]   ;;  %v3922_v5 = vld [vmem:[%s4816_s9 + $0xa0] sm:$0xff]   ;;  %v3926_v9 = vld [vmem:[%s4816_s9 + $0xa8] sm:$0xff]  }
  0xf1   : > { %3657 = vmatpush3.bf16.msra.mxu1 %v3910_v57  ;;  %3636 = vmatprep.subr.bf16.mxu0 %v3911_v58  ;;  %v3927_v10 = vld [vmem:[%s4816_s9 + $0x70] sm:$0xff]   ;;  %v3931_v14 = vld [vmem:[%s4816_s9 + $0x78] sm:$0xff]   ;;  %v3941_v21 = vld [vmem:[%s4816_s9 + $0x140] sm:$0xff]  }
  0xf2   : > { %3658 = vmatprep.subr.bf16.mxu1 %v3912_v59  ;;  %v3928_v11 = vld [vmem:[%s4816_s9 + $0xf0] sm:$0xff]   ;;  %v3932_v15 = vld [vmem:[%s4816_s9 + $0xf8] sm:$0xff]   ;;  %v3942_v22 = vld [vmem:[%s4816_s9 + $0x100] sm:$0xff]  }
  0xf3   : > { %v3929_v12 = vld [vmem:[%s4816_s9 + $0x30] sm:$0xff]   ;;  %v3933_v17 = vld [vmem:[%s4816_s9 + $0x38] sm:$0xff]   ;;  %v3943_v23 = vld [vmem:[%s4816_s9 + $0x1c0] sm:$0xff]  }
  0xf4   : > { %3637 = vmatpush3.bf16.msra.mxu0 %v3913_v60  ;;  %v3930_v13 = vld [vmem:[%s4816_s9 + $0xb0] sm:$0xff]   ;;  %v3934_v19 = vld [vmem:[%s4816_s9 + $0xb8] sm:$0xff]   ;;  %v3944_v24 = vld [vmem:[%s4816_s9 + $0x180] sm:$0xff]  }
  0xf5   : > { %3659 = vmatpush3.bf16.msra.mxu1 %v3914_v61  ;;  %3638 = vmatprep.subr.bf16.mxu0 %v3915_v62  ;;  %v3945_v25 = vld [vmem:[%s4816_s9 + $0x148] sm:$0xff]   ;;  %v3949_v29 = vld [vmem:[%s4816_s9 + $0x150] sm:$0xff]   ;;  %v3953_v33 = vld [vmem:[%s4816_s9 + $0x158] sm:$0xff]  }
  0xf6   : > { %3660 = vmatprep.subr.bf16.mxu1 %v3916_v63  ;;  %v3946_v26 = vld [vmem:[%s4816_s9 + $0x108] sm:$0xff]   ;;  %v3950_v30 = vld [vmem:[%s4816_s9 + $0x110] sm:$0xff]   ;;  %v3954_v34 = vld [vmem:[%s4816_s9 + $0x118] sm:$0xff]  }
  0xf7   : > { %v3947_v27 = vld [vmem:[%s4816_s9 + $0x1c8] sm:$0xff]   ;;  %v3951_v31 = vld [vmem:[%s4816_s9 + $0x1d0] sm:$0xff]   ;;  %v3955_v35 = vld [vmem:[%s4816_s9 + $0x1d8] sm:$0xff]  }
  0xf8   : > { %3639 = vmatpush3.bf16.msra.mxu0 %v3917_v0  ;;  %v3948_v28 = vld [vmem:[%s4816_s9 + $0x188] sm:$0xff]   ;;  %v3952_v32 = vld [vmem:[%s4816_s9 + $0x190] sm:$0xff]   ;;  %v3956_v36 = vld [vmem:[%s4816_s9 + $0x198] sm:$0xff]  }
  0xf9   : > { %3661 = vmatpush3.bf16.msra.mxu1 %v3918_v1  ;;  %3640 = vmatprep.subr.bf16.mxu0 %v3919_v2  ;;  %v3957_v37 = vld [vmem:[%s4816_s9 + $0x160] sm:$0xff]   ;;  %v3961_v41 = vld [vmem:[%s4816_s9 + $0x168] sm:$0xff]   ;;  %v3965_v45 = vld [vmem:[%s4816_s9 + $0x170] sm:$0xff]  }
  0xfa   : > { %3662 = vmatprep.subr.bf16.mxu1 %v3920_v3  ;;  %v3958_v38 = vld [vmem:[%s4816_s9 + $0x120] sm:$0xff]   ;;  %v3962_v42 = vld [vmem:[%s4816_s9 + $0x128] sm:$0xff]   ;;  %v3966_v46 = vld [vmem:[%s4816_s9 + $0x130] sm:$0xff]  }
  0xfb   : > { %v3959_v39 = vld [vmem:[%s4816_s9 + $0x1e0] sm:$0xff]   ;;  %v3963_v43 = vld [vmem:[%s4816_s9 + $0x1e8] sm:$0xff]   ;;  %v3967_v47 = vld [vmem:[%s4816_s9 + $0x1f0] sm:$0xff]  }
  0xfc   : > { %3641 = vmatpush3.bf16.msra.mxu0 %v3921_v4  ;;  %v3960_v40 = vld [vmem:[%s4816_s9 + $0x1a0] sm:$0xff]   ;;  %v3964_v44 = vld [vmem:[%s4816_s9 + $0x1a8] sm:$0xff]   ;;  %v3968_v48 = vld [vmem:[%s4816_s9 + $0x1b0] sm:$0xff]  }
  0xfd   : > { %3663 = vmatpush3.bf16.msra.mxu1 %v3922_v5  ;;  %3642 = vmatprep.subr.bf16.mxu0 %v3923_v6  ;;  %v3969_v49 = vld [vmem:[%s4816_s9 + $0x178] sm:$0xff]   ;;  %v3976_v54 = vld [vmem:[%s4816_s9 + $0x240] sm:$0xff]   ;;  %v3983_v60 = vld [vmem:[%s4816_s9 + $0x248] sm:$0xff]  }
  0xfe   : > { %3664 = vmatprep.subr.bf16.mxu1 %v3924_v7  ;;  %v3970_v50 = vld [vmem:[%s4816_s9 + $0x138] sm:$0xff]   ;;  %v3980_v57 = vld [vmem:[%s4816_s9 + $0x200] sm:$0xff]   ;;  %v3984_v61 = vld [vmem:[%s4816_s9 + $0x208] sm:$0xff]  }
  0xff   : > { %v3972_v51 = vld [vmem:[%s5049_s0 + $0x10] ss:$76 sps:$4 sm:$0xff]   ;;  %v3977_v55 = vld [vmem:[%s5049_s0 + $0x18] ss:$76 sps:$4 sm:$0xff]   ;;  %v3985_v62 = vld [vmem:[%s4816_s9 + $0x2c8] sm:$0xff]  }
 0x100   : > { %3643 = vmatpush3.bf16.msra.mxu0 %v3925_v8  ;;  %v3971_v52 = vld [vmem:[%s4816_s9 + $0x1f8] sm:$0xff]   ;;  %v3981_v58 = vld [vmem:[%s4816_s9 + $0x2c0] sm:$0xff]   ;;  %v3986_v63 = vld [vmem:[%s4816_s9 + $0x288] sm:$0xff]  }
 0x101   : > { %3665 = vmatpush3.bf16.msra.mxu1 %v3926_v9  ;;  %3644 = vmatprep.subr.bf16.mxu0 %v3927_v10  ;;  %v3975_v53 = vld [vmem:[%s4816_s9 + $0x1b8] sm:$0xff]   ;;  %v3982_v59 = vld [vmem:[%s4816_s9 + $0x280] sm:$0xff]   ;;  %v3987_v0 = vld [vmem:[%s4816_s9 + $0x250] sm:$0xff]  }
 0x102   : > { %3666 = vmatprep.subr.bf16.mxu1 %v3928_v11  ;;  %v3979_v56 = vld [vmem:[%s5049_s0 + $0x1c] ss:$76 sps:$4 sm:$0xff]   ;;  %v3988_v1 = vld [vmem:[%s4816_s9 + $0x210] sm:$0xff]   ;;  %v3995_v8 = vld [vmem:[%s4816_s9 + $0x260] sm:$0xff]  }
 0x103   : > { %v3989_v2 = vld [vmem:[%s4816_s9 + $0x2d0] sm:$0xff]   ;;  %v3991_v4 = vld [vmem:[%s4816_s9 + $0x258] sm:$0xff]   ;;  %v3996_v9 = vld [vmem:[%s4816_s9 + $0x220] sm:$0xff]  }
 0x104   : > { %3645 = vmatpush3.bf16.msra.mxu0 %v3929_v12  ;;  %v3990_v3 = vld [vmem:[%s4816_s9 + $0x290] sm:$0xff]   ;;  %v3992_v5 = vld [vmem:[%s4816_s9 + $0x218] sm:$0xff]   ;;  %v3997_v10 = vld [vmem:[%s4816_s9 + $0x2e0] sm:$0xff]  }
 0x105   : > { %3667 = vmatpush3.bf16.msra.mxu1 %v3930_v13  ;;  %3646 = vmatprep.subr.bf16.mxu0 %v3931_v14  ;;  %v3993_v6 = vld [vmem:[%s4816_s9 + $0x2d8] sm:$0xff]   ;;  %v3998_v11 = vld [vmem:[%s4816_s9 + $0x2a0] sm:$0xff]   ;;  %v3999_v12 = vld [vmem:[%s4816_s9 + $0x268] sm:$0xff]  }
 0x106   : > { %3668 = vmatprep.subr.bf16.mxu1 %v3932_v15  ;;  %v3994_v7 = vld [vmem:[%s4816_s9 + $0x298] sm:$0xff]   ;;  %v4000_v13 = vld [vmem:[%s4816_s9 + $0x228] sm:$0xff]  }
 0x107   : > { %v4001_v14 = vld [vmem:[%s4816_s9 + $0x2e8] sm:$0xff]  }
 0x108   : > { %3647 = vmatpush3.bf16.msra.mxu0 %v3933_v17  ;;  %v4002_v15 = vld [vmem:[%s4816_s9 + $0x2a8] sm:$0xff]   ;;  %v4004_v17 = vld [vmem:[%s4816_s9 + $0x230] sm:$0xff]  }
 0x109   : > { %3669 = vmatpush3.bf16.msra.mxu1 %v3934_v19  ;;  %3676 = vmatprep.subr.bf16.mxu0 %v3941_v21  ;;  %v4006_v19 = vld [vmem:[%s4816_s9 + $0x2b0] sm:$0xff]   ;;  %v4008_v21 = vld [vmem:[%s4816_s9 + $0x238] sm:$0xff]  }
 0x10a   : > { %3698 = vmatprep.subr.bf16.mxu1 %v3943_v23  ;;  %v4010_v23 = vld [vmem:[%s5049_s0 + $0x20] ss:$76 sps:$4 sm:$0xff]  }
 0x10b   : > { %2875 = vmatmul.mubr.bf16.vlgmr.msra.gmra.mrb[0].mxu0 %v3935_v16  ;;  %v4003_v16 = vld [vmem:[%s4816_s9 + $0x270] sm:$0xff]  }
 0x10c   : > { %2916 = vmatmul.mubr.bf16.vlgmr.msra.gmra.mrb[0].mxu1 %v3938_v18  ;;  %3677 = vmatpush3.bf16.msra.mxu0 %v3942_v22  ;;  %v4005_v18 = vld [vmem:[%s4816_s9 + $0x2f0] sm:$0xff]   ;;  %v4009_v22 = vld [vmem:[%s4816_s9 + $0x2f8] sm:$0xff]  }
 0x10d   : > { %2956 = vmatprep.mubr.bf16.mxu0 %v3974_v20  ;;  %3699 = vmatpush3.bf16.msra.mxu1 %v3944_v24  ;;  %v4007_v20 = vld [vmem:[%s4816_s9 + $0x278] sm:$0xff]   ;;  %v4012_v24 = vld [vmem:[%s5049_s0 + $0x24] ss:$76 sps:$4 sm:$0xff]  }
 0x10e   : > { %3678 = vmatprep.subr.bf16.mxu0 %v3945_v25  ;;  %3700 = vmatprep.subr.bf16.mxu1 %v3947_v27  ;;  %v4013_v25 = vld [vmem:[%s4816_s9 + $0x2b8] sm:$0xff]   ;;  %v4015_v27 = vld [vmem:[%s5049_s0 + $0x28] ss:$76 sps:$4 sm:$0xff]  }
 0x10f   : > { %2997 = vmatprep.mubr.bf16.mxu1 %v3979_v56  ;;  %v4045_v56 = vld [vmem:[%s4816_s9 + $0x378] sm:$0xff]  }
 0x110   : > { %3679 = vmatpush3.bf16.msra.mxu0 %v3946_v26  ;;  %v4014_v26 = vld [vmem:[%s4816_s9 + $0x340] sm:$0xff]  }
 0x111   : > { %3701 = vmatpush3.bf16.msra.mxu1 %v3948_v28  ;;  %3680 = vmatprep.subr.bf16.mxu0 %v3949_v29  ;;  %v4017_v28 = vld [vmem:[%s5049_s0 + $0x2c] ss:$76 sps:$4 sm:$0xff]   ;;  %v4018_v29 = vld [vmem:[%s4816_s9 + $0x300] sm:$0xff]  }
 0x112   : > { %3702 = vmatprep.subr.bf16.mxu1 %v3951_v31  ;;  %v4020_v31 = vld [vmem:[%s4816_s9 + $0x380] sm:$0xff]  }
 0x114   : > { %3681 = vmatpush3.bf16.msra.mxu0 %v3950_v30  ;;  %v4019_v30 = vld [vmem:[%s4816_s9 + $0x3c0] sm:$0xff]  }
 0x115   : > { %3703 = vmatpush3.bf16.msra.mxu1 %v3952_v32  ;;  %3682 = vmatprep.subr.bf16.mxu0 %v3953_v33  ;;  %v4021_v32 = vld [vmem:[%s4816_s9 + $0x348] sm:$0xff]  }
 0x116   : > { %3704 = vmatprep.subr.bf16.mxu1 %v3955_v35  ;;  %v4022_v33 = vld [vmem:[%s4816_s9 + $0x308] sm:$0xff]  }
 0x117   : > { %v4024_v35 = vld [vmem:[%s4816_s9 + $0x388] sm:$0xff]  }
 0x118   : > { %3683 = vmatpush3.bf16.msra.mxu0 %v3954_v34  ;;  %v4023_v34 = vld [vmem:[%s4816_s9 + $0x3c8] sm:$0xff]  }
 0x119   : > { %3705 = vmatpush3.bf16.msra.mxu1 %v3956_v36  ;;  %3684 = vmatprep.subr.bf16.mxu0 %v3957_v37  ;;  %v4025_v36 = vld [vmem:[%s4816_s9 + $0x350] sm:$0xff]  }
 0x11a   : > { %3706 = vmatprep.subr.bf16.mxu1 %v3959_v39  ;;  %v4026_v37 = vld [vmem:[%s4816_s9 + $0x310] sm:$0xff]  }
 0x11b   : > { %v4028_v39 = vld [vmem:[%s4816_s9 + $0x390] sm:$0xff]  }
 0x11c   : > { %3685 = vmatpush3.bf16.msra.mxu0 %v3958_v38  ;;  %v4027_v38 = vld [vmem:[%s4816_s9 + $0x3d0] sm:$0xff]  }
 0x11d   : > { %3707 = vmatpush3.bf16.msra.mxu1 %v3960_v40  ;;  %3686 = vmatprep.subr.bf16.mxu0 %v3961_v41  ;;  %v4029_v40 = vld [vmem:[%s4816_s9 + $0x358] sm:$0xff]  }
 0x11e   : > { %3708 = vmatprep.subr.bf16.mxu1 %v3963_v43  ;;  %v4030_v41 = vld [vmem:[%s4816_s9 + $0x318] sm:$0xff]  }
 0x11f   : > { %v4032_v43 = vld [vmem:[%s4816_s9 + $0x398] sm:$0xff]  }
 0x120   : > { %3687 = vmatpush3.bf16.msra.mxu0 %v3962_v42  ;;  %v4031_v42 = vld [vmem:[%s4816_s9 + $0x3d8] sm:$0xff]  }
 0x121   : > { %3709 = vmatpush3.bf16.msra.mxu1 %v3964_v44  ;;  %3688 = vmatprep.subr.bf16.mxu0 %v3965_v45  ;;  %v4033_v44 = vld [vmem:[%s4816_s9 + $0x360] sm:$0xff]  }
 0x122   : > { %3710 = vmatprep.subr.bf16.mxu1 %v3967_v47  ;;  %v4034_v45 = vld [vmem:[%s4816_s9 + $0x320] sm:$0xff]  }
 0x123   : > { %v4036_v47 = vld [vmem:[%s4816_s9 + $0x3a0] sm:$0xff]  }
 0x124   : > { %3689 = vmatpush3.bf16.msra.mxu0 %v3966_v46  ;;  %v4035_v46 = vld [vmem:[%s4816_s9 + $0x3e0] sm:$0xff]  }
 0x125   : > { %3711 = vmatpush3.bf16.msra.mxu1 %v3968_v48  ;;  %3690 = vmatprep.subr.bf16.mxu0 %v3969_v49  ;;  %v4037_v48 = vld [vmem:[%s4816_s9 + $0x368] sm:$0xff]  }
 0x126   : > { %3712 = vmatprep.subr.bf16.mxu1 %v3971_v52  ;;  %v4038_v49 = vld [vmem:[%s4816_s9 + $0x328] sm:$0xff]   ;;  %v4041_v52 = vld [vmem:[%s4816_s9 + $0x370] sm:$0xff]  }
 0x128   : > { %3691 = vmatpush3.bf16.msra.mxu0 %v3970_v50  ;;  %v4039_v50 = vld [vmem:[%s4816_s9 + $0x3e8] sm:$0xff]  }
 0x129   : > { %3713 = vmatpush3.bf16.msra.mxu1 %v3975_v53  ;;  %3720 = vmatprep.subr.bf16.mxu0 %v3976_v54  ;;  %v4042_v53 = vld [vmem:[%s4816_s9 + $0x330] sm:$0xff]  }
 0x12a   : > { %3742 = vmatprep.subr.bf16.mxu1 %v3981_v58  ;;  %v4043_v54 = vld [vmem:[%s4816_s9 + $0x3f0] sm:$0xff]   ;;  %v4047_v58 = vld [vmem:[%s4816_s9 + $0x3f8] sm:$0xff]  }
 0x12b   : > { %2957 = vmatmul.mubr.bf16.vlgmr.msra.gmra.mrb[4].mxu0 %v3972_v51  ;;  %v4040_v51 = vld [vmem:[%s4816_s9 + $0x3a8] sm:$0xff]  }
 0x12c   : > { %3721 = vmatpush3.bf16.msra.mxu0 %v3980_v57  ;;  %2998 = vmatmul.mubr.bf16.vlgmr.msra.gmra.mrb[4].mxu1 %v3977_v55  ;;  %v4044_v55 = vld [vmem:[%s4816_s9 + $0x3b0] sm:$0xff]   ;;  %v4046_v57 = vld [vmem:[%s4816_s9 + $0x338] sm:$0xff]  }
 0x12d   : > { %3743 = vmatpush3.bf16.msra.mxu1 %v3982_v59  ;;  %3722 = vmatprep.subr.bf16.mxu0 %v3983_v60  ;;  %v4048_v59 = vld [vmem:[%s5049_s0 + $0x30] ss:$76 sps:$4 sm:$0xff]   ;;  %v4050_v60 = vld [vmem:[%s5049_s0 + $0x34] ss:$76 sps:$4 sm:$0xff]  }
 0x12e   : > { %3744 = vmatprep.subr.bf16.mxu1 %v3985_v62  ;;  %3038 = vmatprep.mubr.bf16.mxu0 %v4012_v24  ;;  %v4052_v62 = vld [vmem:[%s4816_s9 + $0x440] sm:$0xff]   ;;  %v4077_v24 = vld [vmem:[%s4816_s9 + $0x438] sm:$0xff]  }
 0x12f   : > { %3079 = vmatprep.mubr.bf16.mxu1 %v4017_v28 }
 0x130   : > { %3723 = vmatpush3.bf16.msra.mxu0 %v3984_v61  ;;  %v4051_v61 = vld [vmem:[%s4816_s9 + $0x3b8] sm:$0xff]  }
 0x131   : > { %3745 = vmatpush3.bf16.msra.mxu1 %v3986_v63  ;;  %3724 = vmatprep.subr.bf16.mxu0 %v3987_v0  ;;  %v4053_v63 = vld [vmem:[%s5049_s0 + $0x38] ss:$76 sps:$4 sm:$0xff]   ;;  %v4055_v0 = vld [vmem:[%s5049_s0 + $0x3c] ss:$76 sps:$4 sm:$0xff]  }
 0x132   : > { %3746 = vmatprep.subr.bf16.mxu1 %v3989_v2  ;;  %v4123_v2 = vmov 0.0  }
 0x134   : > { %3725 = vmatpush3.bf16.msra.mxu0 %v3988_v1  ;;  %v4056_v1 = vld [vmem:[%s4816_s9 + $0x400] sm:$0xff]  }
 0x135   : > { %3747 = vmatpush3.bf16.msra.mxu1 %v3990_v3  ;;  %3726 = vmatprep.subr.bf16.mxu0 %v3991_v4  ;;  %v4057_v3 = vld [vmem:[%s4816_s9 + $0x480] sm:$0xff]   ;;  %v4058_v4 = vld [vmem:[%s4816_s9 + $0x448] sm:$0xff]  }
 0x136   : > { %3748 = vmatprep.subr.bf16.mxu1 %v3993_v6  ;;  %v4060_v6 = vld [vmem:[%s4816_s9 + $0x488] sm:$0xff]  }
 0x138   : > { %3727 = vmatpush3.bf16.msra.mxu0 %v3992_v5  ;;  %v4059_v5 = vld [vmem:[%s4816_s9 + $0x408] sm:$0xff]  }
 0x139   : > { %3749 = vmatpush3.bf16.msra.mxu1 %v3994_v7  ;;  %3728 = vmatprep.subr.bf16.mxu0 %v3995_v8  ;;  %v4061_v7 = vld [vmem:[%s4816_s9 + $0x450] sm:$0xff]  }
 0x13a   : > { %3750 = vmatprep.subr.bf16.mxu1 %v3997_v10  ;;  %v4062_v8 = vld [vmem:[%s4816_s9 + $0x410] sm:$0xff]   ;;  %v4064_v10 = vld [vmem:[%s4816_s9 + $0x458] sm:$0xff]  }
 0x13c   : > { %3729 = vmatpush3.bf16.msra.mxu0 %v3996_v9  ;;  %v4063_v9 = vld [vmem:[%s4816_s9 + $0x490] sm:$0xff]  }
 0x13d   : > { %3751 = vmatpush3.bf16.msra.mxu1 %v3998_v11  ;;  %3730 = vmatprep.subr.bf16.mxu0 %v3999_v12  ;;  %v4065_v11 = vld [vmem:[%s4816_s9 + $0x418] sm:$0xff]  }
 0x13e   : > { %3752 = vmatprep.subr.bf16.mxu1 %v4001_v14  ;;  %v4066_v12 = vld [vmem:[%s4816_s9 + $0x498] sm:$0xff]   ;;  %v4068_v14 = vld [vmem:[%s4816_s9 + $0x420] sm:$0xff]  }
 0x140   : > { %3731 = vmatpush3.bf16.msra.mxu0 %v4000_v13  ;;  %v4067_v13 = vld [vmem:[%s4816_s9 + $0x460] sm:$0xff]  }
 0x141   : > { %3753 = vmatpush3.bf16.msra.mxu1 %v4002_v15  ;;  %3732 = vmatprep.subr.bf16.mxu0 %v4003_v16  ;;  %v4069_v15 = vld [vmem:[%s4816_s9 + $0x4a0] sm:$0xff]   ;;  %v4070_v16 = vld [vmem:[%s4816_s9 + $0x468] sm:$0xff]  }
 0x142   : > { %3754 = vmatprep.subr.bf16.mxu1 %v4005_v18  ;;  %v4072_v18 = vld [vmem:[%s4816_s9 + $0x4a8] sm:$0xff]  }
 0x144   : > { %3733 = vmatpush3.bf16.msra.mxu0 %v4004_v17  ;;  %v4071_v17 = vld [vmem:[%s4816_s9 + $0x428] sm:$0xff]  }
 0x145   : > { %3755 = vmatpush3.bf16.msra.mxu1 %v4006_v19  ;;  %3734 = vmatprep.subr.bf16.mxu0 %v4007_v20  ;;  %v4073_v19 = vld [vmem:[%s4816_s9 + $0x470] sm:$0xff]  }
 0x146   : > { %3756 = vmatprep.subr.bf16.mxu1 %v4009_v22  ;;  %v4074_v20 = vld [vmem:[%s4816_s9 + $0x430] sm:$0xff]  }
 0x147   : > { %v4080_v22 = vld [vmem:[%s5049_s0 + $0x44] ss:$76 sps:$4 sm:$0xff]  }
 0x148   : > { %3735 = vmatpush3.bf16.msra.mxu0 %v4008_v21  ;;  %v4075_v21 = vld [vmem:[%s4816_s9 + $0x4b0] sm:$0xff]  }
 0x149   : > { %3757 = vmatpush3.bf16.msra.mxu1 %v4013_v25  ;;  %3764 = vmatprep.subr.bf16.mxu0 %v4014_v26  ;;  %v4081_v25 = vld [vmem:[%s4816_s9 + $0x4b8] sm:$0xff]   ;;  %v4078_v26 = vld [vmem:[%s5049_s0 + $0x40] ss:$76 sps:$4 sm:$0xff]  }
 0x14a   : > { %3786 = vmatprep.subr.bf16.mxu1 %v4019_v30 }
 0x14b   : > { %3039 = vmatmul.mubr.bf16.vlgmr.msra.gmra.mrb[8].mxu0 %v4010_v23  ;;  %v4076_v23 = vld [vmem:[%s4816_s9 + $0x478] sm:$0xff]   ;;  %s1498_s9 = scalar_select %p1497_p11, %s4113_s14, 1 }
 0x14c   : > { %3765 = vmatpush3.bf16.msra.mxu0 %v4018_v29  ;;  %3080 = vmatmul.mubr.bf16.vlgmr.msra.gmra.mrb[8].mxu1 %v4015_v27  ;;  %v4082_v27 = vld [vmem:[%s5049_s0 + $0x48] ss:$76 sps:$4 sm:$0xff]  }
 0x14d   : > { %3787 = vmatpush3.bf16.msra.mxu1 %v4020_v31  ;;  %3766 = vmatprep.subr.bf16.mxu0 %v4021_v32  ;;  %s1499_s18 = scalar_lea.vmem %s5051_s2, %s1498_s9 }
 0x14e   : > { %3788 = vmatprep.subr.bf16.mxu1 %v4023_v34  ;;  %3120 = vmatprep.mubr.bf16.mxu0 %v4050_v60 }
 0x14f   : > { %3161 = vmatprep.mubr.bf16.mxu1 %v4055_v0 }
 0x150   : > { %3767 = vmatpush3.bf16.msra.mxu0 %v4022_v33 }
 0x151   : > { %3789 = vmatpush3.bf16.msra.mxu1 %v4024_v35  ;;  %3768 = vmatprep.subr.bf16.mxu0 %v4025_v36 }
 0x152   : > { %3790 = vmatprep.subr.bf16.mxu1 %v4027_v38 }
 0x154   : > { %3769 = vmatpush3.bf16.msra.mxu0 %v4026_v37 }
 0x155   : > { %3791 = vmatpush3.bf16.msra.mxu1 %v4028_v39  ;;  %3770 = vmatprep.subr.bf16.mxu0 %v4029_v40 }
 0x156   : > { %3792 = vmatprep.subr.bf16.mxu1 %v4031_v42 }
 0x158   : > { %3771 = vmatpush3.bf16.msra.mxu0 %v4030_v41 }
 0x159   : > { %3793 = vmatpush3.bf16.msra.mxu1 %v4032_v43  ;;  %3772 = vmatprep.subr.bf16.mxu0 %v4033_v44 }
 0x15a   : > { %3794 = vmatprep.subr.bf16.mxu1 %v4035_v46 }
 0x15c   : > { %3773 = vmatpush3.bf16.msra.mxu0 %v4034_v45 }
 0x15d   : > { %3795 = vmatpush3.bf16.msra.mxu1 %v4036_v47  ;;  %3774 = vmatprep.subr.bf16.mxu0 %v4037_v48 }
 0x15e   : > { %3796 = vmatprep.subr.bf16.mxu1 %v4039_v50 }
 0x160   : > { %3775 = vmatpush3.bf16.msra.mxu0 %v4038_v49 }
 0x161   : > { %3797 = vmatpush3.bf16.msra.mxu1 %v4040_v51  ;;  %3776 = vmatprep.subr.bf16.mxu0 %v4041_v52 }
 0x162   : > { %3798 = vmatprep.subr.bf16.mxu1 %v4043_v54 }
 0x164   : > { %3777 = vmatpush3.bf16.msra.mxu0 %v4042_v53 }
 0x165   : > { %3799 = vmatpush3.bf16.msra.mxu1 %v4044_v55  ;;  %3778 = vmatprep.subr.bf16.mxu0 %v4045_v56 }
 0x166   : > { %3800 = vmatprep.subr.bf16.mxu1 %v4047_v58 }
 0x168   : > { %3779 = vmatpush3.bf16.msra.mxu0 %v4046_v57 }
 0x169   : > { %3801 = vmatpush3.bf16.msra.mxu1 %v4051_v61  ;;  %3808 = vmatprep.subr.bf16.mxu0 %v4052_v62 }
 0x16a   : > { %3839 = vmatprep.subr.bf16.mxu1 %v4123_v2 }
 0x16b   : > { %3121 = vmatmul.mubr.bf16.vlgmr.msra.gmra.mrb[12].mxu0 %v4048_v59 }
 0x16c   : > { %3809 = vmatpush3.bf16.msra.mxu0 %v4056_v1  ;;  %3162 = vmatmul.mubr.bf16.vlgmr.msra.gmra.mrb[12].mxu1 %v4053_v63 }
 0x16d   : > { %3840 = vmatpush3.bf16.msra.mxu1 %v4057_v3  ;;  %3855 = vmatprep.mubr.msk.bf16.mxu1 %vm4124_vm0, %v4123_v2 }
 0x16e   : > { %3810 = vmatprep.subr.bf16.mxu0 %v4058_v4  ;;  %3841 = vmatprep.subr.bf16.mxu1 %v4123_v2 }
 0x16f   : > { %3202 = vmatprep.mubr.bf16.mxu0 %v4080_v22 }
 0x170   : > { %3811 = vmatpush3.bf16.msra.mxu0 %v4059_v5 }
 0x171   : > { %3842 = vmatpush3.bf16.msra.mxu1 %v4060_v6  ;;  %3812 = vmatprep.subr.bf16.mxu0 %v4061_v7 }
 0x172   : > { %3843 = vmatprep.subr.bf16.mxu1 %v4123_v2 }
 0x174   : > { %3813 = vmatpush3.bf16.msra.mxu0 %v4062_v8 }
 0x175   : > { %3844 = vmatpush3.bf16.msra.mxu1 %v4063_v9  ;;  %3814 = vmatprep.subr.bf16.mxu0 %v4064_v10 }
 0x176   : > { %3845 = vmatprep.subr.bf16.mxu1 %v4123_v2 }
 0x178   : > { %3815 = vmatpush3.bf16.msra.mxu0 %v4065_v11 }
 0x179   : > { %3846 = vmatpush3.bf16.msra.mxu1 %v4066_v12  ;;  %3816 = vmatprep.subr.bf16.mxu0 %v4067_v13 }
 0x17a   : > { %3847 = vmatprep.subr.bf16.mxu1 %v4123_v2 }
 0x17c   : > { %3817 = vmatpush3.bf16.msra.mxu0 %v4068_v14 }
 0x17d   : > { %3848 = vmatpush3.bf16.msra.mxu1 %v4069_v15  ;;  %3818 = vmatprep.subr.bf16.mxu0 %v4070_v16 }
 0x17e   : > { %3849 = vmatprep.subr.bf16.mxu1 %v4123_v2 }
 0x180   : > { %3819 = vmatpush3.bf16.msra.mxu0 %v4071_v17 }
 0x181   : > { %3850 = vmatpush3.bf16.msra.mxu1 %v4072_v18  ;;  %3820 = vmatprep.subr.bf16.mxu0 %v4073_v19 }
 0x182   : > { %3851 = vmatprep.subr.bf16.mxu1 %v4123_v2 }
 0x184   : > { %3821 = vmatpush3.bf16.msra.mxu0 %v4074_v20 }
 0x185   : > { %3852 = vmatpush3.bf16.msra.mxu1 %v4075_v21  ;;  %3822 = vmatprep.subr.bf16.mxu0 %v4076_v23 }
 0x186   : > { %3853 = vmatprep.subr.bf16.mxu1 %v4123_v2 }
 0x188   : > { %3823 = vmatpush3.bf16.msra.mxu0 %v4077_v24 }
 0x189   : > { %3854 = vmatpush3.bf16.msra.mxu1 %v4081_v25 }
 0x18b   : > { %3203 = vmatmul.mubr.bf16.vlgmr.msra.gmra.mrb[16].mxu0 %v4078_v26 }
 0x18c   : > { %3856 = vmatmul.mubr.bf16.vlgmr.msra.gmra.mrb[16].mxu1 %v4082_v27 }
 0x1de   : > { %v3648_v28 = vpop.f32.mrb[0].mxu0 }
 0x1df   : > { %v3670_v29 = vpop.f32.mrb[0].mxu1  ;;  %v3649_v30 = vpop.f32.mrb[1].mxu0 }
 0x1e0   : > { %v3650_v31 = vadd.f32 %v3649_v30, %v3648_v28  ;;  %v3671_v32 = vpop.f32.mrb[1].mxu1  ;;  %v3651_v33 = vpop.f32.mrb[2].mxu0 }
 0x1e1   : > { %v3672_v34 = vadd.f32 %v3671_v32, %v3670_v29  ;;  %v3673_v35 = vpop.f32.mrb[2].mxu1  ;;  %v3652_v36 = vpop.f32.mrb[3].mxu0 }
 0x1e2   : > { %v3653_v37 = vadd.f32 %v3652_v36, %v3651_v33  ;;  %v3674_v38 = vpop.f32.mrb[3].mxu1 }
 0x1e3   : > { %v2918_v39 = vadd.f32 %v3672_v34, %v3650_v31  ;;  %v3675_v40 = vadd.f32 %v3674_v38, %v3673_v35 }
 0x1e5   : > { %v2921_v41 = vadd.f32 %v3675_v40, %v3653_v37  ;;  %v3618_v37 = vld [vmem:[%s1499_s18] ss:$0 sm:$0xff] }
 0x1fe   : > { %v3692_v42 = vpop.f32.mrb[4].mxu0 }
 0x1ff   : > { %v3693_v43 = vpop.f32.mrb[5].mxu0  ;;  %v3714_v46 = vpop.f32.mrb[4].mxu1 }
 0x200   : > { %v3694_v44 = vadd.f32 %v3693_v43, %v3692_v42  ;;  %v3695_v45 = vpop.f32.mrb[6].mxu0  ;;  %v3715_v48 = vpop.f32.mrb[5].mxu1 }
 0x201   : > { %v3696_v47 = vpop.f32.mrb[7].mxu0  ;;  %v3716_v51 = vadd.f32 %v3715_v48, %v3714_v46  ;;  %v3717_v52 = vpop.f32.mrb[6].mxu1 }
 0x202   : > { %v2959_v49 = vadd.f32 %v3694_v44, %v2918_v39  ;;  %v3697_v50 = vadd.f32 %v3696_v47, %v3695_v45  ;;  %v3718_v53 = vpop.f32.mrb[7].mxu1 }
 0x203   : > { %v3719_v56 = vadd.f32 %v3718_v53, %v3717_v52 }
 0x204   : > { %v2962_v54 = vadd.f32 %v3697_v50, %v2921_v41  ;;  %v3000_v55 = vadd.f32 %v3716_v51, %v2959_v49 }
 0x206   : > { %v3003_v57 = vadd.f32 %v3719_v56, %v2962_v54 }
 0x21e   : > { %v3736_v58 = vpop.f32.mrb[8].mxu0 }
 0x21f   : > { %v3737_v59 = vpop.f32.mrb[9].mxu0  ;;  %v3758_v62 = vpop.f32.mrb[8].mxu1 }
 0x220   : > { %v3738_v60 = vadd.f32 %v3737_v59, %v3736_v58  ;;  %v3739_v61 = vpop.f32.mrb[10].mxu0  ;;  %v3759_v2 = vpop.f32.mrb[9].mxu1 }
 0x221   : > { %v3740_v63 = vpop.f32.mrb[11].mxu0  ;;  %v3760_v3 = vadd.f32 %v3759_v2, %v3758_v62  ;;  %v3761_v4 = vpop.f32.mrb[10].mxu1 }
 0x222   : > { %v3041_v0 = vadd.f32 %v3738_v60, %v3000_v55  ;;  %v3741_v1 = vadd.f32 %v3740_v63, %v3739_v61  ;;  %v3762_v6 = vpop.f32.mrb[11].mxu1 }
 0x223   : > { %v3763_v8 = vadd.f32 %v3762_v6, %v3761_v4 }
 0x224   : > { %v3044_v5 = vadd.f32 %v3741_v1, %v3003_v57  ;;  %v3082_v7 = vadd.f32 %v3760_v3, %v3041_v0 }
 0x226   : > { %v3085_v9 = vadd.f32 %v3763_v8, %v3044_v5 }
 0x23e   : > { %v3780_v10 = vpop.f32.mrb[12].mxu0 }
 0x23f   : > { %v3781_v11 = vpop.f32.mrb[13].mxu0  ;;  %v3802_v14 = vpop.f32.mrb[12].mxu1 }
 0x240   : > { %v3782_v12 = vadd.f32 %v3781_v11, %v3780_v10  ;;  %v3783_v13 = vpop.f32.mrb[14].mxu0  ;;  %v3803_v18 = vpop.f32.mrb[13].mxu1 }
 0x241   : > { %v3784_v15 = vpop.f32.mrb[15].mxu0  ;;  %v3804_v19 = vadd.f32 %v3803_v18, %v3802_v14  ;;  %v3805_v20 = vpop.f32.mrb[14].mxu1 }
 0x242   : > { %v3123_v16 = vadd.f32 %v3782_v12, %v3082_v7  ;;  %v3785_v17 = vadd.f32 %v3784_v15, %v3783_v13  ;;  %v3806_v22 = vpop.f32.mrb[15].mxu1 }
 0x243   : > { %v3807_v24 = vadd.f32 %v3806_v22, %v3805_v20 }
 0x244   : > { %v3126_v21 = vadd.f32 %v3785_v17, %v3085_v9  ;;  %v3164_v23 = vadd.f32 %v3804_v19, %v3123_v16 }
 0x246   : > { %v3167_v25 = vadd.f32 %v3807_v24, %v3126_v21 }
 0x25e   : > { %v3824_v26 = vpop.f32.mrb[16].mxu0 }
 0x25f   : > { %v3825_v27 = vpop.f32.mrb[17].mxu0  ;;  %v3245_v28 = vpop.f32.mrb[16].mxu1 }
 0x260   : > { %v3826_v29 = vadd.f32 %v3825_v27, %v3824_v26  ;;  %v3827_v30 = vpop.f32.mrb[18].mxu0  ;;  %v3857_v31 = vpop.f32.mrb[17].mxu1 }
 0x261   : > { %v3828_v32 = vpop.f32.mrb[19].mxu0  ;;  %v3248_v33 = vpop.f32.mrb[18].mxu1 }
 0x262   : > { %v3205_v34 = vadd.f32 %v3826_v29, %v3164_v23  ;;  %v3829_v35 = vadd.f32 %v3828_v32, %v3827_v30  ;;  %v3858_v36 = vpop.f32.mrb[19].mxu1 }
 0x264   : > { %v3246_v38 = vadd.f32 %v3245_v28, %v3205_v34  ;;  %v3208_v39 = vadd.f32 %v3829_v35, %v3167_v25 }
 0x266   : > { %v3268_v40 = vadd.f32 %v3618_v37, %v3246_v38  ;;  %v3249_v41 = vadd.f32 %v3248_v33, %v3208_v39 }
 0x268   : > { %v3269_v42 = vadd.f32 %v3618_v37, %v3249_v41  ;;  %v3270_v43 = vmax.f32 %v3268_v40, 0.0  ;;  %3288 = sbr.rel (!%p4180_p6) target bundleno = 631 (0x277), region = 85 }
 0x26a   : > { %v3271_v44 = vmax.f32 %v3269_v42, 0.0 }
 0x26c   : > { %v3630_v45 = vpack.c.bf16 %v3271_v44, %v3270_v43 }
 0x26e   : > { %3631 = vst [vmem:[%s1483_s20] sm:$0xff] %v3630_v45  }
 0x275   : > { %v3309_v46 = vld [vmem:[%s1483_s20] sm:$0xf]  ;;  %v3311_v47 = vld [vmem:[%s1483_s20 + $0x4] sm:$0xf] }
 0x276   : > { %3310 = vst [vmem:[%s3293_s26] sm:$0xf] %v3309_v46  ;;  %3312 = vst [vmem:[%s3293_s26 + $0x8] sm:$0xf] %v3311_v47 }
 0x277 PF: > { %s13_s16 = sadd.s32 1, %s4121_s16   ;;  %s5054_s12 = smov %s4109_s13 }
 0x278   : > { %p10_p12 = scmp.ge.s32.totalorder %s13_s16, 4   ;;  %s5055_s13 = smov %s4185_s22 }
 0x279   : > { %s5056_s14 = smov %s4117_s15  ;;  %s5057_s15 = smov %s5059_s17 }
 0x27a   :  { %12 = sbr.rel (!%p10_p12) target bundleno = 3 (0x3), region = 163 }

// kernel: _lambda_.18
= control target key start
LH: loop header
LB: loop body
LE: loop exit
PB: predicated region body
PF: predicated region fallthrough
CT: control target
= control target key end

     0   :  { %s3917_s12 = smov 0   ;;  %s3919_s13 = smov 0   ;;  %s4778_s0 = inlined_call_operand.vmem [shape: bf16[16,2304], index: 0, kind: input, shape index: {}]   ;;  %s4779_s1 = inlined_call_operand.vmem [shape: bf16[2304,512], index: 1, kind: input, shape index: {}]   ;;  %s4780_s2 = inlined_call_operand.vmem [shape: f32[1,512], index: 2, kind: input, shape index: {}]   ;;  %s4781_s3 = inlined_call_operand.vmem [shape: bf16[16,512], index: 3, kind: output, shape index: {}]  }
   0x1   :  { %s3921_s14 = smov 0   ;;  %s3923_s15 = smov 0  }
   0x2   :  { %s3925_s16 = smov 0  }
   0x3 LB: > { %s28_s17 = sadd.s32 1, %s3891_s15  ;;  %s3262_s18 = sadd.s32 4294967295, %s3895_s16   ;;  %s3895_s16 = sphi %s3925_s16, %s13_s16   ;;  %s3891_s15 = sphi %s3923_s15, %s4786_s15   ;;  %s3887_s14 = sphi %s3921_s14, %s4785_s14   ;;  %s3883_s13 = sphi %s3919_s13, %s4784_s13   ;;  %s3879_s12 = sphi %s3917_s12, %s4783_s12  }
   0x4   : > { %p30_p0 = scmp.ge.s32.totalorder %s28_s17, 4  ;;  %p76_p1 = scmp.ne.s32.totalorder %s3883_s13, %s3879_s12 }
   0x5   : > { %p77_p2 = scmp.eq.s32.totalorder %s3895_s16, 0  ;;  %p134_p4 = scmp.eq.s32.totalorder %s3262_s18, 3 }
   0x6   : > { %s4788_s17 = smov (%p30_p0, %s28_s17), 0  ;;  %s69_s20 = sadd.s32 1, %s3883_s13 }
   0x7   : > { %p78_p3 = por %p77_p2, %p76_p1  ;;  %s65_s19 = ssub.s32 %s3891_s15, %s4788_s17 }
   0x8   : > { %p67_p5 = scmp.eq.s32.totalorder %s65_s19, 0  ;;  %p3952_p6 = por %p134_p4, %p76_p1 }
   0x9   : > { %p3266_p7 = scmp.ge.s32.totalorder %s3895_s16, 4 }
   0xa   : > { %s3957_s22 = scalar_select %p67_p5, %s3883_s13, %s69_s20  }
   0xb   : > { %171 = sbr.rel (%p3266_p7) target bundleno = 214 (0xd6), region = 20 }
  0x12   : > { %174 = sbr.rel (!%p78_p3) target bundleno = 214 (0xd6), region = 24  ;;  %s176_s23 = sand.u32 (%p78_p3), 1, %s3883_s13  }
  0x13   : > { %s3267_s24 = sshll.u32 (%p78_p3), %s3891_s15, 2  ;;  %s3644_s25 = smul.u32 (%p78_p3), 1152, %s176_s23 }
  0x14   : > { %s3965_s28 = scalar_lea.vmem (%p78_p3), %s4779_s1, %s3267_s24 }
  0x15   : > { %v199_v0 = vld [vmem:[%s3965_s28] sm:$0xf] (%p78_p3)  ;;  %v201_v1 = vld [vmem:[%s3965_s28 + $0x10] sm:$0xf] (%p78_p3)  ;;  %s3972_s29 = scalar_lea.vmem (%p78_p3), [#allocation3], %s3644_s25 }
  0x16   : > { %v203_v2 = vld [vmem:[%s3965_s28 + $0x20] sm:$0xf] (%p78_p3)  ;;  %v205_v3 = vld [vmem:[%s3965_s28 + $0x30] sm:$0xf] (%p78_p3)  ;;  %200 = vst [vmem:[%s3972_s29] sm:$0xf] (%p78_p3), %v199_v0 }
  0x17   : > { %v207_v4 = vld [vmem:[%s3965_s28 + $0x40] sm:$0xf] (%p78_p3)  ;;  %202 = vst [vmem:[%s3972_s29 + $0x4] sm:$0xf] (%p78_p3), %v201_v1  ;;  %204 = vst [vmem:[%s3972_s29 + $0x8] sm:$0xf] (%p78_p3), %v203_v2 }
  0x18   : > { %206 = vst [vmem:[%s3972_s29 + $0xc] sm:$0xf] (%p78_p3), %v205_v3  ;;  %208 = vst [vmem:[%s3972_s29 + $0x10] sm:$0xf] (%p78_p3), %v207_v4  ;;  %v209_v5 = vld [vmem:[%s3965_s28 + $0x50] sm:$0xf] (%p78_p3) }
  0x19   : > { %v211_v6 = vld [vmem:[%s3965_s28 + $0x60] sm:$0xf]  ;;  %v213_v7 = vld [vmem:[%s3965_s28 + $0x70] sm:$0xf]  ;;  %210 = vst [vmem:[%s3972_s29 + $0x14] sm:$0xf] %v209_v5 }
  0x1a   : > { %212 = vst [vmem:[%s3972_s29 + $0x18] sm:$0xf] %v211_v6  ;;  %214 = vst [vmem:[%s3972_s29 + $0x1c] sm:$0xf] %v213_v7  ;;  %v215_v8 = vld [vmem:[%s3965_s28 + $0x80] sm:$0xf] }
  0x1b   : > { %v217_v9 = vld [vmem:[%s3965_s28 + $0x90] sm:$0xf]  ;;  %v219_v10 = vld [vmem:[%s3965_s28 + $0xa0] sm:$0xf]  ;;  %216 = vst [vmem:[%s3972_s29 + $0x20] sm:$0xf] %v215_v8 }
  0x1c   : > { %218 = vst [vmem:[%s3972_s29 + $0x24] sm:$0xf] %v217_v9  ;;  %220 = vst [vmem:[%s3972_s29 + $0x28] sm:$0xf] %v219_v10  ;;  %v221_v11 = vld [vmem:[%s3965_s28 + $0xb0] sm:$0xf] }
  0x1d   : > { %v223_v12 = vld [vmem:[%s3965_s28 + $0xc0] sm:$0xf]  ;;  %v225_v13 = vld [vmem:[%s3965_s28 + $0xd0] sm:$0xf]  ;;  %222 = vst [vmem:[%s3972_s29 + $0x2c] sm:$0xf] %v221_v11 }
  0x1e   : > { %224 = vst [vmem:[%s3972_s29 + $0x30] sm:$0xf] %v223_v12  ;;  %226 = vst [vmem:[%s3972_s29 + $0x34] sm:$0xf] %v225_v13  ;;  %v227_v14 = vld [vmem:[%s3965_s28 + $0xe0] sm:$0xf] }
  0x1f   : > { %v229_v15 = vld [vmem:[%s3965_s28 + $0xf0] sm:$0xf]  ;;  %v231_v16 = vld [vmem:[%s3965_s28 + $0x100] sm:$0xf]  ;;  %228 = vst [vmem:[%s3972_s29 + $0x38] sm:$0xf] %v227_v14 }
  0x20   : > { %230 = vst [vmem:[%s3972_s29 + $0x3c] sm:$0xf] %v229_v15  ;;  %232 = vst [vmem:[%s3972_s29 + $0x40] sm:$0xf] %v231_v16  ;;  %v233_v17 = vld [vmem:[%s3965_s28 + $0x110] sm:$0xf] }
  0x21   : > { %v235_v18 = vld [vmem:[%s3965_s28 + $0x120] sm:$0xf]  ;;  %v237_v19 = vld [vmem:[%s3965_s28 + $0x130] sm:$0xf]  ;;  %234 = vst [vmem:[%s3972_s29 + $0x44] sm:$0xf] %v233_v17 }
  0x22   : > { %236 = vst [vmem:[%s3972_s29 + $0x48] sm:$0xf] %v235_v18  ;;  %238 = vst [vmem:[%s3972_s29 + $0x4c] sm:$0xf] %v237_v19  ;;  %v239_v20 = vld [vmem:[%s3965_s28 + $0x140] sm:$0xf] }
  0x23   : > { %v241_v21 = vld [vmem:[%s3965_s28 + $0x150] sm:$0xf]  ;;  %v243_v22 = vld [vmem:[%s3965_s28 + $0x160] sm:$0xf]  ;;  %240 = vst [vmem:[%s3972_s29 + $0x50] sm:$0xf] %v239_v20 }
  0x24   : > { %242 = vst [vmem:[%s3972_s29 + $0x54] sm:$0xf] %v241_v21  ;;  %244 = vst [vmem:[%s3972_s29 + $0x58] sm:$0xf] %v243_v22  ;;  %v245_v23 = vld [vmem:[%s3965_s28 + $0x170] sm:$0xf] }
  0x25   : > { %v247_v24 = vld [vmem:[%s3965_s28 + $0x180] sm:$0xf]  ;;  %v249_v25 = vld [vmem:[%s3965_s28 + $0x190] sm:$0xf]  ;;  %246 = vst [vmem:[%s3972_s29 + $0x5c] sm:$0xf] %v245_v23 }
  0x26   : > { %248 = vst [vmem:[%s3972_s29 + $0x60] sm:$0xf] %v247_v24  ;;  %250 = vst [vmem:[%s3972_s29 + $0x64] sm:$0xf] %v249_v25  ;;  %v251_v26 = vld [vmem:[%s3965_s28 + $0x1a0] sm:$0xf] }
  0x27   : > { %v253_v27 = vld [vmem:[%s3965_s28 + $0x1b0] sm:$0xf]  ;;  %v255_v28 = vld [vmem:[%s3965_s28 + $0x1c0] sm:$0xf]  ;;  %252 = vst [vmem:[%s3972_s29 + $0x68] sm:$0xf] %v251_v26 }
  0x28   : > { %254 = vst [vmem:[%s3972_s29 + $0x6c] sm:$0xf] %v253_v27  ;;  %256 = vst [vmem:[%s3972_s29 + $0x70] sm:$0xf] %v255_v28  ;;  %v257_v29 = vld [vmem:[%s3965_s28 + $0x1d0] sm:$0xf] }
  0x29   : > { %v259_v30 = vld [vmem:[%s3965_s28 + $0x1e0] sm:$0xf]  ;;  %v261_v31 = vld [vmem:[%s3965_s28 + $0x1f0] sm:$0xf]  ;;  %258 = vst [vmem:[%s3972_s29 + $0x74] sm:$0xf] %v257_v29 }
  0x2a   : > { %260 = vst [vmem:[%s3972_s29 + $0x78] sm:$0xf] %v259_v30  ;;  %262 = vst [vmem:[%s3972_s29 + $0x7c] sm:$0xf] %v261_v31  ;;  %v263_v32 = vld [vmem:[%s3965_s28 + $0x200] sm:$0xf] }
  0x2b   : > { %v265_v33 = vld [vmem:[%s3965_s28 + $0x210] sm:$0xf]  ;;  %v267_v34 = vld [vmem:[%s3965_s28 + $0x220] sm:$0xf]  ;;  %264 = vst [vmem:[%s3972_s29 + $0x80] sm:$0xf] %v263_v32 }
  0x2c   : > { %266 = vst [vmem:[%s3972_s29 + $0x84] sm:$0xf] %v265_v33  ;;  %268 = vst [vmem:[%s3972_s29 + $0x88] sm:$0xf] %v267_v34  ;;  %v269_v35 = vld [vmem:[%s3965_s28 + $0x230] sm:$0xf] }
  0x2d   : > { %v271_v36 = vld [vmem:[%s3965_s28 + $0x240] sm:$0xf]  ;;  %v273_v37 = vld [vmem:[%s3965_s28 + $0x250] sm:$0xf]  ;;  %270 = vst [vmem:[%s3972_s29 + $0x8c] sm:$0xf] %v269_v35 }
  0x2e   : > { %272 = vst [vmem:[%s3972_s29 + $0x90] sm:$0xf] %v271_v36  ;;  %274 = vst [vmem:[%s3972_s29 + $0x94] sm:$0xf] %v273_v37  ;;  %v275_v38 = vld [vmem:[%s3965_s28 + $0x260] sm:$0xf] }
  0x2f   : > { %v277_v39 = vld [vmem:[%s3965_s28 + $0x270] sm:$0xf]  ;;  %v279_v40 = vld [vmem:[%s3965_s28 + $0x280] sm:$0xf]  ;;  %276 = vst [vmem:[%s3972_s29 + $0x98] sm:$0xf] %v275_v38 }
  0x30   : > { %278 = vst [vmem:[%s3972_s29 + $0x9c] sm:$0xf] %v277_v39  ;;  %280 = vst [vmem:[%s3972_s29 + $0xa0] sm:$0xf] %v279_v40  ;;  %v281_v41 = vld [vmem:[%s3965_s28 + $0x290] sm:$0xf] }
  0x31   : > { %v283_v42 = vld [vmem:[%s3965_s28 + $0x2a0] sm:$0xf]  ;;  %v285_v43 = vld [vmem:[%s3965_s28 + $0x2b0] sm:$0xf]  ;;  %282 = vst [vmem:[%s3972_s29 + $0xa4] sm:$0xf] %v281_v41 }
  0x32   : > { %284 = vst [vmem:[%s3972_s29 + $0xa8] sm:$0xf] %v283_v42  ;;  %286 = vst [vmem:[%s3972_s29 + $0xac] sm:$0xf] %v285_v43  ;;  %v287_v44 = vld [vmem:[%s3965_s28 + $0x2c0] sm:$0xf] }
  0x33   : > { %v289_v45 = vld [vmem:[%s3965_s28 + $0x2d0] sm:$0xf]  ;;  %v291_v46 = vld [vmem:[%s3965_s28 + $0x2e0] sm:$0xf]  ;;  %288 = vst [vmem:[%s3972_s29 + $0xb0] sm:$0xf] %v287_v44 }
  0x34   : > { %290 = vst [vmem:[%s3972_s29 + $0xb4] sm:$0xf] %v289_v45  ;;  %292 = vst [vmem:[%s3972_s29 + $0xb8] sm:$0xf] %v291_v46  ;;  %v293_v47 = vld [vmem:[%s3965_s28 + $0x2f0] sm:$0xf] }
  0x35   : > { %v295_v48 = vld [vmem:[%s3965_s28 + $0x300] sm:$0xf]  ;;  %v297_v49 = vld [vmem:[%s3965_s28 + $0x310] sm:$0xf]  ;;  %294 = vst [vmem:[%s3972_s29 + $0xbc] sm:$0xf] %v293_v47 }
  0x36   : > { %296 = vst [vmem:[%s3972_s29 + $0xc0] sm:$0xf] %v295_v48  ;;  %298 = vst [vmem:[%s3972_s29 + $0xc4] sm:$0xf] %v297_v49  ;;  %v299_v50 = vld [vmem:[%s3965_s28 + $0x320] sm:$0xf] }
  0x37   : > { %v301_v51 = vld [vmem:[%s3965_s28 + $0x330] sm:$0xf]  ;;  %v303_v52 = vld [vmem:[%s3965_s28 + $0x340] sm:$0xf]  ;;  %300 = vst [vmem:[%s3972_s29 + $0xc8] sm:$0xf] %v299_v50 }
  0x38   : > { %302 = vst [vmem:[%s3972_s29 + $0xcc] sm:$0xf] %v301_v51  ;;  %304 = vst [vmem:[%s3972_s29 + $0xd0] sm:$0xf] %v303_v52  ;;  %v305_v53 = vld [vmem:[%s3965_s28 + $0x350] sm:$0xf] }
  0x39   : > { %v307_v54 = vld [vmem:[%s3965_s28 + $0x360] sm:$0xf]  ;;  %v309_v55 = vld [vmem:[%s3965_s28 + $0x370] sm:$0xf]  ;;  %306 = vst [vmem:[%s3972_s29 + $0xd4] sm:$0xf] %v305_v53 }
  0x3a   : > { %308 = vst [vmem:[%s3972_s29 + $0xd8] sm:$0xf] %v307_v54  ;;  %310 = vst [vmem:[%s3972_s29 + $0xdc] sm:$0xf] %v309_v55  ;;  %v311_v56 = vld [vmem:[%s3965_s28 + $0x380] sm:$0xf] }
  0x3b   : > { %v313_v57 = vld [vmem:[%s3965_s28 + $0x390] sm:$0xf]  ;;  %v315_v58 = vld [vmem:[%s3965_s28 + $0x3a0] sm:$0xf]  ;;  %312 = vst [vmem:[%s3972_s29 + $0xe0] sm:$0xf] %v311_v56 }
  0x3c   : > { %314 = vst [vmem:[%s3972_s29 + $0xe4] sm:$0xf] %v313_v57  ;;  %316 = vst [vmem:[%s3972_s29 + $0xe8] sm:$0xf] %v315_v58  ;;  %v317_v59 = vld [vmem:[%s3965_s28 + $0x3b0] sm:$0xf] }
  0x3d   : > { %v319_v60 = vld [vmem:[%s3965_s28 + $0x3c0] sm:$0xf]  ;;  %v321_v61 = vld [vmem:[%s3965_s28 + $0x3d0] sm:$0xf]  ;;  %318 = vst [vmem:[%s3972_s29 + $0xec] sm:$0xf] %v317_v59 }
  0x3e   : > { %320 = vst [vmem:[%s3972_s29 + $0xf0] sm:$0xf] %v319_v60  ;;  %322 = vst [vmem:[%s3972_s29 + $0xf4] sm:$0xf] %v321_v61  ;;  %v323_v62 = vld [vmem:[%s3965_s28 + $0x3e0] sm:$0xf] }
  0x3f   : > { %v325_v63 = vld [vmem:[%s3965_s28 + $0x3f0] sm:$0xf]  ;;  %v327_v0 = vld [vmem:[%s3965_s28 + $0x400] sm:$0xf]  ;;  %324 = vst [vmem:[%s3972_s29 + $0xf8] sm:$0xf] %v323_v62 }
  0x40   : > { %326 = vst [vmem:[%s3972_s29 + $0xfc] sm:$0xf] %v325_v63  ;;  %328 = vst [vmem:[%s3972_s29 + $0x100] sm:$0xf] %v327_v0  ;;  %v329_v1 = vld [vmem:[%s3965_s28 + $0x410] sm:$0xf] }
  0x41   : > { %v331_v2 = vld [vmem:[%s3965_s28 + $0x420] sm:$0xf]  ;;  %v333_v3 = vld [vmem:[%s3965_s28 + $0x430] sm:$0xf]  ;;  %330 = vst [vmem:[%s3972_s29 + $0x104] sm:$0xf] %v329_v1 }
  0x42   : > { %332 = vst [vmem:[%s3972_s29 + $0x108] sm:$0xf] %v331_v2  ;;  %334 = vst [vmem:[%s3972_s29 + $0x10c] sm:$0xf] %v333_v3  ;;  %v335_v4 = vld [vmem:[%s3965_s28 + $0x440] sm:$0xf] }
  0x43   : > { %v337_v5 = vld [vmem:[%s3965_s28 + $0x450] sm:$0xf]  ;;  %v339_v6 = vld [vmem:[%s3965_s28 + $0x460] sm:$0xf]  ;;  %336 = vst [vmem:[%s3972_s29 + $0x110] sm:$0xf] %v335_v4 }
  0x44   : > { %338 = vst [vmem:[%s3972_s29 + $0x114] sm:$0xf] %v337_v5  ;;  %340 = vst [vmem:[%s3972_s29 + $0x118] sm:$0xf] %v339_v6  ;;  %v341_v7 = vld [vmem:[%s3965_s28 + $0x470] sm:$0xf] }
  0x45   : > { %v343_v8 = vld [vmem:[%s3965_s28 + $0x480] sm:$0xf]  ;;  %v345_v9 = vld [vmem:[%s3965_s28 + $0x490] sm:$0xf]  ;;  %342 = vst [vmem:[%s3972_s29 + $0x11c] sm:$0xf] %v341_v7 }
  0x46   : > { %344 = vst [vmem:[%s3972_s29 + $0x120] sm:$0xf] %v343_v8  ;;  %346 = vst [vmem:[%s3972_s29 + $0x124] sm:$0xf] %v345_v9  ;;  %v347_v10 = vld [vmem:[%s3965_s28 + $0x4a0] sm:$0xf] }
  0x47   : > { %v349_v11 = vld [vmem:[%s3965_s28 + $0x4b0] sm:$0xf]  ;;  %v351_v12 = vld [vmem:[%s3965_s28 + $0x4c0] sm:$0xf]  ;;  %348 = vst [vmem:[%s3972_s29 + $0x128] sm:$0xf] %v347_v10 }
  0x48   : > { %350 = vst [vmem:[%s3972_s29 + $0x12c] sm:$0xf] %v349_v11  ;;  %352 = vst [vmem:[%s3972_s29 + $0x130] sm:$0xf] %v351_v12  ;;  %v353_v13 = vld [vmem:[%s3965_s28 + $0x4d0] sm:$0xf] }
  0x49   : > { %v355_v14 = vld [vmem:[%s3965_s28 + $0x4e0] sm:$0xf]  ;;  %v357_v15 = vld [vmem:[%s3965_s28 + $0x4f0] sm:$0xf]  ;;  %354 = vst [vmem:[%s3972_s29 + $0x134] sm:$0xf] %v353_v13 }
  0x4a   : > { %356 = vst [vmem:[%s3972_s29 + $0x138] sm:$0xf] %v355_v14  ;;  %358 = vst [vmem:[%s3972_s29 + $0x13c] sm:$0xf] %v357_v15  ;;  %v359_v16 = vld [vmem:[%s3965_s28 + $0x500] sm:$0xf] }
  0x4b   : > { %v361_v17 = vld [vmem:[%s3965_s28 + $0x510] sm:$0xf]  ;;  %v363_v18 = vld [vmem:[%s3965_s28 + $0x520] sm:$0xf]  ;;  %360 = vst [vmem:[%s3972_s29 + $0x140] sm:$0xf] %v359_v16 }
  0x4c   : > { %362 = vst [vmem:[%s3972_s29 + $0x144] sm:$0xf] %v361_v17  ;;  %364 = vst [vmem:[%s3972_s29 + $0x148] sm:$0xf] %v363_v18  ;;  %v365_v19 = vld [vmem:[%s3965_s28 + $0x530] sm:$0xf] }
  0x4d   : > { %v367_v20 = vld [vmem:[%s3965_s28 + $0x540] sm:$0xf]  ;;  %v369_v21 = vld [vmem:[%s3965_s28 + $0x550] sm:$0xf]  ;;  %366 = vst [vmem:[%s3972_s29 + $0x14c] sm:$0xf] %v365_v19 }
  0x4e   : > { %368 = vst [vmem:[%s3972_s29 + $0x150] sm:$0xf] %v367_v20  ;;  %370 = vst [vmem:[%s3972_s29 + $0x154] sm:$0xf] %v369_v21  ;;  %v371_v22 = vld [vmem:[%s3965_s28 + $0x560] sm:$0xf] }
  0x4f   : > { %v373_v23 = vld [vmem:[%s3965_s28 + $0x570] sm:$0xf]  ;;  %v375_v24 = vld [vmem:[%s3965_s28 + $0x580] sm:$0xf]  ;;  %372 = vst [vmem:[%s3972_s29 + $0x158] sm:$0xf] %v371_v22 }
  0x50   : > { %374 = vst [vmem:[%s3972_s29 + $0x15c] sm:$0xf] %v373_v23  ;;  %376 = vst [vmem:[%s3972_s29 + $0x160] sm:$0xf] %v375_v24  ;;  %v377_v25 = vld [vmem:[%s3965_s28 + $0x590] sm:$0xf] }
  0x51   : > { %v379_v26 = vld [vmem:[%s3965_s28 + $0x5a0] sm:$0xf]  ;;  %v381_v27 = vld [vmem:[%s3965_s28 + $0x5b0] sm:$0xf]  ;;  %378 = vst [vmem:[%s3972_s29 + $0x164] sm:$0xf] %v377_v25 }
  0x52   : > { %380 = vst [vmem:[%s3972_s29 + $0x168] sm:$0xf] %v379_v26  ;;  %382 = vst [vmem:[%s3972_s29 + $0x16c] sm:$0xf] %v381_v27  ;;  %v383_v28 = vld [vmem:[%s3965_s28 + $0x5c0] sm:$0xf] }
  0x53   : > { %v385_v29 = vld [vmem:[%s3965_s28 + $0x5d0] sm:$0xf]  ;;  %v387_v30 = vld [vmem:[%s3965_s28 + $0x5e0] sm:$0xf]  ;;  %384 = vst [vmem:[%s3972_s29 + $0x170] sm:$0xf] %v383_v28 }
  0x54   : > { %386 = vst [vmem:[%s3972_s29 + $0x174] sm:$0xf] %v385_v29  ;;  %388 = vst [vmem:[%s3972_s29 + $0x178] sm:$0xf] %v387_v30  ;;  %v389_v31 = vld [vmem:[%s3965_s28 + $0x5f0] sm:$0xf] }
  0x55   : > { %v391_v32 = vld [vmem:[%s3965_s28 + $0x600] sm:$0xf]  ;;  %v393_v33 = vld [vmem:[%s3965_s28 + $0x610] sm:$0xf]  ;;  %390 = vst [vmem:[%s3972_s29 + $0x17c] sm:$0xf] %v389_v31 }
  0x56   : > { %392 = vst [vmem:[%s3972_s29 + $0x180] sm:$0xf] %v391_v32  ;;  %394 = vst [vmem:[%s3972_s29 + $0x184] sm:$0xf] %v393_v33  ;;  %v395_v34 = vld [vmem:[%s3965_s28 + $0x620] sm:$0xf] }
  0x57   : > { %v397_v35 = vld [vmem:[%s3965_s28 + $0x630] sm:$0xf]  ;;  %v399_v36 = vld [vmem:[%s3965_s28 + $0x640] sm:$0xf]  ;;  %396 = vst [vmem:[%s3972_s29 + $0x188] sm:$0xf] %v395_v34 }
  0x58   : > { %398 = vst [vmem:[%s3972_s29 + $0x18c] sm:$0xf] %v397_v35  ;;  %400 = vst [vmem:[%s3972_s29 + $0x190] sm:$0xf] %v399_v36  ;;  %v401_v37 = vld [vmem:[%s3965_s28 + $0x650] sm:$0xf] }
  0x59   : > { %v403_v38 = vld [vmem:[%s3965_s28 + $0x660] sm:$0xf]  ;;  %v405_v39 = vld [vmem:[%s3965_s28 + $0x670] sm:$0xf]  ;;  %402 = vst [vmem:[%s3972_s29 + $0x194] sm:$0xf] %v401_v37 }
  0x5a   : > { %404 = vst [vmem:[%s3972_s29 + $0x198] sm:$0xf] %v403_v38  ;;  %406 = vst [vmem:[%s3972_s29 + $0x19c] sm:$0xf] %v405_v39  ;;  %v407_v40 = vld [vmem:[%s3965_s28 + $0x680] sm:$0xf] }
  0x5b   : > { %v409_v41 = vld [vmem:[%s3965_s28 + $0x690] sm:$0xf]  ;;  %v411_v42 = vld [vmem:[%s3965_s28 + $0x6a0] sm:$0xf]  ;;  %408 = vst [vmem:[%s3972_s29 + $0x1a0] sm:$0xf] %v407_v40 }
  0x5c   : > { %410 = vst [vmem:[%s3972_s29 + $0x1a4] sm:$0xf] %v409_v41  ;;  %412 = vst [vmem:[%s3972_s29 + $0x1a8] sm:$0xf] %v411_v42  ;;  %v413_v43 = vld [vmem:[%s3965_s28 + $0x6b0] sm:$0xf] }
  0x5d   : > { %v415_v44 = vld [vmem:[%s3965_s28 + $0x6c0] sm:$0xf]  ;;  %v417_v45 = vld [vmem:[%s3965_s28 + $0x6d0] sm:$0xf]  ;;  %414 = vst [vmem:[%s3972_s29 + $0x1ac] sm:$0xf] %v413_v43 }
  0x5e   : > { %416 = vst [vmem:[%s3972_s29 + $0x1b0] sm:$0xf] %v415_v44  ;;  %418 = vst [vmem:[%s3972_s29 + $0x1b4] sm:$0xf] %v417_v45  ;;  %v419_v46 = vld [vmem:[%s3965_s28 + $0x6e0] sm:$0xf] }
  0x5f   : > { %v421_v47 = vld [vmem:[%s3965_s28 + $0x6f0] sm:$0xf]  ;;  %v423_v48 = vld [vmem:[%s3965_s28 + $0x700] sm:$0xf]  ;;  %420 = vst [vmem:[%s3972_s29 + $0x1b8] sm:$0xf] %v419_v46 }
  0x60   : > { %422 = vst [vmem:[%s3972_s29 + $0x1bc] sm:$0xf] %v421_v47  ;;  %424 = vst [vmem:[%s3972_s29 + $0x1c0] sm:$0xf] %v423_v48  ;;  %v425_v49 = vld [vmem:[%s3965_s28 + $0x710] sm:$0xf] }
  0x61   : > { %v427_v50 = vld [vmem:[%s3965_s28 + $0x720] sm:$0xf]  ;;  %v429_v51 = vld [vmem:[%s3965_s28 + $0x730] sm:$0xf]  ;;  %426 = vst [vmem:[%s3972_s29 + $0x1c4] sm:$0xf] %v425_v49 }
  0x62   : > { %428 = vst [vmem:[%s3972_s29 + $0x1c8] sm:$0xf] %v427_v50  ;;  %430 = vst [vmem:[%s3972_s29 + $0x1cc] sm:$0xf] %v429_v51  ;;  %v431_v52 = vld [vmem:[%s3965_s28 + $0x740] sm:$0xf] }
  0x63   : > { %v433_v53 = vld [vmem:[%s3965_s28 + $0x750] sm:$0xf]  ;;  %v435_v54 = vld [vmem:[%s3965_s28 + $0x760] sm:$0xf]  ;;  %432 = vst [vmem:[%s3972_s29 + $0x1d0] sm:$0xf] %v431_v52 }
  0x64   : > { %434 = vst [vmem:[%s3972_s29 + $0x1d4] sm:$0xf] %v433_v53  ;;  %436 = vst [vmem:[%s3972_s29 + $0x1d8] sm:$0xf] %v435_v54  ;;  %v437_v55 = vld [vmem:[%s3965_s28 + $0x770] sm:$0xf] }
  0x65   : > { %v439_v56 = vld [vmem:[%s3965_s28 + $0x780] sm:$0xf]  ;;  %v441_v57 = vld [vmem:[%s3965_s28 + $0x790] sm:$0xf]  ;;  %438 = vst [vmem:[%s3972_s29 + $0x1dc] sm:$0xf] %v437_v55 }
  0x66   : > { %440 = vst [vmem:[%s3972_s29 + $0x1e0] sm:$0xf] %v439_v56  ;;  %442 = vst [vmem:[%s3972_s29 + $0x1e4] sm:$0xf] %v441_v57  ;;  %v443_v58 = vld [vmem:[%s3965_s28 + $0x7a0] sm:$0xf] }
  0x67   : > { %v445_v59 = vld [vmem:[%s3965_s28 + $0x7b0] sm:$0xf]  ;;  %v447_v60 = vld [vmem:[%s3965_s28 + $0x7c0] sm:$0xf]  ;;  %444 = vst [vmem:[%s3972_s29 + $0x1e8] sm:$0xf] %v443_v58 }
  0x68   : > { %446 = vst [vmem:[%s3972_s29 + $0x1ec] sm:$0xf] %v445_v59  ;;  %448 = vst [vmem:[%s3972_s29 + $0x1f0] sm:$0xf] %v447_v60  ;;  %v449_v61 = vld [vmem:[%s3965_s28 + $0x7d0] sm:$0xf] }
  0x69   : > { %v451_v62 = vld [vmem:[%s3965_s28 + $0x7e0] sm:$0xf]  ;;  %v453_v63 = vld [vmem:[%s3965_s28 + $0x7f0] sm:$0xf]  ;;  %450 = vst [vmem:[%s3972_s29 + $0x1f4] sm:$0xf] %v449_v61 }
  0x6a   : > { %452 = vst [vmem:[%s3972_s29 + $0x1f8] sm:$0xf] %v451_v62  ;;  %454 = vst [vmem:[%s3972_s29 + $0x1fc] sm:$0xf] %v453_v63  ;;  %v455_v0 = vld [vmem:[%s3965_s28 + $0x800] sm:$0xf] }
  0x6b   : > { %v457_v1 = vld [vmem:[%s3965_s28 + $0x810] sm:$0xf]  ;;  %v459_v2 = vld [vmem:[%s3965_s28 + $0x820] sm:$0xf]  ;;  %456 = vst [vmem:[%s3972_s29 + $0x200] sm:$0xf] %v455_v0 }
  0x6c   : > { %458 = vst [vmem:[%s3972_s29 + $0x204] sm:$0xf] %v457_v1  ;;  %460 = vst [vmem:[%s3972_s29 + $0x208] sm:$0xf] %v459_v2  ;;  %v461_v3 = vld [vmem:[%s3965_s28 + $0x830] sm:$0xf] }
  0x6d   : > { %v463_v4 = vld [vmem:[%s3965_s28 + $0x840] sm:$0xf]  ;;  %v465_v5 = vld [vmem:[%s3965_s28 + $0x850] sm:$0xf]  ;;  %462 = vst [vmem:[%s3972_s29 + $0x20c] sm:$0xf] %v461_v3 }
  0x6e   : > { %464 = vst [vmem:[%s3972_s29 + $0x210] sm:$0xf] %v463_v4  ;;  %466 = vst [vmem:[%s3972_s29 + $0x214] sm:$0xf] %v465_v5  ;;  %v467_v6 = vld [vmem:[%s3965_s28 + $0x860] sm:$0xf] }
  0x6f   : > { %v469_v7 = vld [vmem:[%s3965_s28 + $0x870] sm:$0xf]  ;;  %v471_v8 = vld [vmem:[%s3965_s28 + $0x880] sm:$0xf]  ;;  %468 = vst [vmem:[%s3972_s29 + $0x218] sm:$0xf] %v467_v6 }
  0x70   : > { %470 = vst [vmem:[%s3972_s29 + $0x21c] sm:$0xf] %v469_v7  ;;  %472 = vst [vmem:[%s3972_s29 + $0x220] sm:$0xf] %v471_v8  ;;  %v473_v9 = vld [vmem:[%s3965_s28 + $0x890] sm:$0xf] }
  0x71   : > { %v475_v10 = vld [vmem:[%s3965_s28 + $0x8a0] sm:$0xf]  ;;  %v477_v11 = vld [vmem:[%s3965_s28 + $0x8b0] sm:$0xf]  ;;  %474 = vst [vmem:[%s3972_s29 + $0x224] sm:$0xf] %v473_v9 }
  0x72   : > { %476 = vst [vmem:[%s3972_s29 + $0x228] sm:$0xf] %v475_v10  ;;  %478 = vst [vmem:[%s3972_s29 + $0x22c] sm:$0xf] %v477_v11  ;;  %v479_v12 = vld [vmem:[%s3965_s28 + $0x8c0] sm:$0xf] }
  0x73   : > { %v481_v13 = vld [vmem:[%s3965_s28 + $0x8d0] sm:$0xf]  ;;  %v483_v14 = vld [vmem:[%s3965_s28 + $0x8e0] sm:$0xf]  ;;  %480 = vst [vmem:[%s3972_s29 + $0x230] sm:$0xf] %v479_v12 }
  0x74   : > { %482 = vst [vmem:[%s3972_s29 + $0x234] sm:$0xf] %v481_v13  ;;  %484 = vst [vmem:[%s3972_s29 + $0x238] sm:$0xf] %v483_v14  ;;  %v485_v15 = vld [vmem:[%s3965_s28 + $0x8f0] sm:$0xf] }
  0x75   : > { %v487_v16 = vld [vmem:[%s3965_s28 + $0x900] sm:$0xf]  ;;  %v489_v17 = vld [vmem:[%s3965_s28 + $0x910] sm:$0xf]  ;;  %486 = vst [vmem:[%s3972_s29 + $0x23c] sm:$0xf] %v485_v15 }
  0x76   : > { %488 = vst [vmem:[%s3972_s29 + $0x240] sm:$0xf] %v487_v16  ;;  %490 = vst [vmem:[%s3972_s29 + $0x244] sm:$0xf] %v489_v17  ;;  %v491_v18 = vld [vmem:[%s3965_s28 + $0x920] sm:$0xf] }
  0x77   : > { %v493_v19 = vld [vmem:[%s3965_s28 + $0x930] sm:$0xf]  ;;  %v495_v20 = vld [vmem:[%s3965_s28 + $0x940] sm:$0xf]  ;;  %492 = vst [vmem:[%s3972_s29 + $0x248] sm:$0xf] %v491_v18 }
  0x78   : > { %494 = vst [vmem:[%s3972_s29 + $0x24c] sm:$0xf] %v493_v19  ;;  %496 = vst [vmem:[%s3972_s29 + $0x250] sm:$0xf] %v495_v20  ;;  %v497_v21 = vld [vmem:[%s3965_s28 + $0x950] sm:$0xf] }
  0x79   : > { %v499_v22 = vld [vmem:[%s3965_s28 + $0x960] sm:$0xf]  ;;  %v501_v23 = vld [vmem:[%s3965_s28 + $0x970] sm:$0xf]  ;;  %498 = vst [vmem:[%s3972_s29 + $0x254] sm:$0xf] %v497_v21 }
  0x7a   : > { %500 = vst [vmem:[%s3972_s29 + $0x258] sm:$0xf] %v499_v22  ;;  %502 = vst [vmem:[%s3972_s29 + $0x25c] sm:$0xf] %v501_v23  ;;  %v503_v24 = vld [vmem:[%s3965_s28 + $0x980] sm:$0xf] }
  0x7b   : > { %v505_v25 = vld [vmem:[%s3965_s28 + $0x990] sm:$0xf]  ;;  %v507_v26 = vld [vmem:[%s3965_s28 + $0x9a0] sm:$0xf]  ;;  %504 = vst [vmem:[%s3972_s29 + $0x260] sm:$0xf] %v503_v24 }
  0x7c   : > { %506 = vst [vmem:[%s3972_s29 + $0x264] sm:$0xf] %v505_v25  ;;  %508 = vst [vmem:[%s3972_s29 + $0x268] sm:$0xf] %v507_v26  ;;  %v509_v27 = vld [vmem:[%s3965_s28 + $0x9b0] sm:$0xf] }
  0x7d   : > { %v511_v28 = vld [vmem:[%s3965_s28 + $0x9c0] sm:$0xf]  ;;  %v513_v29 = vld [vmem:[%s3965_s28 + $0x9d0] sm:$0xf]  ;;  %510 = vst [vmem:[%s3972_s29 + $0x26c] sm:$0xf] %v509_v27 }
  0x7e   : > { %512 = vst [vmem:[%s3972_s29 + $0x270] sm:$0xf] %v511_v28  ;;  %514 = vst [vmem:[%s3972_s29 + $0x274] sm:$0xf] %v513_v29  ;;  %v515_v30 = vld [vmem:[%s3965_s28 + $0x9e0] sm:$0xf] }
  0x7f   : > { %v517_v31 = vld [vmem:[%s3965_s28 + $0x9f0] sm:$0xf]  ;;  %v519_v32 = vld [vmem:[%s3965_s28 + $0xa00] sm:$0xf]  ;;  %516 = vst [vmem:[%s3972_s29 + $0x278] sm:$0xf] %v515_v30 }
  0x80   : > { %518 = vst [vmem:[%s3972_s29 + $0x27c] sm:$0xf] %v517_v31  ;;  %520 = vst [vmem:[%s3972_s29 + $0x280] sm:$0xf] %v519_v32  ;;  %v521_v33 = vld [vmem:[%s3965_s28 + $0xa10] sm:$0xf] }
  0x81   : > { %v523_v34 = vld [vmem:[%s3965_s28 + $0xa20] sm:$0xf]  ;;  %v525_v35 = vld [vmem:[%s3965_s28 + $0xa30] sm:$0xf]  ;;  %522 = vst [vmem:[%s3972_s29 + $0x284] sm:$0xf] %v521_v33 }
  0x82   : > { %524 = vst [vmem:[%s3972_s29 + $0x288] sm:$0xf] %v523_v34  ;;  %526 = vst [vmem:[%s3972_s29 + $0x28c] sm:$0xf] %v525_v35  ;;  %v527_v36 = vld [vmem:[%s3965_s28 + $0xa40] sm:$0xf] }
  0x83   : > { %v529_v37 = vld [vmem:[%s3965_s28 + $0xa50] sm:$0xf]  ;;  %v531_v38 = vld [vmem:[%s3965_s28 + $0xa60] sm:$0xf]  ;;  %528 = vst [vmem:[%s3972_s29 + $0x290] sm:$0xf] %v527_v36 }
  0x84   : > { %530 = vst [vmem:[%s3972_s29 + $0x294] sm:$0xf] %v529_v37  ;;  %532 = vst [vmem:[%s3972_s29 + $0x298] sm:$0xf] %v531_v38  ;;  %v533_v39 = vld [vmem:[%s3965_s28 + $0xa70] sm:$0xf] }
  0x85   : > { %v535_v40 = vld [vmem:[%s3965_s28 + $0xa80] sm:$0xf]  ;;  %v537_v41 = vld [vmem:[%s3965_s28 + $0xa90] sm:$0xf]  ;;  %534 = vst [vmem:[%s3972_s29 + $0x29c] sm:$0xf] %v533_v39 }
  0x86   : > { %536 = vst [vmem:[%s3972_s29 + $0x2a0] sm:$0xf] %v535_v40  ;;  %538 = vst [vmem:[%s3972_s29 + $0x2a4] sm:$0xf] %v537_v41  ;;  %v539_v42 = vld [vmem:[%s3965_s28 + $0xaa0] sm:$0xf] }
  0x87   : > { %v541_v43 = vld [vmem:[%s3965_s28 + $0xab0] sm:$0xf]  ;;  %v543_v44 = vld [vmem:[%s3965_s28 + $0xac0] sm:$0xf]  ;;  %540 = vst [vmem:[%s3972_s29 + $0x2a8] sm:$0xf] %v539_v42 }
  0x88   : > { %542 = vst [vmem:[%s3972_s29 + $0x2ac] sm:$0xf] %v541_v43  ;;  %544 = vst [vmem:[%s3972_s29 + $0x2b0] sm:$0xf] %v543_v44  ;;  %v545_v45 = vld [vmem:[%s3965_s28 + $0xad0] sm:$0xf] }
  0x89   : > { %v547_v46 = vld [vmem:[%s3965_s28 + $0xae0] sm:$0xf]  ;;  %v549_v47 = vld [vmem:[%s3965_s28 + $0xaf0] sm:$0xf]  ;;  %546 = vst [vmem:[%s3972_s29 + $0x2b4] sm:$0xf] %v545_v45 }
  0x8a   : > { %548 = vst [vmem:[%s3972_s29 + $0x2b8] sm:$0xf] %v547_v46  ;;  %550 = vst [vmem:[%s3972_s29 + $0x2bc] sm:$0xf] %v549_v47  ;;  %v551_v48 = vld [vmem:[%s3965_s28 + $0xb00] sm:$0xf] }
  0x8b   : > { %v553_v49 = vld [vmem:[%s3965_s28 + $0xb10] sm:$0xf]  ;;  %v555_v50 = vld [vmem:[%s3965_s28 + $0xb20] sm:$0xf]  ;;  %552 = vst [vmem:[%s3972_s29 + $0x2c0] sm:$0xf] %v551_v48 }
  0x8c   : > { %554 = vst [vmem:[%s3972_s29 + $0x2c4] sm:$0xf] %v553_v49  ;;  %556 = vst [vmem:[%s3972_s29 + $0x2c8] sm:$0xf] %v555_v50  ;;  %v557_v51 = vld [vmem:[%s3965_s28 + $0xb30] sm:$0xf] }
  0x8d   : > { %v559_v52 = vld [vmem:[%s3965_s28 + $0xb40] sm:$0xf]  ;;  %v561_v53 = vld [vmem:[%s3965_s28 + $0xb50] sm:$0xf]  ;;  %558 = vst [vmem:[%s3972_s29 + $0x2cc] sm:$0xf] %v557_v51 }
  0x8e   : > { %560 = vst [vmem:[%s3972_s29 + $0x2d0] sm:$0xf] %v559_v52  ;;  %562 = vst [vmem:[%s3972_s29 + $0x2d4] sm:$0xf] %v561_v53  ;;  %v563_v54 = vld [vmem:[%s3965_s28 + $0xb60] sm:$0xf] }
  0x8f   : > { %v565_v55 = vld [vmem:[%s3965_s28 + $0xb70] sm:$0xf]  ;;  %v567_v56 = vld [vmem:[%s3965_s28 + $0xb80] sm:$0xf]  ;;  %564 = vst [vmem:[%s3972_s29 + $0x2d8] sm:$0xf] %v563_v54 }
  0x90   : > { %566 = vst [vmem:[%s3972_s29 + $0x2dc] sm:$0xf] %v565_v55  ;;  %568 = vst [vmem:[%s3972_s29 + $0x2e0] sm:$0xf] %v567_v56  ;;  %v569_v57 = vld [vmem:[%s3965_s28 + $0xb90] sm:$0xf] }
  0x91   : > { %v571_v58 = vld [vmem:[%s3965_s28 + $0xba0] sm:$0xf]  ;;  %v573_v59 = vld [vmem:[%s3965_s28 + $0xbb0] sm:$0xf]  ;;  %570 = vst [vmem:[%s3972_s29 + $0x2e4] sm:$0xf] %v569_v57 }
  0x92   : > { %572 = vst [vmem:[%s3972_s29 + $0x2e8] sm:$0xf] %v571_v58  ;;  %574 = vst [vmem:[%s3972_s29 + $0x2ec] sm:$0xf] %v573_v59  ;;  %v575_v60 = vld [vmem:[%s3965_s28 + $0xbc0] sm:$0xf] }
  0x93   : > { %v577_v61 = vld [vmem:[%s3965_s28 + $0xbd0] sm:$0xf]  ;;  %v579_v62 = vld [vmem:[%s3965_s28 + $0xbe0] sm:$0xf]  ;;  %576 = vst [vmem:[%s3972_s29 + $0x2f0] sm:$0xf] %v575_v60 }
  0x94   : > { %578 = vst [vmem:[%s3972_s29 + $0x2f4] sm:$0xf] %v577_v61  ;;  %580 = vst [vmem:[%s3972_s29 + $0x2f8] sm:$0xf] %v579_v62  ;;  %v581_v63 = vld [vmem:[%s3965_s28 + $0xbf0] sm:$0xf] }
  0x95   : > { %v583_v0 = vld [vmem:[%s3965_s28 + $0xc00] sm:$0xf]  ;;  %v585_v1 = vld [vmem:[%s3965_s28 + $0xc10] sm:$0xf]  ;;  %582 = vst [vmem:[%s3972_s29 + $0x2fc] sm:$0xf] %v581_v63 }
  0x96   : > { %584 = vst [vmem:[%s3972_s29 + $0x300] sm:$0xf] %v583_v0  ;;  %586 = vst [vmem:[%s3972_s29 + $0x304] sm:$0xf] %v585_v1  ;;  %v587_v2 = vld [vmem:[%s3965_s28 + $0xc20] sm:$0xf] }
  0x97   : > { %v589_v3 = vld [vmem:[%s3965_s28 + $0xc30] sm:$0xf]  ;;  %v591_v4 = vld [vmem:[%s3965_s28 + $0xc40] sm:$0xf]  ;;  %588 = vst [vmem:[%s3972_s29 + $0x308] sm:$0xf] %v587_v2 }
  0x98   : > { %590 = vst [vmem:[%s3972_s29 + $0x30c] sm:$0xf] %v589_v3  ;;  %592 = vst [vmem:[%s3972_s29 + $0x310] sm:$0xf] %v591_v4  ;;  %v593_v5 = vld [vmem:[%s3965_s28 + $0xc50] sm:$0xf] }
  0x99   : > { %v595_v6 = vld [vmem:[%s3965_s28 + $0xc60] sm:$0xf]  ;;  %v597_v7 = vld [vmem:[%s3965_s28 + $0xc70] sm:$0xf]  ;;  %594 = vst [vmem:[%s3972_s29 + $0x314] sm:$0xf] %v593_v5 }
  0x9a   : > { %596 = vst [vmem:[%s3972_s29 + $0x318] sm:$0xf] %v595_v6  ;;  %598 = vst [vmem:[%s3972_s29 + $0x31c] sm:$0xf] %v597_v7  ;;  %v599_v8 = vld [vmem:[%s3965_s28 + $0xc80] sm:$0xf] }
  0x9b   : > { %v601_v9 = vld [vmem:[%s3965_s28 + $0xc90] sm:$0xf]  ;;  %v603_v10 = vld [vmem:[%s3965_s28 + $0xca0] sm:$0xf]  ;;  %600 = vst [vmem:[%s3972_s29 + $0x320] sm:$0xf] %v599_v8 }
  0x9c   : > { %602 = vst [vmem:[%s3972_s29 + $0x324] sm:$0xf] %v601_v9  ;;  %604 = vst [vmem:[%s3972_s29 + $0x328] sm:$0xf] %v603_v10  ;;  %v605_v11 = vld [vmem:[%s3965_s28 + $0xcb0] sm:$0xf] }
  0x9d   : > { %v607_v12 = vld [vmem:[%s3965_s28 + $0xcc0] sm:$0xf]  ;;  %v609_v13 = vld [vmem:[%s3965_s28 + $0xcd0] sm:$0xf]  ;;  %606 = vst [vmem:[%s3972_s29 + $0x32c] sm:$0xf] %v605_v11 }
  0x9e   : > { %608 = vst [vmem:[%s3972_s29 + $0x330] sm:$0xf] %v607_v12  ;;  %610 = vst [vmem:[%s3972_s29 + $0x334] sm:$0xf] %v609_v13  ;;  %v611_v14 = vld [vmem:[%s3965_s28 + $0xce0] sm:$0xf] }
  0x9f   : > { %v613_v15 = vld [vmem:[%s3965_s28 + $0xcf0] sm:$0xf]  ;;  %v615_v16 = vld [vmem:[%s3965_s28 + $0xd00] sm:$0xf]  ;;  %612 = vst [vmem:[%s3972_s29 + $0x338] sm:$0xf] %v611_v14 }
  0xa0   : > { %614 = vst [vmem:[%s3972_s29 + $0x33c] sm:$0xf] %v613_v15  ;;  %616 = vst [vmem:[%s3972_s29 + $0x340] sm:$0xf] %v615_v16  ;;  %v617_v17 = vld [vmem:[%s3965_s28 + $0xd10] sm:$0xf] }
  0xa1   : > { %v619_v18 = vld [vmem:[%s3965_s28 + $0xd20] sm:$0xf]  ;;  %v621_v19 = vld [vmem:[%s3965_s28 + $0xd30] sm:$0xf]  ;;  %618 = vst [vmem:[%s3972_s29 + $0x344] sm:$0xf] %v617_v17 }
  0xa2   : > { %620 = vst [vmem:[%s3972_s29 + $0x348] sm:$0xf] %v619_v18  ;;  %622 = vst [vmem:[%s3972_s29 + $0x34c] sm:$0xf] %v621_v19  ;;  %v623_v20 = vld [vmem:[%s3965_s28 + $0xd40] sm:$0xf] }
  0xa3   : > { %v625_v21 = vld [vmem:[%s3965_s28 + $0xd50] sm:$0xf]  ;;  %v627_v22 = vld [vmem:[%s3965_s28 + $0xd60] sm:$0xf]  ;;  %624 = vst [vmem:[%s3972_s29 + $0x350] sm:$0xf] %v623_v20 }
  0xa4   : > { %626 = vst [vmem:[%s3972_s29 + $0x354] sm:$0xf] %v625_v21  ;;  %628 = vst [vmem:[%s3972_s29 + $0x358] sm:$0xf] %v627_v22  ;;  %v629_v23 = vld [vmem:[%s3965_s28 + $0xd70] sm:$0xf] }
  0xa5   : > { %v631_v24 = vld [vmem:[%s3965_s28 + $0xd80] sm:$0xf]  ;;  %v633_v25 = vld [vmem:[%s3965_s28 + $0xd90] sm:$0xf]  ;;  %630 = vst [vmem:[%s3972_s29 + $0x35c] sm:$0xf] %v629_v23 }
  0xa6   : > { %632 = vst [vmem:[%s3972_s29 + $0x360] sm:$0xf] %v631_v24  ;;  %634 = vst [vmem:[%s3972_s29 + $0x364] sm:$0xf] %v633_v25  ;;  %v635_v26 = vld [vmem:[%s3965_s28 + $0xda0] sm:$0xf] }
  0xa7   : > { %v637_v27 = vld [vmem:[%s3965_s28 + $0xdb0] sm:$0xf]  ;;  %v639_v28 = vld [vmem:[%s3965_s28 + $0xdc0] sm:$0xf]  ;;  %636 = vst [vmem:[%s3972_s29 + $0x368] sm:$0xf] %v635_v26 }
  0xa8   : > { %638 = vst [vmem:[%s3972_s29 + $0x36c] sm:$0xf] %v637_v27  ;;  %640 = vst [vmem:[%s3972_s29 + $0x370] sm:$0xf] %v639_v28  ;;  %v641_v29 = vld [vmem:[%s3965_s28 + $0xdd0] sm:$0xf] }
  0xa9   : > { %v643_v30 = vld [vmem:[%s3965_s28 + $0xde0] sm:$0xf]  ;;  %v645_v31 = vld [vmem:[%s3965_s28 + $0xdf0] sm:$0xf]  ;;  %642 = vst [vmem:[%s3972_s29 + $0x374] sm:$0xf] %v641_v29 }
  0xaa   : > { %644 = vst [vmem:[%s3972_s29 + $0x378] sm:$0xf] %v643_v30  ;;  %646 = vst [vmem:[%s3972_s29 + $0x37c] sm:$0xf] %v645_v31  ;;  %v647_v32 = vld [vmem:[%s3965_s28 + $0xe00] sm:$0xf] }
  0xab   : > { %v649_v33 = vld [vmem:[%s3965_s28 + $0xe10] sm:$0xf]  ;;  %v651_v34 = vld [vmem:[%s3965_s28 + $0xe20] sm:$0xf]  ;;  %648 = vst [vmem:[%s3972_s29 + $0x380] sm:$0xf] %v647_v32 }
  0xac   : > { %650 = vst [vmem:[%s3972_s29 + $0x384] sm:$0xf] %v649_v33  ;;  %652 = vst [vmem:[%s3972_s29 + $0x388] sm:$0xf] %v651_v34  ;;  %v653_v35 = vld [vmem:[%s3965_s28 + $0xe30] sm:$0xf] }
  0xad   : > { %v655_v36 = vld [vmem:[%s3965_s28 + $0xe40] sm:$0xf]  ;;  %v657_v37 = vld [vmem:[%s3965_s28 + $0xe50] sm:$0xf]  ;;  %654 = vst [vmem:[%s3972_s29 + $0x38c] sm:$0xf] %v653_v35 }
  0xae   : > { %656 = vst [vmem:[%s3972_s29 + $0x390] sm:$0xf] %v655_v36  ;;  %658 = vst [vmem:[%s3972_s29 + $0x394] sm:$0xf] %v657_v37  ;;  %v659_v38 = vld [vmem:[%s3965_s28 + $0xe60] sm:$0xf] }
  0xaf   : > { %v661_v39 = vld [vmem:[%s3965_s28 + $0xe70] sm:$0xf]  ;;  %v663_v40 = vld [vmem:[%s3965_s28 + $0xe80] sm:$0xf]  ;;  %660 = vst [vmem:[%s3972_s29 + $0x398] sm:$0xf] %v659_v38 }
  0xb0   : > { %662 = vst [vmem:[%s3972_s29 + $0x39c] sm:$0xf] %v661_v39  ;;  %664 = vst [vmem:[%s3972_s29 + $0x3a0] sm:$0xf] %v663_v40  ;;  %v665_v41 = vld [vmem:[%s3965_s28 + $0xe90] sm:$0xf] }
  0xb1   : > { %v667_v42 = vld [vmem:[%s3965_s28 + $0xea0] sm:$0xf]  ;;  %v669_v43 = vld [vmem:[%s3965_s28 + $0xeb0] sm:$0xf]  ;;  %666 = vst [vmem:[%s3972_s29 + $0x3a4] sm:$0xf] %v665_v41 }
  0xb2   : > { %668 = vst [vmem:[%s3972_s29 + $0x3a8] sm:$0xf] %v667_v42  ;;  %670 = vst [vmem:[%s3972_s29 + $0x3ac] sm:$0xf] %v669_v43  ;;  %v671_v44 = vld [vmem:[%s3965_s28 + $0xec0] sm:$0xf] }
  0xb3   : > { %v673_v45 = vld [vmem:[%s3965_s28 + $0xed0] sm:$0xf]  ;;  %v675_v46 = vld [vmem:[%s3965_s28 + $0xee0] sm:$0xf]  ;;  %672 = vst [vmem:[%s3972_s29 + $0x3b0] sm:$0xf] %v671_v44 }
  0xb4   : > { %674 = vst [vmem:[%s3972_s29 + $0x3b4] sm:$0xf] %v673_v45  ;;  %676 = vst [vmem:[%s3972_s29 + $0x3b8] sm:$0xf] %v675_v46  ;;  %v677_v47 = vld [vmem:[%s3965_s28 + $0xef0] sm:$0xf] }
  0xb5   : > { %v679_v48 = vld [vmem:[%s3965_s28 + $0xf00] sm:$0xf]  ;;  %v681_v49 = vld [vmem:[%s3965_s28 + $0xf10] sm:$0xf]  ;;  %678 = vst [vmem:[%s3972_s29 + $0x3bc] sm:$0xf] %v677_v47 }
  0xb6   : > { %680 = vst [vmem:[%s3972_s29 + $0x3c0] sm:$0xf] %v679_v48  ;;  %682 = vst [vmem:[%s3972_s29 + $0x3c4] sm:$0xf] %v681_v49  ;;  %v683_v50 = vld [vmem:[%s3965_s28 + $0xf20] sm:$0xf] }
  0xb7   : > { %v685_v51 = vld [vmem:[%s3965_s28 + $0xf30] sm:$0xf]  ;;  %v687_v52 = vld [vmem:[%s3965_s28 + $0xf40] sm:$0xf]  ;;  %684 = vst [vmem:[%s3972_s29 + $0x3c8] sm:$0xf] %v683_v50 }
  0xb8   : > { %686 = vst [vmem:[%s3972_s29 + $0x3cc] sm:$0xf] %v685_v51  ;;  %688 = vst [vmem:[%s3972_s29 + $0x3d0] sm:$0xf] %v687_v52  ;;  %v689_v53 = vld [vmem:[%s3965_s28 + $0xf50] sm:$0xf] }
  0xb9   : > { %v691_v54 = vld [vmem:[%s3965_s28 + $0xf60] sm:$0xf]  ;;  %v693_v55 = vld [vmem:[%s3965_s28 + $0xf70] sm:$0xf]  ;;  %690 = vst [vmem:[%s3972_s29 + $0x3d4] sm:$0xf] %v689_v53 }
  0xba   : > { %692 = vst [vmem:[%s3972_s29 + $0x3d8] sm:$0xf] %v691_v54  ;;  %694 = vst [vmem:[%s3972_s29 + $0x3dc] sm:$0xf] %v693_v55  ;;  %v695_v56 = vld [vmem:[%s3965_s28 + $0xf80] sm:$0xf] }
  0xbb   : > { %v697_v57 = vld [vmem:[%s3965_s28 + $0xf90] sm:$0xf]  ;;  %v699_v58 = vld [vmem:[%s3965_s28 + $0xfa0] sm:$0xf]  ;;  %696 = vst [vmem:[%s3972_s29 + $0x3e0] sm:$0xf] %v695_v56 }
  0xbc   : > { %698 = vst [vmem:[%s3972_s29 + $0x3e4] sm:$0xf] %v697_v57  ;;  %700 = vst [vmem:[%s3972_s29 + $0x3e8] sm:$0xf] %v699_v58  ;;  %v701_v59 = vld [vmem:[%s3965_s28 + $0xfb0] sm:$0xf] }
  0xbd   : > { %v703_v60 = vld [vmem:[%s3965_s28 + $0xfc0] sm:$0xf]  ;;  %v705_v61 = vld [vmem:[%s3965_s28 + $0xfd0] sm:$0xf]  ;;  %702 = vst [vmem:[%s3972_s29 + $0x3ec] sm:$0xf] %v701_v59 }
  0xbe   : > { %704 = vst [vmem:[%s3972_s29 + $0x3f0] sm:$0xf] %v703_v60  ;;  %706 = vst [vmem:[%s3972_s29 + $0x3f4] sm:$0xf] %v705_v61  ;;  %v707_v62 = vld [vmem:[%s3965_s28 + $0xfe0] sm:$0xf] }
  0xbf   : > { %v709_v63 = vld [vmem:[%s3965_s28 + $0xff0] sm:$0xf]  ;;  %v711_v0 = vld [vmem:[%s3965_s28 + $0x1000] sm:$0xf]  ;;  %708 = vst [vmem:[%s3972_s29 + $0x3f8] sm:$0xf] %v707_v62 }
  0xc0   : > { %710 = vst [vmem:[%s3972_s29 + $0x3fc] sm:$0xf] %v709_v63  ;;  %712 = vst [vmem:[%s3972_s29 + $0x400] sm:$0xf] %v711_v0  ;;  %v713_v1 = vld [vmem:[%s3965_s28 + $0x1010] sm:$0xf] }
  0xc1   : > { %v715_v2 = vld [vmem:[%s3965_s28 + $0x1020] sm:$0xf]  ;;  %v717_v3 = vld [vmem:[%s3965_s28 + $0x1030] sm:$0xf]  ;;  %714 = vst [vmem:[%s3972_s29 + $0x404] sm:$0xf] %v713_v1 }
  0xc2   : > { %716 = vst [vmem:[%s3972_s29 + $0x408] sm:$0xf] %v715_v2  ;;  %718 = vst [vmem:[%s3972_s29 + $0x40c] sm:$0xf] %v717_v3  ;;  %v719_v4 = vld [vmem:[%s3965_s28 + $0x1040] sm:$0xf] }
  0xc3   : > { %v721_v5 = vld [vmem:[%s3965_s28 + $0x1050] sm:$0xf]  ;;  %v723_v6 = vld [vmem:[%s3965_s28 + $0x1060] sm:$0xf]  ;;  %720 = vst [vmem:[%s3972_s29 + $0x410] sm:$0xf] %v719_v4 }
  0xc4   : > { %722 = vst [vmem:[%s3972_s29 + $0x414] sm:$0xf] %v721_v5  ;;  %724 = vst [vmem:[%s3972_s29 + $0x418] sm:$0xf] %v723_v6  ;;  %v725_v7 = vld [vmem:[%s3965_s28 + $0x1070] sm:$0xf] }
  0xc5   : > { %v727_v8 = vld [vmem:[%s3965_s28 + $0x1080] sm:$0xf]  ;;  %v729_v9 = vld [vmem:[%s3965_s28 + $0x1090] sm:$0xf]  ;;  %726 = vst [vmem:[%s3972_s29 + $0x41c] sm:$0xf] %v725_v7 }
  0xc6   : > { %728 = vst [vmem:[%s3972_s29 + $0x420] sm:$0xf] %v727_v8  ;;  %730 = vst [vmem:[%s3972_s29 + $0x424] sm:$0xf] %v729_v9  ;;  %v731_v10 = vld [vmem:[%s3965_s28 + $0x10a0] sm:$0xf] }
  0xc7   : > { %v733_v11 = vld [vmem:[%s3965_s28 + $0x10b0] sm:$0xf]  ;;  %v735_v12 = vld [vmem:[%s3965_s28 + $0x10c0] sm:$0xf]  ;;  %732 = vst [vmem:[%s3972_s29 + $0x428] sm:$0xf] %v731_v10 }
  0xc8   : > { %734 = vst [vmem:[%s3972_s29 + $0x42c] sm:$0xf] %v733_v11  ;;  %736 = vst [vmem:[%s3972_s29 + $0x430] sm:$0xf] %v735_v12  ;;  %v737_v13 = vld [vmem:[%s3965_s28 + $0x10d0] sm:$0xf] }
  0xc9   : > { %v739_v14 = vld [vmem:[%s3965_s28 + $0x10e0] sm:$0xf]  ;;  %v741_v15 = vld [vmem:[%s3965_s28 + $0x10f0] sm:$0xf]  ;;  %738 = vst [vmem:[%s3972_s29 + $0x434] sm:$0xf] %v737_v13 }
  0xca   : > { %740 = vst [vmem:[%s3972_s29 + $0x438] sm:$0xf] %v739_v14  ;;  %742 = vst [vmem:[%s3972_s29 + $0x43c] sm:$0xf] %v741_v15  ;;  %v743_v16 = vld [vmem:[%s3965_s28 + $0x1100] sm:$0xf] }
  0xcb   : > { %v745_v17 = vld [vmem:[%s3965_s28 + $0x1110] sm:$0xf]  ;;  %v747_v18 = vld [vmem:[%s3965_s28 + $0x1120] sm:$0xf]  ;;  %744 = vst [vmem:[%s3972_s29 + $0x440] sm:$0xf] %v743_v16 }
  0xcc   : > { %746 = vst [vmem:[%s3972_s29 + $0x444] sm:$0xf] %v745_v17  ;;  %748 = vst [vmem:[%s3972_s29 + $0x448] sm:$0xf] %v747_v18  ;;  %v749_v19 = vld [vmem:[%s3965_s28 + $0x1130] sm:$0xf] }
  0xcd   : > { %v751_v20 = vld [vmem:[%s3965_s28 + $0x1140] sm:$0xf]  ;;  %v753_v21 = vld [vmem:[%s3965_s28 + $0x1150] sm:$0xf]  ;;  %750 = vst [vmem:[%s3972_s29 + $0x44c] sm:$0xf] %v749_v19 }
  0xce   : > { %752 = vst [vmem:[%s3972_s29 + $0x450] sm:$0xf] %v751_v20  ;;  %754 = vst [vmem:[%s3972_s29 + $0x454] sm:$0xf] %v753_v21  ;;  %v755_v22 = vld [vmem:[%s3965_s28 + $0x1160] sm:$0xf] }
  0xcf   : > { %v757_v23 = vld [vmem:[%s3965_s28 + $0x1170] sm:$0xf]  ;;  %v759_v24 = vld [vmem:[%s3965_s28 + $0x1180] sm:$0xf]  ;;  %756 = vst [vmem:[%s3972_s29 + $0x458] sm:$0xf] %v755_v22 }
  0xd0   : > { %758 = vst [vmem:[%s3972_s29 + $0x45c] sm:$0xf] %v757_v23  ;;  %760 = vst [vmem:[%s3972_s29 + $0x460] sm:$0xf] %v759_v24  ;;  %v761_v25 = vld [vmem:[%s3965_s28 + $0x1190] sm:$0xf] }
  0xd1   : > { %v763_v26 = vld [vmem:[%s3965_s28 + $0x11a0] sm:$0xf]  ;;  %v765_v27 = vld [vmem:[%s3965_s28 + $0x11b0] sm:$0xf]  ;;  %762 = vst [vmem:[%s3972_s29 + $0x464] sm:$0xf] %v761_v25 }
  0xd2   : > { %764 = vst [vmem:[%s3972_s29 + $0x468] sm:$0xf] %v763_v26  ;;  %766 = vst [vmem:[%s3972_s29 + $0x46c] sm:$0xf] %v765_v27  ;;  %v767_v28 = vld [vmem:[%s3965_s28 + $0x11c0] sm:$0xf] }
  0xd3   : > { %v769_v29 = vld [vmem:[%s3965_s28 + $0x11d0] sm:$0xf]  ;;  %v771_v30 = vld [vmem:[%s3965_s28 + $0x11e0] sm:$0xf]  ;;  %768 = vst [vmem:[%s3972_s29 + $0x470] sm:$0xf] %v767_v28 }
  0xd4   : > { %770 = vst [vmem:[%s3972_s29 + $0x474] sm:$0xf] %v769_v29  ;;  %772 = vst [vmem:[%s3972_s29 + $0x478] sm:$0xf] %v771_v30  ;;  %v773_v31 = vld [vmem:[%s3965_s28 + $0x11f0] sm:$0xf] }
  0xd5   : > { %774 = vst [vmem:[%s3972_s29 + $0x47c] sm:$0xf] %v773_v31 }
  0xd6 PF: > { %p3268_p8 = scmp.ge.s32.totalorder %s3895_s16, 1  ;;  %p1378_p9 = scmp.lt.s32.totalorder %s3895_s16, 5 }
  0xd8   : > { %p1379_p10 = pnand %p3268_p8, %p1378_p9 }
  0xd9   : > { %s1385_s30 = sand.u32 (!%p1379_p10), 1, %s3879_s12   ;;  %v3720_v32 = vld [vmem:[%s4778_s0 + $0x4] ss:$72 sps:$4 sm:$0xff] (!%p1379_p10)   ;;  %v3718_v0 = vld [vmem:[%s4778_s0] ss:$72 sps:$4 sm:$0xff] (!%p1379_p10)   ;;  %p1433_p11 = scmp.lt.s32.totalorder (!%p1379_p10), %s3887_s14, 3 }
  0xda   : > { %1382 = sbr.rel (%p1379_p10) target bundleno = 618 (0x26a), region = 69  ;;  %v3723_v33 = vld [vmem:[%s4778_s0 + $0xc] ss:$72 sps:$4 sm:$0xff] (!%p1379_p10)   ;;  %2738 = vmatprep.mubr.bf16.mxu0 (!%p1379_p10), %v3720_v32  ;;  %v3721_v2 = vld [vmem:[%s4778_s0 + $0x8] ss:$72 sps:$4 sm:$0xff] (!%p1379_p10)   ;;  %s3269_s11 = sshll.u32 (!%p1379_p10), %s1385_s30, 3 }
  0xdb   : > { %s3645_s4 = smul.u32 (!%p1379_p10), 1152, %s1385_s30  ;;  %2779 = vmatprep.mubr.bf16.mxu1 (!%p1379_p10), %v3723_v33  ;;  %v3757_v4 = vld [vmem:[%s4778_s0 + $0x14] ss:$72 sps:$4 sm:$0xff] (!%p1379_p10)   ;;  %s1419_s18 = scalar_lea.vmem (!%p1379_p10), [#allocation4], %s3269_s11 }
  0xdd   : > { %s4556_s9 = scalar_lea.vmem (!%p1379_p10), [#allocation3], %s3645_s4 }
  0xde   : > { %v3686_v34 = vld [vmem:[%s4556_s9 + $0x40] sm:$0xff] (!%p1379_p10)   ;;  %v3690_v38 = vld [vmem:[%s4556_s9 + $0x48] sm:$0xff] (!%p1379_p10)   ;;  %v3694_v42 = vld [vmem:[%s4556_s9 + $0x50] sm:$0xff] (!%p1379_p10)  }
  0xdf   : > { %v3687_v35 = vld [vmem:[%s4556_s9 + $0xc0] sm:$0xff] (!%p1379_p10)   ;;  %3446 = vmatprep.subr.bf16.mxu0 (!%p1379_p10), %v3686_v34  ;;  %v3691_v39 = vld [vmem:[%s4556_s9 + $0xc8] sm:$0xff] (!%p1379_p10)   ;;  %v3695_v43 = vld [vmem:[%s4556_s9 + $0xd0] sm:$0xff] (!%p1379_p10)  }
  0xe0   : > { %v3688_v36 = vld [vmem:[%s4556_s9] sm:$0xff] (!%p1379_p10)   ;;  %3468 = vmatprep.subr.bf16.mxu1 (!%p1379_p10), %v3687_v35  ;;  %v3692_v40 = vld [vmem:[%s4556_s9 + $0x8] sm:$0xff] (!%p1379_p10)   ;;  %v3696_v44 = vld [vmem:[%s4556_s9 + $0x10] sm:$0xff] (!%p1379_p10)  }
  0xe1   : > { %v3689_v37 = vld [vmem:[%s4556_s9 + $0x80] sm:$0xff]   ;;  %3447 = vmatpush3.bf16.msra.mxu0 %v3688_v36  ;;  %v3693_v41 = vld [vmem:[%s4556_s9 + $0x88] sm:$0xff]   ;;  %v3697_v45 = vld [vmem:[%s4556_s9 + $0x90] sm:$0xff]   ;;  %s3436_s19 = sshll.u32 (%p3952_p6), %s3887_s14, 2 }
  0xe2   : > { %3469 = vmatpush3.bf16.msra.mxu1 %v3689_v37  ;;  %3448 = vmatprep.subr.bf16.mxu0 %v3690_v38  ;;  %v3698_v46 = vld [vmem:[%s4556_s9 + $0x58] sm:$0xff]   ;;  %v3702_v50 = vld [vmem:[%s4556_s9 + $0x60] sm:$0xff]   ;;  %v3706_v54 = vld [vmem:[%s4556_s9 + $0x68] sm:$0xff]   ;;  %s3116_s24 = scalar_lea.vmem (%p3952_p6), %s4781_s3, %s3436_s19 }
  0xe3   : > { %3470 = vmatprep.subr.bf16.mxu1 %v3691_v39  ;;  %v3699_v47 = vld [vmem:[%s4556_s9 + $0xd8] sm:$0xff]   ;;  %v3703_v51 = vld [vmem:[%s4556_s9 + $0xe0] sm:$0xff]   ;;  %v3707_v55 = vld [vmem:[%s4556_s9 + $0xe8] sm:$0xff]  }
  0xe4   : > { %v3700_v48 = vld [vmem:[%s4556_s9 + $0x18] sm:$0xff]   ;;  %v3704_v52 = vld [vmem:[%s4556_s9 + $0x20] sm:$0xff]   ;;  %v3708_v56 = vld [vmem:[%s4556_s9 + $0x28] sm:$0xff]  }
  0xe5   : > { %3449 = vmatpush3.bf16.msra.mxu0 %v3692_v40  ;;  %v3701_v49 = vld [vmem:[%s4556_s9 + $0x98] sm:$0xff]   ;;  %v3705_v53 = vld [vmem:[%s4556_s9 + $0xa0] sm:$0xff]   ;;  %v3709_v57 = vld [vmem:[%s4556_s9 + $0xa8] sm:$0xff]  }
  0xe6   : > { %3471 = vmatpush3.bf16.msra.mxu1 %v3693_v41  ;;  %3450 = vmatprep.subr.bf16.mxu0 %v3694_v42  ;;  %v3710_v58 = vld [vmem:[%s4556_s9 + $0x70] sm:$0xff]   ;;  %v3714_v62 = vld [vmem:[%s4556_s9 + $0x78] sm:$0xff]   ;;  %v3724_v5 = vld [vmem:[%s4556_s9 + $0x140] sm:$0xff]  }
  0xe7   : > { %3472 = vmatprep.subr.bf16.mxu1 %v3695_v43  ;;  %v3711_v59 = vld [vmem:[%s4556_s9 + $0xf0] sm:$0xff]   ;;  %v3715_v63 = vld [vmem:[%s4556_s9 + $0xf8] sm:$0xff]   ;;  %v3725_v6 = vld [vmem:[%s4556_s9 + $0x100] sm:$0xff]  }
  0xe8   : > { %v3712_v60 = vld [vmem:[%s4556_s9 + $0x30] sm:$0xff]   ;;  %v3716_v1 = vld [vmem:[%s4556_s9 + $0x38] sm:$0xff]   ;;  %v3726_v7 = vld [vmem:[%s4556_s9 + $0x1c0] sm:$0xff]  }
  0xe9   : > { %3451 = vmatpush3.bf16.msra.mxu0 %v3696_v44  ;;  %v3713_v61 = vld [vmem:[%s4556_s9 + $0xb0] sm:$0xff]   ;;  %v3717_v3 = vld [vmem:[%s4556_s9 + $0xb8] sm:$0xff]   ;;  %v3727_v8 = vld [vmem:[%s4556_s9 + $0x180] sm:$0xff]  }
  0xea   : > { %3473 = vmatpush3.bf16.msra.mxu1 %v3697_v45  ;;  %3452 = vmatprep.subr.bf16.mxu0 %v3698_v46  ;;  %v3728_v9 = vld [vmem:[%s4556_s9 + $0x148] sm:$0xff]   ;;  %v3732_v13 = vld [vmem:[%s4556_s9 + $0x150] sm:$0xff]   ;;  %v3736_v17 = vld [vmem:[%s4556_s9 + $0x158] sm:$0xff]  }
  0xeb   : > { %3474 = vmatprep.subr.bf16.mxu1 %v3699_v47  ;;  %v3729_v10 = vld [vmem:[%s4556_s9 + $0x108] sm:$0xff]   ;;  %v3733_v14 = vld [vmem:[%s4556_s9 + $0x110] sm:$0xff]   ;;  %v3737_v18 = vld [vmem:[%s4556_s9 + $0x118] sm:$0xff]  }
  0xec   : > { %v3730_v11 = vld [vmem:[%s4556_s9 + $0x1c8] sm:$0xff]   ;;  %v3734_v15 = vld [vmem:[%s4556_s9 + $0x1d0] sm:$0xff]   ;;  %v3738_v19 = vld [vmem:[%s4556_s9 + $0x1d8] sm:$0xff]  }
  0xed   : > { %3453 = vmatpush3.bf16.msra.mxu0 %v3700_v48  ;;  %v3731_v12 = vld [vmem:[%s4556_s9 + $0x188] sm:$0xff]   ;;  %v3735_v16 = vld [vmem:[%s4556_s9 + $0x190] sm:$0xff]   ;;  %v3739_v20 = vld [vmem:[%s4556_s9 + $0x198] sm:$0xff]  }
  0xee   : > { %3475 = vmatpush3.bf16.msra.mxu1 %v3701_v49  ;;  %3454 = vmatprep.subr.bf16.mxu0 %v3702_v50  ;;  %v3740_v21 = vld [vmem:[%s4556_s9 + $0x160] sm:$0xff]   ;;  %v3744_v25 = vld [vmem:[%s4556_s9 + $0x168] sm:$0xff]   ;;  %v3748_v29 = vld [vmem:[%s4556_s9 + $0x170] sm:$0xff]  }
  0xef   : > { %3476 = vmatprep.subr.bf16.mxu1 %v3703_v51  ;;  %v3741_v22 = vld [vmem:[%s4556_s9 + $0x120] sm:$0xff]   ;;  %v3745_v26 = vld [vmem:[%s4556_s9 + $0x128] sm:$0xff]   ;;  %v3749_v30 = vld [vmem:[%s4556_s9 + $0x130] sm:$0xff]  }
  0xf0   : > { %v3742_v23 = vld [vmem:[%s4556_s9 + $0x1e0] sm:$0xff]   ;;  %v3746_v27 = vld [vmem:[%s4556_s9 + $0x1e8] sm:$0xff]   ;;  %v3750_v31 = vld [vmem:[%s4556_s9 + $0x1f0] sm:$0xff]  }
  0xf1   : > { %3455 = vmatpush3.bf16.msra.mxu0 %v3704_v52  ;;  %v3743_v24 = vld [vmem:[%s4556_s9 + $0x1a0] sm:$0xff]   ;;  %v3747_v28 = vld [vmem:[%s4556_s9 + $0x1a8] sm:$0xff]   ;;  %v3751_v32 = vld [vmem:[%s4556_s9 + $0x1b0] sm:$0xff]  }
  0xf2   : > { %3477 = vmatpush3.bf16.msra.mxu1 %v3705_v53  ;;  %3456 = vmatprep.subr.bf16.mxu0 %v3706_v54  ;;  %v3752_v33 = vld [vmem:[%s4556_s9 + $0x178] sm:$0xff]   ;;  %v3759_v38 = vld [vmem:[%s4556_s9 + $0x240] sm:$0xff]   ;;  %v3766_v44 = vld [vmem:[%s4556_s9 + $0x248] sm:$0xff]  }
  0xf3   : > { %3478 = vmatprep.subr.bf16.mxu1 %v3707_v55  ;;  %v3753_v34 = vld [vmem:[%s4556_s9 + $0x138] sm:$0xff]   ;;  %v3763_v41 = vld [vmem:[%s4556_s9 + $0x200] sm:$0xff]   ;;  %v3767_v45 = vld [vmem:[%s4556_s9 + $0x208] sm:$0xff]  }
  0xf4   : > { %v3755_v35 = vld [vmem:[%s4778_s0 + $0x10] ss:$72 sps:$4 sm:$0xff]   ;;  %v3762_v40 = vld [vmem:[%s4778_s0 + $0x1c] ss:$72 sps:$4 sm:$0xff]   ;;  %v3768_v46 = vld [vmem:[%s4556_s9 + $0x2c8] sm:$0xff]  }
  0xf5   : > { %3457 = vmatpush3.bf16.msra.mxu0 %v3708_v56  ;;  %v3754_v36 = vld [vmem:[%s4556_s9 + $0x1f8] sm:$0xff]   ;;  %v3764_v42 = vld [vmem:[%s4556_s9 + $0x2c0] sm:$0xff]   ;;  %v3769_v47 = vld [vmem:[%s4556_s9 + $0x288] sm:$0xff]  }
  0xf6   : > { %3479 = vmatpush3.bf16.msra.mxu1 %v3709_v57  ;;  %3458 = vmatprep.subr.bf16.mxu0 %v3710_v58  ;;  %v3758_v37 = vld [vmem:[%s4556_s9 + $0x1b8] sm:$0xff]   ;;  %v3765_v43 = vld [vmem:[%s4556_s9 + $0x280] sm:$0xff]   ;;  %v3770_v48 = vld [vmem:[%s4556_s9 + $0x250] sm:$0xff]  }
  0xf7   : > { %3480 = vmatprep.subr.bf16.mxu1 %v3711_v59  ;;  %v3760_v39 = vld [vmem:[%s4778_s0 + $0x18] ss:$72 sps:$4 sm:$0xff]   ;;  %v3771_v49 = vld [vmem:[%s4556_s9 + $0x210] sm:$0xff]  }
  0xf8   : > { %v3772_v50 = vld [vmem:[%s4556_s9 + $0x2d0] sm:$0xff]   ;;  %v3774_v52 = vld [vmem:[%s4556_s9 + $0x258] sm:$0xff]   ;;  %v3778_v56 = vld [vmem:[%s4556_s9 + $0x260] sm:$0xff]  }
  0xf9   : > { %3459 = vmatpush3.bf16.msra.mxu0 %v3712_v60  ;;  %v3773_v51 = vld [vmem:[%s4556_s9 + $0x290] sm:$0xff]   ;;  %v3775_v53 = vld [vmem:[%s4556_s9 + $0x218] sm:$0xff]   ;;  %v3779_v57 = vld [vmem:[%s4556_s9 + $0x220] sm:$0xff]  }
  0xfa   : > { %3481 = vmatpush3.bf16.msra.mxu1 %v3713_v61  ;;  %3460 = vmatprep.subr.bf16.mxu0 %v3714_v62  ;;  %v3776_v54 = vld [vmem:[%s4556_s9 + $0x2d8] sm:$0xff]   ;;  %v3780_v58 = vld [vmem:[%s4556_s9 + $0x2e0] sm:$0xff]   ;;  %v3782_v60 = vld [vmem:[%s4556_s9 + $0x268] sm:$0xff]  }
  0xfb   : > { %3482 = vmatprep.subr.bf16.mxu1 %v3715_v63  ;;  %v3777_v55 = vld [vmem:[%s4556_s9 + $0x298] sm:$0xff]   ;;  %v3781_v59 = vld [vmem:[%s4556_s9 + $0x2a0] sm:$0xff]   ;;  %v3783_v61 = vld [vmem:[%s4556_s9 + $0x228] sm:$0xff]  }
  0xfc   : > { %v3784_v62 = vld [vmem:[%s4556_s9 + $0x2e8] sm:$0xff]  }
  0xfd   : > { %3461 = vmatpush3.bf16.msra.mxu0 %v3716_v1  ;;  %v3785_v63 = vld [vmem:[%s4556_s9 + $0x2a8] sm:$0xff]   ;;  %v3787_v1 = vld [vmem:[%s4556_s9 + $0x230] sm:$0xff]  }
  0xfe   : > { %3483 = vmatpush3.bf16.msra.mxu1 %v3717_v3  ;;  %3490 = vmatprep.subr.bf16.mxu0 %v3724_v5  ;;  %v3789_v3 = vld [vmem:[%s4556_s9 + $0x2b0] sm:$0xff]   ;;  %v3791_v5 = vld [vmem:[%s4556_s9 + $0x238] sm:$0xff]  }
  0xff   : > { %3512 = vmatprep.subr.bf16.mxu1 %v3726_v7  ;;  %v3793_v7 = vld [vmem:[%s4778_s0 + $0x20] ss:$72 sps:$4 sm:$0xff]  }
 0x100   : > { %2739 = vmatmul.mubr.bf16.vlgmr.msra.gmra.mrb[0].mxu0 %v3718_v0  ;;  %v3786_v0 = vld [vmem:[%s4556_s9 + $0x270] sm:$0xff]  }
 0x101   : > { %2780 = vmatmul.mubr.bf16.vlgmr.msra.gmra.mrb[0].mxu1 %v3721_v2  ;;  %3491 = vmatpush3.bf16.msra.mxu0 %v3725_v6  ;;  %v3788_v2 = vld [vmem:[%s4556_s9 + $0x2f0] sm:$0xff]   ;;  %v3792_v6 = vld [vmem:[%s4556_s9 + $0x2f8] sm:$0xff]  }
 0x102   : > { %2820 = vmatprep.mubr.bf16.mxu0 %v3757_v4  ;;  %3513 = vmatpush3.bf16.msra.mxu1 %v3727_v8  ;;  %v3790_v4 = vld [vmem:[%s4556_s9 + $0x278] sm:$0xff]   ;;  %v3795_v8 = vld [vmem:[%s4778_s0 + $0x24] ss:$72 sps:$4 sm:$0xff]  }
 0x103   : > { %3492 = vmatprep.subr.bf16.mxu0 %v3728_v9  ;;  %3514 = vmatprep.subr.bf16.mxu1 %v3730_v11  ;;  %v3796_v9 = vld [vmem:[%s4556_s9 + $0x2b8] sm:$0xff]   ;;  %v3798_v11 = vld [vmem:[%s4778_s0 + $0x28] ss:$72 sps:$4 sm:$0xff]  }
 0x104   : > { %2861 = vmatprep.mubr.bf16.mxu1 %v3762_v40  ;;  %v3828_v40 = vld [vmem:[%s4556_s9 + $0x378] sm:$0xff]  }
 0x105   : > { %3493 = vmatpush3.bf16.msra.mxu0 %v3729_v10  ;;  %v3797_v10 = vld [vmem:[%s4556_s9 + $0x340] sm:$0xff]  }
 0x106   : > { %3515 = vmatpush3.bf16.msra.mxu1 %v3731_v12  ;;  %3494 = vmatprep.subr.bf16.mxu0 %v3732_v13  ;;  %v3800_v12 = vld [vmem:[%s4778_s0 + $0x2c] ss:$72 sps:$4 sm:$0xff]   ;;  %v3801_v13 = vld [vmem:[%s4556_s9 + $0x300] sm:$0xff]  }
 0x107   : > { %3516 = vmatprep.subr.bf16.mxu1 %v3734_v15  ;;  %v3803_v15 = vld [vmem:[%s4556_s9 + $0x380] sm:$0xff]  }
 0x109   : > { %3495 = vmatpush3.bf16.msra.mxu0 %v3733_v14  ;;  %v3802_v14 = vld [vmem:[%s4556_s9 + $0x3c0] sm:$0xff]  }
 0x10a   : > { %3517 = vmatpush3.bf16.msra.mxu1 %v3735_v16  ;;  %3496 = vmatprep.subr.bf16.mxu0 %v3736_v17  ;;  %v3804_v16 = vld [vmem:[%s4556_s9 + $0x348] sm:$0xff]  }
 0x10b   : > { %3518 = vmatprep.subr.bf16.mxu1 %v3738_v19  ;;  %v3805_v17 = vld [vmem:[%s4556_s9 + $0x308] sm:$0xff]  }
 0x10c   : > { %v3807_v19 = vld [vmem:[%s4556_s9 + $0x388] sm:$0xff]  }
 0x10d   : > { %3497 = vmatpush3.bf16.msra.mxu0 %v3737_v18  ;;  %v3806_v18 = vld [vmem:[%s4556_s9 + $0x3c8] sm:$0xff]  }
 0x10e   : > { %3519 = vmatpush3.bf16.msra.mxu1 %v3739_v20  ;;  %3498 = vmatprep.subr.bf16.mxu0 %v3740_v21  ;;  %v3808_v20 = vld [vmem:[%s4556_s9 + $0x350] sm:$0xff]  }
 0x10f   : > { %3520 = vmatprep.subr.bf16.mxu1 %v3742_v23  ;;  %v3809_v21 = vld [vmem:[%s4556_s9 + $0x310] sm:$0xff]  }
 0x110   : > { %v3811_v23 = vld [vmem:[%s4556_s9 + $0x390] sm:$0xff]  }
 0x111   : > { %3499 = vmatpush3.bf16.msra.mxu0 %v3741_v22  ;;  %v3810_v22 = vld [vmem:[%s4556_s9 + $0x3d0] sm:$0xff]  }
 0x112   : > { %3521 = vmatpush3.bf16.msra.mxu1 %v3743_v24  ;;  %3500 = vmatprep.subr.bf16.mxu0 %v3744_v25  ;;  %v3812_v24 = vld [vmem:[%s4556_s9 + $0x358] sm:$0xff]  }
 0x113   : > { %3522 = vmatprep.subr.bf16.mxu1 %v3746_v27  ;;  %v3813_v25 = vld [vmem:[%s4556_s9 + $0x318] sm:$0xff]  }
 0x114   : > { %v3815_v27 = vld [vmem:[%s4556_s9 + $0x398] sm:$0xff]  }
 0x115   : > { %3501 = vmatpush3.bf16.msra.mxu0 %v3745_v26  ;;  %v3814_v26 = vld [vmem:[%s4556_s9 + $0x3d8] sm:$0xff]  }
 0x116   : > { %3523 = vmatpush3.bf16.msra.mxu1 %v3747_v28  ;;  %3502 = vmatprep.subr.bf16.mxu0 %v3748_v29  ;;  %v3816_v28 = vld [vmem:[%s4556_s9 + $0x360] sm:$0xff]  }
 0x117   : > { %3524 = vmatprep.subr.bf16.mxu1 %v3750_v31  ;;  %v3817_v29 = vld [vmem:[%s4556_s9 + $0x320] sm:$0xff]  }
 0x118   : > { %v3819_v31 = vld [vmem:[%s4556_s9 + $0x3a0] sm:$0xff]  }
 0x119   : > { %3503 = vmatpush3.bf16.msra.mxu0 %v3749_v30  ;;  %v3818_v30 = vld [vmem:[%s4556_s9 + $0x3e0] sm:$0xff]  }
 0x11a   : > { %3525 = vmatpush3.bf16.msra.mxu1 %v3751_v32  ;;  %3504 = vmatprep.subr.bf16.mxu0 %v3752_v33  ;;  %v3820_v32 = vld [vmem:[%s4556_s9 + $0x368] sm:$0xff]  }
 0x11b   : > { %3526 = vmatprep.subr.bf16.mxu1 %v3754_v36  ;;  %v3821_v33 = vld [vmem:[%s4556_s9 + $0x328] sm:$0xff]   ;;  %v3824_v36 = vld [vmem:[%s4556_s9 + $0x370] sm:$0xff]  }
 0x11d   : > { %3505 = vmatpush3.bf16.msra.mxu0 %v3753_v34  ;;  %v3822_v34 = vld [vmem:[%s4556_s9 + $0x3e8] sm:$0xff]  }
 0x11e   : > { %3527 = vmatpush3.bf16.msra.mxu1 %v3758_v37  ;;  %3534 = vmatprep.subr.bf16.mxu0 %v3759_v38  ;;  %v3825_v37 = vld [vmem:[%s4556_s9 + $0x330] sm:$0xff]  }
 0x11f   : > { %3556 = vmatprep.subr.bf16.mxu1 %v3764_v42  ;;  %v3826_v38 = vld [vmem:[%s4556_s9 + $0x3f0] sm:$0xff]   ;;  %v3830_v42 = vld [vmem:[%s4556_s9 + $0x3f8] sm:$0xff]  }
 0x120   : > { %2821 = vmatmul.mubr.bf16.vlgmr.msra.gmra.mrb[4].mxu0 %v3755_v35  ;;  %v3823_v35 = vld [vmem:[%s4556_s9 + $0x3a8] sm:$0xff]  }
 0x121   : > { %3535 = vmatpush3.bf16.msra.mxu0 %v3763_v41  ;;  %2862 = vmatmul.mubr.bf16.vlgmr.msra.gmra.mrb[4].mxu1 %v3760_v39  ;;  %v3827_v39 = vld [vmem:[%s4556_s9 + $0x3b0] sm:$0xff]   ;;  %v3829_v41 = vld [vmem:[%s4556_s9 + $0x338] sm:$0xff]  }
 0x122   : > { %3557 = vmatpush3.bf16.msra.mxu1 %v3765_v43  ;;  %3536 = vmatprep.subr.bf16.mxu0 %v3766_v44  ;;  %v3831_v43 = vld [vmem:[%s4778_s0 + $0x30] ss:$72 sps:$4 sm:$0xff]   ;;  %v3833_v44 = vld [vmem:[%s4778_s0 + $0x34] ss:$72 sps:$4 sm:$0xff]  }
 0x123   : > { %3558 = vmatprep.subr.bf16.mxu1 %v3768_v46  ;;  %2902 = vmatprep.mubr.bf16.mxu0 %v3795_v8  ;;  %v3835_v46 = vld [vmem:[%s4556_s9 + $0x440] sm:$0xff]  }
 0x124   : > { %2943 = vmatprep.mubr.bf16.mxu1 %v3800_v12 }
 0x125   : > { %3537 = vmatpush3.bf16.msra.mxu0 %v3767_v45  ;;  %v3834_v45 = vld [vmem:[%s4556_s9 + $0x3b8] sm:$0xff]  }
 0x126   : > { %3559 = vmatpush3.bf16.msra.mxu1 %v3769_v47  ;;  %3538 = vmatprep.subr.bf16.mxu0 %v3770_v48  ;;  %v3836_v47 = vld [vmem:[%s4778_s0 + $0x38] ss:$72 sps:$4 sm:$0xff]   ;;  %v3838_v48 = vld [vmem:[%s4778_s0 + $0x3c] ss:$72 sps:$4 sm:$0xff]  }
 0x127   : > { %3560 = vmatprep.subr.bf16.mxu1 %v3772_v50  ;;  %v3840_v50 = vld [vmem:[%s4556_s9 + $0x448] sm:$0xff]  }
 0x129   : > { %3539 = vmatpush3.bf16.msra.mxu0 %v3771_v49  ;;  %v3839_v49 = vld [vmem:[%s4556_s9 + $0x400] sm:$0xff]  }
 0x12a   : > { %3561 = vmatpush3.bf16.msra.mxu1 %v3773_v51  ;;  %3540 = vmatprep.subr.bf16.mxu0 %v3774_v52  ;;  %v3841_v51 = vld [vmem:[%s4556_s9 + $0x408] sm:$0xff]   ;;  %v3842_v52 = vld [vmem:[%s4556_s9 + $0x450] sm:$0xff]  }
 0x12b   : > { %3562 = vmatprep.subr.bf16.mxu1 %v3776_v54  ;;  %v3844_v54 = vld [vmem:[%s4556_s9 + $0x458] sm:$0xff]  }
 0x12d   : > { %3541 = vmatpush3.bf16.msra.mxu0 %v3775_v53  ;;  %v3843_v53 = vld [vmem:[%s4556_s9 + $0x410] sm:$0xff]  }
 0x12e   : > { %3563 = vmatpush3.bf16.msra.mxu1 %v3777_v55  ;;  %3542 = vmatprep.subr.bf16.mxu0 %v3778_v56  ;;  %v3845_v55 = vld [vmem:[%s4556_s9 + $0x418] sm:$0xff]   ;;  %v3846_v56 = vld [vmem:[%s4556_s9 + $0x460] sm:$0xff]  }
 0x12f   : > { %3564 = vmatprep.subr.bf16.mxu1 %v3780_v58  ;;  %v3848_v58 = vld [vmem:[%s4556_s9 + $0x468] sm:$0xff]  }
 0x131   : > { %3543 = vmatpush3.bf16.msra.mxu0 %v3779_v57  ;;  %v3847_v57 = vld [vmem:[%s4556_s9 + $0x420] sm:$0xff]  }
 0x132   : > { %3565 = vmatpush3.bf16.msra.mxu1 %v3781_v59  ;;  %3544 = vmatprep.subr.bf16.mxu0 %v3782_v60  ;;  %v3856_v59 = vld [vmem:[%s4778_s0 + $0x44] ss:$72 sps:$4 sm:$0xff]  }
 0x133   : > { %3566 = vmatprep.subr.bf16.mxu1 %v3784_v62  ;;  %v3849_v60 = vld [vmem:[%s4556_s9 + $0x428] sm:$0xff]   ;;  %v3851_v62 = vld [vmem:[%s4556_s9 + $0x430] sm:$0xff]  }
 0x135   : > { %3545 = vmatpush3.bf16.msra.mxu0 %v3783_v61  ;;  %v3850_v61 = vld [vmem:[%s4556_s9 + $0x470] sm:$0xff]  }
 0x136   : > { %3567 = vmatpush3.bf16.msra.mxu1 %v3785_v63  ;;  %3546 = vmatprep.subr.bf16.mxu0 %v3786_v0  ;;  %v3852_v63 = vld [vmem:[%s4556_s9 + $0x478] sm:$0xff]  }
 0x137   : > { %3568 = vmatprep.subr.bf16.mxu1 %v3788_v2  ;;  %v3853_v0 = vld [vmem:[%s4556_s9 + $0x438] sm:$0xff]   ;;  %s1434_s9 = scalar_select %p1433_p11, %s3887_s14, 3 }
 0x139   : > { %3547 = vmatpush3.bf16.msra.mxu0 %v3787_v1  ;;  %v3854_v1 = vld [vmem:[%s4778_s0 + $0x40] ss:$72 sps:$4 sm:$0xff]   ;;  %s1435_s10 = scalar_lea.vmem %s4780_s2, %s1434_s9 }
 0x13a   : > { %3569 = vmatpush3.bf16.msra.mxu1 %v3789_v3  ;;  %3548 = vmatprep.subr.bf16.mxu0 %v3790_v4 }
 0x13b   : > { %3570 = vmatprep.subr.bf16.mxu1 %v3792_v6 }
 0x13d   : > { %3549 = vmatpush3.bf16.msra.mxu0 %v3791_v5 }
 0x13e   : > { %3571 = vmatpush3.bf16.msra.mxu1 %v3796_v9  ;;  %3578 = vmatprep.subr.bf16.mxu0 %v3797_v10 }
 0x13f   : > { %3600 = vmatprep.subr.bf16.mxu1 %v3802_v14 }
 0x140   : > { %2903 = vmatmul.mubr.bf16.vlgmr.msra.gmra.mrb[8].mxu0 %v3793_v7 }
 0x141   : > { %3579 = vmatpush3.bf16.msra.mxu0 %v3801_v13  ;;  %2944 = vmatmul.mubr.bf16.vlgmr.msra.gmra.mrb[8].mxu1 %v3798_v11 }
 0x142   : > { %3601 = vmatpush3.bf16.msra.mxu1 %v3803_v15  ;;  %3580 = vmatprep.subr.bf16.mxu0 %v3804_v16 }
 0x143   : > { %3602 = vmatprep.subr.bf16.mxu1 %v3806_v18  ;;  %2984 = vmatprep.mubr.bf16.mxu0 %v3833_v44 }
 0x144   : > { %3025 = vmatprep.mubr.bf16.mxu1 %v3838_v48 }
 0x145   : > { %3581 = vmatpush3.bf16.msra.mxu0 %v3805_v17 }
 0x146   : > { %3603 = vmatpush3.bf16.msra.mxu1 %v3807_v19  ;;  %3582 = vmatprep.subr.bf16.mxu0 %v3808_v20 }
 0x147   : > { %3604 = vmatprep.subr.bf16.mxu1 %v3810_v22 }
 0x149   : > { %3583 = vmatpush3.bf16.msra.mxu0 %v3809_v21 }
 0x14a   : > { %3605 = vmatpush3.bf16.msra.mxu1 %v3811_v23  ;;  %3584 = vmatprep.subr.bf16.mxu0 %v3812_v24 }
 0x14b   : > { %3606 = vmatprep.subr.bf16.mxu1 %v3814_v26 }
 0x14d   : > { %3585 = vmatpush3.bf16.msra.mxu0 %v3813_v25 }
 0x14e   : > { %3607 = vmatpush3.bf16.msra.mxu1 %v3815_v27  ;;  %3586 = vmatprep.subr.bf16.mxu0 %v3816_v28 }
 0x14f   : > { %3608 = vmatprep.subr.bf16.mxu1 %v3818_v30 }
 0x151   : > { %3587 = vmatpush3.bf16.msra.mxu0 %v3817_v29 }
 0x152   : > { %3609 = vmatpush3.bf16.msra.mxu1 %v3819_v31  ;;  %3588 = vmatprep.subr.bf16.mxu0 %v3820_v32 }
 0x153   : > { %3610 = vmatprep.subr.bf16.mxu1 %v3822_v34 }
 0x155   : > { %3589 = vmatpush3.bf16.msra.mxu0 %v3821_v33 }
 0x156   : > { %3611 = vmatpush3.bf16.msra.mxu1 %v3823_v35  ;;  %3590 = vmatprep.subr.bf16.mxu0 %v3824_v36 }
 0x157   : > { %3612 = vmatprep.subr.bf16.mxu1 %v3826_v38 }
 0x159   : > { %3591 = vmatpush3.bf16.msra.mxu0 %v3825_v37 }
 0x15a   : > { %3613 = vmatpush3.bf16.msra.mxu1 %v3827_v39  ;;  %3592 = vmatprep.subr.bf16.mxu0 %v3828_v40 }
 0x15b   : > { %3614 = vmatprep.subr.bf16.mxu1 %v3830_v42 }
 0x15d   : > { %3593 = vmatpush3.bf16.msra.mxu0 %v3829_v41 }
 0x15e   : > { %3615 = vmatpush3.bf16.msra.mxu1 %v3834_v45  ;;  %3622 = vmatprep.subr.bf16.mxu0 %v3835_v46 }
 0x160   : > { %2985 = vmatmul.mubr.bf16.vlgmr.msra.gmra.mrb[12].mxu0 %v3831_v43 }
 0x161   : > { %3623 = vmatpush3.bf16.msra.mxu0 %v3839_v49  ;;  %3026 = vmatmul.mubr.bf16.vlgmr.msra.gmra.mrb[12].mxu1 %v3836_v47 }
 0x162   : > { %3624 = vmatprep.subr.bf16.mxu0 %v3840_v50  ;;  %3066 = vmatprep.mubr.bf16.mxu0 %v3856_v59 }
 0x165   : > { %3625 = vmatpush3.bf16.msra.mxu0 %v3841_v51 }
 0x166   : > { %3626 = vmatprep.subr.bf16.mxu0 %v3842_v52 }
 0x169   : > { %3627 = vmatpush3.bf16.msra.mxu0 %v3843_v53 }
 0x16a   : > { %3628 = vmatprep.subr.bf16.mxu0 %v3844_v54 }
 0x16d   : > { %3629 = vmatpush3.bf16.msra.mxu0 %v3845_v55 }
 0x16e   : > { %3630 = vmatprep.subr.bf16.mxu0 %v3846_v56 }
 0x171   : > { %3631 = vmatpush3.bf16.msra.mxu0 %v3847_v57 }
 0x172   : > { %3632 = vmatprep.subr.bf16.mxu0 %v3848_v58 }
 0x175   : > { %3633 = vmatpush3.bf16.msra.mxu0 %v3849_v60 }
 0x176   : > { %3634 = vmatprep.subr.bf16.mxu0 %v3850_v61 }
 0x179   : > { %3635 = vmatpush3.bf16.msra.mxu0 %v3851_v62 }
 0x17a   : > { %3636 = vmatprep.subr.bf16.mxu0 %v3852_v63 }
 0x17d   : > { %3637 = vmatpush3.bf16.msra.mxu0 %v3853_v0 }
 0x180   : > { %3067 = vmatmul.mubr.bf16.vlgmr.msra.gmra.mrb[16].mxu0 %v3854_v1 }
 0x1d3   : > { %v3462_v2 = vpop.f32.mrb[0].mxu0 }
 0x1d4   : > { %v3484_v3 = vpop.f32.mrb[0].mxu1  ;;  %v3463_v4 = vpop.f32.mrb[1].mxu0 }
 0x1d5   : > { %v3464_v5 = vadd.f32 %v3463_v4, %v3462_v2  ;;  %v3485_v6 = vpop.f32.mrb[1].mxu1  ;;  %v3465_v7 = vpop.f32.mrb[2].mxu0  ;;  %v3432_v4 = vld [vmem:[%s1435_s10] ss:$0 sm:$0xff] }
 0x1d6   : > { %v3486_v8 = vadd.f32 %v3485_v6, %v3484_v3  ;;  %v3487_v9 = vpop.f32.mrb[2].mxu1  ;;  %v3466_v10 = vpop.f32.mrb[3].mxu0 }
 0x1d7   : > { %v3467_v11 = vadd.f32 %v3466_v10, %v3465_v7  ;;  %v3488_v12 = vpop.f32.mrb[3].mxu1 }
 0x1d8   : > { %v2782_v13 = vadd.f32 %v3486_v8, %v3464_v5  ;;  %v3489_v14 = vadd.f32 %v3488_v12, %v3487_v9 }
 0x1da   : > { %v2785_v15 = vadd.f32 %v3489_v14, %v3467_v11 }
 0x1f3   : > { %v3506_v16 = vpop.f32.mrb[4].mxu0 }
 0x1f4   : > { %v3507_v17 = vpop.f32.mrb[5].mxu0  ;;  %v3528_v20 = vpop.f32.mrb[4].mxu1 }
 0x1f5   : > { %v3508_v18 = vadd.f32 %v3507_v17, %v3506_v16  ;;  %v3509_v19 = vpop.f32.mrb[6].mxu0  ;;  %v3529_v22 = vpop.f32.mrb[5].mxu1 }
 0x1f6   : > { %v3510_v21 = vpop.f32.mrb[7].mxu0  ;;  %v3530_v25 = vadd.f32 %v3529_v22, %v3528_v20  ;;  %v3531_v26 = vpop.f32.mrb[6].mxu1 }
 0x1f7   : > { %v2823_v23 = vadd.f32 %v3508_v18, %v2782_v13  ;;  %v3511_v24 = vadd.f32 %v3510_v21, %v3509_v19  ;;  %v3532_v27 = vpop.f32.mrb[7].mxu1 }
 0x1f8   : > { %v3533_v30 = vadd.f32 %v3532_v27, %v3531_v26 }
 0x1f9   : > { %v2826_v28 = vadd.f32 %v3511_v24, %v2785_v15  ;;  %v2864_v29 = vadd.f32 %v3530_v25, %v2823_v23 }
 0x1fb   : > { %v2867_v31 = vadd.f32 %v3533_v30, %v2826_v28 }
 0x213   : > { %v3550_v32 = vpop.f32.mrb[8].mxu0 }
 0x214   : > { %v3551_v33 = vpop.f32.mrb[9].mxu0  ;;  %v3572_v36 = vpop.f32.mrb[8].mxu1 }
 0x215   : > { %v3552_v34 = vadd.f32 %v3551_v33, %v3550_v32  ;;  %v3553_v35 = vpop.f32.mrb[10].mxu0  ;;  %v3573_v40 = vpop.f32.mrb[9].mxu1 }
 0x216   : > { %v3554_v37 = vpop.f32.mrb[11].mxu0  ;;  %v3574_v41 = vadd.f32 %v3573_v40, %v3572_v36  ;;  %v3575_v42 = vpop.f32.mrb[10].mxu1 }
 0x217   : > { %v2905_v38 = vadd.f32 %v3552_v34, %v2864_v29  ;;  %v3555_v39 = vadd.f32 %v3554_v37, %v3553_v35  ;;  %v3576_v44 = vpop.f32.mrb[11].mxu1 }
 0x218   : > { %v3577_v46 = vadd.f32 %v3576_v44, %v3575_v42 }
 0x219   : > { %v2908_v43 = vadd.f32 %v3555_v39, %v2867_v31  ;;  %v2946_v45 = vadd.f32 %v3574_v41, %v2905_v38 }
 0x21b   : > { %v2949_v47 = vadd.f32 %v3577_v46, %v2908_v43 }
 0x233   : > { %v3594_v48 = vpop.f32.mrb[12].mxu0 }
 0x234   : > { %v3595_v49 = vpop.f32.mrb[13].mxu0  ;;  %v3616_v52 = vpop.f32.mrb[12].mxu1 }
 0x235   : > { %v3596_v50 = vadd.f32 %v3595_v49, %v3594_v48  ;;  %v3597_v51 = vpop.f32.mrb[14].mxu0  ;;  %v3617_v56 = vpop.f32.mrb[13].mxu1 }
 0x236   : > { %v3598_v53 = vpop.f32.mrb[15].mxu0  ;;  %v3618_v57 = vadd.f32 %v3617_v56, %v3616_v52  ;;  %v3619_v58 = vpop.f32.mrb[14].mxu1 }
 0x237   : > { %v2987_v54 = vadd.f32 %v3596_v50, %v2946_v45  ;;  %v3599_v55 = vadd.f32 %v3598_v53, %v3597_v51  ;;  %v3620_v60 = vpop.f32.mrb[15].mxu1 }
 0x238   : > { %v3621_v62 = vadd.f32 %v3620_v60, %v3619_v58 }
 0x239   : > { %v2990_v59 = vadd.f32 %v3599_v55, %v2949_v47  ;;  %v3028_v61 = vadd.f32 %v3618_v57, %v2987_v54 }
 0x23b   : > { %v3031_v63 = vadd.f32 %v3621_v62, %v2990_v59 }
 0x253   : > { %v3638_v0 = vpop.f32.mrb[16].mxu0 }
 0x254   : > { %v3639_v1 = vpop.f32.mrb[17].mxu0 }
 0x255   : > { %v3640_v2 = vadd.f32 %v3639_v1, %v3638_v0  ;;  %v3641_v3 = vpop.f32.mrb[18].mxu0 }
 0x256   : > { %v3642_v5 = vpop.f32.mrb[19].mxu0 }
 0x257   : > { %v3069_v6 = vadd.f32 %v3640_v2, %v3028_v61  ;;  %v3643_v7 = vadd.f32 %v3642_v5, %v3641_v3 }
 0x259   : > { %v3091_v8 = vadd.f32 %v3432_v4, %v3069_v6  ;;  %v3072_v9 = vadd.f32 %v3643_v7, %v3031_v63 }
 0x25b   : > { %v3092_v10 = vadd.f32 %v3432_v4, %v3072_v9  ;;  %v3093_v11 = vmax.f32 %v3091_v8, 0.0  ;;  %3111 = sbr.rel (!%p3952_p6) target bundleno = 618 (0x26a), region = 85 }
 0x25d   : > { %v3094_v12 = vmax.f32 %v3092_v10, 0.0 }
 0x25f   : > { %v3444_v13 = vpack.c.bf16 %v3094_v12, %v3093_v11 }
 0x261   : > { %3445 = vst [vmem:[%s1419_s18] sm:$0xff] %v3444_v13  }
 0x268   : > { %v3132_v14 = vld [vmem:[%s1419_s18] sm:$0xf]  ;;  %v3134_v15 = vld [vmem:[%s1419_s18 + $0x4] sm:$0xf] }
 0x269   : > { %3133 = vst [vmem:[%s3116_s24] sm:$0xf] %v3132_v14  ;;  %3135 = vst [vmem:[%s3116_s24 + $0x10] sm:$0xf] %v3134_v15 }
 0x26a PF: > { %s13_s16 = sadd.s32 1, %s3895_s16   ;;  %s4783_s12 = smov %s3883_s13 }
 0x26b   : > { %p10_p12 = scmp.ge.s32.totalorder %s13_s16, 6   ;;  %s4784_s13 = smov %s3957_s22 }
 0x26c   : > { %s4785_s14 = smov %s3891_s15  ;;  %s4786_s15 = smov %s4788_s17 }
 0x26d   :  { %12 = sbr.rel (!%p10_p12) target bundleno = 3 (0x3), region = 163 }

// kernel: _lambda_.19
= control target key start
LH: loop header
LB: loop body
LE: loop exit
PB: predicated region body
PF: predicated region fallthrough
CT: control target
= control target key end

     0   :  { %s5324_s0 = inlined_call_operand.vmem [shape: bf16[16,4864], index: 0, kind: input, shape index: {}]   ;;  %s5325_s1 = inlined_call_operand.vmem [shape: bf16[4864,512], index: 1, kind: input, shape index: {}]   ;;  %s5326_s2 = inlined_call_operand.vmem [shape: f32[1,512], index: 2, kind: input, shape index: {}]   ;;  %s5327_s3 = inlined_call_operand.vmem [shape: bf16[16,512], index: 3, kind: output, shape index: {}]  }
   0x1   :  { %5329 = sst [smem:[#allocation7_spill]] %s5324_s0 }
   0x2   :  { %5330 = sst [smem:[#allocation8_spill]] %s5325_s1 }
   0x3   :  { %s4315_s12 = smov 0   ;;  %s4317_s13 = smov 0  }
   0x4   :  { %s4319_s14 = smov 0   ;;  %s4321_s15 = smov 0  }
   0x5   :  { %s4323_s16 = smov 0   ;;  %s4325_s17 = smov 0  }
   0x6   :  { %s4327_s18 = smov 0   ;;  %s4329_s19 = smov 0  }
   0x7   :  { %s4331_s20 = smov 0   ;;  %s4333_s21 = smov 0  }
   0x8   :  { %s4335_s22 = smov 0  }
   0x9 LB: > { %s3500_s23 = sadd.s32 4294967295, %s4290_s22   ;;  %s25_s24 = sadd.s32 1, %s4282_s20  ;;  %s4290_s22 = sphi %s4335_s22, %s13_s22   ;;  %s4286_s21 = sphi %s4333_s21, %s5347_s21   ;;  %s4282_s20 = sphi %s4331_s20, %s5346_s20   ;;  %s4278_s19 = sphi %s4329_s19, %s5345_s19   ;;  %s4274_s18 = sphi %s4327_s18, %s5344_s18   ;;  %s4270_s17 = sphi %s4325_s17, %s5343_s17   ;;  %s4266_s16 = sphi %s4323_s16, %s5342_s16   ;;  %s4262_s15 = sphi %s4321_s15, %s5341_s15   ;;  %s4258_s14 = sphi %s4319_s14, %s5340_s14   ;;  %s4254_s13 = sphi %s4317_s13, %s5339_s13   ;;  %s4250_s12 = sphi %s4315_s12, %s5338_s12  }
   0xa   : > { %p26_p0 = scmp.ge.s32.totalorder %s25_s24, 2  ;;  %s28_s25 = sadd.s32 1, %s4286_s21 }
   0xb   : > { %s41_s26 = sadd.s32 1, %s4270_s17  ;;  %p48_p1 = scmp.ne.s32.totalorder %s4270_s17, %s4266_s16 }
   0xc   : > { %s5349_s24 = smov (%p26_p0, %s25_s24), 0  ;;  %s5351_s25 = smov (!%p26_p0, %s28_s25), %s4286_s21 }
   0xd   : > { %s37_s27 = ssub.s32 %s4282_s20, %s5349_s24  ;;  %p49_p2 = scmp.eq.s32.totalorder %s4290_s22, 0 }
   0xe   : > { %p30_p3 = scmp.ge.s32.totalorder %s5351_s25, 4  ;;  %p39_p4 = scmp.eq.s32.totalorder %s37_s27, 0 }
   0xf   : > { %p4382_p5 = por %p49_p2, %p48_p1  ;;  %s69_s29 = sadd.s32 1, %s4262_s15 }
  0x10   : > { %s5353_s25 = smov (%p30_p3, %s5351_s25), 0  ;;  %p76_p6 = scmp.ne.s32.totalorder %s4262_s15, %s4258_s14 }
  0x11   : > { %5332 = sst [smem:[#allocation6_spill]] %s5353_s25  ;;  %s65_s4 = ssub.s32 %s4286_s21, %s5353_s25 }
  0x12   : > { %s4390_s30 = scalar_select %p39_p4, %s4270_s17, %s41_s26  }
  0x13   : > { %s66_s5 = sor.u32 %s65_s4, %s37_s27  ;;  %p121_p7 = scmp.eq.s32.totalorder %s65_s4, 0 }
  0x14   : > { %p67_p8 = scmp.eq.s32.totalorder %s66_s5, 0  ;;  %p4396_p9 = por %p76_p6, %p49_p2 }
  0x15   : > { %s123_s7 = sadd.s32 1, %s4254_s13  ;;  %p133_p10 = scmp.ne.s32.totalorder %s4254_s13, %s4250_s12 }
  0x16   : > { %s4404_s8 = scalar_select %p67_p8, %s4262_s15, %s69_s29  }
  0x17   : > { %s4407_s9 = scalar_select %p121_p7, %s4254_s13, %s123_s7  }
  0x18   : > { %p134_p11 = scmp.eq.s32.totalorder %s3500_s23, 7  ;;  %p3503_p13 = scmp.ge.s32.totalorder %s4290_s22, 8 }
  0x1a   : > { %p4409_p12 = por %p134_p11, %p133_p10  ;;  %156 = sbr.rel (%p3503_p13) target bundleno = 264 (0x108), region = 16 }
  0x21   : > { %159 = sbr.rel (!%p4382_p5) target bundleno = 52 (0x34), region = 20  ;;  %s161_s11 = sand.u32 (%p4382_p5), 1, %s4270_s17  }
  0x22   : > { %s3693_s26 = smul.u32 (%p4382_p5), 76, %s4282_s20  ;;  %s5335_s0 = sld [smem:[#allocation7_spill]] (%p4382_p5) }
  0x23   : > { %s3929_s27 = smul.u32 (%p4382_p5), 152, %s161_s11 }
  0x25   : > { %s4426_s23 = scalar_lea.vmem (%p4382_p5), [#allocation3], %s3929_s27 }
  0x28   : > { %s4421_s5 = scalar_lea.vmem %s5335_s0, %s3693_s26 }
  0x29   : > { %v184_v0 = vld [vmem:[%s4421_s5] sm:$0xff]  ;;  %v186_v1 = vld [vmem:[%s4421_s5 + $0x8] sm:$0xff]  ;;  %v188_v2 = vld [vmem:[%s4421_s5 + $0x10] sm:$0xff] }
  0x2a   : > { %185 = vst [vmem:[%s4426_s23] sm:$0xff] %v184_v0  ;;  %187 = vst [vmem:[%s4426_s23 + $0x8] sm:$0xff] %v186_v1  ;;  %v190_v3 = vld [vmem:[%s4421_s5 + $0x18] sm:$0xff]  ;;  %v192_v4 = vld [vmem:[%s4421_s5 + $0x20] sm:$0xff] }
  0x2b   : > { %189 = vst [vmem:[%s4426_s23 + $0x10] sm:$0xff] %v188_v2  ;;  %v194_v5 = vld [vmem:[%s4421_s5 + $0x28] sm:$0xff]  ;;  %191 = vst [vmem:[%s4426_s23 + $0x18] sm:$0xff] %v190_v3  ;;  %v196_v6 = vld [vmem:[%s4421_s5 + $0x30] sm:$0xff] }
  0x2c   : > { %193 = vst [vmem:[%s4426_s23 + $0x20] sm:$0xff] %v192_v4  ;;  %195 = vst [vmem:[%s4426_s23 + $0x28] sm:$0xff] %v194_v5  ;;  %v198_v7 = vld [vmem:[%s4421_s5 + $0x38] sm:$0xff]  ;;  %v200_v8 = vld [vmem:[%s4421_s5 + $0x40] sm:$0xff] }
  0x2d   : > { %197 = vst [vmem:[%s4426_s23 + $0x30] sm:$0xff] %v196_v6  ;;  %199 = vst [vmem:[%s4426_s23 + $0x38] sm:$0xff] %v198_v7  ;;  %v202_v9 = vld [vmem:[%s4421_s5 + $0x98] sm:$0xff]  ;;  %v204_v10 = vld [vmem:[%s4421_s5 + $0xa0] sm:$0xff] }
  0x2e   : > { %201 = vst [vmem:[%s4426_s23 + $0x40] sm:$0xff] %v200_v8  ;;  %v206_v11 = vld [vmem:[%s4421_s5 + $0xa8] sm:$0xff]  ;;  %203 = vst [vmem:[%s4426_s23 + $0x4c] sm:$0xff] %v202_v9  ;;  %v208_v12 = vld [vmem:[%s4421_s5 + $0xb0] sm:$0xff] }
  0x2f   : > { %205 = vst [vmem:[%s4426_s23 + $0x54] sm:$0xff] %v204_v10  ;;  %207 = vst [vmem:[%s4426_s23 + $0x5c] sm:$0xff] %v206_v11  ;;  %v210_v13 = vld [vmem:[%s4421_s5 + $0xb8] sm:$0xff]  ;;  %v212_v14 = vld [vmem:[%s4421_s5 + $0xc0] sm:$0xff] }
  0x30   : > { %209 = vst [vmem:[%s4426_s23 + $0x64] sm:$0xff] %v208_v12  ;;  %211 = vst [vmem:[%s4426_s23 + $0x6c] sm:$0xff] %v210_v13  ;;  %v214_v15 = vld [vmem:[%s4421_s5 + $0xc8] sm:$0xff]  ;;  %v216_v16 = vld [vmem:[%s4421_s5 + $0xd0] sm:$0xff] }
  0x31   : > { %213 = vst [vmem:[%s4426_s23 + $0x74] sm:$0xff] %v212_v14  ;;  %v218_v17 = vld [vmem:[%s4421_s5 + $0xd8] sm:$0xff]  ;;  %215 = vst [vmem:[%s4426_s23 + $0x7c] sm:$0xff] %v214_v15  ;;  %v3505_v18 = vld [vmem:[%s4421_s5 + $0x48] sm:$0xf] }
  0x32   : > { %217 = vst [vmem:[%s4426_s23 + $0x84] sm:$0xff] %v216_v16  ;;  %219 = vst [vmem:[%s4426_s23 + $0x8c] sm:$0xff] %v218_v17  ;;  %v3507_v19 = vld [vmem:[%s4421_s5 + $0xe0] sm:$0xf] }
  0x33   : > { %3506 = vst [vmem:[%s4426_s23 + $0x48] sm:$0xf] %v3505_v18  ;;  %3508 = vst [vmem:[%s4426_s23 + $0x94] sm:$0xf] %v3507_v19 }
  0x34 PF: > { %236 = sbr.rel (!%p4396_p9) target bundleno = 264 (0x108), region = 46  ;;  %s238_s28 = sand.u32 (%p4396_p9), 1, %s4262_s15  }
  0x35   : > { %s3694_s7 = smul.u32 (%p4396_p9), 1216, %s4282_s20  ;;  %s5336_s1 = sld [smem:[#allocation8_spill]] (%p4396_p9) }
  0x36   : > { %s3930_s11 = smul.u32 (%p4396_p9), 1216, %s238_s28 }
  0x37   : > { %s243_s26 = sadd.s32 (%p4396_p9), %s4286_s21, %s3694_s7 }
  0x38   : > { %s3510_s27 = sshll.u32 (%p4396_p9), %s243_s26, 2  ;;  %s4478_s6 = scalar_lea.vmem (%p4396_p9), [#allocation4], %s3930_s11 }
  0x3b   : > { %s4473_s0 = scalar_lea.vmem %s5336_s1, %s3510_s27 }
  0x3c   : > { %v261_v20 = vld [vmem:[%s4473_s0] sm:$0xf]  ;;  %v263_v21 = vld [vmem:[%s4473_s0 + $0x10] sm:$0xf] }
  0x3d   : > { %v265_v22 = vld [vmem:[%s4473_s0 + $0x20] sm:$0xf]  ;;  %262 = vst [vmem:[%s4478_s6] sm:$0xf] %v261_v20  ;;  %264 = vst [vmem:[%s4478_s6 + $0x4] sm:$0xf] %v263_v21 }
  0x3e   : > { %266 = vst [vmem:[%s4478_s6 + $0x8] sm:$0xf] %v265_v22  ;;  %v267_v23 = vld [vmem:[%s4473_s0 + $0x30] sm:$0xf]  ;;  %v269_v24 = vld [vmem:[%s4473_s0 + $0x40] sm:$0xf] }
  0x3f   : > { %v271_v25 = vld [vmem:[%s4473_s0 + $0x50] sm:$0xf]  ;;  %268 = vst [vmem:[%s4478_s6 + $0xc] sm:$0xf] %v267_v23  ;;  %270 = vst [vmem:[%s4478_s6 + $0x10] sm:$0xf] %v269_v24 }
  0x40   : > { %272 = vst [vmem:[%s4478_s6 + $0x14] sm:$0xf] %v271_v25  ;;  %v273_v26 = vld [vmem:[%s4473_s0 + $0x60] sm:$0xf]  ;;  %v275_v27 = vld [vmem:[%s4473_s0 + $0x70] sm:$0xf] }
  0x41   : > { %v277_v28 = vld [vmem:[%s4473_s0 + $0x80] sm:$0xf]  ;;  %274 = vst [vmem:[%s4478_s6 + $0x18] sm:$0xf] %v273_v26  ;;  %276 = vst [vmem:[%s4478_s6 + $0x1c] sm:$0xf] %v275_v27 }
  0x42   : > { %278 = vst [vmem:[%s4478_s6 + $0x20] sm:$0xf] %v277_v28  ;;  %v279_v29 = vld [vmem:[%s4473_s0 + $0x90] sm:$0xf]  ;;  %v281_v30 = vld [vmem:[%s4473_s0 + $0xa0] sm:$0xf] }
  0x43   : > { %v283_v31 = vld [vmem:[%s4473_s0 + $0xb0] sm:$0xf]  ;;  %280 = vst [vmem:[%s4478_s6 + $0x24] sm:$0xf] %v279_v29  ;;  %282 = vst [vmem:[%s4478_s6 + $0x28] sm:$0xf] %v281_v30 }
  0x44   : > { %284 = vst [vmem:[%s4478_s6 + $0x2c] sm:$0xf] %v283_v31  ;;  %v285_v32 = vld [vmem:[%s4473_s0 + $0xc0] sm:$0xf]  ;;  %v287_v33 = vld [vmem:[%s4473_s0 + $0xd0] sm:$0xf] }
  0x45   : > { %v289_v34 = vld [vmem:[%s4473_s0 + $0xe0] sm:$0xf]  ;;  %286 = vst [vmem:[%s4478_s6 + $0x30] sm:$0xf] %v285_v32  ;;  %288 = vst [vmem:[%s4478_s6 + $0x34] sm:$0xf] %v287_v33 }
  0x46   : > { %290 = vst [vmem:[%s4478_s6 + $0x38] sm:$0xf] %v289_v34  ;;  %v291_v35 = vld [vmem:[%s4473_s0 + $0xf0] sm:$0xf]  ;;  %v293_v36 = vld [vmem:[%s4473_s0 + $0x100] sm:$0xf] }
  0x47   : > { %v295_v37 = vld [vmem:[%s4473_s0 + $0x110] sm:$0xf]  ;;  %292 = vst [vmem:[%s4478_s6 + $0x3c] sm:$0xf] %v291_v35  ;;  %294 = vst [vmem:[%s4478_s6 + $0x40] sm:$0xf] %v293_v36 }
  0x48   : > { %296 = vst [vmem:[%s4478_s6 + $0x44] sm:$0xf] %v295_v37  ;;  %v297_v38 = vld [vmem:[%s4473_s0 + $0x120] sm:$0xf]  ;;  %v299_v39 = vld [vmem:[%s4473_s0 + $0x130] sm:$0xf] }
  0x49   : > { %v301_v40 = vld [vmem:[%s4473_s0 + $0x140] sm:$0xf]  ;;  %298 = vst [vmem:[%s4478_s6 + $0x48] sm:$0xf] %v297_v38  ;;  %300 = vst [vmem:[%s4478_s6 + $0x4c] sm:$0xf] %v299_v39 }
  0x4a   : > { %302 = vst [vmem:[%s4478_s6 + $0x50] sm:$0xf] %v301_v40  ;;  %v303_v41 = vld [vmem:[%s4473_s0 + $0x150] sm:$0xf]  ;;  %v305_v42 = vld [vmem:[%s4473_s0 + $0x160] sm:$0xf] }
  0x4b   : > { %v307_v43 = vld [vmem:[%s4473_s0 + $0x170] sm:$0xf]  ;;  %304 = vst [vmem:[%s4478_s6 + $0x54] sm:$0xf] %v303_v41  ;;  %306 = vst [vmem:[%s4478_s6 + $0x58] sm:$0xf] %v305_v42 }
  0x4c   : > { %308 = vst [vmem:[%s4478_s6 + $0x5c] sm:$0xf] %v307_v43  ;;  %v309_v44 = vld [vmem:[%s4473_s0 + $0x180] sm:$0xf]  ;;  %v311_v45 = vld [vmem:[%s4473_s0 + $0x190] sm:$0xf] }
  0x4d   : > { %v313_v46 = vld [vmem:[%s4473_s0 + $0x1a0] sm:$0xf]  ;;  %310 = vst [vmem:[%s4478_s6 + $0x60] sm:$0xf] %v309_v44  ;;  %312 = vst [vmem:[%s4478_s6 + $0x64] sm:$0xf] %v311_v45 }
  0x4e   : > { %314 = vst [vmem:[%s4478_s6 + $0x68] sm:$0xf] %v313_v46  ;;  %v315_v47 = vld [vmem:[%s4473_s0 + $0x1b0] sm:$0xf]  ;;  %v317_v48 = vld [vmem:[%s4473_s0 + $0x1c0] sm:$0xf] }
  0x4f   : > { %v319_v49 = vld [vmem:[%s4473_s0 + $0x1d0] sm:$0xf]  ;;  %316 = vst [vmem:[%s4478_s6 + $0x6c] sm:$0xf] %v315_v47  ;;  %318 = vst [vmem:[%s4478_s6 + $0x70] sm:$0xf] %v317_v48 }
  0x50   : > { %320 = vst [vmem:[%s4478_s6 + $0x74] sm:$0xf] %v319_v49  ;;  %v321_v50 = vld [vmem:[%s4473_s0 + $0x1e0] sm:$0xf]  ;;  %v323_v51 = vld [vmem:[%s4473_s0 + $0x1f0] sm:$0xf] }
  0x51   : > { %v325_v52 = vld [vmem:[%s4473_s0 + $0x200] sm:$0xf]  ;;  %322 = vst [vmem:[%s4478_s6 + $0x78] sm:$0xf] %v321_v50  ;;  %324 = vst [vmem:[%s4478_s6 + $0x7c] sm:$0xf] %v323_v51 }
  0x52   : > { %326 = vst [vmem:[%s4478_s6 + $0x80] sm:$0xf] %v325_v52  ;;  %v327_v53 = vld [vmem:[%s4473_s0 + $0x210] sm:$0xf]  ;;  %v329_v54 = vld [vmem:[%s4473_s0 + $0x220] sm:$0xf] }
  0x53   : > { %v331_v55 = vld [vmem:[%s4473_s0 + $0x230] sm:$0xf]  ;;  %328 = vst [vmem:[%s4478_s6 + $0x84] sm:$0xf] %v327_v53  ;;  %330 = vst [vmem:[%s4478_s6 + $0x88] sm:$0xf] %v329_v54 }
  0x54   : > { %332 = vst [vmem:[%s4478_s6 + $0x8c] sm:$0xf] %v331_v55  ;;  %v333_v56 = vld [vmem:[%s4473_s0 + $0x240] sm:$0xf]  ;;  %v335_v57 = vld [vmem:[%s4473_s0 + $0x250] sm:$0xf] }
  0x55   : > { %v337_v58 = vld [vmem:[%s4473_s0 + $0x260] sm:$0xf]  ;;  %334 = vst [vmem:[%s4478_s6 + $0x90] sm:$0xf] %v333_v56  ;;  %336 = vst [vmem:[%s4478_s6 + $0x94] sm:$0xf] %v335_v57 }
  0x56   : > { %338 = vst [vmem:[%s4478_s6 + $0x98] sm:$0xf] %v337_v58  ;;  %v339_v59 = vld [vmem:[%s4473_s0 + $0x270] sm:$0xf]  ;;  %v341_v60 = vld [vmem:[%s4473_s0 + $0x280] sm:$0xf] }
  0x57   : > { %v343_v61 = vld [vmem:[%s4473_s0 + $0x290] sm:$0xf]  ;;  %340 = vst [vmem:[%s4478_s6 + $0x9c] sm:$0xf] %v339_v59  ;;  %342 = vst [vmem:[%s4478_s6 + $0xa0] sm:$0xf] %v341_v60 }
  0x58   : > { %344 = vst [vmem:[%s4478_s6 + $0xa4] sm:$0xf] %v343_v61  ;;  %v345_v62 = vld [vmem:[%s4473_s0 + $0x2a0] sm:$0xf]  ;;  %v347_v63 = vld [vmem:[%s4473_s0 + $0x2b0] sm:$0xf] }
  0x59   : > { %v349_v0 = vld [vmem:[%s4473_s0 + $0x2c0] sm:$0xf]  ;;  %346 = vst [vmem:[%s4478_s6 + $0xa8] sm:$0xf] %v345_v62  ;;  %348 = vst [vmem:[%s4478_s6 + $0xac] sm:$0xf] %v347_v63 }
  0x5a   : > { %350 = vst [vmem:[%s4478_s6 + $0xb0] sm:$0xf] %v349_v0  ;;  %v351_v1 = vld [vmem:[%s4473_s0 + $0x2d0] sm:$0xf]  ;;  %v353_v2 = vld [vmem:[%s4473_s0 + $0x2e0] sm:$0xf] }
  0x5b   : > { %v355_v3 = vld [vmem:[%s4473_s0 + $0x2f0] sm:$0xf]  ;;  %352 = vst [vmem:[%s4478_s6 + $0xb4] sm:$0xf] %v351_v1  ;;  %354 = vst [vmem:[%s4478_s6 + $0xb8] sm:$0xf] %v353_v2 }
  0x5c   : > { %356 = vst [vmem:[%s4478_s6 + $0xbc] sm:$0xf] %v355_v3  ;;  %v357_v4 = vld [vmem:[%s4473_s0 + $0x300] sm:$0xf]  ;;  %v359_v5 = vld [vmem:[%s4473_s0 + $0x310] sm:$0xf] }
  0x5d   : > { %v361_v6 = vld [vmem:[%s4473_s0 + $0x320] sm:$0xf]  ;;  %358 = vst [vmem:[%s4478_s6 + $0xc0] sm:$0xf] %v357_v4  ;;  %360 = vst [vmem:[%s4478_s6 + $0xc4] sm:$0xf] %v359_v5 }
  0x5e   : > { %362 = vst [vmem:[%s4478_s6 + $0xc8] sm:$0xf] %v361_v6  ;;  %v363_v7 = vld [vmem:[%s4473_s0 + $0x330] sm:$0xf]  ;;  %v365_v8 = vld [vmem:[%s4473_s0 + $0x340] sm:$0xf] }
  0x5f   : > { %v367_v9 = vld [vmem:[%s4473_s0 + $0x350] sm:$0xf]  ;;  %364 = vst [vmem:[%s4478_s6 + $0xcc] sm:$0xf] %v363_v7  ;;  %366 = vst [vmem:[%s4478_s6 + $0xd0] sm:$0xf] %v365_v8 }
  0x60   : > { %368 = vst [vmem:[%s4478_s6 + $0xd4] sm:$0xf] %v367_v9  ;;  %v369_v10 = vld [vmem:[%s4473_s0 + $0x360] sm:$0xf]  ;;  %v371_v11 = vld [vmem:[%s4473_s0 + $0x370] sm:$0xf] }
  0x61   : > { %v373_v12 = vld [vmem:[%s4473_s0 + $0x380] sm:$0xf]  ;;  %370 = vst [vmem:[%s4478_s6 + $0xd8] sm:$0xf] %v369_v10  ;;  %372 = vst [vmem:[%s4478_s6 + $0xdc] sm:$0xf] %v371_v11 }
  0x62   : > { %374 = vst [vmem:[%s4478_s6 + $0xe0] sm:$0xf] %v373_v12  ;;  %v375_v13 = vld [vmem:[%s4473_s0 + $0x390] sm:$0xf]  ;;  %v377_v14 = vld [vmem:[%s4473_s0 + $0x3a0] sm:$0xf] }
  0x63   : > { %v379_v15 = vld [vmem:[%s4473_s0 + $0x3b0] sm:$0xf]  ;;  %376 = vst [vmem:[%s4478_s6 + $0xe4] sm:$0xf] %v375_v13  ;;  %378 = vst [vmem:[%s4478_s6 + $0xe8] sm:$0xf] %v377_v14 }
  0x64   : > { %380 = vst [vmem:[%s4478_s6 + $0xec] sm:$0xf] %v379_v15  ;;  %v381_v16 = vld [vmem:[%s4473_s0 + $0x3c0] sm:$0xf]  ;;  %v383_v17 = vld [vmem:[%s4473_s0 + $0x3d0] sm:$0xf] }
  0x65   : > { %v385_v18 = vld [vmem:[%s4473_s0 + $0x3e0] sm:$0xf]  ;;  %382 = vst [vmem:[%s4478_s6 + $0xf0] sm:$0xf] %v381_v16  ;;  %384 = vst [vmem:[%s4478_s6 + $0xf4] sm:$0xf] %v383_v17 }
  0x66   : > { %386 = vst [vmem:[%s4478_s6 + $0xf8] sm:$0xf] %v385_v18  ;;  %v387_v19 = vld [vmem:[%s4473_s0 + $0x3f0] sm:$0xf]  ;;  %v389_v20 = vld [vmem:[%s4473_s0 + $0x400] sm:$0xf] }
  0x67   : > { %v391_v21 = vld [vmem:[%s4473_s0 + $0x410] sm:$0xf]  ;;  %388 = vst [vmem:[%s4478_s6 + $0xfc] sm:$0xf] %v387_v19  ;;  %390 = vst [vmem:[%s4478_s6 + $0x100] sm:$0xf] %v389_v20 }
  0x68   : > { %392 = vst [vmem:[%s4478_s6 + $0x104] sm:$0xf] %v391_v21  ;;  %v393_v22 = vld [vmem:[%s4473_s0 + $0x420] sm:$0xf]  ;;  %v395_v23 = vld [vmem:[%s4473_s0 + $0x430] sm:$0xf] }
  0x69   : > { %v397_v24 = vld [vmem:[%s4473_s0 + $0x440] sm:$0xf]  ;;  %394 = vst [vmem:[%s4478_s6 + $0x108] sm:$0xf] %v393_v22  ;;  %396 = vst [vmem:[%s4478_s6 + $0x10c] sm:$0xf] %v395_v23 }
  0x6a   : > { %398 = vst [vmem:[%s4478_s6 + $0x110] sm:$0xf] %v397_v24  ;;  %v399_v25 = vld [vmem:[%s4473_s0 + $0x450] sm:$0xf]  ;;  %v401_v26 = vld [vmem:[%s4473_s0 + $0x460] sm:$0xf] }
  0x6b   : > { %v403_v27 = vld [vmem:[%s4473_s0 + $0x470] sm:$0xf]  ;;  %400 = vst [vmem:[%s4478_s6 + $0x114] sm:$0xf] %v399_v25  ;;  %402 = vst [vmem:[%s4478_s6 + $0x118] sm:$0xf] %v401_v26 }
  0x6c   : > { %404 = vst [vmem:[%s4478_s6 + $0x11c] sm:$0xf] %v403_v27  ;;  %v405_v28 = vld [vmem:[%s4473_s0 + $0x480] sm:$0xf]  ;;  %v407_v29 = vld [vmem:[%s4473_s0 + $0x490] sm:$0xf] }
  0x6d   : > { %v409_v30 = vld [vmem:[%s4473_s0 + $0x4a0] sm:$0xf]  ;;  %406 = vst [vmem:[%s4478_s6 + $0x120] sm:$0xf] %v405_v28  ;;  %408 = vst [vmem:[%s4478_s6 + $0x124] sm:$0xf] %v407_v29 }
  0x6e   : > { %410 = vst [vmem:[%s4478_s6 + $0x128] sm:$0xf] %v409_v30  ;;  %v411_v31 = vld [vmem:[%s4473_s0 + $0x4b0] sm:$0xf]  ;;  %v413_v32 = vld [vmem:[%s4473_s0 + $0x4c0] sm:$0xf] }
  0x6f   : > { %v415_v33 = vld [vmem:[%s4473_s0 + $0x4d0] sm:$0xf]  ;;  %412 = vst [vmem:[%s4478_s6 + $0x12c] sm:$0xf] %v411_v31  ;;  %414 = vst [vmem:[%s4478_s6 + $0x130] sm:$0xf] %v413_v32 }
  0x70   : > { %416 = vst [vmem:[%s4478_s6 + $0x134] sm:$0xf] %v415_v33  ;;  %v417_v34 = vld [vmem:[%s4473_s0 + $0x4e0] sm:$0xf]  ;;  %v419_v35 = vld [vmem:[%s4473_s0 + $0x4f0] sm:$0xf] }
  0x71   : > { %v421_v36 = vld [vmem:[%s4473_s0 + $0x500] sm:$0xf]  ;;  %418 = vst [vmem:[%s4478_s6 + $0x138] sm:$0xf] %v417_v34  ;;  %420 = vst [vmem:[%s4478_s6 + $0x13c] sm:$0xf] %v419_v35 }
  0x72   : > { %422 = vst [vmem:[%s4478_s6 + $0x140] sm:$0xf] %v421_v36  ;;  %v423_v37 = vld [vmem:[%s4473_s0 + $0x510] sm:$0xf]  ;;  %v425_v38 = vld [vmem:[%s4473_s0 + $0x520] sm:$0xf] }
  0x73   : > { %v427_v39 = vld [vmem:[%s4473_s0 + $0x530] sm:$0xf]  ;;  %424 = vst [vmem:[%s4478_s6 + $0x144] sm:$0xf] %v423_v37  ;;  %426 = vst [vmem:[%s4478_s6 + $0x148] sm:$0xf] %v425_v38 }
  0x74   : > { %428 = vst [vmem:[%s4478_s6 + $0x14c] sm:$0xf] %v427_v39  ;;  %v429_v40 = vld [vmem:[%s4473_s0 + $0x540] sm:$0xf]  ;;  %v431_v41 = vld [vmem:[%s4473_s0 + $0x550] sm:$0xf] }
  0x75   : > { %v433_v42 = vld [vmem:[%s4473_s0 + $0x560] sm:$0xf]  ;;  %430 = vst [vmem:[%s4478_s6 + $0x150] sm:$0xf] %v429_v40  ;;  %432 = vst [vmem:[%s4478_s6 + $0x154] sm:$0xf] %v431_v41 }
  0x76   : > { %434 = vst [vmem:[%s4478_s6 + $0x158] sm:$0xf] %v433_v42  ;;  %v435_v43 = vld [vmem:[%s4473_s0 + $0x570] sm:$0xf]  ;;  %v437_v44 = vld [vmem:[%s4473_s0 + $0x580] sm:$0xf] }
  0x77   : > { %v439_v45 = vld [vmem:[%s4473_s0 + $0x590] sm:$0xf]  ;;  %436 = vst [vmem:[%s4478_s6 + $0x15c] sm:$0xf] %v435_v43  ;;  %438 = vst [vmem:[%s4478_s6 + $0x160] sm:$0xf] %v437_v44 }
  0x78   : > { %440 = vst [vmem:[%s4478_s6 + $0x164] sm:$0xf] %v439_v45  ;;  %v441_v46 = vld [vmem:[%s4473_s0 + $0x5a0] sm:$0xf]  ;;  %v443_v47 = vld [vmem:[%s4473_s0 + $0x5b0] sm:$0xf] }
  0x79   : > { %v445_v48 = vld [vmem:[%s4473_s0 + $0x5c0] sm:$0xf]  ;;  %442 = vst [vmem:[%s4478_s6 + $0x168] sm:$0xf] %v441_v46  ;;  %444 = vst [vmem:[%s4478_s6 + $0x16c] sm:$0xf] %v443_v47 }
  0x7a   : > { %446 = vst [vmem:[%s4478_s6 + $0x170] sm:$0xf] %v445_v48  ;;  %v447_v49 = vld [vmem:[%s4473_s0 + $0x5d0] sm:$0xf]  ;;  %v449_v50 = vld [vmem:[%s4473_s0 + $0x5e0] sm:$0xf] }
  0x7b   : > { %v451_v51 = vld [vmem:[%s4473_s0 + $0x5f0] sm:$0xf]  ;;  %448 = vst [vmem:[%s4478_s6 + $0x174] sm:$0xf] %v447_v49  ;;  %450 = vst [vmem:[%s4478_s6 + $0x178] sm:$0xf] %v449_v50 }
  0x7c   : > { %452 = vst [vmem:[%s4478_s6 + $0x17c] sm:$0xf] %v451_v51  ;;  %v453_v52 = vld [vmem:[%s4473_s0 + $0x600] sm:$0xf]  ;;  %v455_v53 = vld [vmem:[%s4473_s0 + $0x610] sm:$0xf] }
  0x7d   : > { %v457_v54 = vld [vmem:[%s4473_s0 + $0x620] sm:$0xf]  ;;  %454 = vst [vmem:[%s4478_s6 + $0x180] sm:$0xf] %v453_v52  ;;  %456 = vst [vmem:[%s4478_s6 + $0x184] sm:$0xf] %v455_v53 }
  0x7e   : > { %458 = vst [vmem:[%s4478_s6 + $0x188] sm:$0xf] %v457_v54  ;;  %v459_v55 = vld [vmem:[%s4473_s0 + $0x630] sm:$0xf]  ;;  %v461_v56 = vld [vmem:[%s4473_s0 + $0x640] sm:$0xf] }
  0x7f   : > { %v463_v57 = vld [vmem:[%s4473_s0 + $0x650] sm:$0xf]  ;;  %460 = vst [vmem:[%s4478_s6 + $0x18c] sm:$0xf] %v459_v55  ;;  %462 = vst [vmem:[%s4478_s6 + $0x190] sm:$0xf] %v461_v56 }
  0x80   : > { %464 = vst [vmem:[%s4478_s6 + $0x194] sm:$0xf] %v463_v57  ;;  %v465_v58 = vld [vmem:[%s4473_s0 + $0x660] sm:$0xf]  ;;  %v467_v59 = vld [vmem:[%s4473_s0 + $0x670] sm:$0xf] }
  0x81   : > { %v469_v60 = vld [vmem:[%s4473_s0 + $0x680] sm:$0xf]  ;;  %466 = vst [vmem:[%s4478_s6 + $0x198] sm:$0xf] %v465_v58  ;;  %468 = vst [vmem:[%s4478_s6 + $0x19c] sm:$0xf] %v467_v59 }
  0x82   : > { %470 = vst [vmem:[%s4478_s6 + $0x1a0] sm:$0xf] %v469_v60  ;;  %v471_v61 = vld [vmem:[%s4473_s0 + $0x690] sm:$0xf]  ;;  %v473_v62 = vld [vmem:[%s4473_s0 + $0x6a0] sm:$0xf] }
  0x83   : > { %v475_v63 = vld [vmem:[%s4473_s0 + $0x6b0] sm:$0xf]  ;;  %472 = vst [vmem:[%s4478_s6 + $0x1a4] sm:$0xf] %v471_v61  ;;  %474 = vst [vmem:[%s4478_s6 + $0x1a8] sm:$0xf] %v473_v62 }
  0x84   : > { %476 = vst [vmem:[%s4478_s6 + $0x1ac] sm:$0xf] %v475_v63  ;;  %v477_v0 = vld [vmem:[%s4473_s0 + $0x6c0] sm:$0xf]  ;;  %v479_v1 = vld [vmem:[%s4473_s0 + $0x6d0] sm:$0xf] }
  0x85   : > { %v481_v2 = vld [vmem:[%s4473_s0 + $0x6e0] sm:$0xf]  ;;  %478 = vst [vmem:[%s4478_s6 + $0x1b0] sm:$0xf] %v477_v0  ;;  %480 = vst [vmem:[%s4478_s6 + $0x1b4] sm:$0xf] %v479_v1 }
  0x86   : > { %482 = vst [vmem:[%s4478_s6 + $0x1b8] sm:$0xf] %v481_v2  ;;  %v483_v3 = vld [vmem:[%s4473_s0 + $0x6f0] sm:$0xf]  ;;  %v485_v4 = vld [vmem:[%s4473_s0 + $0x700] sm:$0xf] }
  0x87   : > { %v487_v5 = vld [vmem:[%s4473_s0 + $0x710] sm:$0xf]  ;;  %484 = vst [vmem:[%s4478_s6 + $0x1bc] sm:$0xf] %v483_v3  ;;  %486 = vst [vmem:[%s4478_s6 + $0x1c0] sm:$0xf] %v485_v4 }
  0x88   : > { %488 = vst [vmem:[%s4478_s6 + $0x1c4] sm:$0xf] %v487_v5  ;;  %v489_v6 = vld [vmem:[%s4473_s0 + $0x720] sm:$0xf]  ;;  %v491_v7 = vld [vmem:[%s4473_s0 + $0x730] sm:$0xf] }
  0x89   : > { %v493_v8 = vld [vmem:[%s4473_s0 + $0x740] sm:$0xf]  ;;  %490 = vst [vmem:[%s4478_s6 + $0x1c8] sm:$0xf] %v489_v6  ;;  %492 = vst [vmem:[%s4478_s6 + $0x1cc] sm:$0xf] %v491_v7 }
  0x8a   : > { %494 = vst [vmem:[%s4478_s6 + $0x1d0] sm:$0xf] %v493_v8  ;;  %v495_v9 = vld [vmem:[%s4473_s0 + $0x750] sm:$0xf]  ;;  %v497_v10 = vld [vmem:[%s4473_s0 + $0x760] sm:$0xf] }
  0x8b   : > { %v499_v11 = vld [vmem:[%s4473_s0 + $0x770] sm:$0xf]  ;;  %496 = vst [vmem:[%s4478_s6 + $0x1d4] sm:$0xf] %v495_v9  ;;  %498 = vst [vmem:[%s4478_s6 + $0x1d8] sm:$0xf] %v497_v10 }
  0x8c   : > { %500 = vst [vmem:[%s4478_s6 + $0x1dc] sm:$0xf] %v499_v11  ;;  %v501_v12 = vld [vmem:[%s4473_s0 + $0x780] sm:$0xf]  ;;  %v503_v13 = vld [vmem:[%s4473_s0 + $0x790] sm:$0xf] }
  0x8d   : > { %v505_v14 = vld [vmem:[%s4473_s0 + $0x7a0] sm:$0xf]  ;;  %502 = vst [vmem:[%s4478_s6 + $0x1e0] sm:$0xf] %v501_v12  ;;  %504 = vst [vmem:[%s4478_s6 + $0x1e4] sm:$0xf] %v503_v13 }
  0x8e   : > { %506 = vst [vmem:[%s4478_s6 + $0x1e8] sm:$0xf] %v505_v14  ;;  %v507_v15 = vld [vmem:[%s4473_s0 + $0x7b0] sm:$0xf]  ;;  %v509_v16 = vld [vmem:[%s4473_s0 + $0x7c0] sm:$0xf] }
  0x8f   : > { %v511_v17 = vld [vmem:[%s4473_s0 + $0x7d0] sm:$0xf]  ;;  %508 = vst [vmem:[%s4478_s6 + $0x1ec] sm:$0xf] %v507_v15  ;;  %510 = vst [vmem:[%s4478_s6 + $0x1f0] sm:$0xf] %v509_v16 }
  0x90   : > { %512 = vst [vmem:[%s4478_s6 + $0x1f4] sm:$0xf] %v511_v17  ;;  %v513_v18 = vld [vmem:[%s4473_s0 + $0x7e0] sm:$0xf]  ;;  %v515_v19 = vld [vmem:[%s4473_s0 + $0x7f0] sm:$0xf] }
  0x91   : > { %v517_v20 = vld [vmem:[%s4473_s0 + $0x800] sm:$0xf]  ;;  %514 = vst [vmem:[%s4478_s6 + $0x1f8] sm:$0xf] %v513_v18  ;;  %516 = vst [vmem:[%s4478_s6 + $0x1fc] sm:$0xf] %v515_v19 }
  0x92   : > { %518 = vst [vmem:[%s4478_s6 + $0x200] sm:$0xf] %v517_v20  ;;  %v519_v21 = vld [vmem:[%s4473_s0 + $0x810] sm:$0xf]  ;;  %v521_v22 = vld [vmem:[%s4473_s0 + $0x820] sm:$0xf] }
  0x93   : > { %v523_v23 = vld [vmem:[%s4473_s0 + $0x830] sm:$0xf]  ;;  %520 = vst [vmem:[%s4478_s6 + $0x204] sm:$0xf] %v519_v21  ;;  %522 = vst [vmem:[%s4478_s6 + $0x208] sm:$0xf] %v521_v22 }
  0x94   : > { %524 = vst [vmem:[%s4478_s6 + $0x20c] sm:$0xf] %v523_v23  ;;  %v525_v24 = vld [vmem:[%s4473_s0 + $0x840] sm:$0xf]  ;;  %v527_v25 = vld [vmem:[%s4473_s0 + $0x850] sm:$0xf] }
  0x95   : > { %v529_v26 = vld [vmem:[%s4473_s0 + $0x860] sm:$0xf]  ;;  %526 = vst [vmem:[%s4478_s6 + $0x210] sm:$0xf] %v525_v24  ;;  %528 = vst [vmem:[%s4478_s6 + $0x214] sm:$0xf] %v527_v25 }
  0x96   : > { %530 = vst [vmem:[%s4478_s6 + $0x218] sm:$0xf] %v529_v26  ;;  %v531_v27 = vld [vmem:[%s4473_s0 + $0x870] sm:$0xf]  ;;  %v533_v28 = vld [vmem:[%s4473_s0 + $0x880] sm:$0xf] }
  0x97   : > { %v535_v29 = vld [vmem:[%s4473_s0 + $0x890] sm:$0xf]  ;;  %532 = vst [vmem:[%s4478_s6 + $0x21c] sm:$0xf] %v531_v27  ;;  %534 = vst [vmem:[%s4478_s6 + $0x220] sm:$0xf] %v533_v28 }
  0x98   : > { %536 = vst [vmem:[%s4478_s6 + $0x224] sm:$0xf] %v535_v29  ;;  %v537_v30 = vld [vmem:[%s4473_s0 + $0x8a0] sm:$0xf]  ;;  %v539_v31 = vld [vmem:[%s4473_s0 + $0x8b0] sm:$0xf] }
  0x99   : > { %v541_v32 = vld [vmem:[%s4473_s0 + $0x8c0] sm:$0xf]  ;;  %538 = vst [vmem:[%s4478_s6 + $0x228] sm:$0xf] %v537_v30  ;;  %540 = vst [vmem:[%s4478_s6 + $0x22c] sm:$0xf] %v539_v31 }
  0x9a   : > { %542 = vst [vmem:[%s4478_s6 + $0x230] sm:$0xf] %v541_v32  ;;  %v543_v33 = vld [vmem:[%s4473_s0 + $0x8d0] sm:$0xf]  ;;  %v545_v34 = vld [vmem:[%s4473_s0 + $0x8e0] sm:$0xf] }
  0x9b   : > { %v547_v35 = vld [vmem:[%s4473_s0 + $0x8f0] sm:$0xf]  ;;  %544 = vst [vmem:[%s4478_s6 + $0x234] sm:$0xf] %v543_v33  ;;  %546 = vst [vmem:[%s4478_s6 + $0x238] sm:$0xf] %v545_v34 }
  0x9c   : > { %548 = vst [vmem:[%s4478_s6 + $0x23c] sm:$0xf] %v547_v35  ;;  %v549_v36 = vld [vmem:[%s4473_s0 + $0x900] sm:$0xf]  ;;  %v551_v37 = vld [vmem:[%s4473_s0 + $0x910] sm:$0xf] }
  0x9d   : > { %v553_v38 = vld [vmem:[%s4473_s0 + $0x920] sm:$0xf]  ;;  %550 = vst [vmem:[%s4478_s6 + $0x240] sm:$0xf] %v549_v36  ;;  %552 = vst [vmem:[%s4478_s6 + $0x244] sm:$0xf] %v551_v37 }
  0x9e   : > { %554 = vst [vmem:[%s4478_s6 + $0x248] sm:$0xf] %v553_v38  ;;  %v555_v39 = vld [vmem:[%s4473_s0 + $0x930] sm:$0xf]  ;;  %v557_v40 = vld [vmem:[%s4473_s0 + $0x940] sm:$0xf] }
  0x9f   : > { %v559_v41 = vld [vmem:[%s4473_s0 + $0x950] sm:$0xf]  ;;  %556 = vst [vmem:[%s4478_s6 + $0x24c] sm:$0xf] %v555_v39  ;;  %558 = vst [vmem:[%s4478_s6 + $0x250] sm:$0xf] %v557_v40 }
  0xa0   : > { %560 = vst [vmem:[%s4478_s6 + $0x254] sm:$0xf] %v559_v41  ;;  %v561_v42 = vld [vmem:[%s4473_s0 + $0x960] sm:$0xf]  ;;  %v563_v43 = vld [vmem:[%s4473_s0 + $0x970] sm:$0xf] }
  0xa1   : > { %v565_v44 = vld [vmem:[%s4473_s0 + $0x980] sm:$0xf]  ;;  %562 = vst [vmem:[%s4478_s6 + $0x258] sm:$0xf] %v561_v42  ;;  %564 = vst [vmem:[%s4478_s6 + $0x25c] sm:$0xf] %v563_v43 }
  0xa2   : > { %566 = vst [vmem:[%s4478_s6 + $0x260] sm:$0xf] %v565_v44  ;;  %v567_v45 = vld [vmem:[%s4473_s0 + $0x990] sm:$0xf]  ;;  %v569_v46 = vld [vmem:[%s4473_s0 + $0x9a0] sm:$0xf] }
  0xa3   : > { %v571_v47 = vld [vmem:[%s4473_s0 + $0x9b0] sm:$0xf]  ;;  %568 = vst [vmem:[%s4478_s6 + $0x264] sm:$0xf] %v567_v45  ;;  %570 = vst [vmem:[%s4478_s6 + $0x268] sm:$0xf] %v569_v46 }
  0xa4   : > { %572 = vst [vmem:[%s4478_s6 + $0x26c] sm:$0xf] %v571_v47  ;;  %v573_v48 = vld [vmem:[%s4473_s0 + $0x9c0] sm:$0xf]  ;;  %v575_v49 = vld [vmem:[%s4473_s0 + $0x9d0] sm:$0xf] }
  0xa5   : > { %v577_v50 = vld [vmem:[%s4473_s0 + $0x9e0] sm:$0xf]  ;;  %574 = vst [vmem:[%s4478_s6 + $0x270] sm:$0xf] %v573_v48  ;;  %576 = vst [vmem:[%s4478_s6 + $0x274] sm:$0xf] %v575_v49 }
  0xa6   : > { %578 = vst [vmem:[%s4478_s6 + $0x278] sm:$0xf] %v577_v50  ;;  %v579_v51 = vld [vmem:[%s4473_s0 + $0x9f0] sm:$0xf]  ;;  %v581_v52 = vld [vmem:[%s4473_s0 + $0xa00] sm:$0xf] }
  0xa7   : > { %v583_v53 = vld [vmem:[%s4473_s0 + $0xa10] sm:$0xf]  ;;  %580 = vst [vmem:[%s4478_s6 + $0x27c] sm:$0xf] %v579_v51  ;;  %582 = vst [vmem:[%s4478_s6 + $0x280] sm:$0xf] %v581_v52 }
  0xa8   : > { %584 = vst [vmem:[%s4478_s6 + $0x284] sm:$0xf] %v583_v53  ;;  %v585_v54 = vld [vmem:[%s4473_s0 + $0xa20] sm:$0xf]  ;;  %v587_v55 = vld [vmem:[%s4473_s0 + $0xa30] sm:$0xf] }
  0xa9   : > { %v589_v56 = vld [vmem:[%s4473_s0 + $0xa40] sm:$0xf]  ;;  %586 = vst [vmem:[%s4478_s6 + $0x288] sm:$0xf] %v585_v54  ;;  %588 = vst [vmem:[%s4478_s6 + $0x28c] sm:$0xf] %v587_v55 }
  0xaa   : > { %590 = vst [vmem:[%s4478_s6 + $0x290] sm:$0xf] %v589_v56  ;;  %v591_v57 = vld [vmem:[%s4473_s0 + $0xa50] sm:$0xf]  ;;  %v593_v58 = vld [vmem:[%s4473_s0 + $0xa60] sm:$0xf] }
  0xab   : > { %v595_v59 = vld [vmem:[%s4473_s0 + $0xa70] sm:$0xf]  ;;  %592 = vst [vmem:[%s4478_s6 + $0x294] sm:$0xf] %v591_v57  ;;  %594 = vst [vmem:[%s4478_s6 + $0x298] sm:$0xf] %v593_v58 }
  0xac   : > { %596 = vst [vmem:[%s4478_s6 + $0x29c] sm:$0xf] %v595_v59  ;;  %v597_v60 = vld [vmem:[%s4473_s0 + $0xa80] sm:$0xf]  ;;  %v599_v61 = vld [vmem:[%s4473_s0 + $0xa90] sm:$0xf] }
  0xad   : > { %v601_v62 = vld [vmem:[%s4473_s0 + $0xaa0] sm:$0xf]  ;;  %598 = vst [vmem:[%s4478_s6 + $0x2a0] sm:$0xf] %v597_v60  ;;  %600 = vst [vmem:[%s4478_s6 + $0x2a4] sm:$0xf] %v599_v61 }
  0xae   : > { %602 = vst [vmem:[%s4478_s6 + $0x2a8] sm:$0xf] %v601_v62  ;;  %v603_v63 = vld [vmem:[%s4473_s0 + $0xab0] sm:$0xf]  ;;  %v605_v0 = vld [vmem:[%s4473_s0 + $0xac0] sm:$0xf] }
  0xaf   : > { %v607_v1 = vld [vmem:[%s4473_s0 + $0xad0] sm:$0xf]  ;;  %604 = vst [vmem:[%s4478_s6 + $0x2ac] sm:$0xf] %v603_v63  ;;  %606 = vst [vmem:[%s4478_s6 + $0x2b0] sm:$0xf] %v605_v0 }
  0xb0   : > { %608 = vst [vmem:[%s4478_s6 + $0x2b4] sm:$0xf] %v607_v1  ;;  %v609_v2 = vld [vmem:[%s4473_s0 + $0xae0] sm:$0xf]  ;;  %v611_v3 = vld [vmem:[%s4473_s0 + $0xaf0] sm:$0xf] }
  0xb1   : > { %v613_v4 = vld [vmem:[%s4473_s0 + $0xb00] sm:$0xf]  ;;  %610 = vst [vmem:[%s4478_s6 + $0x2b8] sm:$0xf] %v609_v2  ;;  %612 = vst [vmem:[%s4478_s6 + $0x2bc] sm:$0xf] %v611_v3 }
  0xb2   : > { %614 = vst [vmem:[%s4478_s6 + $0x2c0] sm:$0xf] %v613_v4  ;;  %v615_v5 = vld [vmem:[%s4473_s0 + $0xb10] sm:$0xf]  ;;  %v617_v6 = vld [vmem:[%s4473_s0 + $0xb20] sm:$0xf] }
  0xb3   : > { %v619_v7 = vld [vmem:[%s4473_s0 + $0xb30] sm:$0xf]  ;;  %616 = vst [vmem:[%s4478_s6 + $0x2c4] sm:$0xf] %v615_v5  ;;  %618 = vst [vmem:[%s4478_s6 + $0x2c8] sm:$0xf] %v617_v6 }
  0xb4   : > { %620 = vst [vmem:[%s4478_s6 + $0x2cc] sm:$0xf] %v619_v7  ;;  %v621_v8 = vld [vmem:[%s4473_s0 + $0xb40] sm:$0xf]  ;;  %v623_v9 = vld [vmem:[%s4473_s0 + $0xb50] sm:$0xf] }
  0xb5   : > { %v625_v10 = vld [vmem:[%s4473_s0 + $0xb60] sm:$0xf]  ;;  %622 = vst [vmem:[%s4478_s6 + $0x2d0] sm:$0xf] %v621_v8  ;;  %624 = vst [vmem:[%s4478_s6 + $0x2d4] sm:$0xf] %v623_v9 }
  0xb6   : > { %626 = vst [vmem:[%s4478_s6 + $0x2d8] sm:$0xf] %v625_v10  ;;  %v627_v11 = vld [vmem:[%s4473_s0 + $0xb70] sm:$0xf]  ;;  %v629_v12 = vld [vmem:[%s4473_s0 + $0xb80] sm:$0xf] }
  0xb7   : > { %v631_v13 = vld [vmem:[%s4473_s0 + $0xb90] sm:$0xf]  ;;  %628 = vst [vmem:[%s4478_s6 + $0x2dc] sm:$0xf] %v627_v11  ;;  %630 = vst [vmem:[%s4478_s6 + $0x2e0] sm:$0xf] %v629_v12 }
  0xb8   : > { %632 = vst [vmem:[%s4478_s6 + $0x2e4] sm:$0xf] %v631_v13  ;;  %v633_v14 = vld [vmem:[%s4473_s0 + $0xba0] sm:$0xf]  ;;  %v635_v15 = vld [vmem:[%s4473_s0 + $0xbb0] sm:$0xf] }
  0xb9   : > { %v637_v16 = vld [vmem:[%s4473_s0 + $0xbc0] sm:$0xf]  ;;  %634 = vst [vmem:[%s4478_s6 + $0x2e8] sm:$0xf] %v633_v14  ;;  %636 = vst [vmem:[%s4478_s6 + $0x2ec] sm:$0xf] %v635_v15 }
  0xba   : > { %638 = vst [vmem:[%s4478_s6 + $0x2f0] sm:$0xf] %v637_v16  ;;  %v639_v17 = vld [vmem:[%s4473_s0 + $0xbd0] sm:$0xf]  ;;  %v641_v18 = vld [vmem:[%s4473_s0 + $0xbe0] sm:$0xf] }
  0xbb   : > { %v643_v19 = vld [vmem:[%s4473_s0 + $0xbf0] sm:$0xf]  ;;  %640 = vst [vmem:[%s4478_s6 + $0x2f4] sm:$0xf] %v639_v17  ;;  %642 = vst [vmem:[%s4478_s6 + $0x2f8] sm:$0xf] %v641_v18 }
  0xbc   : > { %644 = vst [vmem:[%s4478_s6 + $0x2fc] sm:$0xf] %v643_v19  ;;  %v645_v20 = vld [vmem:[%s4473_s0 + $0xc00] sm:$0xf]  ;;  %v647_v21 = vld [vmem:[%s4473_s0 + $0xc10] sm:$0xf] }
  0xbd   : > { %v649_v22 = vld [vmem:[%s4473_s0 + $0xc20] sm:$0xf]  ;;  %646 = vst [vmem:[%s4478_s6 + $0x300] sm:$0xf] %v645_v20  ;;  %648 = vst [vmem:[%s4478_s6 + $0x304] sm:$0xf] %v647_v21 }
  0xbe   : > { %650 = vst [vmem:[%s4478_s6 + $0x308] sm:$0xf] %v649_v22  ;;  %v651_v23 = vld [vmem:[%s4473_s0 + $0xc30] sm:$0xf]  ;;  %v653_v24 = vld [vmem:[%s4473_s0 + $0xc40] sm:$0xf] }
  0xbf   : > { %v655_v25 = vld [vmem:[%s4473_s0 + $0xc50] sm:$0xf]  ;;  %652 = vst [vmem:[%s4478_s6 + $0x30c] sm:$0xf] %v651_v23  ;;  %654 = vst [vmem:[%s4478_s6 + $0x310] sm:$0xf] %v653_v24 }
  0xc0   : > { %656 = vst [vmem:[%s4478_s6 + $0x314] sm:$0xf] %v655_v25  ;;  %v657_v26 = vld [vmem:[%s4473_s0 + $0xc60] sm:$0xf]  ;;  %v659_v27 = vld [vmem:[%s4473_s0 + $0xc70] sm:$0xf] }
  0xc1   : > { %v661_v28 = vld [vmem:[%s4473_s0 + $0xc80] sm:$0xf]  ;;  %658 = vst [vmem:[%s4478_s6 + $0x318] sm:$0xf] %v657_v26  ;;  %660 = vst [vmem:[%s4478_s6 + $0x31c] sm:$0xf] %v659_v27 }
  0xc2   : > { %662 = vst [vmem:[%s4478_s6 + $0x320] sm:$0xf] %v661_v28  ;;  %v663_v29 = vld [vmem:[%s4473_s0 + $0xc90] sm:$0xf]  ;;  %v665_v30 = vld [vmem:[%s4473_s0 + $0xca0] sm:$0xf] }
  0xc3   : > { %v667_v31 = vld [vmem:[%s4473_s0 + $0xcb0] sm:$0xf]  ;;  %664 = vst [vmem:[%s4478_s6 + $0x324] sm:$0xf] %v663_v29  ;;  %666 = vst [vmem:[%s4478_s6 + $0x328] sm:$0xf] %v665_v30 }
  0xc4   : > { %668 = vst [vmem:[%s4478_s6 + $0x32c] sm:$0xf] %v667_v31  ;;  %v669_v32 = vld [vmem:[%s4473_s0 + $0xcc0] sm:$0xf]  ;;  %v671_v33 = vld [vmem:[%s4473_s0 + $0xcd0] sm:$0xf] }
  0xc5   : > { %v673_v34 = vld [vmem:[%s4473_s0 + $0xce0] sm:$0xf]  ;;  %670 = vst [vmem:[%s4478_s6 + $0x330] sm:$0xf] %v669_v32  ;;  %672 = vst [vmem:[%s4478_s6 + $0x334] sm:$0xf] %v671_v33 }
  0xc6   : > { %674 = vst [vmem:[%s4478_s6 + $0x338] sm:$0xf] %v673_v34  ;;  %v675_v35 = vld [vmem:[%s4473_s0 + $0xcf0] sm:$0xf]  ;;  %v677_v36 = vld [vmem:[%s4473_s0 + $0xd00] sm:$0xf] }
  0xc7   : > { %v679_v37 = vld [vmem:[%s4473_s0 + $0xd10] sm:$0xf]  ;;  %676 = vst [vmem:[%s4478_s6 + $0x33c] sm:$0xf] %v675_v35  ;;  %678 = vst [vmem:[%s4478_s6 + $0x340] sm:$0xf] %v677_v36 }
  0xc8   : > { %680 = vst [vmem:[%s4478_s6 + $0x344] sm:$0xf] %v679_v37  ;;  %v681_v38 = vld [vmem:[%s4473_s0 + $0xd20] sm:$0xf]  ;;  %v683_v39 = vld [vmem:[%s4473_s0 + $0xd30] sm:$0xf] }
  0xc9   : > { %v685_v40 = vld [vmem:[%s4473_s0 + $0xd40] sm:$0xf]  ;;  %682 = vst [vmem:[%s4478_s6 + $0x348] sm:$0xf] %v681_v38  ;;  %684 = vst [vmem:[%s4478_s6 + $0x34c] sm:$0xf] %v683_v39 }
  0xca   : > { %686 = vst [vmem:[%s4478_s6 + $0x350] sm:$0xf] %v685_v40  ;;  %v687_v41 = vld [vmem:[%s4473_s0 + $0xd50] sm:$0xf]  ;;  %v689_v42 = vld [vmem:[%s4473_s0 + $0xd60] sm:$0xf] }
  0xcb   : > { %v691_v43 = vld [vmem:[%s4473_s0 + $0xd70] sm:$0xf]  ;;  %688 = vst [vmem:[%s4478_s6 + $0x354] sm:$0xf] %v687_v41  ;;  %690 = vst [vmem:[%s4478_s6 + $0x358] sm:$0xf] %v689_v42 }
  0xcc   : > { %692 = vst [vmem:[%s4478_s6 + $0x35c] sm:$0xf] %v691_v43  ;;  %v693_v44 = vld [vmem:[%s4473_s0 + $0xd80] sm:$0xf]  ;;  %v695_v45 = vld [vmem:[%s4473_s0 + $0xd90] sm:$0xf] }
  0xcd   : > { %v697_v46 = vld [vmem:[%s4473_s0 + $0xda0] sm:$0xf]  ;;  %694 = vst [vmem:[%s4478_s6 + $0x360] sm:$0xf] %v693_v44  ;;  %696 = vst [vmem:[%s4478_s6 + $0x364] sm:$0xf] %v695_v45 }
  0xce   : > { %698 = vst [vmem:[%s4478_s6 + $0x368] sm:$0xf] %v697_v46  ;;  %v699_v47 = vld [vmem:[%s4473_s0 + $0xdb0] sm:$0xf]  ;;  %v701_v48 = vld [vmem:[%s4473_s0 + $0xdc0] sm:$0xf] }
  0xcf   : > { %v703_v49 = vld [vmem:[%s4473_s0 + $0xdd0] sm:$0xf]  ;;  %700 = vst [vmem:[%s4478_s6 + $0x36c] sm:$0xf] %v699_v47  ;;  %702 = vst [vmem:[%s4478_s6 + $0x370] sm:$0xf] %v701_v48 }
  0xd0   : > { %704 = vst [vmem:[%s4478_s6 + $0x374] sm:$0xf] %v703_v49  ;;  %v705_v50 = vld [vmem:[%s4473_s0 + $0xde0] sm:$0xf]  ;;  %v707_v51 = vld [vmem:[%s4473_s0 + $0xdf0] sm:$0xf] }
  0xd1   : > { %v709_v52 = vld [vmem:[%s4473_s0 + $0xe00] sm:$0xf]  ;;  %706 = vst [vmem:[%s4478_s6 + $0x378] sm:$0xf] %v705_v50  ;;  %708 = vst [vmem:[%s4478_s6 + $0x37c] sm:$0xf] %v707_v51 }
  0xd2   : > { %710 = vst [vmem:[%s4478_s6 + $0x380] sm:$0xf] %v709_v52  ;;  %v711_v53 = vld [vmem:[%s4473_s0 + $0xe10] sm:$0xf]  ;;  %v713_v54 = vld [vmem:[%s4473_s0 + $0xe20] sm:$0xf] }
  0xd3   : > { %v715_v55 = vld [vmem:[%s4473_s0 + $0xe30] sm:$0xf]  ;;  %712 = vst [vmem:[%s4478_s6 + $0x384] sm:$0xf] %v711_v53  ;;  %714 = vst [vmem:[%s4478_s6 + $0x388] sm:$0xf] %v713_v54 }
  0xd4   : > { %716 = vst [vmem:[%s4478_s6 + $0x38c] sm:$0xf] %v715_v55  ;;  %v717_v56 = vld [vmem:[%s4473_s0 + $0xe40] sm:$0xf]  ;;  %v719_v57 = vld [vmem:[%s4473_s0 + $0xe50] sm:$0xf] }
  0xd5   : > { %v721_v58 = vld [vmem:[%s4473_s0 + $0xe60] sm:$0xf]  ;;  %718 = vst [vmem:[%s4478_s6 + $0x390] sm:$0xf] %v717_v56  ;;  %720 = vst [vmem:[%s4478_s6 + $0x394] sm:$0xf] %v719_v57 }
  0xd6   : > { %722 = vst [vmem:[%s4478_s6 + $0x398] sm:$0xf] %v721_v58  ;;  %v723_v59 = vld [vmem:[%s4473_s0 + $0xe70] sm:$0xf]  ;;  %v725_v60 = vld [vmem:[%s4473_s0 + $0xe80] sm:$0xf] }
  0xd7   : > { %v727_v61 = vld [vmem:[%s4473_s0 + $0xe90] sm:$0xf]  ;;  %724 = vst [vmem:[%s4478_s6 + $0x39c] sm:$0xf] %v723_v59  ;;  %726 = vst [vmem:[%s4478_s6 + $0x3a0] sm:$0xf] %v725_v60 }
  0xd8   : > { %728 = vst [vmem:[%s4478_s6 + $0x3a4] sm:$0xf] %v727_v61  ;;  %v729_v62 = vld [vmem:[%s4473_s0 + $0xea0] sm:$0xf]  ;;  %v731_v63 = vld [vmem:[%s4473_s0 + $0xeb0] sm:$0xf] }
  0xd9   : > { %v733_v0 = vld [vmem:[%s4473_s0 + $0xec0] sm:$0xf]  ;;  %730 = vst [vmem:[%s4478_s6 + $0x3a8] sm:$0xf] %v729_v62  ;;  %732 = vst [vmem:[%s4478_s6 + $0x3ac] sm:$0xf] %v731_v63 }
  0xda   : > { %734 = vst [vmem:[%s4478_s6 + $0x3b0] sm:$0xf] %v733_v0  ;;  %v735_v1 = vld [vmem:[%s4473_s0 + $0xed0] sm:$0xf]  ;;  %v737_v2 = vld [vmem:[%s4473_s0 + $0xee0] sm:$0xf] }
  0xdb   : > { %v739_v3 = vld [vmem:[%s4473_s0 + $0xef0] sm:$0xf]  ;;  %736 = vst [vmem:[%s4478_s6 + $0x3b4] sm:$0xf] %v735_v1  ;;  %738 = vst [vmem:[%s4478_s6 + $0x3b8] sm:$0xf] %v737_v2 }
  0xdc   : > { %740 = vst [vmem:[%s4478_s6 + $0x3bc] sm:$0xf] %v739_v3  ;;  %v741_v4 = vld [vmem:[%s4473_s0 + $0xf00] sm:$0xf]  ;;  %v743_v5 = vld [vmem:[%s4473_s0 + $0xf10] sm:$0xf] }
  0xdd   : > { %v745_v6 = vld [vmem:[%s4473_s0 + $0xf20] sm:$0xf]  ;;  %742 = vst [vmem:[%s4478_s6 + $0x3c0] sm:$0xf] %v741_v4  ;;  %744 = vst [vmem:[%s4478_s6 + $0x3c4] sm:$0xf] %v743_v5 }
  0xde   : > { %746 = vst [vmem:[%s4478_s6 + $0x3c8] sm:$0xf] %v745_v6  ;;  %v747_v7 = vld [vmem:[%s4473_s0 + $0xf30] sm:$0xf]  ;;  %v749_v8 = vld [vmem:[%s4473_s0 + $0xf40] sm:$0xf] }
  0xdf   : > { %v751_v9 = vld [vmem:[%s4473_s0 + $0xf50] sm:$0xf]  ;;  %748 = vst [vmem:[%s4478_s6 + $0x3cc] sm:$0xf] %v747_v7  ;;  %750 = vst [vmem:[%s4478_s6 + $0x3d0] sm:$0xf] %v749_v8 }
  0xe0   : > { %752 = vst [vmem:[%s4478_s6 + $0x3d4] sm:$0xf] %v751_v9  ;;  %v753_v10 = vld [vmem:[%s4473_s0 + $0xf60] sm:$0xf]  ;;  %v755_v11 = vld [vmem:[%s4473_s0 + $0xf70] sm:$0xf] }
  0xe1   : > { %v757_v12 = vld [vmem:[%s4473_s0 + $0xf80] sm:$0xf]  ;;  %754 = vst [vmem:[%s4478_s6 + $0x3d8] sm:$0xf] %v753_v10  ;;  %756 = vst [vmem:[%s4478_s6 + $0x3dc] sm:$0xf] %v755_v11 }
  0xe2   : > { %758 = vst [vmem:[%s4478_s6 + $0x3e0] sm:$0xf] %v757_v12  ;;  %v759_v13 = vld [vmem:[%s4473_s0 + $0xf90] sm:$0xf]  ;;  %v761_v14 = vld [vmem:[%s4473_s0 + $0xfa0] sm:$0xf] }
  0xe3   : > { %v763_v15 = vld [vmem:[%s4473_s0 + $0xfb0] sm:$0xf]  ;;  %760 = vst [vmem:[%s4478_s6 + $0x3e4] sm:$0xf] %v759_v13  ;;  %762 = vst [vmem:[%s4478_s6 + $0x3e8] sm:$0xf] %v761_v14 }
  0xe4   : > { %764 = vst [vmem:[%s4478_s6 + $0x3ec] sm:$0xf] %v763_v15  ;;  %v765_v16 = vld [vmem:[%s4473_s0 + $0xfc0] sm:$0xf]  ;;  %v767_v17 = vld [vmem:[%s4473_s0 + $0xfd0] sm:$0xf] }
  0xe5   : > { %v769_v18 = vld [vmem:[%s4473_s0 + $0xfe0] sm:$0xf]  ;;  %766 = vst [vmem:[%s4478_s6 + $0x3f0] sm:$0xf] %v765_v16  ;;  %768 = vst [vmem:[%s4478_s6 + $0x3f4] sm:$0xf] %v767_v17 }
  0xe6   : > { %770 = vst [vmem:[%s4478_s6 + $0x3f8] sm:$0xf] %v769_v18  ;;  %v771_v19 = vld [vmem:[%s4473_s0 + $0xff0] sm:$0xf]  ;;  %v773_v20 = vld [vmem:[%s4473_s0 + $0x1000] sm:$0xf] }
  0xe7   : > { %v775_v21 = vld [vmem:[%s4473_s0 + $0x1010] sm:$0xf]  ;;  %772 = vst [vmem:[%s4478_s6 + $0x3fc] sm:$0xf] %v771_v19  ;;  %774 = vst [vmem:[%s4478_s6 + $0x400] sm:$0xf] %v773_v20 }
  0xe8   : > { %776 = vst [vmem:[%s4478_s6 + $0x404] sm:$0xf] %v775_v21  ;;  %v777_v22 = vld [vmem:[%s4473_s0 + $0x1020] sm:$0xf]  ;;  %v779_v23 = vld [vmem:[%s4473_s0 + $0x1030] sm:$0xf] }
  0xe9   : > { %v781_v24 = vld [vmem:[%s4473_s0 + $0x1040] sm:$0xf]  ;;  %778 = vst [vmem:[%s4478_s6 + $0x408] sm:$0xf] %v777_v22  ;;  %780 = vst [vmem:[%s4478_s6 + $0x40c] sm:$0xf] %v779_v23 }
  0xea   : > { %782 = vst [vmem:[%s4478_s6 + $0x410] sm:$0xf] %v781_v24  ;;  %v783_v25 = vld [vmem:[%s4473_s0 + $0x1050] sm:$0xf]  ;;  %v785_v26 = vld [vmem:[%s4473_s0 + $0x1060] sm:$0xf] }
  0xeb   : > { %v787_v27 = vld [vmem:[%s4473_s0 + $0x1070] sm:$0xf]  ;;  %784 = vst [vmem:[%s4478_s6 + $0x414] sm:$0xf] %v783_v25  ;;  %786 = vst [vmem:[%s4478_s6 + $0x418] sm:$0xf] %v785_v26 }
  0xec   : > { %788 = vst [vmem:[%s4478_s6 + $0x41c] sm:$0xf] %v787_v27  ;;  %v789_v28 = vld [vmem:[%s4473_s0 + $0x1080] sm:$0xf]  ;;  %v791_v29 = vld [vmem:[%s4473_s0 + $0x1090] sm:$0xf] }
  0xed   : > { %v793_v30 = vld [vmem:[%s4473_s0 + $0x10a0] sm:$0xf]  ;;  %790 = vst [vmem:[%s4478_s6 + $0x420] sm:$0xf] %v789_v28  ;;  %792 = vst [vmem:[%s4478_s6 + $0x424] sm:$0xf] %v791_v29 }
  0xee   : > { %794 = vst [vmem:[%s4478_s6 + $0x428] sm:$0xf] %v793_v30  ;;  %v795_v31 = vld [vmem:[%s4473_s0 + $0x10b0] sm:$0xf]  ;;  %v797_v32 = vld [vmem:[%s4473_s0 + $0x10c0] sm:$0xf] }
  0xef   : > { %v799_v33 = vld [vmem:[%s4473_s0 + $0x10d0] sm:$0xf]  ;;  %796 = vst [vmem:[%s4478_s6 + $0x42c] sm:$0xf] %v795_v31  ;;  %798 = vst [vmem:[%s4478_s6 + $0x430] sm:$0xf] %v797_v32 }
  0xf0   : > { %800 = vst [vmem:[%s4478_s6 + $0x434] sm:$0xf] %v799_v33  ;;  %v801_v34 = vld [vmem:[%s4473_s0 + $0x10e0] sm:$0xf]  ;;  %v803_v35 = vld [vmem:[%s4473_s0 + $0x10f0] sm:$0xf] }
  0xf1   : > { %v805_v36 = vld [vmem:[%s4473_s0 + $0x1100] sm:$0xf]  ;;  %802 = vst [vmem:[%s4478_s6 + $0x438] sm:$0xf] %v801_v34  ;;  %804 = vst [vmem:[%s4478_s6 + $0x43c] sm:$0xf] %v803_v35 }
  0xf2   : > { %806 = vst [vmem:[%s4478_s6 + $0x440] sm:$0xf] %v805_v36  ;;  %v807_v37 = vld [vmem:[%s4473_s0 + $0x1110] sm:$0xf]  ;;  %v809_v38 = vld [vmem:[%s4473_s0 + $0x1120] sm:$0xf] }
  0xf3   : > { %v811_v39 = vld [vmem:[%s4473_s0 + $0x1130] sm:$0xf]  ;;  %808 = vst [vmem:[%s4478_s6 + $0x444] sm:$0xf] %v807_v37  ;;  %810 = vst [vmem:[%s4478_s6 + $0x448] sm:$0xf] %v809_v38 }
  0xf4   : > { %812 = vst [vmem:[%s4478_s6 + $0x44c] sm:$0xf] %v811_v39  ;;  %v813_v40 = vld [vmem:[%s4473_s0 + $0x1140] sm:$0xf]  ;;  %v815_v41 = vld [vmem:[%s4473_s0 + $0x1150] sm:$0xf] }
  0xf5   : > { %v817_v42 = vld [vmem:[%s4473_s0 + $0x1160] sm:$0xf]  ;;  %814 = vst [vmem:[%s4478_s6 + $0x450] sm:$0xf] %v813_v40  ;;  %816 = vst [vmem:[%s4478_s6 + $0x454] sm:$0xf] %v815_v41 }
  0xf6   : > { %818 = vst [vmem:[%s4478_s6 + $0x458] sm:$0xf] %v817_v42  ;;  %v819_v43 = vld [vmem:[%s4473_s0 + $0x1170] sm:$0xf]  ;;  %v821_v44 = vld [vmem:[%s4473_s0 + $0x1180] sm:$0xf] }
  0xf7   : > { %v823_v45 = vld [vmem:[%s4473_s0 + $0x1190] sm:$0xf]  ;;  %820 = vst [vmem:[%s4478_s6 + $0x45c] sm:$0xf] %v819_v43  ;;  %822 = vst [vmem:[%s4478_s6 + $0x460] sm:$0xf] %v821_v44 }
  0xf8   : > { %824 = vst [vmem:[%s4478_s6 + $0x464] sm:$0xf] %v823_v45  ;;  %v825_v46 = vld [vmem:[%s4473_s0 + $0x11a0] sm:$0xf]  ;;  %v827_v47 = vld [vmem:[%s4473_s0 + $0x11b0] sm:$0xf] }
  0xf9   : > { %v829_v48 = vld [vmem:[%s4473_s0 + $0x11c0] sm:$0xf]  ;;  %826 = vst [vmem:[%s4478_s6 + $0x468] sm:$0xf] %v825_v46  ;;  %828 = vst [vmem:[%s4478_s6 + $0x46c] sm:$0xf] %v827_v47 }
  0xfa   : > { %830 = vst [vmem:[%s4478_s6 + $0x470] sm:$0xf] %v829_v48  ;;  %v831_v49 = vld [vmem:[%s4473_s0 + $0x11d0] sm:$0xf]  ;;  %v833_v50 = vld [vmem:[%s4473_s0 + $0x11e0] sm:$0xf] }
  0xfb   : > { %v835_v51 = vld [vmem:[%s4473_s0 + $0x11f0] sm:$0xf]  ;;  %832 = vst [vmem:[%s4478_s6 + $0x474] sm:$0xf] %v831_v49  ;;  %834 = vst [vmem:[%s4478_s6 + $0x478] sm:$0xf] %v833_v50 }
  0xfc   : > { %836 = vst [vmem:[%s4478_s6 + $0x47c] sm:$0xf] %v835_v51  ;;  %v837_v52 = vld [vmem:[%s4473_s0 + $0x1200] sm:$0xf]  ;;  %v839_v53 = vld [vmem:[%s4473_s0 + $0x1210] sm:$0xf] }
  0xfd   : > { %v841_v54 = vld [vmem:[%s4473_s0 + $0x1220] sm:$0xf]  ;;  %838 = vst [vmem:[%s4478_s6 + $0x480] sm:$0xf] %v837_v52  ;;  %840 = vst [vmem:[%s4478_s6 + $0x484] sm:$0xf] %v839_v53 }
  0xfe   : > { %842 = vst [vmem:[%s4478_s6 + $0x488] sm:$0xf] %v841_v54  ;;  %v843_v55 = vld [vmem:[%s4473_s0 + $0x1230] sm:$0xf]  ;;  %v845_v56 = vld [vmem:[%s4473_s0 + $0x1240] sm:$0xf] }
  0xff   : > { %v847_v57 = vld [vmem:[%s4473_s0 + $0x1250] sm:$0xf]  ;;  %844 = vst [vmem:[%s4478_s6 + $0x48c] sm:$0xf] %v843_v55  ;;  %846 = vst [vmem:[%s4478_s6 + $0x490] sm:$0xf] %v845_v56 }
 0x100   : > { %848 = vst [vmem:[%s4478_s6 + $0x494] sm:$0xf] %v847_v57  ;;  %v849_v58 = vld [vmem:[%s4473_s0 + $0x1260] sm:$0xf]  ;;  %v851_v59 = vld [vmem:[%s4473_s0 + $0x1270] sm:$0xf] }
 0x101   : > { %v853_v60 = vld [vmem:[%s4473_s0 + $0x1280] sm:$0xf]  ;;  %850 = vst [vmem:[%s4478_s6 + $0x498] sm:$0xf] %v849_v58  ;;  %852 = vst [vmem:[%s4478_s6 + $0x49c] sm:$0xf] %v851_v59 }
 0x102   : > { %854 = vst [vmem:[%s4478_s6 + $0x4a0] sm:$0xf] %v853_v60  ;;  %v855_v61 = vld [vmem:[%s4473_s0 + $0x1290] sm:$0xf]  ;;  %v857_v62 = vld [vmem:[%s4473_s0 + $0x12a0] sm:$0xf] }
 0x103   : > { %v859_v63 = vld [vmem:[%s4473_s0 + $0x12b0] sm:$0xf]  ;;  %856 = vst [vmem:[%s4478_s6 + $0x4a4] sm:$0xf] %v855_v61  ;;  %858 = vst [vmem:[%s4478_s6 + $0x4a8] sm:$0xf] %v857_v62 }
 0x104   : > { %860 = vst [vmem:[%s4478_s6 + $0x4ac] sm:$0xf] %v859_v63  ;;  %v861_v0 = vld [vmem:[%s4473_s0 + $0x12c0] sm:$0xf]  ;;  %v863_v1 = vld [vmem:[%s4473_s0 + $0x12d0] sm:$0xf] }
 0x105   : > { %v865_v2 = vld [vmem:[%s4473_s0 + $0x12e0] sm:$0xf]  ;;  %862 = vst [vmem:[%s4478_s6 + $0x4b0] sm:$0xf] %v861_v0  ;;  %864 = vst [vmem:[%s4478_s6 + $0x4b4] sm:$0xf] %v863_v1 }
 0x106   : > { %866 = vst [vmem:[%s4478_s6 + $0x4b8] sm:$0xf] %v865_v2  ;;  %v867_v3 = vld [vmem:[%s4473_s0 + $0x12f0] sm:$0xf] }
 0x107   : > { %868 = vst [vmem:[%s4478_s6 + $0x4bc] sm:$0xf] %v867_v3 }
 0x108 PF: > { %p3511_p0 = scmp.ge.s32.totalorder %s4290_s22, 1  ;;  %p1504_p1 = scmp.lt.s32.totalorder %s4290_s22, 9 }
 0x10a   : > { %p1505_p2 = pnand %p3511_p0, %p1504_p1 }
 0x10b   : > { %s1511_s5 = sand.u32 (!%p1505_p2), 1, %s4266_s16   ;;  %s1518_s23 = sand.u32 (!%p1505_p2), 1, %s4258_s14  }
 0x10c   : > { %1508 = sbr.rel (%p1505_p2) target bundleno = 691 (0x2b3), region = 91  ;;  %s1544_s7 = sand.u32 (!%p1505_p2), 1, %s4250_s12  }
 0x10d   : > { %s3931_s28 = smul.u32 (!%p1505_p2), 152, %s1511_s5  ;;  %s3512_s0 = sshll.u32 (!%p1505_p2), %s1544_s7, 3 }
 0x10e   : > { %s3932_s11 = smul.u32 (!%p1505_p2), 1216, %s1518_s23  ;;  %p1550_p3 = scmp.lt.s32.totalorder (!%p1505_p2), %s4278_s19, 3 }
 0x10f   : > { %s5098_s6 = scalar_lea.vmem (!%p1505_p2), [#allocation3], %s3931_s28  ;;  %s5102_s25 = scalar_lea.vmem (!%p1505_p2), [#allocation5], %s3512_s0 }
 0x110   : > { %s5100_s1 = scalar_lea.vmem (!%p1505_p2), [#allocation4], %s3932_s11  ;;  %p3513_p4 = scmp.ne.s32.totalorder (!%p1505_p2), %s4274_s18, 0 }
 0x113   : > { %s5092_s26 = scalar_select %p1550_p3, %s4278_s19, 3 }
 0x114   : > { %1558 = sbr.rel (%p3513_p4) target bundleno = 283 (0x11b), region = 103  ;;  %v4292_v4 = vmov (!%p3513_p4), 0.0  }
 0x115   : > { %s1552_s4 = scalar_lea.vmem %s5326_s2, %s5092_s26  ;;  %1559 = vst [vmem:[#allocation2] sm:$0xff] (!%p3513_p4), %v4292_v4  ;;  %1560 = vst [vmem:[#allocation2 + $0x8] sm:$0xff] (!%p3513_p4), %v4292_v4 }
 0x11b PF: > { %v4024_v5 = vld [vmem:[%s5100_s1 + $0x40] sm:$0xff]   ;;  %v4028_v9 = vld [vmem:[%s5100_s1 + $0x48] sm:$0xff]   ;;  %v4032_v13 = vld [vmem:[%s5100_s1 + $0x50] sm:$0xff]   ;;  %vm4294_vm0 = vmmov 0   ;;  %p3685_p5 = scmp.ne.s32.totalorder %s4274_s18, 1 }
 0x11c   : > { %v4025_v6 = vld [vmem:[%s5100_s1 + $0xc0] sm:$0xff]   ;;  %3702 = vmatprep.subr.bf16.mxu0 %v4024_v5  ;;  %v4029_v10 = vld [vmem:[%s5100_s1 + $0xc8] sm:$0xff]   ;;  %v4033_v14 = vld [vmem:[%s5100_s1 + $0xd0] sm:$0xff]  }
 0x11d   : > { %v4026_v7 = vld [vmem:[%s5100_s1] sm:$0xff]   ;;  %3724 = vmatprep.subr.bf16.mxu1 %v4025_v6  ;;  %v4030_v11 = vld [vmem:[%s5100_s1 + $0x8] sm:$0xff]   ;;  %v4034_v15 = vld [vmem:[%s5100_s1 + $0x10] sm:$0xff]  }
 0x11e   : > { %v4027_v8 = vld [vmem:[%s5100_s1 + $0x80] sm:$0xff]   ;;  %3703 = vmatpush3.bf16.msra.mxu0 %v4026_v7  ;;  %v4031_v12 = vld [vmem:[%s5100_s1 + $0x88] sm:$0xff]   ;;  %v4035_v16 = vld [vmem:[%s5100_s1 + $0x90] sm:$0xff]  }
 0x11f   : > { %3725 = vmatpush3.bf16.msra.mxu1 %v4027_v8  ;;  %3704 = vmatprep.subr.bf16.mxu0 %v4028_v9  ;;  %v4036_v17 = vld [vmem:[%s5100_s1 + $0x58] sm:$0xff]   ;;  %v4040_v21 = vld [vmem:[%s5100_s1 + $0x60] sm:$0xff]   ;;  %v4044_v25 = vld [vmem:[%s5100_s1 + $0x68] sm:$0xff]  }
 0x120   : > { %3726 = vmatprep.subr.bf16.mxu1 %v4029_v10  ;;  %v4037_v18 = vld [vmem:[%s5100_s1 + $0xd8] sm:$0xff]   ;;  %v4041_v22 = vld [vmem:[%s5100_s1 + $0xe0] sm:$0xff]   ;;  %v4045_v26 = vld [vmem:[%s5100_s1 + $0xe8] sm:$0xff]  }
 0x121   : > { %v4038_v19 = vld [vmem:[%s5100_s1 + $0x18] sm:$0xff]   ;;  %v4042_v23 = vld [vmem:[%s5100_s1 + $0x20] sm:$0xff]   ;;  %v4046_v27 = vld [vmem:[%s5100_s1 + $0x28] sm:$0xff]  }
 0x122   : > { %3705 = vmatpush3.bf16.msra.mxu0 %v4030_v11  ;;  %v4039_v20 = vld [vmem:[%s5100_s1 + $0x98] sm:$0xff]   ;;  %v4043_v24 = vld [vmem:[%s5100_s1 + $0xa0] sm:$0xff]   ;;  %v4047_v28 = vld [vmem:[%s5100_s1 + $0xa8] sm:$0xff]  }
 0x123   : > { %3727 = vmatpush3.bf16.msra.mxu1 %v4031_v12  ;;  %3706 = vmatprep.subr.bf16.mxu0 %v4032_v13  ;;  %v4048_v29 = vld [vmem:[%s5100_s1 + $0x70] sm:$0xff]   ;;  %v4052_v33 = vld [vmem:[%s5100_s1 + $0x78] sm:$0xff]   ;;  %v4062_v41 = vld [vmem:[%s5100_s1 + $0x140] sm:$0xff]  }
 0x124   : > { %3728 = vmatprep.subr.bf16.mxu1 %v4033_v14  ;;  %v4049_v30 = vld [vmem:[%s5100_s1 + $0xf0] sm:$0xff]   ;;  %v4053_v34 = vld [vmem:[%s5100_s1 + $0xf8] sm:$0xff]   ;;  %v4063_v42 = vld [vmem:[%s5100_s1 + $0x100] sm:$0xff]  }
 0x125   : > { %v4050_v31 = vld [vmem:[%s5100_s1 + $0x30] sm:$0xff]   ;;  %v4054_v35 = vld [vmem:[%s5100_s1 + $0x38] sm:$0xff]   ;;  %v4064_v43 = vld [vmem:[%s5100_s1 + $0x1c0] sm:$0xff]  }
 0x126   : > { %3707 = vmatpush3.bf16.msra.mxu0 %v4034_v15  ;;  %v4051_v32 = vld [vmem:[%s5100_s1 + $0xb0] sm:$0xff]   ;;  %v4055_v36 = vld [vmem:[%s5100_s1 + $0xb8] sm:$0xff]   ;;  %v4065_v44 = vld [vmem:[%s5100_s1 + $0x180] sm:$0xff]  }
 0x127   : > { %3729 = vmatpush3.bf16.msra.mxu1 %v4035_v16  ;;  %3708 = vmatprep.subr.bf16.mxu0 %v4036_v17  ;;  %v4056_v37 = vld [vmem:[%s5098_s6] ss:$76 sps:$4 sm:$0xff]   ;;  %v4058_v38 = vld [vmem:[%s5098_s6 + $0x4] ss:$76 sps:$4 sm:$0xff]   ;;  %v4059_v39 = vld [vmem:[%s5098_s6 + $0x8] ss:$76 sps:$4 sm:$0xff]  }
 0x128   : > { %3730 = vmatprep.subr.bf16.mxu1 %v4037_v18  ;;  %v4061_v40 = vld [vmem:[%s5098_s6 + $0xc] ss:$76 sps:$4 sm:$0xff]   ;;  %2927 = vmatprep.mubr.bf16.mxu0 %v4058_v38  ;;  %v4093_v8 = vld [vmem:[%s5098_s6 + $0x10] ss:$76 sps:$4 sm:$0xff]   ;;  %v4095_v9 = vld [vmem:[%s5098_s6 + $0x14] ss:$76 sps:$4 sm:$0xff]  }
 0x129   : > { %2968 = vmatprep.mubr.bf16.mxu1 %v4061_v40  ;;  %v4066_v45 = vld [vmem:[%s5100_s1 + $0x148] sm:$0xff]   ;;  %v4070_v49 = vld [vmem:[%s5100_s1 + $0x150] sm:$0xff]   ;;  %v4074_v53 = vld [vmem:[%s5100_s1 + $0x158] sm:$0xff]  }
 0x12a   : > { %3709 = vmatpush3.bf16.msra.mxu0 %v4038_v19  ;;  %v4067_v46 = vld [vmem:[%s5100_s1 + $0x108] sm:$0xff]   ;;  %v4071_v50 = vld [vmem:[%s5100_s1 + $0x110] sm:$0xff]   ;;  %v4075_v54 = vld [vmem:[%s5100_s1 + $0x118] sm:$0xff]  }
 0x12b   : > { %3731 = vmatpush3.bf16.msra.mxu1 %v4039_v20  ;;  %3710 = vmatprep.subr.bf16.mxu0 %v4040_v21  ;;  %v4068_v47 = vld [vmem:[%s5100_s1 + $0x1c8] sm:$0xff]   ;;  %v4072_v51 = vld [vmem:[%s5100_s1 + $0x1d0] sm:$0xff]   ;;  %v4076_v55 = vld [vmem:[%s5100_s1 + $0x1d8] sm:$0xff]  }
 0x12c   : > { %3732 = vmatprep.subr.bf16.mxu1 %v4041_v22  ;;  %v4069_v48 = vld [vmem:[%s5100_s1 + $0x188] sm:$0xff]   ;;  %v4073_v52 = vld [vmem:[%s5100_s1 + $0x190] sm:$0xff]   ;;  %v4077_v56 = vld [vmem:[%s5100_s1 + $0x198] sm:$0xff]  }
 0x12d   : > { %v4078_v57 = vld [vmem:[%s5100_s1 + $0x160] sm:$0xff]   ;;  %v4082_v61 = vld [vmem:[%s5100_s1 + $0x168] sm:$0xff]   ;;  %v4086_v1 = vld [vmem:[%s5100_s1 + $0x170] sm:$0xff]  }
 0x12e   : > { %3711 = vmatpush3.bf16.msra.mxu0 %v4042_v23  ;;  %v4079_v58 = vld [vmem:[%s5100_s1 + $0x120] sm:$0xff]   ;;  %v4083_v62 = vld [vmem:[%s5100_s1 + $0x128] sm:$0xff]   ;;  %v4087_v2 = vld [vmem:[%s5100_s1 + $0x130] sm:$0xff]  }
 0x12f   : > { %3733 = vmatpush3.bf16.msra.mxu1 %v4043_v24  ;;  %3712 = vmatprep.subr.bf16.mxu0 %v4044_v25  ;;  %v4080_v59 = vld [vmem:[%s5100_s1 + $0x1e0] sm:$0xff]   ;;  %v4084_v63 = vld [vmem:[%s5100_s1 + $0x1e8] sm:$0xff]   ;;  %v4088_v3 = vld [vmem:[%s5100_s1 + $0x1f0] sm:$0xff]  }
 0x130   : > { %3734 = vmatprep.subr.bf16.mxu1 %v4045_v26  ;;  %v4081_v60 = vld [vmem:[%s5100_s1 + $0x1a0] sm:$0xff]   ;;  %v4085_v0 = vld [vmem:[%s5100_s1 + $0x1a8] sm:$0xff]   ;;  %v4089_v4 = vld [vmem:[%s5100_s1 + $0x1b0] sm:$0xff]  }
 0x131   : > { %v4090_v5 = vld [vmem:[%s5100_s1 + $0x178] sm:$0xff]   ;;  %v4097_v11 = vld [vmem:[%s5100_s1 + $0x240] sm:$0xff]   ;;  %v4104_v17 = vld [vmem:[%s5100_s1 + $0x248] sm:$0xff]  }
 0x132   : > { %3713 = vmatpush3.bf16.msra.mxu0 %v4046_v27  ;;  %v4091_v6 = vld [vmem:[%s5100_s1 + $0x138] sm:$0xff]   ;;  %v4098_v12 = vld [vmem:[%s5098_s6 + $0x18] ss:$76 sps:$4 sm:$0xff]  }
 0x133   : > { %3735 = vmatpush3.bf16.msra.mxu1 %v4047_v28  ;;  %3714 = vmatprep.subr.bf16.mxu0 %v4048_v29  ;;  %v4092_v7 = vld [vmem:[%s5100_s1 + $0x1f8] sm:$0xff]   ;;  %v4101_v14 = vld [vmem:[%s5100_s1 + $0x200] sm:$0xff]   ;;  %v4105_v18 = vld [vmem:[%s5100_s1 + $0x208] sm:$0xff]  }
 0x134   : > { %3736 = vmatprep.subr.bf16.mxu1 %v4049_v30  ;;  %v4096_v10 = vld [vmem:[%s5100_s1 + $0x1b8] sm:$0xff]   ;;  %v4102_v15 = vld [vmem:[%s5100_s1 + $0x2c0] sm:$0xff]   ;;  %v4106_v19 = vld [vmem:[%s5100_s1 + $0x2c8] sm:$0xff]  }
 0x135   : > { %v4100_v13 = vld [vmem:[%s5098_s6 + $0x1c] ss:$76 sps:$4 sm:$0xff]  }
 0x136   : > { %3715 = vmatpush3.bf16.msra.mxu0 %v4050_v31  ;;  %v4103_v16 = vld [vmem:[%s5100_s1 + $0x280] sm:$0xff]   ;;  %v4107_v20 = vld [vmem:[%s5100_s1 + $0x288] sm:$0xff]   ;;  %v4108_v21 = vld [vmem:[%s5100_s1 + $0x250] sm:$0xff]  }
 0x137   : > { %3737 = vmatpush3.bf16.msra.mxu1 %v4051_v32  ;;  %3716 = vmatprep.subr.bf16.mxu0 %v4052_v33  ;;  %v4109_v22 = vld [vmem:[%s5100_s1 + $0x210] sm:$0xff]   ;;  %v4112_v25 = vld [vmem:[%s5100_s1 + $0x258] sm:$0xff]   ;;  %v4116_v29 = vld [vmem:[%s5100_s1 + $0x260] sm:$0xff]  }
 0x138   : > { %3738 = vmatprep.subr.bf16.mxu1 %v4053_v34  ;;  %v4110_v23 = vld [vmem:[%s5100_s1 + $0x2d0] sm:$0xff]   ;;  %v4113_v26 = vld [vmem:[%s5100_s1 + $0x218] sm:$0xff]   ;;  %v4117_v30 = vld [vmem:[%s5100_s1 + $0x220] sm:$0xff]  }
 0x139   : > { %v4111_v24 = vld [vmem:[%s5100_s1 + $0x290] sm:$0xff]   ;;  %v4114_v27 = vld [vmem:[%s5100_s1 + $0x2d8] sm:$0xff]   ;;  %v4118_v31 = vld [vmem:[%s5100_s1 + $0x2e0] sm:$0xff]  }
 0x13a   : > { %3717 = vmatpush3.bf16.msra.mxu0 %v4054_v35  ;;  %v4115_v28 = vld [vmem:[%s5100_s1 + $0x298] sm:$0xff]   ;;  %v4119_v32 = vld [vmem:[%s5100_s1 + $0x2a0] sm:$0xff]   ;;  %v4120_v33 = vld [vmem:[%s5100_s1 + $0x268] sm:$0xff]  }
 0x13b   : > { %3739 = vmatpush3.bf16.msra.mxu1 %v4055_v36  ;;  %3746 = vmatprep.subr.bf16.mxu0 %v4062_v41  ;;  %v4121_v34 = vld [vmem:[%s5100_s1 + $0x228] sm:$0xff]   ;;  %v4125_v38 = vld [vmem:[%s5100_s1 + $0x230] sm:$0xff]   ;;  %v4128_v41 = vld [vmem:[%s5100_s1 + $0x278] sm:$0xff]  }
 0x13c   : > { %3768 = vmatprep.subr.bf16.mxu1 %v4064_v43  ;;  %v4122_v35 = vld [vmem:[%s5100_s1 + $0x2e8] sm:$0xff]   ;;  %v4127_v40 = vld [vmem:[%s5100_s1 + $0x2b0] sm:$0xff]   ;;  %v4130_v43 = vld [vmem:[%s5100_s1 + $0x2f8] sm:$0xff]  }
 0x13d   : > { %2928 = vmatmul.mubr.bf16.vlgmr.msra.gmra.mrb[0].mxu0 %v4056_v37  ;;  %v4123_v36 = vld [vmem:[%s5100_s1 + $0x2a8] sm:$0xff]   ;;  %v4124_v37 = vld [vmem:[%s5100_s1 + $0x270] sm:$0xff]  }
 0x13e   : > { %2969 = vmatmul.mubr.bf16.vlgmr.msra.gmra.mrb[0].mxu1 %v4059_v39  ;;  %3747 = vmatpush3.bf16.msra.mxu0 %v4063_v42  ;;  %v4126_v39 = vld [vmem:[%s5100_s1 + $0x2f0] sm:$0xff]   ;;  %v4129_v42 = vld [vmem:[%s5100_s1 + $0x238] sm:$0xff]  }
 0x13f   : > { %3769 = vmatpush3.bf16.msra.mxu1 %v4065_v44  ;;  %3748 = vmatprep.subr.bf16.mxu0 %v4066_v45  ;;  %v4131_v44 = vld [vmem:[%s5098_s6 + $0x20] ss:$76 sps:$4 sm:$0xff]   ;;  %v4133_v45 = vld [vmem:[%s5098_s6 + $0x24] ss:$76 sps:$4 sm:$0xff]  }
 0x140   : > { %3770 = vmatprep.subr.bf16.mxu1 %v4068_v47  ;;  %3009 = vmatprep.mubr.bf16.mxu0 %v4095_v9  ;;  %v4135_v47 = vld [vmem:[%s5100_s1 + $0x340] sm:$0xff]   ;;  %v4162_v9 = vld [vmem:[%s5100_s1 + $0x370] sm:$0xff]  }
 0x141   : > { %3050 = vmatprep.mubr.bf16.mxu1 %v4100_v13  ;;  %v4166_v13 = vld [vmem:[%s5100_s1 + $0x378] sm:$0xff]  }
 0x142   : > { %3749 = vmatpush3.bf16.msra.mxu0 %v4067_v46  ;;  %v4134_v46 = vld [vmem:[%s5100_s1 + $0x2b8] sm:$0xff]  }
 0x143   : > { %3771 = vmatpush3.bf16.msra.mxu1 %v4069_v48  ;;  %3750 = vmatprep.subr.bf16.mxu0 %v4070_v49  ;;  %v4136_v48 = vld [vmem:[%s5098_s6 + $0x28] ss:$76 sps:$4 sm:$0xff]   ;;  %v4138_v49 = vld [vmem:[%s5098_s6 + $0x2c] ss:$76 sps:$4 sm:$0xff]  }
 0x144   : > { %3772 = vmatprep.subr.bf16.mxu1 %v4072_v51  ;;  %v4140_v51 = vld [vmem:[%s5100_s1 + $0x3c0] sm:$0xff]  }
 0x146   : > { %3751 = vmatpush3.bf16.msra.mxu0 %v4071_v50  ;;  %v4139_v50 = vld [vmem:[%s5100_s1 + $0x300] sm:$0xff]  }
 0x147   : > { %3773 = vmatpush3.bf16.msra.mxu1 %v4073_v52  ;;  %3752 = vmatprep.subr.bf16.mxu0 %v4074_v53  ;;  %v4141_v52 = vld [vmem:[%s5100_s1 + $0x380] sm:$0xff]   ;;  %v4142_v53 = vld [vmem:[%s5100_s1 + $0x348] sm:$0xff]  }
 0x148   : > { %3774 = vmatprep.subr.bf16.mxu1 %v4076_v55  ;;  %v4144_v55 = vld [vmem:[%s5100_s1 + $0x3c8] sm:$0xff]  }
 0x14a   : > { %3753 = vmatpush3.bf16.msra.mxu0 %v4075_v54  ;;  %v4143_v54 = vld [vmem:[%s5100_s1 + $0x308] sm:$0xff]  }
 0x14b   : > { %3775 = vmatpush3.bf16.msra.mxu1 %v4077_v56  ;;  %3754 = vmatprep.subr.bf16.mxu0 %v4078_v57  ;;  %v4145_v56 = vld [vmem:[%s5100_s1 + $0x388] sm:$0xff]   ;;  %v4146_v57 = vld [vmem:[%s5100_s1 + $0x350] sm:$0xff]  }
 0x14c   : > { %3776 = vmatprep.subr.bf16.mxu1 %v4080_v59  ;;  %v4148_v59 = vld [vmem:[%s5100_s1 + $0x3d0] sm:$0xff]  }
 0x14e   : > { %3755 = vmatpush3.bf16.msra.mxu0 %v4079_v58  ;;  %v4147_v58 = vld [vmem:[%s5100_s1 + $0x310] sm:$0xff]  }
 0x14f   : > { %3777 = vmatpush3.bf16.msra.mxu1 %v4081_v60  ;;  %3756 = vmatprep.subr.bf16.mxu0 %v4082_v61  ;;  %v4149_v60 = vld [vmem:[%s5100_s1 + $0x390] sm:$0xff]   ;;  %v4150_v61 = vld [vmem:[%s5100_s1 + $0x358] sm:$0xff]  }
 0x150   : > { %3778 = vmatprep.subr.bf16.mxu1 %v4084_v63  ;;  %v4152_v63 = vld [vmem:[%s5100_s1 + $0x3d8] sm:$0xff]  }
 0x152   : > { %3757 = vmatpush3.bf16.msra.mxu0 %v4083_v62  ;;  %v4151_v62 = vld [vmem:[%s5100_s1 + $0x318] sm:$0xff]  }
 0x153   : > { %3779 = vmatpush3.bf16.msra.mxu1 %v4085_v0  ;;  %3758 = vmatprep.subr.bf16.mxu0 %v4086_v1  ;;  %v4153_v0 = vld [vmem:[%s5100_s1 + $0x398] sm:$0xff]   ;;  %v4154_v1 = vld [vmem:[%s5100_s1 + $0x360] sm:$0xff]  }
 0x154   : > { %3780 = vmatprep.subr.bf16.mxu1 %v4088_v3  ;;  %v4156_v3 = vld [vmem:[%s5100_s1 + $0x3e0] sm:$0xff]  }
 0x156   : > { %3759 = vmatpush3.bf16.msra.mxu0 %v4087_v2  ;;  %v4155_v2 = vld [vmem:[%s5100_s1 + $0x320] sm:$0xff]  }
 0x157   : > { %3781 = vmatpush3.bf16.msra.mxu1 %v4089_v4  ;;  %3760 = vmatprep.subr.bf16.mxu0 %v4090_v5  ;;  %v4157_v4 = vld [vmem:[%s5100_s1 + $0x3a0] sm:$0xff]   ;;  %v4158_v5 = vld [vmem:[%s5100_s1 + $0x368] sm:$0xff]  }
 0x158   : > { %3782 = vmatprep.subr.bf16.mxu1 %v4092_v7  ;;  %v4160_v7 = vld [vmem:[%s5100_s1 + $0x3e8] sm:$0xff]  }
 0x15a   : > { %3761 = vmatpush3.bf16.msra.mxu0 %v4091_v6  ;;  %v4159_v6 = vld [vmem:[%s5100_s1 + $0x328] sm:$0xff]  }
 0x15b   : > { %3783 = vmatpush3.bf16.msra.mxu1 %v4096_v10  ;;  %3790 = vmatprep.subr.bf16.mxu0 %v4097_v11  ;;  %v4163_v10 = vld [vmem:[%s5100_s1 + $0x330] sm:$0xff]  }
 0x15c   : > { %3812 = vmatprep.subr.bf16.mxu1 %v4102_v15  ;;  %v4164_v11 = vld [vmem:[%s5100_s1 + $0x3f0] sm:$0xff]   ;;  %v4168_v15 = vld [vmem:[%s5100_s1 + $0x3f8] sm:$0xff]  }
 0x15d   : > { %3010 = vmatmul.mubr.bf16.vlgmr.msra.gmra.mrb[4].mxu0 %v4093_v8  ;;  %v4161_v8 = vld [vmem:[%s5100_s1 + $0x3a8] sm:$0xff]  }
 0x15e   : > { %3791 = vmatpush3.bf16.msra.mxu0 %v4101_v14  ;;  %3051 = vmatmul.mubr.bf16.vlgmr.msra.gmra.mrb[4].mxu1 %v4098_v12  ;;  %v4165_v12 = vld [vmem:[%s5100_s1 + $0x3b0] sm:$0xff]   ;;  %v4167_v14 = vld [vmem:[%s5100_s1 + $0x338] sm:$0xff]  }
 0x15f   : > { %3813 = vmatpush3.bf16.msra.mxu1 %v4103_v16  ;;  %3792 = vmatprep.subr.bf16.mxu0 %v4104_v17  ;;  %v4169_v16 = vld [vmem:[%s5098_s6 + $0x30] ss:$76 sps:$4 sm:$0xff]   ;;  %v4171_v17 = vld [vmem:[%s5098_s6 + $0x34] ss:$76 sps:$4 sm:$0xff]  }
 0x160   : > { %3814 = vmatprep.subr.bf16.mxu1 %v4106_v19  ;;  %3091 = vmatprep.mubr.bf16.mxu0 %v4133_v45  ;;  %v4173_v19 = vld [vmem:[%s5100_s1 + $0x440] sm:$0xff]   ;;  %v4198_v45 = vld [vmem:[%s5100_s1 + $0x438] sm:$0xff]  }
 0x161   : > { %3132 = vmatprep.mubr.bf16.mxu1 %v4138_v49 }
 0x162   : > { %3793 = vmatpush3.bf16.msra.mxu0 %v4105_v18  ;;  %v4172_v18 = vld [vmem:[%s5100_s1 + $0x3b8] sm:$0xff]  }
 0x163   : > { %3815 = vmatpush3.bf16.msra.mxu1 %v4107_v20  ;;  %3794 = vmatprep.subr.bf16.mxu0 %v4108_v21  ;;  %v4174_v20 = vld [vmem:[%s5098_s6 + $0x38] ss:$76 sps:$4 sm:$0xff]   ;;  %v4176_v21 = vld [vmem:[%s5098_s6 + $0x3c] ss:$76 sps:$4 sm:$0xff]  }
 0x164   : > { %3816 = vmatprep.subr.bf16.mxu1 %v4110_v23  ;;  %v4293_v23 = vmov 0.0  }
 0x166   : > { %3795 = vmatpush3.bf16.msra.mxu0 %v4109_v22  ;;  %v4177_v22 = vld [vmem:[%s5100_s1 + $0x400] sm:$0xff]  }
 0x167   : > { %3817 = vmatpush3.bf16.msra.mxu1 %v4111_v24  ;;  %3796 = vmatprep.subr.bf16.mxu0 %v4112_v25  ;;  %v4178_v24 = vld [vmem:[%s5100_s1 + $0x480] sm:$0xff]   ;;  %v4179_v25 = vld [vmem:[%s5100_s1 + $0x448] sm:$0xff]  }
 0x168   : > { %3818 = vmatprep.subr.bf16.mxu1 %v4114_v27  ;;  %v4181_v27 = vld [vmem:[%s5100_s1 + $0x488] sm:$0xff]  }
 0x16a   : > { %3797 = vmatpush3.bf16.msra.mxu0 %v4113_v26  ;;  %v4180_v26 = vld [vmem:[%s5100_s1 + $0x408] sm:$0xff]  }
 0x16b   : > { %3819 = vmatpush3.bf16.msra.mxu1 %v4115_v28  ;;  %3798 = vmatprep.subr.bf16.mxu0 %v4116_v29  ;;  %v4182_v28 = vld [vmem:[%s5100_s1 + $0x450] sm:$0xff]  }
 0x16c   : > { %3820 = vmatprep.subr.bf16.mxu1 %v4118_v31  ;;  %v4183_v29 = vld [vmem:[%s5100_s1 + $0x410] sm:$0xff]   ;;  %v4185_v31 = vld [vmem:[%s5100_s1 + $0x458] sm:$0xff]  }
 0x16e   : > { %3799 = vmatpush3.bf16.msra.mxu0 %v4117_v30  ;;  %v4184_v30 = vld [vmem:[%s5100_s1 + $0x490] sm:$0xff]  }
 0x16f   : > { %3821 = vmatpush3.bf16.msra.mxu1 %v4119_v32  ;;  %3800 = vmatprep.subr.bf16.mxu0 %v4120_v33  ;;  %v4186_v32 = vld [vmem:[%s5100_s1 + $0x418] sm:$0xff]  }
 0x170   : > { %3822 = vmatprep.subr.bf16.mxu1 %v4122_v35  ;;  %v4187_v33 = vld [vmem:[%s5100_s1 + $0x498] sm:$0xff]   ;;  %v4189_v35 = vld [vmem:[%s5100_s1 + $0x420] sm:$0xff]  }
 0x172   : > { %3801 = vmatpush3.bf16.msra.mxu0 %v4121_v34  ;;  %v4188_v34 = vld [vmem:[%s5100_s1 + $0x460] sm:$0xff]  }
 0x173   : > { %3823 = vmatpush3.bf16.msra.mxu1 %v4123_v36  ;;  %3802 = vmatprep.subr.bf16.mxu0 %v4124_v37  ;;  %v4190_v36 = vld [vmem:[%s5100_s1 + $0x4a0] sm:$0xff]   ;;  %v4191_v37 = vld [vmem:[%s5100_s1 + $0x468] sm:$0xff]  }
 0x174   : > { %3824 = vmatprep.subr.bf16.mxu1 %v4126_v39  ;;  %v4193_v39 = vld [vmem:[%s5100_s1 + $0x4a8] sm:$0xff]  }
 0x176   : > { %3803 = vmatpush3.bf16.msra.mxu0 %v4125_v38  ;;  %v4192_v38 = vld [vmem:[%s5100_s1 + $0x428] sm:$0xff]  }
 0x177   : > { %3825 = vmatpush3.bf16.msra.mxu1 %v4127_v40  ;;  %3804 = vmatprep.subr.bf16.mxu0 %v4128_v41  ;;  %v4194_v40 = vld [vmem:[%s5100_s1 + $0x470] sm:$0xff]  }
 0x178   : > { %3826 = vmatprep.subr.bf16.mxu1 %v4130_v43  ;;  %v4195_v41 = vld [vmem:[%s5100_s1 + $0x430] sm:$0xff]  }
 0x179   : > { %v4201_v43 = vld [vmem:[%s5098_s6 + $0x44] ss:$76 sps:$4 sm:$0xff]  }
 0x17a   : > { %3805 = vmatpush3.bf16.msra.mxu0 %v4129_v42  ;;  %v4196_v42 = vld [vmem:[%s5100_s1 + $0x4b0] sm:$0xff]  }
 0x17b   : > { %3827 = vmatpush3.bf16.msra.mxu1 %v4134_v46  ;;  %3834 = vmatprep.subr.bf16.mxu0 %v4135_v47  ;;  %v4202_v46 = vld [vmem:[%s5100_s1 + $0x4b8] sm:$0xff]  }
 0x17c   : > { %3856 = vmatprep.subr.bf16.mxu1 %v4140_v51  ;;  %v4199_v47 = vld [vmem:[%s5098_s6 + $0x40] ss:$76 sps:$4 sm:$0xff]  }
 0x17d   : > { %3092 = vmatmul.mubr.bf16.vlgmr.msra.gmra.mrb[8].mxu0 %v4131_v44  ;;  %v4197_v44 = vld [vmem:[%s5100_s1 + $0x478] sm:$0xff]  }
 0x17e   : > { %3835 = vmatpush3.bf16.msra.mxu0 %v4139_v50  ;;  %3133 = vmatmul.mubr.bf16.vlgmr.msra.gmra.mrb[8].mxu1 %v4136_v48  ;;  %v4203_v48 = vld [vmem:[%s5098_s6 + $0x48] ss:$76 sps:$4 sm:$0xff]  }
 0x17f   : > { %3857 = vmatpush3.bf16.msra.mxu1 %v4141_v52  ;;  %3836 = vmatprep.subr.bf16.mxu0 %v4142_v53 }
 0x180   : > { %3858 = vmatprep.subr.bf16.mxu1 %v4144_v55  ;;  %3173 = vmatprep.mubr.bf16.mxu0 %v4171_v17 }
 0x181   : > { %3214 = vmatprep.mubr.bf16.mxu1 %v4176_v21 }
 0x182   : > { %3837 = vmatpush3.bf16.msra.mxu0 %v4143_v54 }
 0x183   : > { %3859 = vmatpush3.bf16.msra.mxu1 %v4145_v56  ;;  %3838 = vmatprep.subr.bf16.mxu0 %v4146_v57 }
 0x184   : > { %3860 = vmatprep.subr.bf16.mxu1 %v4148_v59 }
 0x186   : > { %3839 = vmatpush3.bf16.msra.mxu0 %v4147_v58 }
 0x187   : > { %3861 = vmatpush3.bf16.msra.mxu1 %v4149_v60  ;;  %3840 = vmatprep.subr.bf16.mxu0 %v4150_v61 }
 0x188   : > { %3862 = vmatprep.subr.bf16.mxu1 %v4152_v63 }
 0x18a   : > { %3841 = vmatpush3.bf16.msra.mxu0 %v4151_v62 }
 0x18b   : > { %3863 = vmatpush3.bf16.msra.mxu1 %v4153_v0  ;;  %3842 = vmatprep.subr.bf16.mxu0 %v4154_v1 }
 0x18c   : > { %3864 = vmatprep.subr.bf16.mxu1 %v4156_v3 }
 0x18e   : > { %3843 = vmatpush3.bf16.msra.mxu0 %v4155_v2 }
 0x18f   : > { %3865 = vmatpush3.bf16.msra.mxu1 %v4157_v4  ;;  %3844 = vmatprep.subr.bf16.mxu0 %v4158_v5 }
 0x190   : > { %3866 = vmatprep.subr.bf16.mxu1 %v4160_v7 }
 0x192   : > { %3845 = vmatpush3.bf16.msra.mxu0 %v4159_v6 }
 0x193   : > { %3867 = vmatpush3.bf16.msra.mxu1 %v4161_v8  ;;  %3846 = vmatprep.subr.bf16.mxu0 %v4162_v9 }
 0x194   : > { %3868 = vmatprep.subr.bf16.mxu1 %v4164_v11 }
 0x196   : > { %3847 = vmatpush3.bf16.msra.mxu0 %v4163_v10 }
 0x197   : > { %3869 = vmatpush3.bf16.msra.mxu1 %v4165_v12  ;;  %3848 = vmatprep.subr.bf16.mxu0 %v4166_v13 }
 0x198   : > { %3870 = vmatprep.subr.bf16.mxu1 %v4168_v15 }
 0x19a   : > { %3849 = vmatpush3.bf16.msra.mxu0 %v4167_v14 }
 0x19b   : > { %3871 = vmatpush3.bf16.msra.mxu1 %v4172_v18  ;;  %3878 = vmatprep.subr.bf16.mxu0 %v4173_v19 }
 0x19c   : > { %3909 = vmatprep.subr.bf16.mxu1 %v4293_v23 }
 0x19d   : > { %3174 = vmatmul.mubr.bf16.vlgmr.msra.gmra.mrb[12].mxu0 %v4169_v16 }
 0x19e   : > { %3879 = vmatpush3.bf16.msra.mxu0 %v4177_v22  ;;  %3215 = vmatmul.mubr.bf16.vlgmr.msra.gmra.mrb[12].mxu1 %v4174_v20 }
 0x19f   : > { %3910 = vmatpush3.bf16.msra.mxu1 %v4178_v24  ;;  %3925 = vmatprep.mubr.msk.bf16.mxu1 %vm4294_vm0, %v4293_v23 }
 0x1a0   : > { %3880 = vmatprep.subr.bf16.mxu0 %v4179_v25  ;;  %3911 = vmatprep.subr.bf16.mxu1 %v4293_v23 }
 0x1a1   : > { %3255 = vmatprep.mubr.bf16.mxu0 %v4201_v43 }
 0x1a2   : > { %3881 = vmatpush3.bf16.msra.mxu0 %v4180_v26 }
 0x1a3   : > { %3912 = vmatpush3.bf16.msra.mxu1 %v4181_v27  ;;  %3882 = vmatprep.subr.bf16.mxu0 %v4182_v28 }
 0x1a4   : > { %3913 = vmatprep.subr.bf16.mxu1 %v4293_v23 }
 0x1a6   : > { %3883 = vmatpush3.bf16.msra.mxu0 %v4183_v29 }
 0x1a7   : > { %3914 = vmatpush3.bf16.msra.mxu1 %v4184_v30  ;;  %3884 = vmatprep.subr.bf16.mxu0 %v4185_v31 }
 0x1a8   : > { %3915 = vmatprep.subr.bf16.mxu1 %v4293_v23 }
 0x1aa   : > { %3885 = vmatpush3.bf16.msra.mxu0 %v4186_v32 }
 0x1ab   : > { %3916 = vmatpush3.bf16.msra.mxu1 %v4187_v33  ;;  %3886 = vmatprep.subr.bf16.mxu0 %v4188_v34 }
 0x1ac   : > { %3917 = vmatprep.subr.bf16.mxu1 %v4293_v23 }
 0x1ae   : > { %3887 = vmatpush3.bf16.msra.mxu0 %v4189_v35 }
 0x1af   : > { %3918 = vmatpush3.bf16.msra.mxu1 %v4190_v36  ;;  %3888 = vmatprep.subr.bf16.mxu0 %v4191_v37 }
 0x1b0   : > { %3919 = vmatprep.subr.bf16.mxu1 %v4293_v23 }
 0x1b2   : > { %3889 = vmatpush3.bf16.msra.mxu0 %v4192_v38 }
 0x1b3   : > { %3920 = vmatpush3.bf16.msra.mxu1 %v4193_v39  ;;  %3890 = vmatprep.subr.bf16.mxu0 %v4194_v40 }
 0x1b4   : > { %3921 = vmatprep.subr.bf16.mxu1 %v4293_v23 }
 0x1b6   : > { %3891 = vmatpush3.bf16.msra.mxu0 %v4195_v41 }
 0x1b7   : > { %3922 = vmatpush3.bf16.msra.mxu1 %v4196_v42  ;;  %3892 = vmatprep.subr.bf16.mxu0 %v4197_v44 }
 0x1b8   : > { %3923 = vmatprep.subr.bf16.mxu1 %v4293_v23 }
 0x1ba   : > { %3893 = vmatpush3.bf16.msra.mxu0 %v4198_v45 }
 0x1bb   : > { %3924 = vmatpush3.bf16.msra.mxu1 %v4202_v46 }
 0x1bd   : > { %3256 = vmatmul.mubr.bf16.vlgmr.msra.gmra.mrb[16].mxu0 %v4199_v47 }
 0x1be   : > { %3926 = vmatmul.mubr.bf16.vlgmr.msra.gmra.mrb[16].mxu1 %v4203_v48 }
 0x210   : > { %v3718_v49 = vpop.f32.mrb[0].mxu0 }
 0x211   : > { %v3740_v50 = vpop.f32.mrb[0].mxu1  ;;  %v3719_v51 = vpop.f32.mrb[1].mxu0 }
 0x212   : > { %v3720_v52 = vadd.f32 %v3719_v51, %v3718_v49  ;;  %v3741_v53 = vpop.f32.mrb[1].mxu1  ;;  %v3721_v54 = vpop.f32.mrb[2].mxu0 }
 0x213   : > { %v3742_v55 = vadd.f32 %v3741_v53, %v3740_v50  ;;  %v3743_v56 = vpop.f32.mrb[2].mxu1  ;;  %v3722_v57 = vpop.f32.mrb[3].mxu0 }
 0x214   : > { %v3723_v58 = vadd.f32 %v3722_v57, %v3721_v54  ;;  %v3744_v59 = vpop.f32.mrb[3].mxu1 }
 0x215   : > { %v2971_v60 = vadd.f32 %v3742_v55, %v3720_v52  ;;  %v3745_v61 = vadd.f32 %v3744_v59, %v3743_v56 }
 0x217   : > { %v2974_v62 = vadd.f32 %v3745_v61, %v3723_v58  ;;  %v1561_v58 = vld [vmem:[#allocation2] sm:$0xff]  ;;  %v1562_v61 = vld [vmem:[#allocation2 + $0x8] sm:$0xff] }
 0x230   : > { %v3762_v63 = vpop.f32.mrb[4].mxu0 }
 0x231   : > { %v3763_v0 = vpop.f32.mrb[5].mxu0  ;;  %v3784_v5 = vpop.f32.mrb[4].mxu1 }
 0x232   : > { %v3764_v1 = vadd.f32 %v3763_v0, %v3762_v63  ;;  %v3765_v2 = vpop.f32.mrb[6].mxu0  ;;  %v3785_v7 = vpop.f32.mrb[5].mxu1 }
 0x233   : > { %v3766_v3 = vpop.f32.mrb[7].mxu0  ;;  %v3786_v9 = vadd.f32 %v3785_v7, %v3784_v5  ;;  %v3787_v10 = vpop.f32.mrb[6].mxu1 }
 0x234   : > { %v3012_v4 = vadd.f32 %v3764_v1, %v2971_v60  ;;  %v3767_v6 = vadd.f32 %v3766_v3, %v3765_v2  ;;  %v3788_v11 = vpop.f32.mrb[7].mxu1  ;;  %v3686_v3 = vld [vmem:[%s1552_s4] ss:$0 sm:$0xff] (!%p3685_p5) }
 0x235   : > { %v3789_v13 = vadd.f32 %v3788_v11, %v3787_v10 }
 0x236   : > { %v3015_v8 = vadd.f32 %v3767_v6, %v2974_v62  ;;  %v3053_v12 = vadd.f32 %v3786_v9, %v3012_v4 }
 0x238   : > { %v3056_v14 = vadd.f32 %v3789_v13, %v3015_v8 }
 0x250   : > { %v3806_v15 = vpop.f32.mrb[8].mxu0 }
 0x251   : > { %v3807_v16 = vpop.f32.mrb[9].mxu0  ;;  %v3828_v19 = vpop.f32.mrb[8].mxu1 }
 0x252   : > { %v3808_v17 = vadd.f32 %v3807_v16, %v3806_v15  ;;  %v3809_v18 = vpop.f32.mrb[10].mxu0  ;;  %v3829_v23 = vpop.f32.mrb[9].mxu1 }
 0x253   : > { %v3810_v20 = vpop.f32.mrb[11].mxu0  ;;  %v3830_v24 = vadd.f32 %v3829_v23, %v3828_v19  ;;  %v3831_v25 = vpop.f32.mrb[10].mxu1 }
 0x254   : > { %v3094_v21 = vadd.f32 %v3808_v17, %v3053_v12  ;;  %v3811_v22 = vadd.f32 %v3810_v20, %v3809_v18  ;;  %v3832_v27 = vpop.f32.mrb[11].mxu1 }
 0x255   : > { %v3833_v29 = vadd.f32 %v3832_v27, %v3831_v25 }
 0x256   : > { %v3097_v26 = vadd.f32 %v3811_v22, %v3056_v14  ;;  %v3135_v28 = vadd.f32 %v3830_v24, %v3094_v21 }
 0x258   : > { %v3138_v30 = vadd.f32 %v3833_v29, %v3097_v26 }
 0x270   : > { %v3850_v31 = vpop.f32.mrb[12].mxu0 }
 0x271   : > { %v3851_v32 = vpop.f32.mrb[13].mxu0  ;;  %v3872_v35 = vpop.f32.mrb[12].mxu1 }
 0x272   : > { %v3852_v33 = vadd.f32 %v3851_v32, %v3850_v31  ;;  %v3853_v34 = vpop.f32.mrb[14].mxu0  ;;  %v3873_v39 = vpop.f32.mrb[13].mxu1 }
 0x273   : > { %v3854_v36 = vpop.f32.mrb[15].mxu0  ;;  %v3874_v40 = vadd.f32 %v3873_v39, %v3872_v35  ;;  %v3875_v41 = vpop.f32.mrb[14].mxu1 }
 0x274   : > { %v3176_v37 = vadd.f32 %v3852_v33, %v3135_v28  ;;  %v3855_v38 = vadd.f32 %v3854_v36, %v3853_v34  ;;  %v3876_v43 = vpop.f32.mrb[15].mxu1 }
 0x275   : > { %v3877_v45 = vadd.f32 %v3876_v43, %v3875_v41 }
 0x276   : > { %v3179_v42 = vadd.f32 %v3855_v38, %v3138_v30  ;;  %v3217_v44 = vadd.f32 %v3874_v40, %v3176_v37 }
 0x278   : > { %v3220_v46 = vadd.f32 %v3877_v45, %v3179_v42 }
 0x290   : > { %v3894_v47 = vpop.f32.mrb[16].mxu0 }
 0x291   : > { %v3895_v48 = vpop.f32.mrb[17].mxu0  ;;  %v3298_v49 = vpop.f32.mrb[16].mxu1 }
 0x292   : > { %v3896_v50 = vadd.f32 %v3895_v48, %v3894_v47  ;;  %v3897_v51 = vpop.f32.mrb[18].mxu0  ;;  %v3927_v52 = vpop.f32.mrb[17].mxu1 }
 0x293   : > { %v3898_v53 = vpop.f32.mrb[19].mxu0  ;;  %v3301_v54 = vpop.f32.mrb[18].mxu1 }
 0x294   : > { %v3258_v55 = vadd.f32 %v3896_v50, %v3217_v44  ;;  %v3899_v56 = vadd.f32 %v3898_v53, %v3897_v51  ;;  %v3928_v57 = vpop.f32.mrb[19].mxu1 }
 0x296   : > { %v3299_v59 = vadd.f32 %v3298_v49, %v3258_v55  ;;  %v3261_v60 = vadd.f32 %v3899_v56, %v3220_v46  ;;  %3312 = sbr.rel (%p3685_p5) target bundleno = 683 (0x2ab), region = 107 }
 0x298   : > { %v3305_v62 = vadd.f32 %v3299_v59, %v1561_v58  ;;  %v3302_v63 = vadd.f32 %v3301_v54, %v3261_v60 }
 0x29a   : > { %3307 = vst [vmem:[#allocation2] sm:$0xff] %v3305_v62  ;;  %v3306_v0 = vadd.f32 %v3302_v63, %v1562_v61 }
 0x29c   : > { %3308 = vst [vmem:[#allocation2 + $0x8] sm:$0xff] %v3306_v0 }
 0x2a1   : > { %v3313_v1 = vld [vmem:[#allocation2] sm:$0xff] }
 0x2a2   : > { %v3322_v4 = vadd.f32 %v3686_v3, %v3313_v1 }
 0x2a3   : > { %v3314_v2 = vld [vmem:[#allocation2 + $0x8] sm:$0xff] }
 0x2a4   : > { %v3323_v5 = vadd.f32 %v3686_v3, %v3314_v2  ;;  %v3324_v6 = vmax.f32 %v3322_v4, 0.0 }
 0x2a6   : > { %v3325_v7 = vmax.f32 %v3323_v5, 0.0 }
 0x2a8   : > { %v3700_v8 = vpack.c.bf16 %v3325_v7, %v3324_v6 }
 0x2aa   : > { %3701 = vst [vmem:[%s5102_s25] sm:$0xff] %v3700_v8  }
 0x2ab PF: > { %3342 = sbr.rel (!%p4409_p12) target bundleno = 691 (0x2b3), region = 111  ;;  %s3690_s14 = sshll.u32 (%p4409_p12), %s4278_s19, 2 }
 0x2ac   : > { %s3347_s5 = scalar_lea.vmem (%p4409_p12), %s5327_s3, %s3690_s14 }
 0x2b1   : > { %v3363_v9 = vld [vmem:[%s5102_s25] sm:$0xf] (%p4409_p12)  ;;  %v3365_v10 = vld [vmem:[%s5102_s25 + $0x4] sm:$0xf] (%p4409_p12) }
 0x2b2   : > { %3364 = vst [vmem:[%s3347_s5] sm:$0xf] %v3363_v9  ;;  %3366 = vst [vmem:[%s3347_s5 + $0x10] sm:$0xf] %v3365_v10 }
 0x2b3 PF: > { %s13_s22 = sadd.s32 1, %s4290_s22   ;;  %s5337_s25 = sld [smem:[#allocation6_spill]] }
 0x2b4   : > { %p10_p6 = scmp.ge.s32.totalorder %s13_s22, 10   ;;  %s5338_s12 = smov %s4254_s13 }
 0x2b5   : > { %s5339_s13 = smov %s4407_s9  ;;  %s5340_s14 = smov %s4262_s15 }
 0x2b6   : > { %s5341_s15 = smov %s4404_s8  ;;  %s5342_s16 = smov %s4270_s17 }
 0x2b7   : > { %s5343_s17 = smov %s4390_s30  ;;  %s5344_s18 = smov %s4282_s20 }
 0x2b8   : > { %s5345_s19 = smov %s4286_s21  ;;  %s5346_s20 = smov %s5349_s24 }
 0x2b9   : > { %s5347_s21 = smov %s5337_s25  ;;  %12 = sbr.rel (!%p10_p6) target bundleno = 9 (0x9), region = 200 }

</bundles_post_ra>
